<compile_context>
chip_gen: v7x
topology: tpu7x:2x2x1
jax: 0.10.0
libtpu: 0.0.40
codegen_flags: <defaults>
</compile_context>

<pallas_src>
import jax
import jax.numpy as jnp
from jax.experimental import pallas as pl
from jax.experimental.pallas import tpu as pltpu

EPS = 1e-5          # nn.LayerNorm default eps
K = 7               # depthwise kernel size
PAD = K // 2        # padding = 3


def _vpu_supports_bf16():
    """bf16 VALU exists on v6e/v7x; keep depthwise math in f32 on <= v5."""
    try:
        kind = jax.devices()[0].device_kind.lower()
    except Exception:
        return False
    return not any(t in kind for t in ("v2", "v3", "v4", "v5"))


def _round_up(v, m):
    return ((v + m - 1) // m) * m


# ----------------------------- Pallas kernel ------------------------------ #
def make_adapter_kernel(Bb, H, W, C, alpha):
    Hp = H + 2 * PAD
    # Sublane-aligned scratch width (16 covers both bf16 16-row and f32 8-row
    # sublane packing); the conv never reads past column W + 2*PAD - 1.
    Wpad = _round_up(W + 2 * PAD, 16)

    def kernel(x_ref, wdw_ref, bdw_ref, g1_ref, b1_ref, g2_ref, b2_ref,
               w1_ref, bp1_ref, w2_ref, bp2_ref, o_ref, ypad_ref):
        dwt = ypad_ref.dtype
        x = x_ref[...]                                     # (Bb, H, W, C) f32

        # ---- LayerNorm #1 on the interior only (f32) ----
        mu = jnp.mean(x, axis=-1, keepdims=True)
        xc = x - mu
        var = jnp.mean(xc * xc, axis=-1, keepdims=True)
        y = xc * jax.lax.rsqrt(var + EPS) * g1_ref[0] + b1_ref[0]

        # ---- build the zero-padded conv input in the VMEM scratch ----
        # 3 aligned full-width stores per step: top halo strip, interior rows
        # with left/right halos fused in, bottom halo strip.  Done every step
        # (not pid==0-gated) so megacore-sharding the batch axis stays safe.
        zero_strip = jnp.zeros((Bb, PAD, Wpad, C), dwt)
        ypad_ref[:, 0:PAD, :, :] = zero_strip
        ypad_ref[:, PAD + H:Hp, :, :] = zero_strip
        row_block = jnp.concatenate(
            [jnp.zeros((Bb, H, PAD, C), dwt),
             y.astype(dwt),
             jnp.zeros((Bb, H, Wpad - PAD - W, C), dwt)],
            axis=2)                                        # (Bb, H, Wpad, C)
        ypad_ref[:, PAD:PAD + H, :, :] = row_block

        # ---- depthwise 7x7 conv (groups == C) ----
        # Per dw: one sublane-realigned W-shift sliced straight off the scratch
        # ref and one contiguous (K, C) tap load (weights laid out [dw, dh, C]),
        # then a dwt partial sum over the 7 dh offsets and a single upcast-add
        # into the f32 accumulator.  Keeps live vregs small (no 49-tap hoist,
        # no whole-ypad value).
        acc = None
        for dw in range(K):
            taps_dw = wdw_ref[dw]                          # (K, C) in dwt
            y_dw = ypad_ref[:, :, dw:dw + W, :]            # (Bb, Hp, W, C)
            psum = y_dw[:, 0:H] * taps_dw[0]
            for dh in range(1, K):
                psum = psum + y_dw[:, dh:dh + H] * taps_dw[dh]
            contrib = psum.astype(jnp.float32)
            acc = contrib if acc is None else acc + contrib
        acc = acc + bdw_ref[0]                             # conv bias added once

        # ---- LayerNorm #2 (f32) ----
        mu2 = jnp.mean(acc, axis=-1, keepdims=True)
        ac = acc - mu2
        var2 = jnp.mean(ac * ac, axis=-1, keepdims=True)
        z = ac * jax.lax.rsqrt(var2 + EPS) * g2_ref[0] + b2_ref[0]

        # ---- 1x1 conv (C->Rp) + SiLU + 1x1 conv (Rp->C) on the MXU ----
        mmt = w1_ref.dtype
        z2 = z.reshape(Bb * H * W, C).astype(mmt)          # M = Bb*H*W rows
        h1 = jnp.dot(z2, w1_ref[...],
                     preferred_element_type=jnp.float32) + bp1_ref[0]
        h1 = h1 * jax.nn.sigmoid(h1)                       # SiLU
        p = jnp.dot(h1.astype(mmt), w2_ref[...],
                    preferred_element_type=jnp.float32) + bp2_ref[0]

        # ---- residual add (from the unpadded input: free view) ----
        # TODO(synk): DropPath with drop_prob > 0 (stochastic depth) not
        # implemented; drop_prob=0 (module default) is identity.
        res = x.reshape(Bb * H * W, C)
        o_ref[...] = (res + alpha * p).reshape(Bb, H * W, C).astype(o_ref.dtype)

    return kernel, Hp, Wpad


def _full_spec(arr):
    nd = arr.ndim
    return pl.BlockSpec(arr.shape, lambda b, _nd=nd: (0,) * _nd)


def _pick_block_b(B):
    # >= 2 grid steps keeps both v7x TensorCores busy; 2 images per step fills
    # the MXU M dim (2*h*w rows) while bounding the depthwise f32-accumulator
    # vreg footprint.
    if B % 2 == 0 and B >= 4:
        return 2
    return 1


# ------------------------------- wrapper ----------------------------------- #
def adapter_convnext_block(x, params, *, h, w, alpha=1.0,
                           block_b=None, dw_bf16=None, mm_bf16=True):
    """x: (B, 1 + h*w, C) tokens; returns same shape."""
    B, N, C = x.shape
    assert N == 1 + h * w
    (g1, b1, wdw, bdw, g2, b2, w1, bp1, w2, bp2) = params
    R = w1.shape[1]

    if dw_bf16 is None:
        dw_bf16 = _vpu_supports_bf16()
    dw_dtype = jnp.bfloat16 if dw_bf16 else jnp.float32
    mm_dtype = jnp.bfloat16 if mm_bf16 else jnp.float32

    Bb = _pick_block_b(B) if block_b is None else block_b
    assert B % Bb == 0, "batch must be divisible by the per-step image count"

    cls_tok = x[:, :1, :]
    # permute(0,2,1)->reshape(B,C,h,w)->NHWC-permute composes to a plain reshape.
    feat_nhwc = x[:, 1:, :].reshape(B, h, w, C)

    # Pad the rank dim to a lane-dense multiple of 128; exact because the extra
    # bias entries are 0 (silu(0)=0) and the extra rows of w2 are 0.
    Rp = ((max(R, 1) + 127) // 128) * 128
    w1p = jnp.zeros((C, Rp), mm_dtype).at[:, :R].set(w1.astype(mm_dtype))
    bp1p = jnp.zeros((1, Rp), jnp.float32).at[0, :R].set(bp1.astype(jnp.float32))
    w2p = jnp.zeros((Rp, C), mm_dtype).at[:R, :].set(w2.astype(mm_dtype))

    # Depthwise taps laid out [dw, dh, C] so the kernel reads the 7 taps of a
    # given dw with one contiguous load inside the dw loop (no 49-tap hoist).
    wdw_t = jnp.transpose(wdw, (1, 0, 2)).astype(dw_dtype)
    bdw2 = bdw.reshape(1, C).astype(jnp.float32)
    g1_2, b1_2 = g1.reshape(1, C), b1.reshape(1, C)
    g2_2, b2_2 = g2.reshape(1, C), b2.reshape(1, C)
    bp2_2 = bp2.reshape(1, C).astype(jnp.float32)

    kernel, Hp, Wpad = make_adapter_kernel(Bb, h, w, C, alpha)

    # TODO(synk): for very large h*w*C add an H-row grid axis with a 3-row halo
    # (size the strip against 64 MiB VMEM on v7x, 128 MiB on v5e/v6e).
    grid_spec = pltpu.PrefetchScalarGridSpec(
        num_scalar_prefetch=0,
        grid=(B // Bb,),
        in_specs=[
            pl.BlockSpec((Bb, h, w, C), lambda b: (b, 0, 0, 0)),
            _full_spec(wdw_t), _full_spec(bdw2),
            _full_spec(g1_2), _full_spec(b1_2),
            _full_spec(g2_2), _full_spec(b2_2),
            _full_spec(w1p), _full_spec(bp1p),
            _full_spec(w2p), _full_spec(bp2_2),
        ],
        out_specs=pl.BlockSpec((Bb, h * w, C), lambda b: (b, 0, 0)),
        scratch_shapes=[pltpu.VMEM((Bb, Hp, Wpad, C), dw_dtype)],
    )

    out = pl.pallas_call(
        kernel,
        out_shape=jax.ShapeDtypeStruct((B, h * w, C), jnp.float32),
        grid_spec=grid_spec,
        compiler_params=pltpu.CompilerParams(
            dimension_semantics=("parallel",),
        ),
    )(feat_nhwc, wdw_t, bdw2, g1_2, b1_2, g2_2, b2_2, w1p, bp1p, w2p, bp2_2)

    # Back to NCHW, then reproduce PyTorch's raw reshape (NO permute) exactly:
    # feature.reshape(B, -1, feature.shape[1]) on the contiguous NCHW tensor.
    # TODO(synk): for large deployments fuse the cls concat into the kernel
    # output (needs channel-interleaved token emission); kept in XLA here.
    feat_out_nchw = jnp.transpose(out.reshape(B, h, w, C), (0, 3, 1, 2))
    feat_tokens = feat_out_nchw.reshape(B, -1, C)
    return jnp.concatenate([cls_tok, feat_tokens], axis=1)


# ----------------------- deterministic parameter init ---------------------- #
def init_params(key, C, rank_scale=4):
    R = C // rank_scale                     # rank_type='low'
    ks = jax.random.split(key, 3)
    std = 0.02
    # trunc_normal_(std=0.02) approximated by a clipped normal
    tn = lambda k, shape: jnp.clip(
        jax.random.normal(k, shape) * std, -2 * std, 2 * std).astype(jnp.float32)
    g1 = jnp.ones((C,), jnp.float32)
    b1 = jnp.zeros((C,), jnp.float32)
    wdw = tn(ks[0], (K, K, C))              # wdw[i, j, c] == torch W[c, 0, i, j]
    bdw = jnp.zeros((C,), jnp.float32)
    g2 = jnp.ones((C,), jnp.float32)
    b2 = jnp.zeros((C,), jnp.float32)
    w1 = tn(ks[1], (C, R))                  # 1x1 conv C->R (as matmul weight)
    bp1 = jnp.zeros((R,), jnp.float32)
    w2 = tn(ks[2], (R, C))                  # 1x1 conv R->C
    bp2 = jnp.zeros((C,), jnp.float32)
    return (g1, b1, wdw, bdw, g2, b2, w1, bp1, w2, bp2)


# ------------------------- pure-JAX reference ------------------------------ #
def reference_forward(x, params, *, h, w, alpha=1.0):
    (g1, b1, wdw, bdw, g2, b2, w1, bp1, w2, bp2) = params
    B, N, C = x.shape
    cls_tok, feat_tok = x[:, :1, :], x[:, 1:, :]
    f_nchw = jnp.transpose(feat_tok, (0, 2, 1)).reshape(B, C, h, w)
    res = f_nchw
    fh = jnp.transpose(f_nchw, (0, 2, 3, 1))               # NHWC

    def ln(t, g, b):
        mu = t.mean(-1, keepdims=True)
        var = ((t - mu) ** 2).mean(-1, keepdims=True)
        return (t - mu) / jnp.sqrt(var + EPS) * g + b

    y = ln(fh, g1, b1)
    conv = jax.lax.conv_general_dilated(
        y, wdw.reshape(K, K, 1, C), (1, 1), 'SAME',
        dimension_numbers=('NHWC', 'HWIO', 'NHWC'),
        feature_group_count=C) + bdw
    z = ln(conv, g2, b2)
    h1 = z @ w1 + bp1
    h1 = h1 * jax.nn.sigmoid(h1)
    p = h1 @ w2 + bp2
    out_nhwc = jnp.transpose(res, (0, 2, 3, 1)) + alpha * p
    out_nchw = jnp.transpose(out_nhwc, (0, 3, 1, 2))
    feat_tokens = out_nchw.reshape(B, -1, C)                # raw reshape, as in torch
    return jnp.concatenate([cls_tok, feat_tokens], axis=1)


# ---------------------------------- main ----------------------------------- #
if __name__ == "__main__":
    key = jax.random.PRNGKey(0)
    B, C, h, w = 4, 128, 8, 8                # embed_dim=128, 8x8 spatial, 65 tokens
    kx, kp = jax.random.split(key)
    x = jax.random.normal(kx, (B, 1 + h * w, C), jnp.float32)
    params = init_params(kp, C, rank_scale=4)

    dw_bf16 = _vpu_supports_bf16()           # bf16 depthwise only on v6e/v7x
    mm_bf16 = True                           # bf16 MXU matmuls on all gens
    out = adapter_convnext_block(x, params, h=h, w=w, alpha=1.0,
                                 dw_bf16=dw_bf16, mm_bf16=mm_bf16)
    out = jax.block_until_ready(out)

    ref = reference_forward(x, params, h=h, w=w, alpha=1.0)
    err = float(jnp.max(jnp.abs(out - ref)))
    assert out.shape == x.shape
    tol = 5e-3 if (dw_bf16 or mm_bf16) else 1e-3   # f32 reference vs mixed precision
    if err < tol:
        print("KERNEL_OK")
    else:
        print(f"MISMATCH max_abs_err={err}")
</pallas_src>

<mosaic_0001>
module attributes {stable_mosaic.version = 11 : i64} {
  func.func @kernel(%arg0: i32, %arg1: memref<2x8x8x128xf32, #tpu.memory_space<vmem>>, %arg2: memref<7x7x128xbf16, #tpu.memory_space<vmem>>, %arg3: memref<1x128xf32, #tpu.memory_space<vmem>>, %arg4: memref<1x128xf32, #tpu.memory_space<vmem>>, %arg5: memref<1x128xf32, #tpu.memory_space<vmem>>, %arg6: memref<1x128xf32, #tpu.memory_space<vmem>>, %arg7: memref<1x128xf32, #tpu.memory_space<vmem>>, %arg8: memref<128x128xbf16, #tpu.memory_space<vmem>>, %arg9: memref<1x128xf32, #tpu.memory_space<vmem>>, %arg10: memref<128x128xbf16, #tpu.memory_space<vmem>>, %arg11: memref<1x128xf32, #tpu.memory_space<vmem>>, %arg12: memref<2x64x128xf32, #tpu.memory_space<vmem>>, %arg13: memref<2x14x16x128xbf16, #tpu.memory_space<vmem>>) attributes {dimension_semantics = [#tpu.dimension_semantics<parallel>], iteration_bounds = array<i64: 2>, scalar_prefetch = 0 : i64, scratch_operands = 1 : i64, tpu.core_type = #tpu.core_type<tc>, window_params = [{transform_indices = @transform_0, window_bounds = array<i64: 2, 8, 8, 128>}, {pipeline_mode = #tpu.pipeline_mode<synchronous>, transform_indices = @transform_1, window_bounds = array<i64: 7, 7, 128>}, {pipeline_mode = #tpu.pipeline_mode<synchronous>, transform_indices = @transform_2, window_bounds = array<i64: 1, 128>}, {pipeline_mode = #tpu.pipeline_mode<synchronous>, transform_indices = @transform_3, window_bounds = array<i64: 1, 128>}, {pipeline_mode = #tpu.pipeline_mode<synchronous>, transform_indices = @transform_4, window_bounds = array<i64: 1, 128>}, {pipeline_mode = #tpu.pipeline_mode<synchronous>, transform_indices = @transform_5, window_bounds = array<i64: 1, 128>}, {pipeline_mode = #tpu.pipeline_mode<synchronous>, transform_indices = @transform_6, window_bounds = array<i64: 1, 128>}, {pipeline_mode = #tpu.pipeline_mode<synchronous>, transform_indices = @transform_7, window_bounds = array<i64: 128, 128>}, {pipeline_mode = #tpu.pipeline_mode<synchronous>, transform_indices = @transform_8, window_bounds = array<i64: 1, 128>}, {pipeline_mode = #tpu.pipeline_mode<synchronous>, transform_indices = @transform_9, window_bounds = array<i64: 128, 128>}, {pipeline_mode = #tpu.pipeline_mode<synchronous>, transform_indices = @transform_10, window_bounds = array<i64: 1, 128>}, {transform_indices = @transform_11, window_bounds = array<i64: 2, 64, 128>}]} {
    %c0 = arith.constant 0 : index
    %c0_0 = arith.constant 0 : index
    %c0_1 = arith.constant 0 : index
    %c0_2 = arith.constant 0 : index
    %0 = vector.load %arg1[%c0, %c0_0, %c0_1, %c0_2] : memref<2x8x8x128xf32, #tpu.memory_space<vmem>>, vector<2x8x8x128xf32>
    %cst = arith.constant dense<0.000000e+00> : vector<2x8x8xf32>
    %1 = vector.multi_reduction <add>, %0, %cst [3] : vector<2x8x8x128xf32> to vector<2x8x8xf32>
    %2 = vector.shape_cast %1 : vector<2x8x8xf32> to vector<2x8x8x1xf32>
    %cst_3 = arith.constant 1.280000e+02 : f32
    %3 = vector.broadcast %cst_3 : f32 to vector<2x8x8x1xf32>
    %4 = arith.divf %2, %3 : vector<2x8x8x1xf32>
    %5 = vector.broadcast %4 : vector<2x8x8x1xf32> to vector<2x8x8x128xf32>
    %6 = arith.subf %0, %5 : vector<2x8x8x128xf32>
    %7 = arith.mulf %6, %6 : vector<2x8x8x128xf32>
    %cst_4 = arith.constant dense<0.000000e+00> : vector<2x8x8xf32>
    %8 = vector.multi_reduction <add>, %7, %cst_4 [3] : vector<2x8x8x128xf32> to vector<2x8x8xf32>
    %9 = vector.shape_cast %8 : vector<2x8x8xf32> to vector<2x8x8x1xf32>
    %cst_5 = arith.constant 1.280000e+02 : f32
    %10 = vector.broadcast %cst_5 : f32 to vector<2x8x8x1xf32>
    %11 = arith.divf %9, %10 : vector<2x8x8x1xf32>
    %cst_6 = arith.constant 9.99999974E-6 : f32
    %12 = vector.broadcast %cst_6 : f32 to vector<2x8x8x1xf32>
    %13 = arith.addf %11, %12 : vector<2x8x8x1xf32>
    %14 = math.rsqrt %13 : vector<2x8x8x1xf32>
    %15 = vector.broadcast %14 : vector<2x8x8x1xf32> to vector<2x8x8x128xf32>
    %16 = arith.mulf %6, %15 : vector<2x8x8x128xf32>
    %c0_7 = arith.constant 0 : index
    %c0_8 = arith.constant 0 : index
    %17 = vector.load %arg4[%c0_7, %c0_8] : memref<1x128xf32, #tpu.memory_space<vmem>>, vector<1x128xf32>
    %18 = vector.shape_cast %17 : vector<1x128xf32> to vector<128xf32>
    %19 = vector.shape_cast %18 : vector<128xf32> to vector<1x1x1x128xf32>
    %20 = vector.broadcast %19 : vector<1x1x1x128xf32> to vector<2x8x8x128xf32>
    %21 = arith.mulf %16, %20 : vector<2x8x8x128xf32>
    %c0_9 = arith.constant 0 : index
    %c0_10 = arith.constant 0 : index
    %22 = vector.load %arg5[%c0_9, %c0_10] : memref<1x128xf32, #tpu.memory_space<vmem>>, vector<1x128xf32>
    %23 = vector.shape_cast %22 : vector<1x128xf32> to vector<128xf32>
    %24 = vector.shape_cast %23 : vector<128xf32> to vector<1x1x1x128xf32>
    %25 = vector.broadcast %24 : vector<1x1x1x128xf32> to vector<2x8x8x128xf32>
    %26 = arith.addf %21, %25 : vector<2x8x8x128xf32>
    %cst_11 = arith.constant 0.000000e+00 : bf16
    %27 = vector.broadcast %cst_11 : bf16 to vector<2x3x16x128xbf16>
    %c0_12 = arith.constant 0 : index
    %c0_13 = arith.constant 0 : index
    %c0_14 = arith.constant 0 : index
    %c0_15 = arith.constant 0 : index
    %28 = vector.load %arg13[%c0_12, %c0_13, %c0_14, %c0_15] : memref<2x14x16x128xbf16, #tpu.memory_space<vmem>>, vector<2x3x16x128xbf16>
    tpu.vector_store %arg13[%c0_12, %c0_13, %c0_14, %c0_15], %27 {strides = array<i32>} : memref<2x14x16x128xbf16, #tpu.memory_space<vmem>>, vector<2x3x16x128xbf16>,
    %c0_16 = arith.constant 0 : index
    %c11 = arith.constant 11 : index
    %c0_17 = arith.constant 0 : index
    %c0_18 = arith.constant 0 : index
    %29 = vector.load %arg13[%c0_16, %c11, %c0_17, %c0_18] : memref<2x14x16x128xbf16, #tpu.memory_space<vmem>>, vector<2x3x16x128xbf16>
    tpu.vector_store %arg13[%c0_16, %c11, %c0_17, %c0_18], %27 {strides = array<i32>} : memref<2x14x16x128xbf16, #tpu.memory_space<vmem>>, vector<2x3x16x128xbf16>,
    %cst_19 = arith.constant 0.000000e+00 : bf16
    %30 = vector.broadcast %cst_19 : bf16 to vector<2x8x3x128xbf16>
    %31 = arith.truncf %26 : vector<2x8x8x128xf32> to vector<2x8x8x128xbf16>
    %cst_20 = arith.constant 0.000000e+00 : bf16
    %32 = vector.broadcast %cst_20 : bf16 to vector<2x8x5x128xbf16>
    %33 = tpu.concatenate %30, %31, %32 in 2 : vector<2x8x3x128xbf16>, vector<2x8x8x128xbf16>, vector<2x8x5x128xbf16> -> vector<2x8x16x128xbf16>
    %c0_21 = arith.constant 0 : index
    %c3 = arith.constant 3 : index
    %c0_22 = arith.constant 0 : index
    %c0_23 = arith.constant 0 : index
    %34 = vector.load %arg13[%c0_21, %c3, %c0_22, %c0_23] : memref<2x14x16x128xbf16, #tpu.memory_space<vmem>>, vector<2x8x16x128xbf16>
    tpu.vector_store %arg13[%c0_21, %c3, %c0_22, %c0_23], %33 {strides = array<i32>} : memref<2x14x16x128xbf16, #tpu.memory_space<vmem>>, vector<2x8x16x128xbf16>,
    %c0_24 = arith.constant 0 : index
    %c0_25 = arith.constant 0 : index
    %c0_26 = arith.constant 0 : index
    %35 = vector.load %arg2[%c0_24, %c0_25, %c0_26] : memref<7x7x128xbf16, #tpu.memory_space<vmem>>, vector<1x7x128xbf16>
    %36 = vector.shape_cast %35 : vector<1x7x128xbf16> to vector<7x128xbf16>
    %c0_27 = arith.constant 0 : index
    %c0_28 = arith.constant 0 : index
    %c0_29 = arith.constant 0 : index
    %c0_30 = arith.constant 0 : index
    %37 = vector.load %arg13[%c0_27, %c0_28, %c0_29, %c0_30] : memref<2x14x16x128xbf16, #tpu.memory_space<vmem>>, vector<2x14x8x128xbf16>
    %38 = vector.extract_strided_slice %37 {offsets = [0, 0, 0, 0], sizes = [2, 8, 8, 128], strides = [1, 1, 1, 1]} : vector<2x14x8x128xbf16> to vector<2x8x8x128xbf16>
    %39 = vector.extract_strided_slice %36 {offsets = [0, 0], sizes = [1, 128], strides = [1, 1]} : vector<7x128xbf16> to vector<1x128xbf16>
    %40 = vector.shape_cast %39 : vector<1x128xbf16> to vector<128xbf16>
    %41 = vector.shape_cast %40 : vector<128xbf16> to vector<1x1x1x128xbf16>
    %42 = vector.broadcast %41 : vector<1x1x1x128xbf16> to vector<2x8x8x128xbf16>
    %43 = arith.mulf %38, %42 : vector<2x8x8x128xbf16>
    %44 = vector.extract_strided_slice %37 {offsets = [0, 1, 0, 0], sizes = [2, 8, 8, 128], strides = [1, 1, 1, 1]} : vector<2x14x8x128xbf16> to vector<2x8x8x128xbf16>
    %45 = vector.extract_strided_slice %36 {offsets = [1, 0], sizes = [1, 128], strides = [1, 1]} : vector<7x128xbf16> to vector<1x128xbf16>
    %46 = vector.shape_cast %45 : vector<1x128xbf16> to vector<128xbf16>
    %47 = vector.shape_cast %46 : vector<128xbf16> to vector<1x1x1x128xbf16>
    %48 = vector.broadcast %47 : vector<1x1x1x128xbf16> to vector<2x8x8x128xbf16>
    %49 = arith.mulf %44, %48 : vector<2x8x8x128xbf16>
    %50 = arith.addf %43, %49 : vector<2x8x8x128xbf16>
    %51 = vector.extract_strided_slice %37 {offsets = [0, 2, 0, 0], sizes = [2, 8, 8, 128], strides = [1, 1, 1, 1]} : vector<2x14x8x128xbf16> to vector<2x8x8x128xbf16>
    %52 = vector.extract_strided_slice %36 {offsets = [2, 0], sizes = [1, 128], strides = [1, 1]} : vector<7x128xbf16> to vector<1x128xbf16>
    %53 = vector.shape_cast %52 : vector<1x128xbf16> to vector<128xbf16>
    %54 = vector.shape_cast %53 : vector<128xbf16> to vector<1x1x1x128xbf16>
    %55 = vector.broadcast %54 : vector<1x1x1x128xbf16> to vector<2x8x8x128xbf16>
    %56 = arith.mulf %51, %55 : vector<2x8x8x128xbf16>
    %57 = arith.addf %50, %56 : vector<2x8x8x128xbf16>
    %58 = vector.extract_strided_slice %37 {offsets = [0, 3, 0, 0], sizes = [2, 8, 8, 128], strides = [1, 1, 1, 1]} : vector<2x14x8x128xbf16> to vector<2x8x8x128xbf16>
    %59 = vector.extract_strided_slice %36 {offsets = [3, 0], sizes = [1, 128], strides = [1, 1]} : vector<7x128xbf16> to vector<1x128xbf16>
    %60 = vector.shape_cast %59 : vector<1x128xbf16> to vector<128xbf16>
    %61 = vector.shape_cast %60 : vector<128xbf16> to vector<1x1x1x128xbf16>
    %62 = vector.broadcast %61 : vector<1x1x1x128xbf16> to vector<2x8x8x128xbf16>
    %63 = arith.mulf %58, %62 : vector<2x8x8x128xbf16>
    %64 = arith.addf %57, %63 : vector<2x8x8x128xbf16>
    %65 = vector.extract_strided_slice %37 {offsets = [0, 4, 0, 0], sizes = [2, 8, 8, 128], strides = [1, 1, 1, 1]} : vector<2x14x8x128xbf16> to vector<2x8x8x128xbf16>
    %66 = vector.extract_strided_slice %36 {offsets = [4, 0], sizes = [1, 128], strides = [1, 1]} : vector<7x128xbf16> to vector<1x128xbf16>
    %67 = vector.shape_cast %66 : vector<1x128xbf16> to vector<128xbf16>
    %68 = vector.shape_cast %67 : vector<128xbf16> to vector<1x1x1x128xbf16>
    %69 = vector.broadcast %68 : vector<1x1x1x128xbf16> to vector<2x8x8x128xbf16>
    %70 = arith.mulf %65, %69 : vector<2x8x8x128xbf16>
    %71 = arith.addf %64, %70 : vector<2x8x8x128xbf16>
    %72 = vector.extract_strided_slice %37 {offsets = [0, 5, 0, 0], sizes = [2, 8, 8, 128], strides = [1, 1, 1, 1]} : vector<2x14x8x128xbf16> to vector<2x8x8x128xbf16>
    %73 = vector.extract_strided_slice %36 {offsets = [5, 0], sizes = [1, 128], strides = [1, 1]} : vector<7x128xbf16> to vector<1x128xbf16>
    %74 = vector.shape_cast %73 : vector<1x128xbf16> to vector<128xbf16>
    %75 = vector.shape_cast %74 : vector<128xbf16> to vector<1x1x1x128xbf16>
    %76 = vector.broadcast %75 : vector<1x1x1x128xbf16> to vector<2x8x8x128xbf16>
    %77 = arith.mulf %72, %76 : vector<2x8x8x128xbf16>
    %78 = arith.addf %71, %77 : vector<2x8x8x128xbf16>
    %79 = vector.extract_strided_slice %37 {offsets = [0, 6, 0, 0], sizes = [2, 8, 8, 128], strides = [1, 1, 1, 1]} : vector<2x14x8x128xbf16> to vector<2x8x8x128xbf16>
    %80 = vector.extract_strided_slice %36 {offsets = [6, 0], sizes = [1, 128], strides = [1, 1]} : vector<7x128xbf16> to vector<1x128xbf16>
    %81 = vector.shape_cast %80 : vector<1x128xbf16> to vector<128xbf16>
    %82 = vector.shape_cast %81 : vector<128xbf16> to vector<1x1x1x128xbf16>
    %83 = vector.broadcast %82 : vector<1x1x1x128xbf16> to vector<2x8x8x128xbf16>
    %84 = arith.mulf %79, %83 : vector<2x8x8x128xbf16>
    %85 = arith.addf %78, %84 : vector<2x8x8x128xbf16>
    %86 = arith.extf %85 : vector<2x8x8x128xbf16> to vector<2x8x8x128xf32>
    %c1 = arith.constant 1 : index
    %c0_31 = arith.constant 0 : index
    %c0_32 = arith.constant 0 : index
    %87 = vector.load %arg2[%c1, %c0_31, %c0_32] : memref<7x7x128xbf16, #tpu.memory_space<vmem>>, vector<1x7x128xbf16>
    %88 = vector.shape_cast %87 : vector<1x7x128xbf16> to vector<7x128xbf16>
    %c0_33 = arith.constant 0 : index
    %c0_34 = arith.constant 0 : index
    %c1_35 = arith.constant 1 : index
    %c0_36 = arith.constant 0 : index
    %89 = vector.load %arg13[%c0_33, %c0_34, %c1_35, %c0_36] : memref<2x14x16x128xbf16, #tpu.memory_space<vmem>>, vector<2x14x8x128xbf16>
    %90 = vector.extract_strided_slice %89 {offsets = [0, 0, 0, 0], sizes = [2, 8, 8, 128], strides = [1, 1, 1, 1]} : vector<2x14x8x128xbf16> to vector<2x8x8x128xbf16>
    %91 = vector.extract_strided_slice %88 {offsets = [0, 0], sizes = [1, 128], strides = [1, 1]} : vector<7x128xbf16> to vector<1x128xbf16>
    %92 = vector.shape_cast %91 : vector<1x128xbf16> to vector<128xbf16>
    %93 = vector.shape_cast %92 : vector<128xbf16> to vector<1x1x1x128xbf16>
    %94 = vector.broadcast %93 : vector<1x1x1x128xbf16> to vector<2x8x8x128xbf16>
    %95 = arith.mulf %90, %94 : vector<2x8x8x128xbf16>
    %96 = vector.extract_strided_slice %89 {offsets = [0, 1, 0, 0], sizes = [2, 8, 8, 128], strides = [1, 1, 1, 1]} : vector<2x14x8x128xbf16> to vector<2x8x8x128xbf16>
    %97 = vector.extract_strided_slice %88 {offsets = [1, 0], sizes = [1, 128], strides = [1, 1]} : vector<7x128xbf16> to vector<1x128xbf16>
    %98 = vector.shape_cast %97 : vector<1x128xbf16> to vector<128xbf16>
    %99 = vector.shape_cast %98 : vector<128xbf16> to vector<1x1x1x128xbf16>
    %100 = vector.broadcast %99 : vector<1x1x1x128xbf16> to vector<2x8x8x128xbf16>
    %101 = arith.mulf %96, %100 : vector<2x8x8x128xbf16>
    %102 = arith.addf %95, %101 : vector<2x8x8x128xbf16>
    %103 = vector.extract_strided_slice %89 {offsets = [0, 2, 0, 0], sizes = [2, 8, 8, 128], strides = [1, 1, 1, 1]} : vector<2x14x8x128xbf16> to vector<2x8x8x128xbf16>
    %104 = vector.extract_strided_slice %88 {offsets = [2, 0], sizes = [1, 128], strides = [1, 1]} : vector<7x128xbf16> to vector<1x128xbf16>
    %105 = vector.shape_cast %104 : vector<1x128xbf16> to vector<128xbf16>
    %106 = vector.shape_cast %105 : vector<128xbf16> to vector<1x1x1x128xbf16>
    %107 = vector.broadcast %106 : vector<1x1x1x128xbf16> to vector<2x8x8x128xbf16>
    %108 = arith.mulf %103, %107 : vector<2x8x8x128xbf16>
    %109 = arith.addf %102, %108 : vector<2x8x8x128xbf16>
    %110 = vector.extract_strided_slice %89 {offsets = [0, 3, 0, 0], sizes = [2, 8, 8, 128], strides = [1, 1, 1, 1]} : vector<2x14x8x128xbf16> to vector<2x8x8x128xbf16>
    %111 = vector.extract_strided_slice %88 {offsets = [3, 0], sizes = [1, 128], strides = [1, 1]} : vector<7x128xbf16> to vector<1x128xbf16>
    %112 = vector.shape_cast %111 : vector<1x128xbf16> to vector<128xbf16>
    %113 = vector.shape_cast %112 : vector<128xbf16> to vector<1x1x1x128xbf16>
    %114 = vector.broadcast %113 : vector<1x1x1x128xbf16> to vector<2x8x8x128xbf16>
    %115 = arith.mulf %110, %114 : vector<2x8x8x128xbf16>
    %116 = arith.addf %109, %115 : vector<2x8x8x128xbf16>
    %117 = vector.extract_strided_slice %89 {offsets = [0, 4, 0, 0], sizes = [2, 8, 8, 128], strides = [1, 1, 1, 1]} : vector<2x14x8x128xbf16> to vector<2x8x8x128xbf16>
    %118 = vector.extract_strided_slice %88 {offsets = [4, 0], sizes = [1, 128], strides = [1, 1]} : vector<7x128xbf16> to vector<1x128xbf16>
    %119 = vector.shape_cast %118 : vector<1x128xbf16> to vector<128xbf16>
    %120 = vector.shape_cast %119 : vector<128xbf16> to vector<1x1x1x128xbf16>
    %121 = vector.broadcast %120 : vector<1x1x1x128xbf16> to vector<2x8x8x128xbf16>
    %122 = arith.mulf %117, %121 : vector<2x8x8x128xbf16>
    %123 = arith.addf %116, %122 : vector<2x8x8x128xbf16>
    %124 = vector.extract_strided_slice %89 {offsets = [0, 5, 0, 0], sizes = [2, 8, 8, 128], strides = [1, 1, 1, 1]} : vector<2x14x8x128xbf16> to vector<2x8x8x128xbf16>
    %125 = vector.extract_strided_slice %88 {offsets = [5, 0], sizes = [1, 128], strides = [1, 1]} : vector<7x128xbf16> to vector<1x128xbf16>
    %126 = vector.shape_cast %125 : vector<1x128xbf16> to vector<128xbf16>
    %127 = vector.shape_cast %126 : vector<128xbf16> to vector<1x1x1x128xbf16>
    %128 = vector.broadcast %127 : vector<1x1x1x128xbf16> to vector<2x8x8x128xbf16>
    %129 = arith.mulf %124, %128 : vector<2x8x8x128xbf16>
    %130 = arith.addf %123, %129 : vector<2x8x8x128xbf16>
    %131 = vector.extract_strided_slice %89 {offsets = [0, 6, 0, 0], sizes = [2, 8, 8, 128], strides = [1, 1, 1, 1]} : vector<2x14x8x128xbf16> to vector<2x8x8x128xbf16>
    %132 = vector.extract_strided_slice %88 {offsets = [6, 0], sizes = [1, 128], strides = [1, 1]} : vector<7x128xbf16> to vector<1x128xbf16>
    %133 = vector.shape_cast %132 : vector<1x128xbf16> to vector<128xbf16>
    %134 = vector.shape_cast %133 : vector<128xbf16> to vector<1x1x1x128xbf16>
    %135 = vector.broadcast %134 : vector<1x1x1x128xbf16> to vector<2x8x8x128xbf16>
    %136 = arith.mulf %131, %135 : vector<2x8x8x128xbf16>
    %137 = arith.addf %130, %136 : vector<2x8x8x128xbf16>
    %138 = arith.extf %137 : vector<2x8x8x128xbf16> to vector<2x8x8x128xf32>
    %139 = arith.addf %86, %138 : vector<2x8x8x128xf32>
    %c2 = arith.constant 2 : index
    %c0_37 = arith.constant 0 : index
    %c0_38 = arith.constant 0 : index
    %140 = vector.load %arg2[%c2, %c0_37, %c0_38] : memref<7x7x128xbf16, #tpu.memory_space<vmem>>, vector<1x7x128xbf16>
    %141 = vector.shape_cast %140 : vector<1x7x128xbf16> to vector<7x128xbf16>
    %c0_39 = arith.constant 0 : index
    %c0_40 = arith.constant 0 : index
    %c2_41 = arith.constant 2 : index
    %c0_42 = arith.constant 0 : index
    %142 = vector.load %arg13[%c0_39, %c0_40, %c2_41, %c0_42] : memref<2x14x16x128xbf16, #tpu.memory_space<vmem>>, vector<2x14x8x128xbf16>
    %143 = vector.extract_strided_slice %142 {offsets = [0, 0, 0, 0], sizes = [2, 8, 8, 128], strides = [1, 1, 1, 1]} : vector<2x14x8x128xbf16> to vector<2x8x8x128xbf16>
    %144 = vector.extract_strided_slice %141 {offsets = [0, 0], sizes = [1, 128], strides = [1, 1]} : vector<7x128xbf16> to vector<1x128xbf16>
    %145 = vector.shape_cast %144 : vector<1x128xbf16> to vector<128xbf16>
    %146 = vector.shape_cast %145 : vector<128xbf16> to vector<1x1x1x128xbf16>
    %147 = vector.broadcast %146 : vector<1x1x1x128xbf16> to vector<2x8x8x128xbf16>
    %148 = arith.mulf %143, %147 : vector<2x8x8x128xbf16>
    %149 = vector.extract_strided_slice %142 {offsets = [0, 1, 0, 0], sizes = [2, 8, 8, 128], strides = [1, 1, 1, 1]} : vector<2x14x8x128xbf16> to vector<2x8x8x128xbf16>
    %150 = vector.extract_strided_slice %141 {offsets = [1, 0], sizes = [1, 128], strides = [1, 1]} : vector<7x128xbf16> to vector<1x128xbf16>
    %151 = vector.shape_cast %150 : vector<1x128xbf16> to vector<128xbf16>
    %152 = vector.shape_cast %151 : vector<128xbf16> to vector<1x1x1x128xbf16>
    %153 = vector.broadcast %152 : vector<1x1x1x128xbf16> to vector<2x8x8x128xbf16>
    %154 = arith.mulf %149, %153 : vector<2x8x8x128xbf16>
    %155 = arith.addf %148, %154 : vector<2x8x8x128xbf16>
    %156 = vector.extract_strided_slice %142 {offsets = [0, 2, 0, 0], sizes = [2, 8, 8, 128], strides = [1, 1, 1, 1]} : vector<2x14x8x128xbf16> to vector<2x8x8x128xbf16>
    %157 = vector.extract_strided_slice %141 {offsets = [2, 0], sizes = [1, 128], strides = [1, 1]} : vector<7x128xbf16> to vector<1x128xbf16>
    %158 = vector.shape_cast %157 : vector<1x128xbf16> to vector<128xbf16>
    %159 = vector.shape_cast %158 : vector<128xbf16> to vector<1x1x1x128xbf16>
    %160 = vector.broadcast %159 : vector<1x1x1x128xbf16> to vector<2x8x8x128xbf16>
    %161 = arith.mulf %156, %160 : vector<2x8x8x128xbf16>
    %162 = arith.addf %155, %161 : vector<2x8x8x128xbf16>
    %163 = vector.extract_strided_slice %142 {offsets = [0, 3, 0, 0], sizes = [2, 8, 8, 128], strides = [1, 1, 1, 1]} : vector<2x14x8x128xbf16> to vector<2x8x8x128xbf16>
    %164 = vector.extract_strided_slice %141 {offsets = [3, 0], sizes = [1, 128], strides = [1, 1]} : vector<7x128xbf16> to vector<1x128xbf16>
    %165 = vector.shape_cast %164 : vector<1x128xbf16> to vector<128xbf16>
    %166 = vector.shape_cast %165 : vector<128xbf16> to vector<1x1x1x128xbf16>
    %167 = vector.broadcast %166 : vector<1x1x1x128xbf16> to vector<2x8x8x128xbf16>
    %168 = arith.mulf %163, %167 : vector<2x8x8x128xbf16>
    %169 = arith.addf %162, %168 : vector<2x8x8x128xbf16>
    %170 = vector.extract_strided_slice %142 {offsets = [0, 4, 0, 0], sizes = [2, 8, 8, 128], strides = [1, 1, 1, 1]} : vector<2x14x8x128xbf16> to vector<2x8x8x128xbf16>
    %171 = vector.extract_strided_slice %141 {offsets = [4, 0], sizes = [1, 128], strides = [1, 1]} : vector<7x128xbf16> to vector<1x128xbf16>
    %172 = vector.shape_cast %171 : vector<1x128xbf16> to vector<128xbf16>
    %173 = vector.shape_cast %172 : vector<128xbf16> to vector<1x1x1x128xbf16>
    %174 = vector.broadcast %173 : vector<1x1x1x128xbf16> to vector<2x8x8x128xbf16>
    %175 = arith.mulf %170, %174 : vector<2x8x8x128xbf16>
    %176 = arith.addf %169, %175 : vector<2x8x8x128xbf16>
    %177 = vector.extract_strided_slice %142 {offsets = [0, 5, 0, 0], sizes = [2, 8, 8, 128], strides = [1, 1, 1, 1]} : vector<2x14x8x128xbf16> to vector<2x8x8x128xbf16>
    %178 = vector.extract_strided_slice %141 {offsets = [5, 0], sizes = [1, 128], strides = [1, 1]} : vector<7x128xbf16> to vector<1x128xbf16>
    %179 = vector.shape_cast %178 : vector<1x128xbf16> to vector<128xbf16>
    %180 = vector.shape_cast %179 : vector<128xbf16> to vector<1x1x1x128xbf16>
    %181 = vector.broadcast %180 : vector<1x1x1x128xbf16> to vector<2x8x8x128xbf16>
    %182 = arith.mulf %177, %181 : vector<2x8x8x128xbf16>
    %183 = arith.addf %176, %182 : vector<2x8x8x128xbf16>
    %184 = vector.extract_strided_slice %142 {offsets = [0, 6, 0, 0], sizes = [2, 8, 8, 128], strides = [1, 1, 1, 1]} : vector<2x14x8x128xbf16> to vector<2x8x8x128xbf16>
    %185 = vector.extract_strided_slice %141 {offsets = [6, 0], sizes = [1, 128], strides = [1, 1]} : vector<7x128xbf16> to vector<1x128xbf16>
    %186 = vector.shape_cast %185 : vector<1x128xbf16> to vector<128xbf16>
    %187 = vector.shape_cast %186 : vector<128xbf16> to vector<1x1x1x128xbf16>
    %188 = vector.broadcast %187 : vector<1x1x1x128xbf16> to vector<2x8x8x128xbf16>
    %189 = arith.mulf %184, %188 : vector<2x8x8x128xbf16>
    %190 = arith.addf %183, %189 : vector<2x8x8x128xbf16>
    %191 = arith.extf %190 : vector<2x8x8x128xbf16> to vector<2x8x8x128xf32>
    %192 = arith.addf %139, %191 : vector<2x8x8x128xf32>
    %c3_43 = arith.constant 3 : index
    %c0_44 = arith.constant 0 : index
    %c0_45 = arith.constant 0 : index
    %193 = vector.load %arg2[%c3_43, %c0_44, %c0_45] : memref<7x7x128xbf16, #tpu.memory_space<vmem>>, vector<1x7x128xbf16>
    %194 = vector.shape_cast %193 : vector<1x7x128xbf16> to vector<7x128xbf16>
    %c0_46 = arith.constant 0 : index
    %c0_47 = arith.constant 0 : index
    %c3_48 = arith.constant 3 : index
    %c0_49 = arith.constant 0 : index
    %195 = vector.load %arg13[%c0_46, %c0_47, %c3_48, %c0_49] : memref<2x14x16x128xbf16, #tpu.memory_space<vmem>>, vector<2x14x8x128xbf16>
    %196 = vector.extract_strided_slice %195 {offsets = [0, 0, 0, 0], sizes = [2, 8, 8, 128], strides = [1, 1, 1, 1]} : vector<2x14x8x128xbf16> to vector<2x8x8x128xbf16>
    %197 = vector.extract_strided_slice %194 {offsets = [0, 0], sizes = [1, 128], strides = [1, 1]} : vector<7x128xbf16> to vector<1x128xbf16>
    %198 = vector.shape_cast %197 : vector<1x128xbf16> to vector<128xbf16>
    %199 = vector.shape_cast %198 : vector<128xbf16> to vector<1x1x1x128xbf16>
    %200 = vector.broadcast %199 : vector<1x1x1x128xbf16> to vector<2x8x8x128xbf16>
    %201 = arith.mulf %196, %200 : vector<2x8x8x128xbf16>
    %202 = vector.extract_strided_slice %195 {offsets = [0, 1, 0, 0], sizes = [2, 8, 8, 128], strides = [1, 1, 1, 1]} : vector<2x14x8x128xbf16> to vector<2x8x8x128xbf16>
    %203 = vector.extract_strided_slice %194 {offsets = [1, 0], sizes = [1, 128], strides = [1, 1]} : vector<7x128xbf16> to vector<1x128xbf16>
    %204 = vector.shape_cast %203 : vector<1x128xbf16> to vector<128xbf16>
    %205 = vector.shape_cast %204 : vector<128xbf16> to vector<1x1x1x128xbf16>
    %206 = vector.broadcast %205 : vector<1x1x1x128xbf16> to vector<2x8x8x128xbf16>
    %207 = arith.mulf %202, %206 : vector<2x8x8x128xbf16>
    %208 = arith.addf %201, %207 : vector<2x8x8x128xbf16>
    %209 = vector.extract_strided_slice %195 {offsets = [0, 2, 0, 0], sizes = [2, 8, 8, 128], strides = [1, 1, 1, 1]} : vector<2x14x8x128xbf16> to vector<2x8x8x128xbf16>
    %210 = vector.extract_strided_slice %194 {offsets = [2, 0], sizes = [1, 128], strides = [1, 1]} : vector<7x128xbf16> to vector<1x128xbf16>
    %211 = vector.shape_cast %210 : vector<1x128xbf16> to vector<128xbf16>
    %212 = vector.shape_cast %211 : vector<128xbf16> to vector<1x1x1x128xbf16>
    %213 = vector.broadcast %212 : vector<1x1x1x128xbf16> to vector<2x8x8x128xbf16>
    %214 = arith.mulf %209, %213 : vector<2x8x8x128xbf16>
    %215 = arith.addf %208, %214 : vector<2x8x8x128xbf16>
    %216 = vector.extract_strided_slice %195 {offsets = [0, 3, 0, 0], sizes = [2, 8, 8, 128], strides = [1, 1, 1, 1]} : vector<2x14x8x128xbf16> to vector<2x8x8x128xbf16>
    %217 = vector.extract_strided_slice %194 {offsets = [3, 0], sizes = [1, 128], strides = [1, 1]} : vector<7x128xbf16> to vector<1x128xbf16>
    %218 = vector.shape_cast %217 : vector<1x128xbf16> to vector<128xbf16>
    %219 = vector.shape_cast %218 : vector<128xbf16> to vector<1x1x1x128xbf16>
    %220 = vector.broadcast %219 : vector<1x1x1x128xbf16> to vector<2x8x8x128xbf16>
    %221 = arith.mulf %216, %220 : vector<2x8x8x128xbf16>
    %222 = arith.addf %215, %221 : vector<2x8x8x128xbf16>
    %223 = vector.extract_strided_slice %195 {offsets = [0, 4, 0, 0], sizes = [2, 8, 8, 128], strides = [1, 1, 1, 1]} : vector<2x14x8x128xbf16> to vector<2x8x8x128xbf16>
    %224 = vector.extract_strided_slice %194 {offsets = [4, 0], sizes = [1, 128], strides = [1, 1]} : vector<7x128xbf16> to vector<1x128xbf16>
    %225 = vector.shape_cast %224 : vector<1x128xbf16> to vector<128xbf16>
    %226 = vector.shape_cast %225 : vector<128xbf16> to vector<1x1x1x128xbf16>
    %227 = vector.broadcast %226 : vector<1x1x1x128xbf16> to vector<2x8x8x128xbf16>
    %228 = arith.mulf %223, %227 : vector<2x8x8x128xbf16>
    %229 = arith.addf %222, %228 : vector<2x8x8x128xbf16>
    %230 = vector.extract_strided_slice %195 {offsets = [0, 5, 0, 0], sizes = [2, 8, 8, 128], strides = [1, 1, 1, 1]} : vector<2x14x8x128xbf16> to vector<2x8x8x128xbf16>
    %231 = vector.extract_strided_slice %194 {offsets = [5, 0], sizes = [1, 128], strides = [1, 1]} : vector<7x128xbf16> to vector<1x128xbf16>
    %232 = vector.shape_cast %231 : vector<1x128xbf16> to vector<128xbf16>
    %233 = vector.shape_cast %232 : vector<128xbf16> to vector<1x1x1x128xbf16>
    %234 = vector.broadcast %233 : vector<1x1x1x128xbf16> to vector<2x8x8x128xbf16>
    %235 = arith.mulf %230, %234 : vector<2x8x8x128xbf16>
    %236 = arith.addf %229, %235 : vector<2x8x8x128xbf16>
    %237 = vector.extract_strided_slice %195 {offsets = [0, 6, 0, 0], sizes = [2, 8, 8, 128], strides = [1, 1, 1, 1]} : vector<2x14x8x128xbf16> to vector<2x8x8x128xbf16>
    %238 = vector.extract_strided_slice %194 {offsets = [6, 0], sizes = [1, 128], strides = [1, 1]} : vector<7x128xbf16> to vector<1x128xbf16>
    %239 = vector.shape_cast %238 : vector<1x128xbf16> to vector<128xbf16>
    %240 = vector.shape_cast %239 : vector<128xbf16> to vector<1x1x1x128xbf16>
    %241 = vector.broadcast %240 : vector<1x1x1x128xbf16> to vector<2x8x8x128xbf16>
    %242 = arith.mulf %237, %241 : vector<2x8x8x128xbf16>
    %243 = arith.addf %236, %242 : vector<2x8x8x128xbf16>
    %244 = arith.extf %243 : vector<2x8x8x128xbf16> to vector<2x8x8x128xf32>
    %245 = arith.addf %192, %244 : vector<2x8x8x128xf32>
    %c4 = arith.constant 4 : index
    %c0_50 = arith.constant 0 : index
    %c0_51 = arith.constant 0 : index
    %246 = vector.load %arg2[%c4, %c0_50, %c0_51] : memref<7x7x128xbf16, #tpu.memory_space<vmem>>, vector<1x7x128xbf16>
    %247 = vector.shape_cast %246 : vector<1x7x128xbf16> to vector<7x128xbf16>
    %c0_52 = arith.constant 0 : index
    %c0_53 = arith.constant 0 : index
    %c4_54 = arith.constant 4 : index
    %c0_55 = arith.constant 0 : index
    %248 = vector.load %arg13[%c0_52, %c0_53, %c4_54, %c0_55] : memref<2x14x16x128xbf16, #tpu.memory_space<vmem>>, vector<2x14x8x128xbf16>
    %249 = vector.extract_strided_slice %248 {offsets = [0, 0, 0, 0], sizes = [2, 8, 8, 128], strides = [1, 1, 1, 1]} : vector<2x14x8x128xbf16> to vector<2x8x8x128xbf16>
    %250 = vector.extract_strided_slice %247 {offsets = [0, 0], sizes = [1, 128], strides = [1, 1]} : vector<7x128xbf16> to vector<1x128xbf16>
    %251 = vector.shape_cast %250 : vector<1x128xbf16> to vector<128xbf16>
    %252 = vector.shape_cast %251 : vector<128xbf16> to vector<1x1x1x128xbf16>
    %253 = vector.broadcast %252 : vector<1x1x1x128xbf16> to vector<2x8x8x128xbf16>
    %254 = arith.mulf %249, %253 : vector<2x8x8x128xbf16>
    %255 = vector.extract_strided_slice %248 {offsets = [0, 1, 0, 0], sizes = [2, 8, 8, 128], strides = [1, 1, 1, 1]} : vector<2x14x8x128xbf16> to vector<2x8x8x128xbf16>
    %256 = vector.extract_strided_slice %247 {offsets = [1, 0], sizes = [1, 128], strides = [1, 1]} : vector<7x128xbf16> to vector<1x128xbf16>
    %257 = vector.shape_cast %256 : vector<1x128xbf16> to vector<128xbf16>
    %258 = vector.shape_cast %257 : vector<128xbf16> to vector<1x1x1x128xbf16>
    %259 = vector.broadcast %258 : vector<1x1x1x128xbf16> to vector<2x8x8x128xbf16>
    %260 = arith.mulf %255, %259 : vector<2x8x8x128xbf16>
    %261 = arith.addf %254, %260 : vector<2x8x8x128xbf16>
    %262 = vector.extract_strided_slice %248 {offsets = [0, 2, 0, 0], sizes = [2, 8, 8, 128], strides = [1, 1, 1, 1]} : vector<2x14x8x128xbf16> to vector<2x8x8x128xbf16>
    %263 = vector.extract_strided_slice %247 {offsets = [2, 0], sizes = [1, 128], strides = [1, 1]} : vector<7x128xbf16> to vector<1x128xbf16>
    %264 = vector.shape_cast %263 : vector<1x128xbf16> to vector<128xbf16>
    %265 = vector.shape_cast %264 : vector<128xbf16> to vector<1x1x1x128xbf16>
    %266 = vector.broadcast %265 : vector<1x1x1x128xbf16> to vector<2x8x8x128xbf16>
    %267 = arith.mulf %262, %266 : vector<2x8x8x128xbf16>
    %268 = arith.addf %261, %267 : vector<2x8x8x128xbf16>
    %269 = vector.extract_strided_slice %248 {offsets = [0, 3, 0, 0], sizes = [2, 8, 8, 128], strides = [1, 1, 1, 1]} : vector<2x14x8x128xbf16> to vector<2x8x8x128xbf16>
    %270 = vector.extract_strided_slice %247 {offsets = [3, 0], sizes = [1, 128], strides = [1, 1]} : vector<7x128xbf16> to vector<1x128xbf16>
    %271 = vector.shape_cast %270 : vector<1x128xbf16> to vector<128xbf16>
    %272 = vector.shape_cast %271 : vector<128xbf16> to vector<1x1x1x128xbf16>
    %273 = vector.broadcast %272 : vector<1x1x1x128xbf16> to vector<2x8x8x128xbf16>
    %274 = arith.mulf %269, %273 : vector<2x8x8x128xbf16>
    %275 = arith.addf %268, %274 : vector<2x8x8x128xbf16>
    %276 = vector.extract_strided_slice %248 {offsets = [0, 4, 0, 0], sizes = [2, 8, 8, 128], strides = [1, 1, 1, 1]} : vector<2x14x8x128xbf16> to vector<2x8x8x128xbf16>
    %277 = vector.extract_strided_slice %247 {offsets = [4, 0], sizes = [1, 128], strides = [1, 1]} : vector<7x128xbf16> to vector<1x128xbf16>
    %278 = vector.shape_cast %277 : vector<1x128xbf16> to vector<128xbf16>
    %279 = vector.shape_cast %278 : vector<128xbf16> to vector<1x1x1x128xbf16>
    %280 = vector.broadcast %279 : vector<1x1x1x128xbf16> to vector<2x8x8x128xbf16>
    %281 = arith.mulf %276, %280 : vector<2x8x8x128xbf16>
    %282 = arith.addf %275, %281 : vector<2x8x8x128xbf16>
    %283 = vector.extract_strided_slice %248 {offsets = [0, 5, 0, 0], sizes = [2, 8, 8, 128], strides = [1, 1, 1, 1]} : vector<2x14x8x128xbf16> to vector<2x8x8x128xbf16>
    %284 = vector.extract_strided_slice %247 {offsets = [5, 0], sizes = [1, 128], strides = [1, 1]} : vector<7x128xbf16> to vector<1x128xbf16>
    %285 = vector.shape_cast %284 : vector<1x128xbf16> to vector<128xbf16>
    %286 = vector.shape_cast %285 : vector<128xbf16> to vector<1x1x1x128xbf16>
    %287 = vector.broadcast %286 : vector<1x1x1x128xbf16> to vector<2x8x8x128xbf16>
    %288 = arith.mulf %283, %287 : vector<2x8x8x128xbf16>
    %289 = arith.addf %282, %288 : vector<2x8x8x128xbf16>
    %290 = vector.extract_strided_slice %248 {offsets = [0, 6, 0, 0], sizes = [2, 8, 8, 128], strides = [1, 1, 1, 1]} : vector<2x14x8x128xbf16> to vector<2x8x8x128xbf16>
    %291 = vector.extract_strided_slice %247 {offsets = [6, 0], sizes = [1, 128], strides = [1, 1]} : vector<7x128xbf16> to vector<1x128xbf16>
    %292 = vector.shape_cast %291 : vector<1x128xbf16> to vector<128xbf16>
    %293 = vector.shape_cast %292 : vector<128xbf16> to vector<1x1x1x128xbf16>
    %294 = vector.broadcast %293 : vector<1x1x1x128xbf16> to vector<2x8x8x128xbf16>
    %295 = arith.mulf %290, %294 : vector<2x8x8x128xbf16>
    %296 = arith.addf %289, %295 : vector<2x8x8x128xbf16>
    %297 = arith.extf %296 : vector<2x8x8x128xbf16> to vector<2x8x8x128xf32>
    %298 = arith.addf %245, %297 : vector<2x8x8x128xf32>
    %c5 = arith.constant 5 : index
    %c0_56 = arith.constant 0 : index
    %c0_57 = arith.constant 0 : index
    %299 = vector.load %arg2[%c5, %c0_56, %c0_57] : memref<7x7x128xbf16, #tpu.memory_space<vmem>>, vector<1x7x128xbf16>
    %300 = vector.shape_cast %299 : vector<1x7x128xbf16> to vector<7x128xbf16>
    %c0_58 = arith.constant 0 : index
    %c0_59 = arith.constant 0 : index
    %c5_60 = arith.constant 5 : index
    %c0_61 = arith.constant 0 : index
    %301 = vector.load %arg13[%c0_58, %c0_59, %c5_60, %c0_61] : memref<2x14x16x128xbf16, #tpu.memory_space<vmem>>, vector<2x14x8x128xbf16>
    %302 = vector.extract_strided_slice %301 {offsets = [0, 0, 0, 0], sizes = [2, 8, 8, 128], strides = [1, 1, 1, 1]} : vector<2x14x8x128xbf16> to vector<2x8x8x128xbf16>
    %303 = vector.extract_strided_slice %300 {offsets = [0, 0], sizes = [1, 128], strides = [1, 1]} : vector<7x128xbf16> to vector<1x128xbf16>
    %304 = vector.shape_cast %303 : vector<1x128xbf16> to vector<128xbf16>
    %305 = vector.shape_cast %304 : vector<128xbf16> to vector<1x1x1x128xbf16>
    %306 = vector.broadcast %305 : vector<1x1x1x128xbf16> to vector<2x8x8x128xbf16>
    %307 = arith.mulf %302, %306 : vector<2x8x8x128xbf16>
    %308 = vector.extract_strided_slice %301 {offsets = [0, 1, 0, 0], sizes = [2, 8, 8, 128], strides = [1, 1, 1, 1]} : vector<2x14x8x128xbf16> to vector<2x8x8x128xbf16>
    %309 = vector.extract_strided_slice %300 {offsets = [1, 0], sizes = [1, 128], strides = [1, 1]} : vector<7x128xbf16> to vector<1x128xbf16>
    %310 = vector.shape_cast %309 : vector<1x128xbf16> to vector<128xbf16>
    %311 = vector.shape_cast %310 : vector<128xbf16> to vector<1x1x1x128xbf16>
    %312 = vector.broadcast %311 : vector<1x1x1x128xbf16> to vector<2x8x8x128xbf16>
    %313 = arith.mulf %308, %312 : vector<2x8x8x128xbf16>
    %314 = arith.addf %307, %313 : vector<2x8x8x128xbf16>
    %315 = vector.extract_strided_slice %301 {offsets = [0, 2, 0, 0], sizes = [2, 8, 8, 128], strides = [1, 1, 1, 1]} : vector<2x14x8x128xbf16> to vector<2x8x8x128xbf16>
    %316 = vector.extract_strided_slice %300 {offsets = [2, 0], sizes = [1, 128], strides = [1, 1]} : vector<7x128xbf16> to vector<1x128xbf16>
    %317 = vector.shape_cast %316 : vector<1x128xbf16> to vector<128xbf16>
    %318 = vector.shape_cast %317 : vector<128xbf16> to vector<1x1x1x128xbf16>
    %319 = vector.broadcast %318 : vector<1x1x1x128xbf16> to vector<2x8x8x128xbf16>
    %320 = arith.mulf %315, %319 : vector<2x8x8x128xbf16>
    %321 = arith.addf %314, %320 : vector<2x8x8x128xbf16>
    %322 = vector.extract_strided_slice %301 {offsets = [0, 3, 0, 0], sizes = [2, 8, 8, 128], strides = [1, 1, 1, 1]} : vector<2x14x8x128xbf16> to vector<2x8x8x128xbf16>
    %323 = vector.extract_strided_slice %300 {offsets = [3, 0], sizes = [1, 128], strides = [1, 1]} : vector<7x128xbf16> to vector<1x128xbf16>
    %324 = vector.shape_cast %323 : vector<1x128xbf16> to vector<128xbf16>
    %325 = vector.shape_cast %324 : vector<128xbf16> to vector<1x1x1x128xbf16>
    %326 = vector.broadcast %325 : vector<1x1x1x128xbf16> to vector<2x8x8x128xbf16>
    %327 = arith.mulf %322, %326 : vector<2x8x8x128xbf16>
    %328 = arith.addf %321, %327 : vector<2x8x8x128xbf16>
    %329 = vector.extract_strided_slice %301 {offsets = [0, 4, 0, 0], sizes = [2, 8, 8, 128], strides = [1, 1, 1, 1]} : vector<2x14x8x128xbf16> to vector<2x8x8x128xbf16>
    %330 = vector.extract_strided_slice %300 {offsets = [4, 0], sizes = [1, 128], strides = [1, 1]} : vector<7x128xbf16> to vector<1x128xbf16>
    %331 = vector.shape_cast %330 : vector<1x128xbf16> to vector<128xbf16>
    %332 = vector.shape_cast %331 : vector<128xbf16> to vector<1x1x1x128xbf16>
    %333 = vector.broadcast %332 : vector<1x1x1x128xbf16> to vector<2x8x8x128xbf16>
    %334 = arith.mulf %329, %333 : vector<2x8x8x128xbf16>
    %335 = arith.addf %328, %334 : vector<2x8x8x128xbf16>
    %336 = vector.extract_strided_slice %301 {offsets = [0, 5, 0, 0], sizes = [2, 8, 8, 128], strides = [1, 1, 1, 1]} : vector<2x14x8x128xbf16> to vector<2x8x8x128xbf16>
    %337 = vector.extract_strided_slice %300 {offsets = [5, 0], sizes = [1, 128], strides = [1, 1]} : vector<7x128xbf16> to vector<1x128xbf16>
    %338 = vector.shape_cast %337 : vector<1x128xbf16> to vector<128xbf16>
    %339 = vector.shape_cast %338 : vector<128xbf16> to vector<1x1x1x128xbf16>
    %340 = vector.broadcast %339 : vector<1x1x1x128xbf16> to vector<2x8x8x128xbf16>
    %341 = arith.mulf %336, %340 : vector<2x8x8x128xbf16>
    %342 = arith.addf %335, %341 : vector<2x8x8x128xbf16>
    %343 = vector.extract_strided_slice %301 {offsets = [0, 6, 0, 0], sizes = [2, 8, 8, 128], strides = [1, 1, 1, 1]} : vector<2x14x8x128xbf16> to vector<2x8x8x128xbf16>
    %344 = vector.extract_strided_slice %300 {offsets = [6, 0], sizes = [1, 128], strides = [1, 1]} : vector<7x128xbf16> to vector<1x128xbf16>
    %345 = vector.shape_cast %344 : vector<1x128xbf16> to vector<128xbf16>
    %346 = vector.shape_cast %345 : vector<128xbf16> to vector<1x1x1x128xbf16>
    %347 = vector.broadcast %346 : vector<1x1x1x128xbf16> to vector<2x8x8x128xbf16>
    %348 = arith.mulf %343, %347 : vector<2x8x8x128xbf16>
    %349 = arith.addf %342, %348 : vector<2x8x8x128xbf16>
    %350 = arith.extf %349 : vector<2x8x8x128xbf16> to vector<2x8x8x128xf32>
    %351 = arith.addf %298, %350 : vector<2x8x8x128xf32>
    %c6 = arith.constant 6 : index
    %c0_62 = arith.constant 0 : index
    %c0_63 = arith.constant 0 : index
    %352 = vector.load %arg2[%c6, %c0_62, %c0_63] : memref<7x7x128xbf16, #tpu.memory_space<vmem>>, vector<1x7x128xbf16>
    %353 = vector.shape_cast %352 : vector<1x7x128xbf16> to vector<7x128xbf16>
    %c0_64 = arith.constant 0 : index
    %c0_65 = arith.constant 0 : index
    %c6_66 = arith.constant 6 : index
    %c0_67 = arith.constant 0 : index
    %354 = vector.load %arg13[%c0_64, %c0_65, %c6_66, %c0_67] : memref<2x14x16x128xbf16, #tpu.memory_space<vmem>>, vector<2x14x8x128xbf16>
    %355 = vector.extract_strided_slice %354 {offsets = [0, 0, 0, 0], sizes = [2, 8, 8, 128], strides = [1, 1, 1, 1]} : vector<2x14x8x128xbf16> to vector<2x8x8x128xbf16>
    %356 = vector.extract_strided_slice %353 {offsets = [0, 0], sizes = [1, 128], strides = [1, 1]} : vector<7x128xbf16> to vector<1x128xbf16>
    %357 = vector.shape_cast %356 : vector<1x128xbf16> to vector<128xbf16>
    %358 = vector.shape_cast %357 : vector<128xbf16> to vector<1x1x1x128xbf16>
    %359 = vector.broadcast %358 : vector<1x1x1x128xbf16> to vector<2x8x8x128xbf16>
    %360 = arith.mulf %355, %359 : vector<2x8x8x128xbf16>
    %361 = vector.extract_strided_slice %354 {offsets = [0, 1, 0, 0], sizes = [2, 8, 8, 128], strides = [1, 1, 1, 1]} : vector<2x14x8x128xbf16> to vector<2x8x8x128xbf16>
    %362 = vector.extract_strided_slice %353 {offsets = [1, 0], sizes = [1, 128], strides = [1, 1]} : vector<7x128xbf16> to vector<1x128xbf16>
    %363 = vector.shape_cast %362 : vector<1x128xbf16> to vector<128xbf16>
    %364 = vector.shape_cast %363 : vector<128xbf16> to vector<1x1x1x128xbf16>
    %365 = vector.broadcast %364 : vector<1x1x1x128xbf16> to vector<2x8x8x128xbf16>
    %366 = arith.mulf %361, %365 : vector<2x8x8x128xbf16>
    %367 = arith.addf %360, %366 : vector<2x8x8x128xbf16>
    %368 = vector.extract_strided_slice %354 {offsets = [0, 2, 0, 0], sizes = [2, 8, 8, 128], strides = [1, 1, 1, 1]} : vector<2x14x8x128xbf16> to vector<2x8x8x128xbf16>
    %369 = vector.extract_strided_slice %353 {offsets = [2, 0], sizes = [1, 128], strides = [1, 1]} : vector<7x128xbf16> to vector<1x128xbf16>
    %370 = vector.shape_cast %369 : vector<1x128xbf16> to vector<128xbf16>
    %371 = vector.shape_cast %370 : vector<128xbf16> to vector<1x1x1x128xbf16>
    %372 = vector.broadcast %371 : vector<1x1x1x128xbf16> to vector<2x8x8x128xbf16>
    %373 = arith.mulf %368, %372 : vector<2x8x8x128xbf16>
    %374 = arith.addf %367, %373 : vector<2x8x8x128xbf16>
    %375 = vector.extract_strided_slice %354 {offsets = [0, 3, 0, 0], sizes = [2, 8, 8, 128], strides = [1, 1, 1, 1]} : vector<2x14x8x128xbf16> to vector<2x8x8x128xbf16>
    %376 = vector.extract_strided_slice %353 {offsets = [3, 0], sizes = [1, 128], strides = [1, 1]} : vector<7x128xbf16> to vector<1x128xbf16>
    %377 = vector.shape_cast %376 : vector<1x128xbf16> to vector<128xbf16>
    %378 = vector.shape_cast %377 : vector<128xbf16> to vector<1x1x1x128xbf16>
    %379 = vector.broadcast %378 : vector<1x1x1x128xbf16> to vector<2x8x8x128xbf16>
    %380 = arith.mulf %375, %379 : vector<2x8x8x128xbf16>
    %381 = arith.addf %374, %380 : vector<2x8x8x128xbf16>
    %382 = vector.extract_strided_slice %354 {offsets = [0, 4, 0, 0], sizes = [2, 8, 8, 128], strides = [1, 1, 1, 1]} : vector<2x14x8x128xbf16> to vector<2x8x8x128xbf16>
    %383 = vector.extract_strided_slice %353 {offsets = [4, 0], sizes = [1, 128], strides = [1, 1]} : vector<7x128xbf16> to vector<1x128xbf16>
    %384 = vector.shape_cast %383 : vector<1x128xbf16> to vector<128xbf16>
    %385 = vector.shape_cast %384 : vector<128xbf16> to vector<1x1x1x128xbf16>
    %386 = vector.broadcast %385 : vector<1x1x1x128xbf16> to vector<2x8x8x128xbf16>
    %387 = arith.mulf %382, %386 : vector<2x8x8x128xbf16>
    %388 = arith.addf %381, %387 : vector<2x8x8x128xbf16>
    %389 = vector.extract_strided_slice %354 {offsets = [0, 5, 0, 0], sizes = [2, 8, 8, 128], strides = [1, 1, 1, 1]} : vector<2x14x8x128xbf16> to vector<2x8x8x128xbf16>
    %390 = vector.extract_strided_slice %353 {offsets = [5, 0], sizes = [1, 128], strides = [1, 1]} : vector<7x128xbf16> to vector<1x128xbf16>
    %391 = vector.shape_cast %390 : vector<1x128xbf16> to vector<128xbf16>
    %392 = vector.shape_cast %391 : vector<128xbf16> to vector<1x1x1x128xbf16>
    %393 = vector.broadcast %392 : vector<1x1x1x128xbf16> to vector<2x8x8x128xbf16>
    %394 = arith.mulf %389, %393 : vector<2x8x8x128xbf16>
    %395 = arith.addf %388, %394 : vector<2x8x8x128xbf16>
    %396 = vector.extract_strided_slice %354 {offsets = [0, 6, 0, 0], sizes = [2, 8, 8, 128], strides = [1, 1, 1, 1]} : vector<2x14x8x128xbf16> to vector<2x8x8x128xbf16>
    %397 = vector.extract_strided_slice %353 {offsets = [6, 0], sizes = [1, 128], strides = [1, 1]} : vector<7x128xbf16> to vector<1x128xbf16>
    %398 = vector.shape_cast %397 : vector<1x128xbf16> to vector<128xbf16>
    %399 = vector.shape_cast %398 : vector<128xbf16> to vector<1x1x1x128xbf16>
    %400 = vector.broadcast %399 : vector<1x1x1x128xbf16> to vector<2x8x8x128xbf16>
    %401 = arith.mulf %396, %400 : vector<2x8x8x128xbf16>
    %402 = arith.addf %395, %401 : vector<2x8x8x128xbf16>
    %403 = arith.extf %402 : vector<2x8x8x128xbf16> to vector<2x8x8x128xf32>
    %404 = arith.addf %351, %403 : vector<2x8x8x128xf32>
    %c0_68 = arith.constant 0 : index
    %c0_69 = arith.constant 0 : index
    %405 = vector.load %arg3[%c0_68, %c0_69] : memref<1x128xf32, #tpu.memory_space<vmem>>, vector<1x128xf32>
    %406 = vector.shape_cast %405 : vector<1x128xf32> to vector<128xf32>
    %407 = vector.shape_cast %406 : vector<128xf32> to vector<1x1x1x128xf32>
    %408 = vector.broadcast %407 : vector<1x1x1x128xf32> to vector<2x8x8x128xf32>
    %409 = arith.addf %404, %408 : vector<2x8x8x128xf32>
    %cst_70 = arith.constant dense<0.000000e+00> : vector<2x8x8xf32>
    %410 = vector.multi_reduction <add>, %409, %cst_70 [3] : vector<2x8x8x128xf32> to vector<2x8x8xf32>
    %411 = vector.shape_cast %410 : vector<2x8x8xf32> to vector<2x8x8x1xf32>
    %cst_71 = arith.constant 1.280000e+02 : f32
    %412 = vector.broadcast %cst_71 : f32 to vector<2x8x8x1xf32>
    %413 = arith.divf %411, %412 : vector<2x8x8x1xf32>
    %414 = vector.broadcast %413 : vector<2x8x8x1xf32> to vector<2x8x8x128xf32>
    %415 = arith.subf %409, %414 : vector<2x8x8x128xf32>
    %416 = arith.mulf %415, %415 : vector<2x8x8x128xf32>
    %cst_72 = arith.constant dense<0.000000e+00> : vector<2x8x8xf32>
    %417 = vector.multi_reduction <add>, %416, %cst_72 [3] : vector<2x8x8x128xf32> to vector<2x8x8xf32>
    %418 = vector.shape_cast %417 : vector<2x8x8xf32> to vector<2x8x8x1xf32>
    %cst_73 = arith.constant 1.280000e+02 : f32
    %419 = vector.broadcast %cst_73 : f32 to vector<2x8x8x1xf32>
    %420 = arith.divf %418, %419 : vector<2x8x8x1xf32>
    %cst_74 = arith.constant 9.99999974E-6 : f32
    %421 = vector.broadcast %cst_74 : f32 to vector<2x8x8x1xf32>
    %422 = arith.addf %420, %421 : vector<2x8x8x1xf32>
    %423 = math.rsqrt %422 : vector<2x8x8x1xf32>
    %424 = vector.broadcast %423 : vector<2x8x8x1xf32> to vector<2x8x8x128xf32>
    %425 = arith.mulf %415, %424 : vector<2x8x8x128xf32>
    %c0_75 = arith.constant 0 : index
    %c0_76 = arith.constant 0 : index
    %426 = vector.load %arg6[%c0_75, %c0_76] : memref<1x128xf32, #tpu.memory_space<vmem>>, vector<1x128xf32>
    %427 = vector.shape_cast %426 : vector<1x128xf32> to vector<128xf32>
    %428 = vector.shape_cast %427 : vector<128xf32> to vector<1x1x1x128xf32>
    %429 = vector.broadcast %428 : vector<1x1x1x128xf32> to vector<2x8x8x128xf32>
    %430 = arith.mulf %425, %429 : vector<2x8x8x128xf32>
    %c0_77 = arith.constant 0 : index
    %c0_78 = arith.constant 0 : index
    %431 = vector.load %arg7[%c0_77, %c0_78] : memref<1x128xf32, #tpu.memory_space<vmem>>, vector<1x128xf32>
    %432 = vector.shape_cast %431 : vector<1x128xf32> to vector<128xf32>
    %433 = vector.shape_cast %432 : vector<128xf32> to vector<1x1x1x128xf32>
    %434 = vector.broadcast %433 : vector<1x1x1x128xf32> to vector<2x8x8x128xf32>
    %435 = arith.addf %430, %434 : vector<2x8x8x128xf32>
    %436 = vector.shape_cast %435 : vector<2x8x8x128xf32> to vector<128x128xf32>
    %437 = arith.truncf %436 : vector<128x128xf32> to vector<128x128xbf16>
    %c0_79 = arith.constant 0 : index
    %c0_80 = arith.constant 0 : index
    %438 = vector.load %arg8[%c0_79, %c0_80] : memref<128x128xbf16, #tpu.memory_space<vmem>>, vector<128x128xbf16>
    %cst_81 = arith.constant dense<0.000000e+00> : vector<128x128xf32>
    %439 = tpu.matmul %437, %438, %cst_81 {dimension_numbers = #tpu.dot_dimension_numbers<[1], [0], [0], [1], [0, 0, 1, 1], [], []>} : vector<128x128xbf16>, vector<128x128xbf16>, vector<128x128xf32> -> vector<128x128xf32>
    %c0_82 = arith.constant 0 : index
    %c0_83 = arith.constant 0 : index
    %440 = vector.load %arg9[%c0_82, %c0_83] : memref<1x128xf32, #tpu.memory_space<vmem>>, vector<1x128xf32>
    %441 = vector.shape_cast %440 : vector<1x128xf32> to vector<128xf32>
    %442 = vector.shape_cast %441 : vector<128xf32> to vector<1x128xf32>
    %443 = vector.broadcast %442 : vector<1x128xf32> to vector<128x128xf32>
    %444 = arith.addf %439, %443 : vector<128x128xf32>
    %445 = arith.negf %444 : vector<128x128xf32>
    %446 = math.exp %445 : vector<128x128xf32>
    %cst_84 = arith.constant 1.000000e+00 : f32
    %447 = vector.broadcast %cst_84 : f32 to vector<128x128xf32>
    %448 = arith.addf %447, %446 : vector<128x128xf32>
    %449 = arith.divf %447, %448 : vector<128x128xf32>
    %450 = arith.mulf %444, %449 : vector<128x128xf32>
    %451 = arith.truncf %450 : vector<128x128xf32> to vector<128x128xbf16>
    %c0_85 = arith.constant 0 : index
    %c0_86 = arith.constant 0 : index
    %452 = vector.load %arg10[%c0_85, %c0_86] : memref<128x128xbf16, #tpu.memory_space<vmem>>, vector<128x128xbf16>
    %cst_87 = arith.constant dense<0.000000e+00> : vector<128x128xf32>
    %453 = tpu.matmul %451, %452, %cst_87 {dimension_numbers = #tpu.dot_dimension_numbers<[1], [0], [0], [1], [0, 0, 1, 1], [], []>} : vector<128x128xbf16>, vector<128x128xbf16>, vector<128x128xf32> -> vector<128x128xf32>
    %c0_88 = arith.constant 0 : index
    %c0_89 = arith.constant 0 : index
    %454 = vector.load %arg11[%c0_88, %c0_89] : memref<1x128xf32, #tpu.memory_space<vmem>>, vector<1x128xf32>
    %455 = vector.shape_cast %454 : vector<1x128xf32> to vector<128xf32>
    %456 = vector.shape_cast %455 : vector<128xf32> to vector<1x128xf32>
    %457 = vector.broadcast %456 : vector<1x128xf32> to vector<128x128xf32>
    %458 = arith.addf %453, %457 : vector<128x128xf32>
    %459 = vector.shape_cast %0 : vector<2x8x8x128xf32> to vector<128x128xf32>
    %cst_90 = arith.constant 1.000000e+00 : f32
    %460 = vector.broadcast %cst_90 : f32 to vector<128x128xf32>
    %461 = arith.mulf %460, %458 : vector<128x128xf32>
    %462 = arith.addf %459, %461 : vector<128x128xf32>
    %463 = vector.shape_cast %462 : vector<128x128xf32> to vector<2x64x128xf32>
    %c0_91 = arith.constant 0 : index
    %c0_92 = arith.constant 0 : index
    %c0_93 = arith.constant 0 : index
    %464 = vector.load %arg12[%c0_91, %c0_92, %c0_93] : memref<2x64x128xf32, #tpu.memory_space<vmem>>, vector<2x64x128xf32>
    tpu.vector_store %arg12[%c0_91, %c0_92, %c0_93], %463 {strides = array<i32>} : memref<2x64x128xf32, #tpu.memory_space<vmem>>, vector<2x64x128xf32>,
    return
  }
  func.func @transform_0(%arg0: i32) -> (i32, i32, i32, i32) {
    %c0_i32 = arith.constant 0 : i32
    %c0_i32_0 = arith.constant 0 : i32
    %c0_i32_1 = arith.constant 0 : i32
    %c0_i32_2 = arith.constant 0 : i32
    return %arg0, %c0_i32, %c0_i32_0, %c0_i32_1 : i32, i32, i32, i32
  }
  func.func @transform_1(%arg0: i32) -> (i32, i32, i32) {
    %c0_i32 = arith.constant 0 : i32
    %c0_i32_0 = arith.constant 0 : i32
    %c0_i32_1 = arith.constant 0 : i32
    %c0_i32_2 = arith.constant 0 : i32
    return %c0_i32, %c0_i32_0, %c0_i32_1 : i32, i32, i32
  }
  func.func @transform_2(%arg0: i32) -> (i32, i32) {
    %c0_i32 = arith.constant 0 : i32
    %c0_i32_0 = arith.constant 0 : i32
    %c0_i32_1 = arith.constant 0 : i32
    return %c0_i32, %c0_i32_0 : i32, i32
  }
  func.func @transform_3(%arg0: i32) -> (i32, i32) {
    %c0_i32 = arith.constant 0 : i32
    %c0_i32_0 = arith.constant 0 : i32
    %c0_i32_1 = arith.constant 0 : i32
    return %c0_i32, %c0_i32_0 : i32, i32
  }
  func.func @transform_4(%arg0: i32) -> (i32, i32) {
    %c0_i32 = arith.constant 0 : i32
    %c0_i32_0 = arith.constant 0 : i32
    %c0_i32_1 = arith.constant 0 : i32
    return %c0_i32, %c0_i32_0 : i32, i32
  }
  func.func @transform_5(%arg0: i32) -> (i32, i32) {
    %c0_i32 = arith.constant 0 : i32
    %c0_i32_0 = arith.constant 0 : i32
    %c0_i32_1 = arith.constant 0 : i32
    return %c0_i32, %c0_i32_0 : i32, i32
  }
  func.func @transform_6(%arg0: i32) -> (i32, i32) {
    %c0_i32 = arith.constant 0 : i32
    %c0_i32_0 = arith.constant 0 : i32
    %c0_i32_1 = arith.constant 0 : i32
    return %c0_i32, %c0_i32_0 : i32, i32
  }
  func.func @transform_7(%arg0: i32) -> (i32, i32) {
    %c0_i32 = arith.constant 0 : i32
    %c0_i32_0 = arith.constant 0 : i32
    %c0_i32_1 = arith.constant 0 : i32
    return %c0_i32, %c0_i32_0 : i32, i32
  }
  func.func @transform_8(%arg0: i32) -> (i32, i32) {
    %c0_i32 = arith.constant 0 : i32
    %c0_i32_0 = arith.constant 0 : i32
    %c0_i32_1 = arith.constant 0 : i32
    return %c0_i32, %c0_i32_0 : i32, i32
  }
  func.func @transform_9(%arg0: i32) -> (i32, i32) {
    %c0_i32 = arith.constant 0 : i32
    %c0_i32_0 = arith.constant 0 : i32
    %c0_i32_1 = arith.constant 0 : i32
    return %c0_i32, %c0_i32_0 : i32, i32
  }
  func.func @transform_10(%arg0: i32) -> (i32, i32) {
    %c0_i32 = arith.constant 0 : i32
    %c0_i32_0 = arith.constant 0 : i32
    %c0_i32_1 = arith.constant 0 : i32
    return %c0_i32, %c0_i32_0 : i32, i32
  }
  func.func @transform_11(%arg0: i32) -> (i32, i32, i32) {
    %c0_i32 = arith.constant 0 : i32
    %c0_i32_0 = arith.constant 0 : i32
    %c0_i32_1 = arith.constant 0 : i32
    return %arg0, %c0_i32, %c0_i32_0 : i32, i32, i32
  }
}

</mosaic_0001>

<bundles_post_ra>
// kernel: tpu_custom_call.1
= control target key start
LH: loop header
LB: loop body
LE: loop exit
PB: predicated region body
PF: predicated region fallthrough
CT: control target
= control target key end

     0   :  { %s8545_s0 = inlined_call_operand.hbm [shape: f32[4,8,8,128], index: 0, kind: input, shape index: {}]   ;;  %s8546_s1 = inlined_call_operand.hbm [shape: bf16[7,7,128], index: 1, kind: input, shape index: {}]   ;;  %s8547_s2 = inlined_call_operand.vmem [shape: f32[1,128], index: 2, kind: input, shape index: {}]   ;;  %s8548_s3 = inlined_call_operand.vmem [shape: f32[1,128], index: 3, kind: input, shape index: {}]   ;;  %s8549_s4 = inlined_call_operand.vmem [shape: f32[1,128], index: 4, kind: input, shape index: {}]   ;;  %s8550_s5 = inlined_call_operand.vmem [shape: f32[1,128], index: 5, kind: input, shape index: {}]   ;;  %s8551_s6 = inlined_call_operand.vmem [shape: f32[1,128], index: 6, kind: input, shape index: {}]   ;;  %s8552_s7 = inlined_call_operand.hbm [shape: bf16[128,128], index: 7, kind: input, shape index: {}]   ;;  %s8553_s8 = inlined_call_operand.vmem [shape: f32[1,128], index: 8, kind: input, shape index: {}]   ;;  %s8554_s9 = inlined_call_operand.hbm [shape: bf16[128,128], index: 9, kind: input, shape index: {}]   ;;  %s8555_s10 = inlined_call_operand.vmem [shape: f32[1,128], index: 10, kind: input, shape index: {}]   ;;  %s8556_s11 = inlined_call_operand.hbm [shape: f32[4,64,128], index: 11, kind: output, shape index: {}]  }
   0x1   :  { %9037 = sst [smem:[#allocation105_spill]] %s8553_s8 }
   0x2   :  { %9038 = sst [smem:[#allocation106_spill]] %s8555_s10 }
   0x3   :  { %9039 = sst [smem:[#allocation107_spill]] %s8556_s11 }
   0x4   :  { %16 = vsyncpa [#allocation4], 0 }
   0x5   :  { %18 = vsyncpa [#allocation4 + $0x1], 0 }
   0x6   :  { %19 = vsyncpa [#allocation7], 0 }
   0x7   :  { %20 = vsyncpa [#allocation10], 0 }
   0x8   :  { %21 = vsyncpa [#allocation5], 0 }
   0x9   :  { %23 = vsyncpa [#allocation5 + $0x1], 0  ;;  %s5320_s17 = smov 0   ;;  %s5322_s18 = smov 0  }
   0xa   :  { %s5324_s19 = smov 0   ;;  %s5326_s20 = smov 0  }
   0xb LB: > { %9040 = sst [smem:[#allocation16_spill]] %s5234_s17  ;;  %s5341_s21 = sadd.s32 4294967295, %s5246_s20   ;;  %s5246_s20 = sphi %s5326_s20, %s10050_s20   ;;  %s5242_s19 = sphi %s5324_s19, %s10049_s19   ;;  %s5238_s18 = sphi %s5322_s18, %s10048_s18   ;;  %s5234_s17 = sphi %s5320_s17, %s10047_s17  }
   0xc   : > { %s4567_s22 = sadd.s32 4294967294, %s5246_s20   ;;  %p49_p0 = scmp.ne.s32.totalorder %s5238_s18, %s5234_s17 }
   0xd   : > { %p8558_p1 = scmp.eq.s32.totalorder %s5341_s21, 0  ;;  %p289_p3 = scmp.eq.s32.totalorder %s4567_s22, 1 }
   0xe   : > { %p4568_p5 = scmp.ge.s32.totalorder %s5246_s20, 1  ;;  %p296_p7 = scmp.lt.s32.totalorder %s5246_s20, 3 }
   0xf   : > { %p5350_p4 = por %p8558_p1, %p49_p0  ;;  %p5355_p6 = por %p289_p3, %p49_p0 }
  0x10   : > { %p5360_p8 = pnand %p4568_p5, %p296_p7  ;;  %s5248_s26 = smov [#allocation6]  }
  0x11   : > { %s9041_s23 = scalar_select %p5350_p4, 1, 0 }
  0x12   : > { %s9042_s24 = scalar_select %p5355_p6, 1, 0 }
  0x13   : > { %s9044_s25 = scalar_select %p5360_p8, 1, 0 }
  0x14   : > { %9043 = sst [smem:[#allocation17_spill]] %s9042_s24  ;;  %s308_s27 = sshll.u32 %s5248_s26, 4  ;;  %s5364_s27 = int_to_ptr.vmem [resolvable:$true] %s308_s27 }
  0x15   : > { %p4744_p9 = pneg %p5360_p8  ;;  %s5249_s29 = smov [#allocation8]  }
  0x16   : > { %s336_s30 = sshll.u32 %s5249_s29, 4  ;;  %s5250_s12 = smov [#allocation9]   ;;  %s5375_s30 = int_to_ptr.vmem [resolvable:$true] %s336_s30 }
  0x17   : > { %p5371_p11 = pnand %p4744_p9, %p8558_p1  ;;  %s5377_s13 = sshll.u32 %s5250_s12, 4  ;;  %s353_s13 = int_to_ptr.vmem [resolvable:$true] %s5377_s13 }
  0x18   : > { %s5058_s16 = scalar_lea.hbm %s8546_s1, 448 }
  0x19   : > { %p5059_p12 = scmp.ne.s32.totalorder %s8546_s1, %s5058_s16  ;;  %p5387_p13 = pneg %p5371_p11 }
  0x1a   : > { %p5065_p5 = scmp.lt.u32.totalorder %s5058_s16, %s8546_s1 }
  0x1b   : > { %p5061_p0 = pnand %p5387_p13, %p5059_p12 }
  0x1d   : > { %p5062_p3 = pneg %p5061_p0 }
  0x1f   : > { %p5067_p7 = pnand %p5065_p5, %p5062_p3 }
  0x21   : > { %5070 = shalt.err (!%p5067_p7)
}
  0x22   : > { %s5071_s14 = scalar_lea.vmem %s5364_s27, 448  ;;  %p5079_p2 = scmp.lt.s32.totalorder %s5364_s27, %s5364_s27 }
  0x23   : > { %p5072_p9 = scmp.ne.s32.totalorder %s5364_s27, %s5071_s14  ;;  %p5080_p6 = scmp.lt.s32.totalorder %s5071_s14, %s5071_s14 }
  0x25   : > { %p5074_p10 = pnand %p5072_p9, %p5387_p13  ;;  %p5081_p12 = por %p5080_p6, %p5079_p2 }
  0x27   : > { %p5075_p1 = pneg %p5074_p10 }
  0x29   : > { %p5082_p0 = pnand %p5081_p12, %p5075_p1 }
  0x2b   : > { %5085 = shalt.err (!%p5082_p0)
}
  0x2c   : > { %s5251_s15 = smov 64   ;;  %s5252_s16 = smov 4  }
  0x2d   : > { %4747 = dma.hbm_to_vmem [thread:$0]  (!%p5371_p11), %s8546_s1, 448, %s5364_s27, [#allocation7], %s5251_s15, %s5251_s15, %s5252_s16  }
  0x2e   : > { %s5086_s14 = scalar_lea.hbm %s8552_s7, 1024 }
  0x2f   : > { %p5087_p1 = scmp.ne.s32.totalorder %s8552_s7, %s5086_s14  ;;  %p5093_p10 = scmp.lt.u32.totalorder %s5086_s14, %s8552_s7 }
  0x31   : > { %p5089_p2 = pnand %p5087_p1, %p5387_p13 }
  0x33   : > { %p5090_p6 = pneg %p5089_p2 }
  0x35   : > { %p5095_p3 = pnand %p5093_p10, %p5090_p6 }
  0x37   : > { %5098 = shalt.err (!%p5095_p3)
}
  0x38   : > { %s5099_s27 = scalar_lea.vmem %s5375_s30, 1024  ;;  %p5107_p12 = scmp.lt.s32.totalorder %s5375_s30, %s5375_s30 }
  0x39   : > { %p5100_p5 = scmp.ne.s32.totalorder %s5375_s30, %s5099_s27  ;;  %p5108_p0 = scmp.lt.s32.totalorder %s5099_s27, %s5099_s27 }
  0x3b   : > { %p5102_p7 = pnand %p5100_p5, %p5387_p13  ;;  %p5109_p1 = por %p5108_p0, %p5107_p12 }
  0x3d   : > { %p5103_p9 = pneg %p5102_p7 }
  0x3f   : > { %p5110_p2 = pnand %p5109_p1, %p5103_p9 }
  0x41   : > { %5113 = shalt.err (!%p5110_p2)
}
  0x42   : > { %4750 = dma.hbm_to_vmem [thread:$0]  (!%p5371_p11), %s8552_s7, 1024, %s5375_s30, [#allocation7], %s5251_s15, %s5251_s15, %s5252_s16  }
  0x43   : > { %s5114_s22 = scalar_lea.hbm %s8554_s9, 1024 }
  0x44   : > { %p5115_p6 = scmp.ne.s32.totalorder %s8554_s9, %s5114_s22  ;;  %p5121_p5 = scmp.lt.u32.totalorder %s5114_s22, %s8554_s9 }
  0x46   : > { %p5117_p10 = pnand %p5115_p6, %p5387_p13 }
  0x48   : > { %p5118_p3 = pneg %p5117_p10 }
  0x4a   : > { %p5123_p7 = pnand %p5121_p5, %p5118_p3 }
  0x4c   : > { %5126 = shalt.err (!%p5123_p7)
}
  0x4d   : > { %s5127_s27 = scalar_lea.vmem %s353_s13, 1024  ;;  %p5135_p1 = scmp.lt.s32.totalorder %s353_s13, %s353_s13 }
  0x4e   : > { %p5128_p9 = scmp.ne.s32.totalorder %s353_s13, %s5127_s27  ;;  %p5136_p2 = scmp.lt.s32.totalorder %s5127_s27, %s5127_s27 }
  0x50   : > { %p5130_p12 = pnand %p5128_p9, %p5387_p13  ;;  %p5137_p4 = por %p5136_p2, %p5135_p1 }
  0x52   : > { %p5131_p0 = pneg %p5130_p12 }
  0x54   : > { %p5138_p8 = pnand %p5137_p4, %p5131_p0 }
  0x56   : > { %5141 = shalt.err (!%p5138_p8)
}
  0x57   : > { %4753 = dma.hbm_to_vmem [thread:$0]  (!%p5371_p11), %s8554_s9, 1024, %s353_s13, [#allocation10], %s5251_s15, %s5251_s15, %s5252_s16  }
  0x58   : > { %s5460_s24 = sadd.s32 1, %s5246_s20   ;;  %s36_s10 = sadd.s32 1, %s5242_s19 }
  0x59   : > { %s33_s28 = ssub.s32 %s5246_s20, %s5460_s24  ;;  %p43_p8 = scmp.ne.s32.totalorder %s5242_s19, %s5238_s18 }
  0x5a   : > { %p34_p4 = scmp.eq.s32.totalorder %s33_s28, 0  ;;  %p44_p13 = scmp.eq.s32.totalorder %s5246_s20, 0 }
  0x5b   : > { %p4765_p6 = scmp.lt.s32.totalorder %s5246_s20, 2  ;;  %p9047_p3 = scmp.eq.s32.totalorder %s5341_s21, 1 }
  0x5c   : > { %s5470_s11 = scalar_select %p34_p4, %s5242_s19, %s36_s10  }
  0x5d   : > { %p45_p10 = por %p44_p13, %p43_p8  ;;  %p5474_p5 = por %p9047_p3, %p43_p8 }
  0x5e   : > { %s369_s22 = sand.u32 1, %s5242_s19   ;;  %s4629_s26 = sshll.u32 %s5246_s20, 11 }
  0x5f   : > { %s4573_s13 = sshll.u32 %s369_s22, 7  ;;  %s5483_s29 = scalar_lea.hbm %s8545_s0, %s4629_s26 }
  0x60   : > { %s373_s12 = scalar_lea.vmem [#allocation3], %s4573_s13  ;;  %p5485_p11 = pnand %p4765_p6, %p45_p10 }
  0x61   : > { %s381_s14 = sshll.u32 %s373_s12, 4  ;;  %s5491_s30 = scalar_lea.sflag [#allocation4], %s369_s22  ;;  %s5489_s14 = int_to_ptr.vmem [resolvable:$true] %s381_s14 }
  0x62   : > { %s5142_s8 = scalar_lea.hbm %s5483_s29, 2048  ;;  %p5144_p9 = pneg %p5485_p11 }
  0x63   : > { %p5143_p7 = scmp.ne.s32.totalorder %s5483_s29, %s5142_s8  ;;  %s5147_s26 = scalar_lea.hbm %s8545_s0, 4096 }
  0x64   : > { %p5148_p1 = scmp.lt.u32.totalorder %s5483_s29, %s8545_s0  ;;  %p5149_p2 = scmp.lt.u32.totalorder %s5147_s26, %s5142_s8 }
  0x65   : > { %p5145_p12 = pnand %p5144_p9, %p5143_p7  ;;  %p5151_p8 = scmp.lt.u32.totalorder %s5142_s8, %s5483_s29 }
  0x66   : > { %p5150_p4 = por %p5149_p2, %p5148_p1 }
  0x67   : > { %p5146_p0 = pneg %p5145_p12 }
  0x68   : > { %p5152_p13 = por %p5151_p8, %p5150_p4 }
  0x6a   : > { %p5153_p6 = pnand %p5152_p13, %p5146_p0 }
  0x6c   : > { %5156 = shalt.err (!%p5153_p6)
}
  0x6d   : > { %s5157_s22 = scalar_lea.vmem %s5489_s14, 2048  ;;  %s5253_s16 = smov [#allocation3]  }
  0x6e   : > { %p5158_p10 = scmp.ne.s32.totalorder %s5489_s14, %s5157_s22  ;;  %s5162_s12 = sshll.u32 %s5253_s16, 4  ;;  %s5163_s12 = int_to_ptr.vmem [resolvable:$false] %s5162_s12 }
  0x6f   : > { %s5164_s28 = scalar_lea.vmem %s5163_s12, 4096  ;;  %p5165_p12 = scmp.lt.s32.totalorder %s5489_s14, %s5163_s12 }
  0x70   : > { %p5160_p3 = pnand %p5158_p10, %p5144_p9  ;;  %p5166_p1 = scmp.lt.s32.totalorder %s5164_s28, %s5157_s22 }
  0x72   : > { %p5161_p7 = pneg %p5160_p3  ;;  %p5167_p2 = por %p5166_p1, %p5165_p12 }
  0x74   : > { %p5168_p4 = pnand %p5167_p2, %p5161_p7 }
  0x76   : > { %5171 = shalt.err (!%p5168_p4)
}
  0x77   : > { %s5254_s8 = smov 128   ;;  %s5255_s10 = smov 8  }
  0x78   : > { %4757 = dma.hbm_to_vmem [thread:$0]  (!%p5485_p11), %s5483_s29, 2048, %s5489_s14, %s5491_s30, %s5254_s8, %s5254_s8, %s5255_s10  }
  0x79   : > { %p9050_p9 = scmp.ne.s32.totalorder %s9044_s25, 0 }
  0x7b   : > { %393 = sbr.rel (%p9050_p9) target bundleno = 1825 (0x721), region = 64 }
  0x82   : > { %s5522_s26 = sand.u32 1, %s5238_s18   ;;  %p9051_p0 = scmp.ne.s32.totalorder %s9041_s23, 0 }
  0x83   : > { %s4578_s13 = sshll.u32 %s5522_s26, 7  ;;  %s396_s15 = scalar_lea.sflag [#allocation4], %s5522_s26 }
  0x84   : > { %s5528_s22 = scalar_lea.vmem [#allocation3], %s4578_s13 }
  0x85   : > { %5217 = dma.done.wait (%p9051_p0), %s396_s15, 2048  }
  0x86   : > { %5219 = vsyncadd (%p9051_p0), %s396_s15, 4294965248  ;;  %p9052_p11 = scmp.eq.s32.totalorder %s5341_s21, 0 }
  0x88   : > { %5221 = dma.done.wait (%p9052_p11), [#allocation7], 1472   ;;  %p9053_p8 = pmov %p9052_p11 }
  0x8a   : > { %5223 = vsyncadd (%p9053_p8), [#allocation7], 4294965824  ;;  %p9054_p13 = pmov %p9053_p8 }
  0x8b   : > { %p9055_p6 = pmov %p9053_p8 }
  0x8c   : > { %5225 = dma.done.wait (%p9054_p13), [#allocation10], 1024  }
  0x8d   : > { %5227 = vsyncadd (%p9055_p6), [#allocation10], 4294966272  ;;  %v453_v0 = vld [vmem:[%s5528_s22] sm:$0xff]  ;;  %v455_v1 = vld [vmem:[%s5528_s22 + $0x10] sm:$0xff]  ;;  %vm865_vm0 = vcmask 1041408   ;;  %vm884_vm2 = vcmask 1045504  }
  0x8e   : > { %469 = vadd.xlane.f32.xlu0 %v453_v0  ;;  %473 = vadd.xlane.f32.xlu1 %v455_v1  ;;  %v454_v2 = vld [vmem:[%s5528_s22 + $0x8] sm:$0xff]  ;;  %v456_v3 = vld [vmem:[%s5528_s22 + $0x18] sm:$0xff]  ;;  %v457_v4 = vld [vmem:[%s5528_s22 + $0x20] sm:$0xff]  ;;  %vm866_vm1 = vsmask.f32 1280  ;;  %vm1543_vm6 = vcmask 1046528  }
  0x8f   : > { %v458_v5 = vld [vmem:[%s5528_s22 + $0x28] sm:$0xff]  ;;  %v459_v6 = vld [vmem:[%s5528_s22 + $0x30] sm:$0xff]  ;;  %v460_v7 = vld [vmem:[%s5528_s22 + $0x38] sm:$0xff]  ;;  %vm885_vm3 = vsmask.f32 5376  ;;  %vm2377_vm7 = vcmask 1044480  }
  0x90   : > { %v461_v8 = vld [vmem:[%s5528_s22 + $0x40] sm:$0xff]  ;;  %v462_v9 = vld [vmem:[%s5528_s22 + $0x48] sm:$0xff]  ;;  %v463_v10 = vld [vmem:[%s5528_s22 + $0x50] sm:$0xff]  ;;  %vm2794_vm8 = vcmask 1043456   ;;  %vm3211_vm9 = vcmask 1042432   ;;  %s10040_s16 = sld [smem:[#allocation105_spill]] }
  0x91   : > { %v5554_v11 = vld [vmem:[%s5528_s22 + $0x58] sm:$0xff]  ;;  %v5558_v12 = vld [vmem:[%s5528_s22 + $0x60] sm:$0xff]  ;;  %v5561_v13 = vld [vmem:[%s5528_s22 + $0x68] sm:$0xff]  ;;  %s10041_s8 = sld [smem:[#allocation106_spill]]  ;;  %s8450_s10 = scalar_lea.vmem [#allocation11], %s4578_s13 }
  0x92   : > { %471 = vadd.xlane.f32.xlu0 %v454_v2  ;;  %475 = vadd.xlane.f32.xlu1 %v456_v3  ;;  %v5566_v14 = vld [vmem:[%s5528_s22 + $0x70] sm:$0xff]  ;;  %v5569_v15 = vld [vmem:[%s5528_s22 + $0x78] sm:$0xff]  ;;  %vm6035_vm4 = vmand %vm865_vm0, %vm866_vm1  ;;  %s4631_s13 = sshll.u32 %s5341_s21, 11  ;;  %s4465_s15 = sshll.u32 %s8450_s10, 4  ;;  %s8497_s15 = int_to_ptr.vmem [resolvable:$true] %s4465_s15 }
  0x93   : > { %vm6044_vm5 = vmand %vm884_vm2, %vm885_vm3  ;;  %s10042_s21 = sld [smem:[#allocation107_spill]]  ;;  %s4451_s14 = scalar_lea.sflag [#allocation5], %s5522_s26 }
  0x94   : > { %s5172_s27 = scalar_lea.vmem %s8497_s15, 2048  ;;  %s5257_s30 = smov [#allocation11]  }
  0x95   : > { %p5173_p10 = scmp.ne.s32.totalorder %s8497_s15, %s5172_s27 }
  0x96   : > { %477 = vadd.xlane.f32.xlu0 %v457_v4  ;;  %479 = vadd.xlane.f32.xlu1 %v458_v5 }
  0x97   : > { %p5174_p3 = pnand %p5173_p10, %p5474_p5 }
  0x99   : > { %s8495_s29 = scalar_lea.hbm %s10042_s21, %s4631_s13  ;;  %p5175_p7 = pneg %p5174_p3 }
  0x9a   : > { %481 = vadd.xlane.f32.xlu0 %v459_v6  ;;  %483 = vadd.xlane.f32.xlu1 %v460_v7 }
  0x9e   : > { %485 = vadd.xlane.f32.xlu0 %v461_v8  ;;  %487 = vadd.xlane.f32.xlu1 %v462_v9 }
  0xa2   : > { %489 = vadd.xlane.f32.xlu0 %v463_v10  ;;  %491 = vadd.xlane.f32.xlu1 %v5554_v11 }
  0xa6   : > { %493 = vadd.xlane.f32.xlu0 %v5558_v12  ;;  %495 = vadd.xlane.f32.xlu1 %v5561_v13 }
  0xaa   : > { %497 = vadd.xlane.f32.xlu0 %v5566_v14  ;;  %499 = vadd.xlane.f32.xlu1 %v5569_v15 }
 0x11b   : > { %v470_v16 = vpop.xlane.xlu0 %469  ;;  %v474_v17 = vpop.xlane.xlu1 %473 }
 0x11c   : > { %v502_v18 = vmul.f32 0.0078125, %v470_v16  ;;  %v504_v19 = vmul.f32 0.0078125, %v474_v17 }
 0x11e   : > { %v5573_v20 = vsub.f32 %v453_v0, %v502_v18  ;;  %v5575_v21 = vsub.f32 %v455_v1, %v504_v19  ;;  %v5256_v18 = vmov 0   ;;  %v1208_v19 = vld [vmem:[#allocation6 + $0x4] sm:$0xf] }
 0x11f   : > { %v472_v22 = vpop.xlane.xlu0 %471  ;;  %v476_v23 = vpop.xlane.xlu1 %475  ;;  %692 = vst [vmem:[#allocation2] sm:$0xff] %v5256_v18  ;;  %693 = vst [vmem:[#allocation2 + $0x8] sm:$0xff] %v5256_v18 }
 0x120   : > { %v503_v24 = vmul.f32 0.0078125, %v472_v22  ;;  %v534_v25 = vmul.f32 %v5573_v20, %v5573_v20  ;;  %v505_v26 = vmul.f32 0.0078125, %v476_v23  ;;  %v536_v29 = vmul.f32 %v5575_v21, %v5575_v21  ;;  %694 = vst [vmem:[#allocation2 + $0x10] sm:$0xff] %v5256_v18  ;;  %695 = vst [vmem:[#allocation2 + $0x70] sm:$0xff] %v5256_v18 }
 0x121   : > { %696 = vst [vmem:[#allocation2 + $0x78] sm:$0xff] %v5256_v18  ;;  %697 = vst [vmem:[#allocation2 + $0x80] sm:$0xff] %v5256_v18 }
 0x122   : > { %v5579_v27 = vsub.f32 %v454_v2, %v503_v24  ;;  %550 = vadd.xlane.f32.xlu0 %v534_v25  ;;  %v5581_v28 = vsub.f32 %v456_v3, %v505_v26  ;;  %699 = vst [vmem:[#allocation2 + $0x58] sm:$0xff] %v5256_v18  ;;  %700 = vst [vmem:[#allocation2 + $0x60] sm:$0xff] %v5256_v18  ;;  %v1625_v24 = vld [vmem:[#allocation6 + $0x8] sm:$0xf]  ;;  %v1260_v25 = vshrl.u32 %v1208_v19, 16 }
 0x123   : > { %v478_v30 = vpop.xlane.xlu0 %477  ;;  %v480_v31 = vpop.xlane.xlu1 %479  ;;  %701 = vst [vmem:[#allocation2 + $0x68] sm:$0xff] %v5256_v18  ;;  %702 = vst [vmem:[#allocation2 + $0xc8] sm:$0xff] %v5256_v18 }
 0x124   : > { %v506_v32 = vmul.f32 0.0078125, %v478_v30  ;;  %v535_v33 = vmul.f32 %v5579_v27, %v5579_v27  ;;  %v507_v34 = vmul.f32 0.0078125, %v480_v31  ;;  %v537_v37 = vmul.f32 %v5581_v28, %v5581_v28  ;;  %703 = vst [vmem:[#allocation2 + $0xd0] sm:$0xff] %v5256_v18  ;;  %704 = vst [vmem:[#allocation2 + $0xd8] sm:$0xff] %v5256_v18 }
 0x125   : > { %v1677_v31 = vshrl.u32 %v1625_v24, 16 }
 0x126   : > { %v5587_v35 = vsub.f32 %v457_v4, %v506_v32  ;;  %554 = vadd.xlane.f32.xlu0 %v536_v29  ;;  %552 = vadd.xlane.f32.xlu1 %v535_v33  ;;  %v5589_v36 = vsub.f32 %v458_v5, %v507_v34  ;;  %v5651_v32 = vpack.i.b16 %v1208_v19, %v1208_v19 }
 0x127   : > { %v482_v38 = vpop.xlane.xlu0 %481  ;;  %v484_v39 = vpop.xlane.xlu1 %483  ;;  %v5653_v33 = vpack.i.b16 %v1260_v25, %v1260_v25  ;;  %v5655_v34 = vpack.i.b16 %v1625_v24, %v1625_v24 }
 0x128   : > { %9056 = vst [vmem:[#allocation18_spill] sm:$0xff] %v5587_v35  ;;  %9057 = vst [vmem:[#allocation19_spill] sm:$0xff] %v5589_v36  ;;  %v508_v40 = vmul.f32 0.0078125, %v482_v38  ;;  %v538_v41 = vmul.f32 %v5587_v35, %v5587_v35  ;;  %v509_v42 = vmul.f32 0.0078125, %v484_v39  ;;  %v539_v45 = vmul.f32 %v5589_v36, %v5589_v36 }
 0x12a   : > { %v5595_v43 = vsub.f32 %v459_v6, %v508_v40  ;;  %556 = vadd.xlane.f32.xlu1 %v537_v37  ;;  %558 = vadd.xlane.f32.xlu0 %v538_v41  ;;  %v5597_v44 = vsub.f32 %v460_v7, %v509_v42  ;;  %v5668_v40 = vpack.i.b16 %v1677_v31, %v1677_v31  ;;  %v2042_v41 = vld [vmem:[#allocation6 + $0xc] sm:$0xf]  ;;  %v921_v42 = vld [vmem:[#allocation2] sm:$0xf] }
 0x12b   : > { %v486_v46 = vpop.xlane.xlu0 %485  ;;  %v488_v47 = vpop.xlane.xlu1 %487 }
 0x12c   : > { %9058 = vst [vmem:[#allocation20_spill] sm:$0xff] %v5595_v43  ;;  %9059 = vst [vmem:[#allocation21_spill] sm:$0xff] %v5597_v44  ;;  %v510_v48 = vmul.f32 0.0078125, %v486_v46  ;;  %v540_v49 = vmul.f32 %v5595_v43, %v5595_v43  ;;  %v511_v50 = vmul.f32 0.0078125, %v488_v47  ;;  %v541_v53 = vmul.f32 %v5597_v44, %v5597_v44  ;;  %v5841_v44 = vld [vmem:[#allocation2 + $0x8] sm:$0x78] }
 0x12e   : > { %v5603_v51 = vsub.f32 %v461_v8, %v510_v48  ;;  %560 = vadd.xlane.f32.xlu1 %v539_v45  ;;  %562 = vadd.xlane.f32.xlu0 %v540_v49  ;;  %v5605_v52 = vsub.f32 %v462_v9, %v511_v50  ;;  %v5670_v45 = vld [vmem:[#allocation2 + $0x8] sm:$0xf]  ;;  %v2459_v48 = vld [vmem:[#allocation6 + $0x10] sm:$0xf]  ;;  %v1209_v49 = vld [vmem:[#allocation2] sm:$0x1f] }
 0x12f   : > { %v490_v54 = vpop.xlane.xlu0 %489  ;;  %v492_v55 = vpop.xlane.xlu1 %491  ;;  %v5680_v50 = vld [vmem:[#allocation2 + $0x8] sm:$0x1f] }
 0x130   : > { %9060 = vst [vmem:[#allocation22_spill] sm:$0xff] %v5603_v51  ;;  %9061 = vst [vmem:[#allocation23_spill] sm:$0xff] %v5605_v52  ;;  %v512_v56 = vmul.f32 0.0078125, %v490_v54  ;;  %v542_v57 = vmul.f32 %v5603_v51, %v5603_v51  ;;  %v513_v58 = vmul.f32 0.0078125, %v492_v55  ;;  %v543_v61 = vmul.f32 %v5605_v52, %v5605_v52  ;;  %v3294_v51 = vld [vmem:[#allocation2] sm:$0x78] }
 0x131   : > { %v2094_v54 = vshrl.u32 %v2042_v41, 16 }
 0x132   : > { %v5611_v59 = vsub.f32 %v463_v10, %v512_v56  ;;  %564 = vadd.xlane.f32.xlu1 %v541_v53  ;;  %566 = vadd.xlane.f32.xlu0 %v542_v57  ;;  %v5614_v60 = vsub.f32 %v5554_v11, %v513_v58  ;;  %v1626_v58 = vld [vmem:[#allocation2] sm:$0x1e] }
 0x133   : > { %v494_v62 = vpop.xlane.xlu0 %493  ;;  %v496_v63 = vpop.xlane.xlu1 %495 }
 0x134   : > { %9062 = vst [vmem:[#allocation24_spill] sm:$0xff] %v5611_v59  ;;  %9063 = vst [vmem:[#allocation25_spill] sm:$0xff] %v5614_v60  ;;  %v514_v0 = vmul.f32 0.0078125, %v494_v62  ;;  %v544_v1 = vmul.f32 %v5611_v59, %v5611_v59  ;;  %v515_v2 = vmul.f32 0.0078125, %v496_v63  ;;  %v545_v5 = vmul.f32 %v5614_v60, %v5614_v60  ;;  %v5699_v63 = vld [vmem:[#allocation2 + $0x10] sm:$0xf] }
 0x135   : > { %9075 = vst [vmem:[#allocation37_spill] sm:$0xff] %v5699_v63 }
 0x136   : > { %v5621_v3 = vsub.f32 %v5558_v12, %v514_v0  ;;  %568 = vadd.xlane.f32.xlu1 %v543_v61  ;;  %570 = vadd.xlane.f32.xlu0 %v544_v1  ;;  %v5624_v4 = vsub.f32 %v5561_v13, %v515_v2  ;;  %v5693_v61 = vld [vmem:[#allocation2 + $0x8] sm:$0x1e]  ;;  %v2511_v0 = vshrl.u32 %v2459_v48, 16  ;;  %v2876_v1 = vld [vmem:[#allocation6 + $0x14] sm:$0xf] }
 0x137   : > { %v498_v6 = vpop.xlane.xlu0 %497  ;;  %v500_v7 = vpop.xlane.xlu1 %499 }
 0x138   : > { %9064 = vst [vmem:[#allocation26_spill] sm:$0xff] %v5621_v3  ;;  %9065 = vst [vmem:[#allocation27_spill] sm:$0xff] %v5624_v4  ;;  %v516_v8 = vmul.f32 0.0078125, %v498_v6  ;;  %v546_v9 = vmul.f32 %v5621_v3, %v5621_v3  ;;  %v517_v10 = vmul.f32 0.0078125, %v500_v7  ;;  %v547_v13 = vmul.f32 %v5624_v4, %v5624_v4  ;;  %v5813_v3 = vld [vmem:[#allocation2 + $0x10] sm:$0x3c] }
 0x139   : > { %v5708_v7 = vpack.i.b16 %v2042_v41, %v2042_v41  ;;  %v5721_v19 = vpack.i.b16 %v2511_v0, %v2511_v0  ;;  %9097 = vst [vmem:[#allocation59_spill] sm:$0xff] %v5813_v3 }
 0x13a   : > { %v5631_v11 = vsub.f32 %v5566_v14, %v516_v8  ;;  %572 = vadd.xlane.f32.xlu1 %v545_v5  ;;  %574 = vadd.xlane.f32.xlu0 %v546_v9  ;;  %v5634_v12 = vsub.f32 %v5569_v15, %v517_v10  ;;  %v952_v14 = vlaneseq  ;;  %v920_v15 = vld [vmem:[#allocation6] sm:$0xf]  ;;  %v3293_v8 = vld [vmem:[#allocation6 + $0x18] sm:$0xf]  ;;  %v5710_v9 = vld [vmem:[#allocation2 + $0x10] sm:$0x1f] }
 0x13b   : > { %v972_v23 = vshrl.u32 %v920_v15, 16  ;;  %v5644_v26 = vpack.i.b16 %v920_v15, %v920_v15  ;;  %9077 = vst [vmem:[#allocation39_spill] sm:$0xff] %v5710_v9  ;;  %v5719_v15 = vpack.i.b16 %v2459_v48, %v2459_v48 }
 0x13c   : > { %9066 = vst [vmem:[#allocation28_spill] sm:$0xff] %v5631_v11  ;;  %9067 = vst [vmem:[#allocation29_spill] sm:$0xff] %v5634_v12  ;;  %v548_v16 = vmul.f32 %v5631_v11, %v5631_v11  ;;  %v549_v17 = vmul.f32 %v5634_v12, %v5634_v12  ;;  %v5642_v22 = vshrl.u32 %v952_v14, 7  ;;  %v2928_v14 = vshrl.u32 %v2876_v1, 16 }
 0x13d   : > { %v5649_v30 = vpack.i.b16 %v972_v23, %v972_v23  ;;  %v3345_v23 = vshrl.u32 %v3293_v8, 16  ;;  %v5766_v11 = vpack.i.b16 %v3293_v8, %v3293_v8 }
 0x13e   : > { %576 = vadd.xlane.f32.xlu1 %v547_v13  ;;  %578 = vadd.xlane.f32.xlu0 %v548_v16  ;;  %v5647_v29 = vsub.s32 0, %v5642_v22  ;;  %v5666_v39 = vsub.s32 1, %v5642_v22  ;;  %v5713_v13 = vpack.i.b16 %v2094_v54, %v2094_v54  ;;  %v5738_v48 = vsub.s32 2, %v5642_v22  ;;  %v5744_v54 = vld [vmem:[#allocation2 + $0x10] sm:$0x1e] }
 0x13f   : > { %9082 = vst [vmem:[#allocation44_spill] sm:$0xff] %v5744_v54  ;;  %v5768_v4 = vpack.i.b16 %v3345_v23, %v3345_v23  ;;  %v5829_v60 = vsub.s32 3, %v5642_v22 }
 0x140   : > { %v5659_v37 = vrot.slane %v5644_v26, %v5647_v29  ;;  %v5663_v38 = vrot.slane %v5649_v30, %v5647_v29  ;;  %v5674_v46 = vrot.slane %v5651_v32, %v5647_v29  ;;  %v5678_v47 = vrot.slane %v5653_v33, %v5647_v29 }
 0x141   : > { %v5684_v53 = vrot.slane %v5655_v34, %v5647_v29  ;;  %v5691_v57 = vrot.slane %v5644_v26, %v5666_v39  ;;  %v5697_v62 = vrot.slane %v5668_v40, %v5647_v29  ;;  %v5706_v6 = vrot.slane %v5651_v32, %v5666_v39 }
 0x142   : > { %580 = vadd.xlane.f32.xlu1 %v549_v17  ;;  %9068 = vst [vmem:[#allocation30_spill] sm:$0xff] %v5659_v37  ;;  %9069 = vst [vmem:[#allocation31_spill] sm:$0xff] %v5663_v38  ;;  %v956_v55 = vmul.bf16 %v5659_v37, %v921_v42  ;;  %v979_v56 = vmul.bf16 %v5663_v38, %v5670_v45  ;;  %v1244_v2 = vmul.bf16 %v5674_v46, %v1209_v49 }
 0x143   : > { %9070 = vst [vmem:[#allocation32_spill] sm:$0xff] %v5674_v46  ;;  %9071 = vst [vmem:[#allocation33_spill] sm:$0xff] %v5678_v47  ;;  %v1267_v5 = vmul.bf16 %v5678_v47, %v5680_v50  ;;  %v1661_v10 = vmul.bf16 %v5684_v53, %v1626_v58  ;;  %v1015_v17 = vmul.bf16 %v5691_v57, %v5699_v63 }
 0x144   : > { %9072 = vst [vmem:[#allocation34_spill] sm:$0xff] %v5684_v53  ;;  %9073 = vst [vmem:[#allocation35_spill] sm:$0xff] %v5691_v57  ;;  %v995_v16 = vadd.bf16 %v979_v56, %v956_v55  ;;  %v1684_v18 = vmul.bf16 %v5697_v62, %v5693_v61  ;;  %v1303_v25 = vmul.bf16 %v5706_v6, %v5710_v9  ;;  %v2043_v55 = vld [vmem:[#allocation2] sm:$0x3e] }
 0x145   : > { %9074 = vst [vmem:[#allocation36_spill] sm:$0xff] %v5697_v62  ;;  %9076 = vst [vmem:[#allocation38_spill] sm:$0xff] %v5706_v6  ;;  %v1283_v24 = vadd.bf16 %v1267_v5, %v1244_v2  ;;  %v5727_v31 = vrot.slane %v5655_v34, %v5666_v39  ;;  %v5731_v41 = vrot.slane %v5708_v7, %v5647_v29  ;;  %v5752_v2 = vld [vmem:[#allocation2 + $0x8] sm:$0x3e] }
 0x146   : > { %v5735_v42 = vrot.slane %v5649_v30, %v5666_v39  ;;  %v5742_v49 = vrot.slane %v5653_v33, %v5666_v39  ;;  %v5748_v56 = vrot.slane %v5713_v13, %v5647_v29  ;;  %v5750_v58 = vadd.bf16 %v1015_v17, %v995_v16 }
 0x147   : > { %9078 = vst [vmem:[#allocation40_spill] sm:$0xff] %v5727_v31  ;;  %9079 = vst [vmem:[#allocation41_spill] sm:$0xff] %v5731_v41  ;;  %v1700_v0 = vadd.bf16 %v1684_v18, %v1661_v10  ;;  %v5754_v5 = vpack.i.b16 %v2876_v1, %v2876_v1  ;;  %v5756_v6 = vpack.i.b16 %v2928_v14, %v2928_v14  ;;  %v2460_v18 = vld [vmem:[#allocation2] sm:$0x3c]  ;;  %v5779_v14 = vld [vmem:[#allocation2 + $0x8] sm:$0x3c] }
 0x148   : > { %9080 = vst [vmem:[#allocation42_spill] sm:$0xff] %v5735_v42  ;;  %9081 = vst [vmem:[#allocation43_spill] sm:$0xff] %v5742_v49  ;;  %v5760_v57 = vrot.slane %v5719_v15, %v5647_v29  ;;  %v5764_v12 = vrot.slane %v5721_v19, %v5647_v29  ;;  %v5770_v16 = vadd.bf16 %v1303_v25, %v1283_v24 }
 0x149   : > { %9083 = vst [vmem:[#allocation45_spill] sm:$0xff] %v5748_v56  ;;  %9084 = vst [vmem:[#allocation46_spill] sm:$0xff] %v5750_v58  ;;  %v1720_v1 = vmul.bf16 %v5727_v31, %v5744_v54  ;;  %v5776_v10 = vrot.slane %v5668_v40, %v5666_v39  ;;  %v2078_v17 = vmul.bf16 %v5731_v41, %v2043_v55  ;;  %v5799_v31 = vld [vmem:[#allocation2 + $0x10] sm:$0x3e]  ;;  %v2877_v58 = vld [vmem:[#allocation2] sm:$0x7c] }
 0x14a   : > { %9085 = vst [vmem:[#allocation47_spill] sm:$0xff] %v5760_v57  ;;  %9086 = vst [vmem:[#allocation48_spill] sm:$0xff] %v5764_v12  ;;  %v5783_v8 = vrot.slane %v5644_v26, %v5738_v48  ;;  %v5787_v23 = vrot.slane %v5649_v30, %v5738_v48  ;;  %v2101_v24 = vmul.bf16 %v5748_v56, %v5752_v2 }
 0x14b   : > { %9087 = vst [vmem:[#allocation49_spill] sm:$0xff] %v5770_v16  ;;  %9088 = vst [vmem:[#allocation50_spill] sm:$0xff] %v5776_v10  ;;  %v5793_v25 = vrot.slane %v5708_v7, %v5666_v39  ;;  %v5797_v55 = vrot.slane %v5651_v32, %v5738_v48  ;;  %v5803_v10 = vrot.slane %v5719_v15, %v5666_v39 }
 0x14c   : > { %9089 = vst [vmem:[#allocation51_spill] sm:$0xff] %v5783_v8  ;;  %9090 = vst [vmem:[#allocation52_spill] sm:$0xff] %v5787_v23  ;;  %v5807_v30 = vrot.slane %v5754_v5, %v5647_v29  ;;  %v5811_v16 = vrot.slane %v5756_v6, %v5647_v29  ;;  %v2495_v49 = vmul.bf16 %v5760_v57, %v2460_v18  ;;  %v5818_v23 = vld [vmem:[#allocation2 + $0x8] sm:$0x7c] }
 0x14d   : > { %9091 = vst [vmem:[#allocation53_spill] sm:$0xff] %v5793_v25  ;;  %9092 = vst [vmem:[#allocation54_spill] sm:$0xff] %v5797_v55  ;;  %v2518_v55 = vmul.bf16 %v5764_v12, %v5779_v14  ;;  %v5822_v8 = vrot.slane %v5766_v11, %v5647_v29  ;;  %v5826_v42 = vrot.slane %v5768_v4, %v5647_v29 }
 0x14e   : > { %9093 = vst [vmem:[#allocation55_spill] sm:$0xff] %v5799_v31  ;;  %9094 = vst [vmem:[#allocation56_spill] sm:$0xff] %v5803_v10  ;;  %v5833_v18 = vrot.slane %v5653_v33, %v5738_v48  ;;  %v5835_v59 = vadd.bf16 %v1720_v1, %v1700_v0  ;;  %v5839_v52 = vrot.slane %v5655_v34, %v5738_v48 }
 0x14f   : > { %9095 = vst [vmem:[#allocation57_spill] sm:$0xff] %v5807_v30  ;;  %9096 = vst [vmem:[#allocation58_spill] sm:$0xff] %v5811_v16  ;;  %v5845_v29 = vrot.slane %v5668_v40, %v5738_v48  ;;  %v2117_v43 = vadd.bf16 %v2101_v24, %v2078_v17  ;;  %v2137_v22 = vmul.bf16 %v5793_v25, %v5799_v31 }
 0x150   : > { %9098 = vst [vmem:[#allocation60_spill] sm:$0xff] %v5822_v8  ;;  %9099 = vst [vmem:[#allocation61_spill] sm:$0xff] %v5826_v42  ;;  %v5851_v33 = vrot.slane %v5713_v13, %v5666_v39  ;;  %v2554_v0 = vmul.bf16 %v5803_v10, %v5813_v3  ;;  %v2912_v1 = vmul.bf16 %v5807_v30, %v2877_v58 }
 0x151   : > { %9100 = vst [vmem:[#allocation62_spill] sm:$0xff] %v5833_v18  ;;  %9101 = vst [vmem:[#allocation63_spill] sm:$0xff] %v5835_v59  ;;  %v2935_v59 = vmul.bf16 %v5811_v16, %v5818_v23  ;;  %v5860_v40 = vrot.slane %v5754_v5, %v5666_v39  ;;  %v2534_v24 = vadd.bf16 %v2518_v55, %v2495_v49 }
 0x152   : > { %9102 = vst [vmem:[#allocation64_spill] sm:$0xff] %v5839_v52  ;;  %9103 = vst [vmem:[#allocation65_spill] sm:$0xff] %v5845_v29  ;;  %v5862_v29 = vld [vmem:[#allocation2 + $0x10] sm:$0x7c]  ;;  %v3329_v25 = vmul.bf16 %v5822_v8, %v3294_v51  ;;  %v5869_v10 = vrot.slane %v5766_v11, %v5666_v39  ;;  %v5873_v52 = vrot.slane %v5644_v26, %v5829_v60 }
 0x153   : > { %9104 = vst [vmem:[#allocation66_spill] sm:$0xff] %v5851_v33  ;;  %9105 = vst [vmem:[#allocation67_spill] sm:$0xff] %v5860_v40  ;;  %v3352_v33 = vmul.bf16 %v5826_v42, %v5841_v44  ;;  %v5877_v18 = vrot.slane %v5708_v7, %v5738_v48  ;;  %v5881_v49 = vrot.slane %v5713_v13, %v5738_v48  ;;  %v5883_v51 = vld [vmem:[#allocation2 + $0x10] sm:$0x78] }
 0x154   : > { %9106 = vst [vmem:[#allocation68_spill] sm:$0xff] %v5862_v29  ;;  %9107 = vst [vmem:[#allocation69_spill] sm:$0xff] %v5869_v10  ;;  %v5887_v55 = vrot.slane %v5651_v32, %v5829_v60  ;;  %v5893_v26 = vadd.bf16 %v2137_v22, %v2117_v43  ;;  %v5901_v13 = vrot.slane %v5721_v19, %v5666_v39 }
 0x155   : > { %9108 = vst [vmem:[#allocation70_spill] sm:$0xff] %v5873_v52  ;;  %9109 = vst [vmem:[#allocation71_spill] sm:$0xff] %v5877_v18  ;;  %v5897_v52 = vrot.slane %v5708_v7, %v5829_v60  ;;  %v2971_v32 = vmul.bf16 %v5860_v40, %v5862_v29  ;;  %v5905_v35 = vadd.bf16 %v2554_v0, %v2534_v24 }
 0x156   : > { %9110 = vst [vmem:[#allocation72_spill] sm:$0xff] %v5881_v49  ;;  %9111 = vst [vmem:[#allocation73_spill] sm:$0xff] %v5883_v51  ;;  %v2951_v49 = vadd.bf16 %v2935_v59, %v2912_v1  ;;  %v5909_v43 = vrot.slane %v5756_v6, %v5666_v39  ;;  %v3388_v7 = vmul.bf16 %v5869_v10, %v5883_v51 }
 0x157   : > { %9112 = vst [vmem:[#allocation74_spill] sm:$0xff] %v5887_v55  ;;  %9114 = vst [vmem:[#allocation76_spill] sm:$0xff] %v5897_v52  ;;  %v5915_v59 = vrot.slane %v5719_v15, %v5738_v48  ;;  %v5919_v1 = vrot.slane %v5721_v19, %v5738_v48  ;;  %v5923_v0 = vrot.slane %v5768_v4, %v5666_v39 }
 0x158   : > { %9115 = vst [vmem:[#allocation77_spill] sm:$0xff] %v5901_v13  ;;  %9116 = vst [vmem:[#allocation78_spill] sm:$0xff] %v5909_v43  ;;  %v5931_v24 = vrot.slane %v5719_v15, %v5829_v60  ;;  %v5937_v39 = vrot.slane %v5754_v5, %v5738_v48 }
 0x159   : > { %9117 = vst [vmem:[#allocation79_spill] sm:$0xff] %v5915_v59  ;;  %9118 = vst [vmem:[#allocation80_spill] sm:$0xff] %v5919_v1 }
 0x15a   : > { %9119 = vst [vmem:[#allocation81_spill] sm:$0xff] %v5923_v0  ;;  %9120 = vst [vmem:[#allocation82_spill] sm:$0xff] %v5931_v24 }
 0x15b   : > { %9121 = vst [vmem:[#allocation83_spill] sm:$0xff] %v5937_v39 }
 0x1af   : > { %v551_v17 = vpop.xlane.xlu0 %550 }
 0x1b0   : > { %v582_v58 = vmul.f32 0.0078125, %v551_v17  ;;  %v5891_v17 = vrot.slane %v5655_v34, %v5829_v60  ;;  %v3368_v34 = vadd.bf16 %v3352_v33, %v3329_v25  ;;  %v957_v25 = vmul.bf16 %v5659_v37, %v5670_v45  ;;  %v9164_v37 = vld [vmem:[#allocation74_spill] sm:$0xff] }
 0x1b1   : > { %v5941_v45 = vrot.slane %v5756_v6, %v5738_v48  ;;  %v5955_v6 = vrot.slane %v5766_v11, %v5738_v48 }
 0x1b2   : > { %9113 = vst [vmem:[#allocation75_spill] sm:$0xff] %v5891_v17  ;;  %v598_v18 = vadd.f32 1e-05, %v582_v58  ;;  %v5943_v40 = vadd.bf16 %v3388_v7, %v3368_v34 }
 0x1b3   : > { %v553_v55 = vpop.xlane.xlu1 %552  ;;  %v555_v36 = vpop.xlane.xlu0 %554  ;;  %9122 = vst [vmem:[#allocation84_spill] sm:$0xff] %v5941_v45  ;;  %9124 = vst [vmem:[#allocation86_spill] sm:$0xff] %v5955_v6 }
 0x1b4   : > { %4828 = vrsqrt.f32 %v598_v18  ;;  %v583_v22 = vmul.f32 0.0078125, %v553_v55  ;;  %v584_v58 = vmul.f32 0.0078125, %v555_v36  ;;  %v980_v18 = vmul.bf16 %v5663_v38, %v5699_v63 }
 0x1b5   : > { %v5933_v55 = vadd.bf16 %v2971_v32, %v2951_v49  ;;  %v1268_v49 = vmul.bf16 %v5678_v47, %v5710_v9  ;;  %v5951_v32 = vrot.slane %v5754_v5, %v5829_v60  ;;  %v2079_v5 = vmul.bf16 %v5731_v41, %v5752_v2 }
 0x1b6   : > { %v599_v33 = vadd.f32 1e-05, %v583_v22  ;;  %v600_v36 = vadd.f32 1e-05, %v584_v58  ;;  %v1245_v22 = vmul.bf16 %v5674_v46, %v5680_v50  ;;  %v5957_v34 = vadd.bf16 %v980_v18, %v957_v25  ;;  %v9163_v46 = vld [vmem:[#allocation62_spill] sm:$0xff] }
 0x1b7   : > { %v557_v19 = vpop.xlane.xlu1 %556  ;;  %v559_v10 = vpop.xlane.xlu0 %558  ;;  %9123 = vst [vmem:[#allocation85_spill] sm:$0xff] %v5951_v32  ;;  %v1662_v50 = vmul.bf16 %v5684_v53, %v5693_v61  ;;  %v2496_v25 = vmul.bf16 %v5760_v57, %v5779_v14  ;;  %v2519_v18 = vmul.bf16 %v5764_v12, %v5813_v3  ;;  %v3330_v2 = vmul.bf16 %v5822_v8, %v5841_v44 }
 0x1b8   : > { %4830 = vrsqrt.f32 %v599_v33  ;;  %v585_v15 = vmul.f32 0.0078125, %v557_v19  ;;  %v586_v58 = vmul.f32 0.0078125, %v559_v10  ;;  %v1685_v10 = vmul.bf16 %v5697_v62, %v5744_v54 }
 0x1b9   : > { %4832 = vrsqrt.f32 %v600_v36  ;;  %v2102_v19 = vmul.bf16 %v5748_v56, %v5799_v31  ;;  %v2936_v62 = vmul.bf16 %v5811_v16, %v5862_v29  ;;  %v3353_v56 = vmul.bf16 %v5826_v42, %v5883_v51 }
 0x1ba   : > { %v601_v7 = vadd.f32 1e-05, %v585_v15  ;;  %v602_v38 = vadd.f32 1e-05, %v586_v58  ;;  %v2913_v58 = vmul.bf16 %v5807_v30, %v5818_v23  ;;  %v5986_v23 = vrot.slane %v5768_v4, %v5738_v48  ;;  %v6002_v4 = vld [vmem:[%s8549_s4] ss:$0 sm:$0xff] }
 0x1bb   : > { %v561_v33 = vpop.xlane.xlu1 %560  ;;  %v563_v36 = vpop.xlane.xlu0 %562  ;;  %v5995_v47 = vrot.slane %v5766_v11, %v5829_v60  ;;  %v6009_v60 = vadd.bf16 %v3353_v56, %v3330_v2 }
 0x1bc   : > { %4834 = vrsqrt.f32 %v601_v7  ;;  %v587_v15 = vmul.f32 0.0078125, %v561_v33  ;;  %v588_v61 = vmul.f32 0.0078125, %v563_v36  ;;  %v5982_v7 = vld [vmem:[%s8548_s3] ss:$0 sm:$0xff]  ;;  %9125 = vst [vmem:[#allocation87_spill] sm:$0xff] %v5986_v23  ;;  %v5990_v36 = vadd.bf16 %v1685_v10, %v1662_v50 }
 0x1bd   : > { %4836 = vrsqrt.f32 %v602_v38  ;;  %v5988_v38 = vadd.bf16 %v1268_v49, %v1245_v22  ;;  %9128 = vst [vmem:[#allocation90_spill] sm:$0xff] %v5995_v47  ;;  %v6007_v50 = vadd.bf16 %v2936_v62, %v2913_v58  ;;  %9132 = vst [vmem:[#allocation94_spill] sm:$0xff] %v6009_v60 }
 0x1be   : > { %v4829_v14 = vpop.eup %4828  ;;  %v603_v33 = vadd.f32 1e-05, %v587_v15  ;;  %9127 = vst [vmem:[#allocation89_spill] sm:$0xff] %v5990_v36  ;;  %v604_v42 = vadd.f32 1e-05, %v588_v61  ;;  %v5997_v15 = vadd.bf16 %v2102_v19, %v2079_v5  ;;  %v9168_v36 = vld [vmem:[#allocation50_spill] sm:$0xff] }
 0x1bf   : > { %9126 = vst [vmem:[#allocation88_spill] sm:$0xff] %v5988_v38  ;;  %v630_v44 = vmul.f32 %v4829_v14, %v5573_v20  ;;  %v565_v16 = vpop.xlane.xlu1 %564  ;;  %v567_v12 = vpop.xlane.xlu0 %566  ;;  %v6004_v20 = vadd.bf16 %v2519_v18, %v2496_v25  ;;  %9131 = vst [vmem:[#allocation93_spill] sm:$0xff] %v6007_v50 }
 0x1c0   : > { %9129 = vst [vmem:[#allocation91_spill] sm:$0xff] %v5997_v15  ;;  %4838 = vrsqrt.f32 %v603_v33  ;;  %v589_v48 = vmul.f32 0.0078125, %v565_v16  ;;  %v590_v22 = vmul.f32 0.0078125, %v567_v12 }
 0x1c1   : > { %9130 = vst [vmem:[#allocation92_spill] sm:$0xff] %v6004_v20  ;;  %v653_v49 = vmul.f32 %v5982_v7, %v630_v44  ;;  %4840 = vrsqrt.f32 %v604_v42  ;;  %v9167_v20 = vld [vmem:[#allocation49_spill] sm:$0xff] }
 0x1c2   : > { %v4831_v10 = vpop.eup %4830  ;;  %v605_v5 = vadd.f32 1e-05, %v589_v48  ;;  %v606_v19 = vadd.f32 1e-05, %v590_v22 }
 0x1c3   : > { %v4833_v16 = vpop.eup %4832  ;;  %v676_v25 = vadd.f32 %v6002_v4, %v653_v49  ;;  %v631_v62 = vmul.f32 %v4831_v10, %v5579_v27  ;;  %v569_v56 = vpop.xlane.xlu1 %568 }
 0x1c4   : > { %v571_v18 = vpop.xlane.xlu0 %570  ;;  %v632_v2 = vmul.f32 %v4833_v16, %v5575_v21  ;;  %v591_v14 = vmul.f32 0.0078125, %v569_v56  ;;  %4842 = vrsqrt.f32 %v605_v5  ;;  %v9133_v5 = vld [vmem:[#allocation18_spill] sm:$0xff] }
 0x1c5   : > { %v592_v33 = vmul.f32 0.0078125, %v571_v18  ;;  %v705_v48 = vpack.c.bf16 %v676_v25, %v676_v25  ;;  %v654_v22 = vmul.f32 %v5982_v7, %v631_v62  ;;  %4844 = vrsqrt.f32 %v606_v19 }
 0x1c6   : > { %v4835_v42 = vpop.eup %4834  ;;  %v655_v49 = vmul.f32 %v5982_v7, %v632_v2  ;;  %v607_v10 = vadd.f32 1e-05, %v591_v14 }
 0x1c7   : > { %v608_v58 = vadd.f32 1e-05, %v592_v33  ;;  %v4837_v12 = vpop.eup %4836  ;;  %v722_v21 = vshrl.u32 %v705_v48, 16  ;;  %v725_v16 = vshll.u32 %v705_v48, 16  ;;  %v677_v56 = vadd.f32 %v6002_v4, %v654_v22  ;;  %v573_v25 = vpop.xlane.xlu1 %572 }
 0x1c8   : > { %v633_v18 = vmul.f32 %v4835_v42, %v5581_v28  ;;  %v678_v62 = vadd.f32 %v6002_v4, %v655_v49  ;;  %v634_v44 = vmul.f32 %v4837_v12, %v9133_v5  ;;  %4846 = vrsqrt.f32 %v607_v10 }
 0x1c9   : > { %v593_v27 = vmul.f32 0.0078125, %v573_v25  ;;  %v724_v61 = vrot.slane %v722_v21, 6  ;;  %v727_v11 = vrot.slane %v725_v16, 7  ;;  %v706_v2 = vpack.c.bf16 %v677_v56, %v677_v56  ;;  %v9138_v25 = vld [vmem:[#allocation19_spill] sm:$0xff] }
 0x1ca   : > { %v656_v19 = vmul.f32 %v5982_v7, %v633_v18  ;;  %v4839_v14 = vpop.eup %4838  ;;  %v707_v28 = vpack.c.bf16 %v678_v62, %v678_v62  ;;  %v657_v48 = vmul.f32 %v5982_v7, %v634_v44  ;;  %4848 = vrsqrt.f32 %v608_v58 }
 0x1cb   : > { %v6040_v22 = vadd.f32 1e-05, %v593_v27  ;;  %v728_v42 = vor.u32 %v727_v11, %v724_v61  ;;  %v730_v49 = vshrl.u32 %v706_v2, 16  ;;  %v733_v10 = vshll.u32 %v706_v2, 16  ;;  %v4841_v58 = vpop.eup %4840 }
 0x1cc   : > { %v679_v21 = vadd.f32 %v6002_v4, %v656_v19  ;;  %v738_v16 = vshrl.u32 %v707_v28, 16  ;;  %v741_v56 = vshll.u32 %v707_v28, 16  ;;  %v680_v18 = vadd.f32 %v6002_v4, %v657_v48 }
 0x1cd   : > { %v635_v44 = vmul.f32 %v4839_v14, %v9138_v25  ;;  %v868_v27 = vsel %vm6035_vm4, 0, %v728_v42  ;;  %v732_v62 = vrot.slane %v730_v49, 6  ;;  %v735_v5 = vrot.slane %v733_v10, 7  ;;  %v9139_v49 = vld [vmem:[#allocation20_spill] sm:$0xff] }
 0x1ce   : > { %v708_v29 = vpack.c.bf16 %v679_v21, %v679_v21  ;;  %v887_v11 = vsel %vm6044_vm5, %v868_v27, 0  ;;  %v740_v61 = vrot.slane %v738_v16, 6  ;;  %v743_v2 = vrot.slane %v741_v56, 7  ;;  %v4843_v19 = vpop.eup %4842 }
 0x1cf   : > { %v709_v30 = vpack.c.bf16 %v680_v18, %v680_v18  ;;  %904 = vst [vmem:[#allocation2 + $0x18] sm:$0xff] %v887_v11  ;;  %v736_v28 = vor.u32 %v735_v5, %v732_v62  ;;  %v658_v14 = vmul.f32 %v5982_v7, %v635_v44  ;;  %v4845_v25 = vpop.eup %4844  ;;  %v636_v10 = vmul.f32 %v4841_v58, %v9139_v49 }
 0x1d0   : > { %v746_v3 = vshrl.u32 %v708_v29, 16  ;;  %v749_v48 = vshll.u32 %v708_v29, 16  ;;  %v744_v57 = vor.u32 %v743_v2, %v740_v61  ;;  %4850 = vrsqrt.f32 %v6040_v22 }
 0x1d1   : > { %v754_v31 = vshrl.u32 %v709_v30, 16  ;;  %v757_v42 = vshll.u32 %v709_v30, 16  ;;  %v869_v21 = vsel %vm6035_vm4, 0, %v736_v28  ;;  %v681_v56 = vadd.f32 %v6002_v4, %v658_v14  ;;  %v9140_v28 = vld [vmem:[#allocation21_spill] sm:$0xff]  ;;  %v9141_v14 = vld [vmem:[#allocation22_spill] sm:$0xff] }
 0x1d2   : > { %v748_v27 = vrot.slane %v746_v3, 6  ;;  %v751_v16 = vrot.slane %v749_v48, 7  ;;  %v4847_v18 = vpop.eup %4846  ;;  %v888_v62 = vsel %vm6044_vm5, %v869_v21, 0  ;;  %v870_v29 = vsel %vm6035_vm4, 0, %v744_v57  ;;  %v9142_v21 = vld [vmem:[#allocation23_spill] sm:$0xff] }
 0x1d3   : > { %v756_v44 = vrot.slane %v754_v31, 6  ;;  %v759_v5 = vrot.slane %v757_v42, 7  ;;  %905 = vst [vmem:[#allocation2 + $0x20] sm:$0xff] %v888_v62  ;;  %v889_v30 = vsel %vm6044_vm5, %v870_v29, 0  ;;  %v710_v11 = vpack.c.bf16 %v681_v56, %v681_v56 }
 0x1d4   : > { %v752_v58 = vor.u32 %v751_v16, %v748_v27  ;;  %v659_v3 = vmul.f32 %v5982_v7, %v636_v10  ;;  %v4849_v61 = vpop.eup %4848  ;;  %906 = vst [vmem:[#allocation2 + $0x28] sm:$0xff] %v889_v30  ;;  %v637_v48 = vmul.f32 %v4843_v19, %v9140_v28  ;;  %v638_v49 = vmul.f32 %v4845_v25, %v9141_v14 }
 0x1d5   : > { %v760_v2 = vor.u32 %v759_v5, %v756_v44  ;;  %v639_v41 = vmul.f32 %v4847_v18, %v9142_v21  ;;  %v762_v31 = vshrl.u32 %v710_v11, 16  ;;  %v765_v42 = vshll.u32 %v710_v11, 16 }
 0x1d6   : > { %v871_v57 = vsel %vm6035_vm4, 0, %v752_v58  ;;  %v682_v62 = vadd.f32 %v6002_v4, %v659_v3  ;;  %v660_v16 = vmul.f32 %v5982_v7, %v637_v48  ;;  %v661_v19 = vmul.f32 %v5982_v7, %v638_v49  ;;  %v9143_v58 = vld [vmem:[#allocation24_spill] sm:$0xff]  ;;  %v575_v3 = vpop.xlane.xlu0 %574 }
 0x1d7   : > { %v890_v27 = vsel %vm6044_vm5, %v871_v57, 0  ;;  %v872_v10 = vsel %vm6035_vm4, 0, %v760_v2  ;;  %v764_v56 = vrot.slane %v762_v31, 6  ;;  %v767_v18 = vrot.slane %v765_v42, 7 }
 0x1d8   : > { %907 = vst [vmem:[#allocation2 + $0x30] sm:$0xff] %v890_v27  ;;  %v891_v25 = vsel %vm6044_vm5, %v872_v10, 0  ;;  %v711_v29 = vpack.c.bf16 %v682_v62, %v682_v62  ;;  %v683_v44 = vadd.f32 %v6002_v4, %v660_v16  ;;  %v684_v5 = vadd.f32 %v6002_v4, %v661_v19  ;;  %v577_v19 = vpop.xlane.xlu1 %576 }
 0x1d9   : > { %908 = vst [vmem:[#allocation2 + $0x38] sm:$0xff] %v891_v25  ;;  %v662_v30 = vmul.f32 %v5982_v7, %v639_v41  ;;  %v640_v11 = vmul.f32 %v4849_v61, %v9143_v58  ;;  %v768_v2 = vor.u32 %v767_v18, %v764_v56  ;;  %v594_v41 = vmul.f32 0.0078125, %v575_v3 }
 0x1da   : > { %v770_v28 = vshrl.u32 %v711_v29, 16  ;;  %v773_v48 = vshll.u32 %v711_v29, 16  ;;  %v712_v14 = vpack.c.bf16 %v683_v44, %v683_v44  ;;  %v713_v49 = vpack.c.bf16 %v684_v5, %v684_v5 }
 0x1db   : > { %v685_v21 = vadd.f32 %v6002_v4, %v662_v30  ;;  %v663_v57 = vmul.f32 %v5982_v7, %v640_v11  ;;  %v873_v31 = vsel %vm6035_vm4, 0, %v768_v2  ;;  %v610_v30 = vadd.f32 1e-05, %v594_v41 }
 0x1dc   : > { %v772_v42 = vrot.slane %v770_v28, 6  ;;  %v775_v62 = vrot.slane %v773_v48, 7  ;;  %v892_v61 = vsel %vm6044_vm5, %v873_v31, 0  ;;  %v778_v27 = vshrl.u32 %v712_v14, 16  ;;  %v579_v28 = vpop.xlane.xlu0 %578 }
 0x1dd   : > { %v781_v10 = vshll.u32 %v712_v14, 16  ;;  %v786_v16 = vshrl.u32 %v713_v49, 16  ;;  %909 = vst [vmem:[#allocation2 + $0x40] sm:$0xff] %v892_v61  ;;  %v789_v25 = vshll.u32 %v713_v49, 16  ;;  %v714_v56 = vpack.c.bf16 %v685_v21, %v685_v21 }
 0x1de   : > { %v776_v22 = vor.u32 %v775_v62, %v772_v42  ;;  %v686_v18 = vadd.f32 %v6002_v4, %v663_v57  ;;  %v780_v29 = vrot.slane %v778_v27, 6  ;;  %4852 = vrsqrt.f32 %v610_v30 }
 0x1df   : > { %v783_v44 = vrot.slane %v781_v10, 7  ;;  %v788_v5 = vrot.slane %v786_v16, 6  ;;  %v791_v11 = vrot.slane %v789_v25, 7  ;;  %v794_v3 = vshrl.u32 %v714_v56, 16  ;;  %v581_v10 = vpop.xlane.xlu1 %580  ;;  %v6099_v16 = vld [vmem:[#allocation2 + $0x18] sm:$0xf] }
 0x1e0   : > { %v874_v58 = vsel %vm6035_vm4, 0, %v776_v22  ;;  %v797_v2 = vshll.u32 %v714_v56, 16  ;;  %v715_v31 = vpack.c.bf16 %v686_v18, %v686_v18  ;;  %v595_v42 = vmul.f32 0.0078125, %v577_v19  ;;  %9144 = vst [vmem:[#allocation18_spill] sm:$0xff] %v6099_v16  ;;  %v4851_v22 = vpop.eup %4850 }
 0x1e1   : > { %v893_v48 = vsel %vm6044_vm5, %v874_v58, 0  ;;  %v784_v14 = vor.u32 %v783_v44, %v780_v29  ;;  %v792_v49 = vor.u32 %v791_v11, %v788_v5  ;;  %v796_v21 = vrot.slane %v794_v3, 6  ;;  %v6105_v44 = vld [vmem:[#allocation2 + $0x20] sm:$0xf]  ;;  %v9146_v58 = vld [vmem:[#allocation25_spill] sm:$0xff] }
 0x1e2   : > { %910 = vst [vmem:[#allocation2 + $0x48] sm:$0xff] %v893_v48  ;;  %v799_v57 = vrot.slane %v797_v2, 7  ;;  %v802_v41 = vshrl.u32 %v715_v31, 16  ;;  %v805_v61 = vshll.u32 %v715_v31, 16  ;;  %v596_v27 = vmul.f32 0.0078125, %v579_v28  ;;  %9145 = vst [vmem:[#allocation19_spill] sm:$0xff] %v6105_v44 }
 0x1e3   : > { %v875_v62 = vsel %vm6035_vm4, 0, %v784_v14  ;;  %v876_v56 = vsel %vm6035_vm4, 0, %v792_v49  ;;  %v611_v29 = vadd.f32 1e-05, %v595_v42  ;;  %v641_v11 = vmul.f32 %v4851_v22, %v9146_v58  ;;  %v6110_v3 = vld [vmem:[#allocation2 + $0x28] sm:$0xf] }
 0x1e4   : > { %v894_v25 = vsel %vm6044_vm5, %v875_v62, 0  ;;  %v800_v18 = vor.u32 %v799_v57, %v796_v21  ;;  %v895_v19 = vsel %vm6044_vm5, %v876_v56, 0  ;;  %v804_v5 = vrot.slane %v802_v41, 6  ;;  %9147 = vst [vmem:[#allocation20_spill] sm:$0xff] %v6110_v3  ;;  %v6114_v14 = vld [vmem:[#allocation2 + $0x30] sm:$0xf] }
 0x1e5   : > { %911 = vst [vmem:[#allocation2 + $0x50] sm:$0xff] %v894_v25  ;;  %v807_v30 = vrot.slane %v805_v61, 7  ;;  %912 = vst [vmem:[#allocation2 + $0x88] sm:$0xff] %v895_v19  ;;  %4854 = vrsqrt.f32 %v611_v29  ;;  %v612_v28 = vadd.f32 1e-05, %v596_v27  ;;  %v597_v48 = vmul.f32 0.0078125, %v581_v10 }
 0x1e6   : > { %v877_v2 = vsel %vm6035_vm4, 0, %v800_v18  ;;  %9148 = vst [vmem:[#allocation21_spill] sm:$0xff] %v6114_v14  ;;  %v664_v21 = vmul.f32 %v5982_v7, %v641_v11  ;;  %v9149_v57 = vld [vmem:[#allocation42_spill] sm:$0xff]  ;;  %v9152_v27 = vld [vmem:[#allocation51_spill] sm:$0xff]  ;;  %v9153_v22 = vld [vmem:[#allocation52_spill] sm:$0xff] }
 0x1e7   : > { %v896_v31 = vsel %vm6044_vm5, %v877_v2, 0  ;;  %v808_v49 = vor.u32 %v807_v30, %v804_v5  ;;  %v1051_v42 = vmul.bf16 %v9149_v57, %v6099_v16  ;;  %v6121_v62 = vld [vmem:[#allocation2 + $0x18] sm:$0x1f]  ;;  %v6123_v41 = vld [vmem:[#allocation2 + $0x20] sm:$0x1f]  ;;  %4856 = vrsqrt.f32 %v612_v28 }
 0x1e8   : > { %9150 = vst [vmem:[#allocation22_spill] sm:$0xff] %v6121_v62  ;;  %9151 = vst [vmem:[#allocation23_spill] sm:$0xff] %v6123_v41  ;;  %v613_v61 = vadd.f32 1e-05, %v597_v48  ;;  %v1087_v10 = vmul.bf16 %v9152_v27, %v6105_v44  ;;  %v1123_v25 = vmul.bf16 %v9153_v22, %v6110_v3  ;;  %v6129_v56 = vld [vmem:[#allocation2 + $0x28] sm:$0x1f]  ;;  %v687_v19 = vadd.f32 %v6002_v4, %v664_v21 }
 0x1e9   : > { %913 = vst [vmem:[#allocation2 + $0x90] sm:$0xff] %v896_v31  ;;  %9154 = vst [vmem:[#allocation24_spill] sm:$0xff] %v6129_v56  ;;  %v6131_v18 = vld [vmem:[#allocation2 + $0x30] sm:$0x1f]  ;;  %v878_v29 = vsel %vm6035_vm4, 0, %v808_v49  ;;  %v9156_v5 = vld [vmem:[#allocation46_spill] sm:$0xff]  ;;  %v1411_v63 = vmul.bf16 %v9163_v46, %v6129_v56 }
 0x1ea   : > { %9155 = vst [vmem:[#allocation25_spill] sm:$0xff] %v6131_v18  ;;  %v1067_v30 = vadd.bf16 %v1051_v42, %v9156_v5  ;;  %v9157_v58 = vld [vmem:[#allocation70_spill] sm:$0xff]  ;;  %v897_v48 = vsel %vm6044_vm5, %v878_v29, 0  ;;  %4858 = vrsqrt.f32 %v613_v61  ;;  %v9160_v31 = vld [vmem:[#allocation43_spill] sm:$0xff]  ;;  %v4853_v42 = vpop.eup %4852  ;;  %v716_v5 = vpack.c.bf16 %v687_v19, %v687_v19  ;;  %v6155_v29 = vld [vmem:[#allocation2 + $0x30] sm:$0x1e] }
 0x1eb   : > { %v1159_v11 = vmul.bf16 %v9157_v58, %v6114_v14  ;;  %v6139_v2 = vld [vmem:[#allocation2 + $0x18] sm:$0x1e]  ;;  %v6141_v28 = vld [vmem:[#allocation2 + $0x20] sm:$0x1e]  ;;  %v1339_v54 = vmul.bf16 %v9160_v31, %v6121_v62  ;;  %v6149_v21 = vld [vmem:[#allocation2 + $0x28] sm:$0x1e]  ;;  %v1447_v60 = vmul.bf16 %v9164_v37, %v6131_v18 }
 0x1ec   : > { %9158 = vst [vmem:[#allocation46_spill] sm:$0xff] %v6139_v2  ;;  %9159 = vst [vmem:[#allocation95_spill] sm:$0xff] %v6141_v28  ;;  %v9161_v49 = vld [vmem:[#allocation54_spill] sm:$0xff]  ;;  %v1103_v9 = vadd.bf16 %v1087_v10, %v1067_v30  ;;  %v1756_v38 = vmul.bf16 %v9168_v36, %v6139_v2  ;;  %v810_v10 = vshrl.u32 %v716_v5, 16  ;;  %v813_v30 = vshll.u32 %v716_v5, 16  ;;  %v9171_v56 = vld [vmem:[#allocation65_spill] sm:$0xff] }
 0x1ed   : > { %v1375_v53 = vmul.bf16 %v9161_v49, %v6123_v41  ;;  %9162 = vst [vmem:[#allocation96_spill] sm:$0xff] %v6149_v21  ;;  %914 = vst [vmem:[#allocation2 + $0x98] sm:$0xff] %v897_v48  ;;  %v9166_v61 = vld [vmem:[#allocation26_spill] sm:$0xff]  ;;  %v1355_v15 = vadd.bf16 %v1339_v54, %v9167_v20  ;;  %v9169_v49 = vld [vmem:[#allocation64_spill] sm:$0xff]  ;;  %v1828_v37 = vmul.bf16 %v9171_v56, %v6149_v21 }
 0x1ee   : > { %9165 = vst [vmem:[#allocation97_spill] sm:$0xff] %v6155_v29  ;;  %v642_v50 = vmul.f32 %v4853_v42, %v9166_v61  ;;  %v1792_v48 = vmul.bf16 %v9169_v49, %v6141_v28  ;;  %v6163_v19 = vld [vmem:[#allocation2 + $0x18] sm:$0x3e]  ;;  %v1139_v46 = vadd.bf16 %v1123_v25, %v1103_v9  ;;  %v6167_v18 = vld [vmem:[#allocation2 + $0x20] sm:$0x3e]  ;;  %v1864_v36 = vmul.bf16 %v5891_v17, %v6155_v29 }
 0x1ef   : > { %9170 = vst [vmem:[#allocation26_spill] sm:$0xff] %v6163_v19  ;;  %v1391_v61 = vadd.bf16 %v1375_v53, %v1355_v15  ;;  %v9172_v54 = vld [vmem:[#allocation63_spill] sm:$0xff]  ;;  %v812_v2 = vrot.slane %v810_v10, 6  ;;  %v815_v49 = vrot.slane %v813_v30, 7  ;;  %v9174_v9 = vld [vmem:[#allocation66_spill] sm:$0xff]  ;;  %v4855_v56 = vpop.eup %4854 }
 0x1f0   : > { %v665_v42 = vmul.f32 %v5982_v7, %v642_v50  ;;  %v1772_v20 = vadd.bf16 %v1756_v38, %v9172_v54  ;;  %v6173_v28 = vadd.bf16 %v1159_v11, %v1139_v46  ;;  %v6175_v5 = vld [vmem:[#allocation2 + $0x28] sm:$0x3e]  ;;  %v2173_v25 = vmul.bf16 %v9174_v9, %v6163_v19 }
 0x1f1   : > { %9173 = vst [vmem:[#allocation49_spill] sm:$0xff] %v6175_v5  ;;  %v1427_v50 = vadd.bf16 %v1411_v63, %v1391_v61  ;;  %v9175_v38 = vld [vmem:[#allocation71_spill] sm:$0xff]  ;;  %v816_v54 = vor.u32 %v815_v49, %v812_v2  ;;  %v4857_v30 = vpop.eup %4856  ;;  %v9177_v9 = vld [vmem:[#allocation72_spill] sm:$0xff]  ;;  %v9179_v61 = vld [vmem:[#allocation29_spill] sm:$0xff] }
 0x1f2   : > { %v688_v21 = vadd.f32 %v6002_v4, %v665_v42  ;;  %v1808_v53 = vadd.bf16 %v1792_v48, %v1772_v20  ;;  %v2209_v15 = vmul.bf16 %v9175_v38, %v6167_v18  ;;  %v9176_v17 = vld [vmem:[#allocation27_spill] sm:$0xff]  ;;  %v1191_v46 = vunpack.c.l.bf16 %v6173_v28  ;;  %v9178_v42 = vld [vmem:[#allocation28_spill] sm:$0xff] }
 0x1f3   : > { %v643_v10 = vmul.f32 %v4855_v56, %v9176_v17  ;;  %v2189_v11 = vadd.bf16 %v2173_v25, %v5893_v26  ;;  %v1463_v31 = vadd.bf16 %v1447_v60, %v1427_v50  ;;  %v2245_v19 = vmul.bf16 %v9177_v9, %v6175_v5 }
 0x1f4   : > { %v717_v29 = vpack.c.bf16 %v688_v21, %v688_v21  ;;  %v1844_v41 = vadd.bf16 %v1828_v37, %v1808_v53  ;;  %v879_v63 = vsel %vm6035_vm4, 0, %v816_v54  ;;  %v644_v2 = vmul.f32 %v4857_v30, %v9178_v42  ;;  %v4859_v17 = vpop.eup %4858 }
 0x1f5   : > { %v666_v48 = vmul.f32 %v5982_v7, %v643_v10  ;;  %v2225_v49 = vadd.bf16 %v2209_v15, %v2189_v11  ;;  %v898_v56 = vsel %vm6044_vm5, %v879_v63, 0  ;;  %v1479_v21 = vunpack.c.l.bf16 %v1463_v31 }
 0x1f6   : > { %v818_v26 = vshrl.u32 %v717_v29, 16  ;;  %v821_v28 = vshll.u32 %v717_v29, 16  ;;  %915 = vst [vmem:[#allocation2 + $0xa0] sm:$0xff] %v898_v56  ;;  %v667_v60 = vmul.f32 %v5982_v7, %v644_v2  ;;  %v645_v20 = vmul.f32 %v4859_v17, %v9179_v61 }
 0x1f7   : > { %v689_v37 = vadd.f32 %v6002_v4, %v666_v48  ;;  %v1480_v25 = vunpack.c.h.bf16 %v1463_v31  ;;  %v1544_v54 = vrot.slane %v1479_v21, 1  ;;  %v1880_v10 = vadd.bf16 %v1864_v36, %v1844_v41  ;;  %v6199_v31 = vld [vmem:[#allocation2 + $0x18] sm:$0x3c] }
 0x1f8   : > { %v820_v50 = vrot.slane %v818_v26, 6  ;;  %v823_v53 = vrot.slane %v821_v28, 7  ;;  %v690_v11 = vadd.f32 %v6002_v4, %v667_v60  ;;  %v668_v30 = vmul.f32 %v5982_v7, %v645_v20  ;;  %9180 = vst [vmem:[#allocation63_spill] sm:$0xff] %v6199_v31  ;;  %v6204_v7 = vld [vmem:[#allocation2 + $0x30] sm:$0x3e] }
 0x1f9   : > { %v718_v15 = vpack.c.bf16 %v689_v37, %v689_v37  ;;  %v1545_v63 = vrot.slane %v1480_v25, 1  ;;  %v1896_v42 = vunpack.c.l.bf16 %v1880_v10  ;;  %v1897_v56 = vunpack.c.h.bf16 %v1880_v10  ;;  %9181 = vst [vmem:[#allocation27_spill] sm:$0xff] %v6204_v7  ;;  %v6209_v25 = vld [vmem:[#allocation2 + $0x20] sm:$0x3c] }
 0x1fa   : > { %v824_v29 = vor.u32 %v823_v53, %v820_v50  ;;  %v2261_v9 = vadd.bf16 %v2245_v19, %v2225_v49  ;;  %v719_v2 = vpack.c.bf16 %v690_v11, %v690_v11  ;;  %v691_v17 = vadd.f32 %v6002_v4, %v668_v30  ;;  %9182 = vst [vmem:[#allocation28_spill] sm:$0xff] %v6209_v25 }
 0x1fb   : > { %v826_v48 = vshrl.u32 %v718_v15, 16  ;;  %v829_v38 = vshll.u32 %v718_v15, 16  ;;  %v1546_v41 = vsel %vm1543_vm6, %v1544_v54, %v1545_v63  ;;  %v1961_v26 = vrot.slane %v1896_v42, 2  ;;  %v6215_v63 = vld [vmem:[#allocation2 + $0x28] sm:$0x3c] }
 0x1fc   : > { %v880_v36 = vsel %vm6035_vm4, 0, %v824_v29  ;;  %v1962_v28 = vrot.slane %v1897_v56, 2  ;;  %v834_v37 = vshrl.u32 %v719_v2, 16  ;;  %v837_v4 = vshll.u32 %v719_v2, 16  ;;  %v6219_v42 = vld [vmem:[#allocation2 + $0x30] sm:$0x3c] }
 0x1fd   : > { %v899_v19 = vsel %vm6044_vm5, %v880_v36, 0  ;;  %v828_v49 = vrot.slane %v826_v48, 6  ;;  %v831_v21 = vrot.slane %v829_v38, 7  ;;  %v720_v60 = vpack.c.bf16 %v691_v17, %v691_v17  ;;  %9183 = vst [vmem:[#allocation29_spill] sm:$0xff] %v6219_v42  ;;  %v6224_v2 = vld [vmem:[#allocation2 + $0x18] sm:$0x7c] }
 0x1fe   : > { %916 = vst [vmem:[#allocation2 + $0xa8] sm:$0xff] %v899_v19  ;;  %v1608_v61 = vadd.f32 %v1546_v41, %v1191_v46  ;;  %v1963_v20 = vsel %vm884_vm2, %v1961_v26, %v1962_v28  ;;  %v836_v53 = vrot.slane %v834_v37, 6  ;;  %v2281_v54 = vmul.bf16 %v5897_v52, %v6204_v7 }
 0x1ff   : > { %v832_v50 = vor.u32 %v831_v21, %v828_v49  ;;  %v2590_v10 = vmul.bf16 %v5901_v13, %v6199_v31  ;;  %v839_v15 = vrot.slane %v837_v4, 7  ;;  %v842_v11 = vshrl.u32 %v720_v60, 16  ;;  %v6232_v21 = vld [vmem:[#allocation2 + $0x18] sm:$0x78] }
 0x200   : > { %v845_v38 = vshll.u32 %v720_v60, 16  ;;  %v2025_v30 = vadd.f32 %v1963_v20, %v1608_v61  ;;  %v2297_v29 = vadd.bf16 %v2281_v54, %v2261_v9  ;;  %v2626_v48 = vmul.bf16 %v5915_v59, %v6209_v25  ;;  %v6238_v61 = vld [vmem:[#allocation2 + $0x28] sm:$0x7c]  ;;  %v6240_v20 = vld [vmem:[#allocation2 + $0x30] sm:$0x7c] }
 0x201   : > { %v881_v46 = vsel %vm6035_vm4, 0, %v832_v50  ;;  %v2606_v56 = vadd.bf16 %v2590_v10, %v5905_v35  ;;  %v840_v36 = vor.u32 %v839_v15, %v836_v53  ;;  %v844_v41 = vrot.slane %v842_v11, 6  ;;  %v6230_v35 = vld [vmem:[#allocation2 + $0x20] sm:$0x7c]  ;;  %9185 = vst [vmem:[#allocation99_spill] sm:$0xff] %v6238_v61 }
 0x202   : > { %v900_v17 = vsel %vm6044_vm5, %v881_v46, 0  ;;  %v847_v26 = vrot.slane %v845_v38, 7  ;;  %v2313_v28 = vunpack.c.l.bf16 %v2297_v29  ;;  %v2314_v19 = vunpack.c.h.bf16 %v2297_v29  ;;  %9184 = vst [vmem:[#allocation98_spill] sm:$0xff] %v6230_v35  ;;  %v6246_v11 = vld [vmem:[#allocation2 + $0x20] sm:$0x78] }
 0x203   : > { %917 = vst [vmem:[#allocation2 + $0xb0] sm:$0xff] %v900_v17  ;;  %v2642_v9 = vadd.bf16 %v2626_v48, %v2606_v56  ;;  %v2662_v49 = vmul.bf16 %v5919_v1, %v6215_v63  ;;  %v882_v37 = vsel %vm6035_vm4, 0, %v840_v36  ;;  %v2698_v60 = vmul.bf16 %v5931_v24, %v6219_v42  ;;  %9186 = vst [vmem:[#allocation100_spill] sm:$0xff] %v6246_v11  ;;  %v6253_v56 = vld [vmem:[#allocation2 + $0x28] sm:$0x78] }
 0x204   : > { %v848_v4 = vor.u32 %v847_v26, %v844_v41  ;;  %v3007_v50 = vmul.bf16 %v5909_v43, %v6224_v2  ;;  %v901_v53 = vsel %vm6044_vm5, %v882_v37, 0  ;;  %v2378_v54 = vrot.slane %v2313_v28, 3  ;;  %9187 = vst [vmem:[#allocation101_spill] sm:$0xff] %v6253_v56  ;;  %v6262_v26 = vld [vmem:[#allocation2 + $0x30] sm:$0x78]  ;;  %v9192_v48 = vld [vmem:[#allocation43_spill] sm:$0xff] }
 0x205   : > { %v2379_v10 = vrot.slane %v2314_v19, 3  ;;  %v2678_v15 = vadd.bf16 %v2662_v49, %v2642_v9  ;;  %918 = vst [vmem:[#allocation2 + $0xb8] sm:$0xff] %v901_v53  ;;  %v3043_v29 = vmul.bf16 %v5937_v39, %v6230_v35  ;;  %v3079_v33 = vmul.bf16 %v5941_v45, %v6238_v61 }
 0x206   : > { %v883_v38 = vsel %vm6035_vm4, 0, %v848_v4  ;;  %v3023_v46 = vadd.bf16 %v3007_v50, %v5933_v55  ;;  %v3115_v28 = vmul.bf16 %v5951_v32, %v6240_v20  ;;  %v3424_v19 = vmul.bf16 %v5923_v0, %v6232_v21 }
 0x207   : > { %v902_v17 = vsel %vm6044_vm5, %v883_v38, 0  ;;  %v2380_v36 = vsel %vm2377_vm7, %v2378_v54, %v2379_v10  ;;  %v2714_v41 = vadd.bf16 %v2698_v60, %v2678_v15  ;;  %v3460_v12 = vmul.bf16 %v5955_v6, %v6246_v11  ;;  %v6275_v54 = vld [vmem:[#allocation2 + $0x38] sm:$0xf]  ;;  %v9189_v10 = vld [vmem:[#allocation35_spill] sm:$0xff] }
 0x208   : > { %919 = vst [vmem:[#allocation2 + $0xc0] sm:$0xff] %v902_v17  ;;  %v3059_v55 = vadd.bf16 %v3043_v29, %v3023_v46  ;;  %v2442_v9 = vadd.f32 %v2380_v36, %v2025_v30  ;;  %v3496_v4 = vmul.bf16 %v5986_v23, %v6253_v56  ;;  %v3440_v50 = vadd.bf16 %v3424_v19, %v5943_v40  ;;  %v9190_v19 = vld [vmem:[#allocation38_spill] sm:$0xff] }
 0x209   : > { %v2730_v49 = vunpack.c.l.bf16 %v2714_v41  ;;  %v2731_v37 = vunpack.c.h.bf16 %v2714_v41  ;;  %v3532_v53 = vmul.bf16 %v5995_v47, %v6262_v26  ;;  %9188 = vst [vmem:[#allocation102_spill] sm:$0xff] %v6275_v54  ;;  %v1016_v15 = vmul.bf16 %v9189_v10, %v6099_v16 }
 0x20a   : > { %v3095_v60 = vadd.bf16 %v3079_v33, %v3059_v55  ;;  %v1052_v30 = vmul.bf16 %v9149_v57, %v6105_v44  ;;  %v1088_v29 = vmul.bf16 %v9152_v27, %v6110_v3  ;;  %v3476_v36 = vadd.bf16 %v3460_v12, %v3440_v50  ;;  %v6293_v12 = vld [vmem:[#allocation2 + $0x38] sm:$0x1f]  ;;  %v9202_v44 = vld [vmem:[#allocation95_spill] sm:$0xff] }
 0x20b   : > { %v2795_v38 = vrot.slane %v2730_v49, 4  ;;  %v2796_v46 = vrot.slane %v2731_v37, 4  ;;  %v1032_v40 = vadd.bf16 %v1016_v15, %v5957_v34  ;;  %v1124_v41 = vmul.bf16 %v9153_v22, %v6114_v14  ;;  %v9191_v37 = vld [vmem:[#allocation23_spill] sm:$0xff]  ;;  %9193 = vst [vmem:[#allocation103_spill] sm:$0xff] %v6293_v12  ;;  %v9194_v34 = vld [vmem:[#allocation24_spill] sm:$0xff]  ;;  %v9197_v14 = vld [vmem:[#allocation25_spill] sm:$0xff] }
 0x20c   : > { %v3131_v17 = vadd.bf16 %v3115_v28, %v3095_v60  ;;  %v1160_v55 = vmul.bf16 %v9157_v58, %v6275_v54  ;;  %v1304_v49 = vmul.bf16 %v9190_v19, %v6121_v62  ;;  %v1340_v51 = vmul.bf16 %v9192_v48, %v9191_v37  ;;  %v9195_v60 = vld [vmem:[#allocation54_spill] sm:$0xff]  ;;  %v9200_v48 = vld [vmem:[#allocation40_spill] sm:$0xff] }
 0x20d   : > { %v2797_v33 = vsel %vm2794_vm8, %v2795_v38, %v2796_v46  ;;  %v3512_v28 = vadd.bf16 %v3496_v4, %v3476_v36  ;;  %v1376_v50 = vmul.bf16 %v9195_v60, %v9194_v34  ;;  %v1068_v22 = vadd.bf16 %v1052_v30, %v1032_v40  ;;  %v9196_v38 = vld [vmem:[#allocation88_spill] sm:$0xff]  ;;  %v9198_v58 = vld [vmem:[#allocation62_spill] sm:$0xff] }
 0x20e   : > { %v3147_v8 = vunpack.c.l.bf16 %v3131_v17  ;;  %v3148_v27 = vunpack.c.h.bf16 %v3131_v17  ;;  %v2859_v15 = vadd.f32 %v2797_v33, %v2442_v9  ;;  %v1320_v46 = vadd.bf16 %v1304_v49, %v9196_v38  ;;  %v9199_v3 = vld [vmem:[#allocation46_spill] sm:$0xff]  ;;  %v9204_v49 = vld [vmem:[#allocation89_spill] sm:$0xff] }
 0x20f   : > { %v1412_v54 = vmul.bf16 %v9198_v58, %v9197_v14  ;;  %v3548_v62 = vadd.bf16 %v3532_v53, %v3512_v28  ;;  %v1721_v37 = vmul.bf16 %v9200_v48, %v9199_v3  ;;  %v1104_v17 = vadd.bf16 %v1088_v29, %v1068_v22  ;;  %v9201_v36 = vld [vmem:[#allocation74_spill] sm:$0xff]  ;;  %v9205_v48 = vld [vmem:[#allocation96_spill] sm:$0xff]  ;;  %v9207_v3 = vld [vmem:[#allocation97_spill] sm:$0xff] }
 0x210   : > { %v3212_v57 = vrot.slane %v3147_v8, 5  ;;  %v3213_v19 = vrot.slane %v3148_v27, 5  ;;  %v1356_v4 = vadd.bf16 %v1340_v51, %v1320_v46  ;;  %v1448_v10 = vmul.bf16 %v9201_v36, %v6293_v12  ;;  %v9203_v60 = vld [vmem:[#allocation50_spill] sm:$0xff]  ;;  %v9206_v22 = vld [vmem:[#allocation64_spill] sm:$0xff]  ;;  %v9208_v58 = vld [vmem:[#allocation65_spill] sm:$0xff] }
 0x211   : > { %v1757_v9 = vmul.bf16 %v9203_v60, %v9202_v44  ;;  %v3564_v40 = vunpack.c.l.bf16 %v3548_v62  ;;  %v3565_v33 = vunpack.c.h.bf16 %v3548_v62  ;;  %v1737_v38 = vadd.bf16 %v1721_v37, %v9204_v49  ;;  %v6308_v28 = vld [vmem:[#allocation2 + $0x38] sm:$0x1e]  ;;  %v9216_v49 = vld [vmem:[#allocation91_spill] sm:$0xff] }
 0x212   : > { %v3214_v30 = vsel %vm3211_vm9, %v3212_v57, %v3213_v19  ;;  %v1140_v27 = vadd.bf16 %v1124_v41, %v1104_v17  ;;  %v1392_v53 = vadd.bf16 %v1376_v50, %v1356_v4  ;;  %v1793_v51 = vmul.bf16 %v9206_v22, %v9205_v48  ;;  %v9209_v19 = vld [vmem:[#allocation26_spill] sm:$0xff]  ;;  %v9210_v62 = vld [vmem:[#allocation53_spill] sm:$0xff]  ;;  %v9213_v4 = vld [vmem:[#allocation75_spill] sm:$0xff] }
 0x213   : > { %v3276_v8 = vadd.f32 %v3214_v30, %v2859_v15  ;;  %v3629_v29 = vrot.slane %v3564_v40, 6  ;;  %v3630_v46 = vrot.slane %v3565_v33, 6  ;;  %v1773_v36 = vadd.bf16 %v1757_v9, %v1737_v38  ;;  %v9211_v37 = vld [vmem:[#allocation66_spill] sm:$0xff] }
 0x214   : > { %v1829_v60 = vmul.bf16 %v9208_v58, %v9207_v3  ;;  %v1176_v44 = vadd.bf16 %v1160_v55, %v1140_v27  ;;  %v1428_v57 = vadd.bf16 %v1412_v54, %v1392_v53  ;;  %v2138_v12 = vmul.bf16 %v9210_v62, %v9209_v19  ;;  %v6322_v15 = vld [vmem:[%s8547_s2] ss:$0 sm:$0xff]  ;;  %v9214_v55 = vld [vmem:[#allocation71_spill] sm:$0xff]  ;;  %v6328_v33 = vld [vmem:[#allocation2 + $0x38] sm:$0x3e] }
 0x215   : > { %v2174_v41 = vmul.bf16 %v9211_v37, %v6167_v18  ;;  %v3631_v50 = vsel %vm865_vm0, %v3629_v29, %v3630_v46  ;;  %9212 = vst [vmem:[#allocation88_spill] sm:$0xff] %v6322_v15  ;;  %v1809_v17 = vadd.bf16 %v1793_v51, %v1773_v36  ;;  %v1865_v9 = vmul.bf16 %v9213_v4, %v6308_v28  ;;  %v9217_v27 = vld [vmem:[#allocation72_spill] sm:$0xff] }
 0x216   : > { %v2210_v54 = vmul.bf16 %v9214_v55, %v6175_v5  ;;  %v3693_v30 = vadd.f32 %v3631_v50, %v3276_v8  ;;  %v1464_v40 = vadd.bf16 %v1448_v10, %v1428_v57  ;;  %9215 = vst [vmem:[#allocation89_spill] sm:$0xff] %v6328_v33  ;;  %v2154_v38 = vadd.bf16 %v2138_v12, %v9216_v49  ;;  %v9218_v37 = vld [vmem:[#allocation56_spill] sm:$0xff]  ;;  %v6342_v49 = vld [vmem:[#allocation2 + $0x38] sm:$0x3c] }
 0x217   : > { %v2246_v53 = vmul.bf16 %v9217_v27, %v6204_v7  ;;  %v1192_v29 = vunpack.c.l.bf16 %v1176_v44  ;;  %v1845_v46 = vadd.bf16 %v1829_v60, %v1809_v17  ;;  %v2555_v36 = vmul.bf16 %v9218_v37, %v6199_v31  ;;  %9220 = vst [vmem:[#allocation97_spill] sm:$0xff] %v6342_v49  ;;  %v9221_v44 = vld [vmem:[#allocation92_spill] sm:$0xff] }
 0x218   : > { %v2591_v51 = vmul.bf16 %v5901_v13, %v6209_v25  ;;  %v6338_v62 = vadd.f32 %v6322_v15, %v3693_v30  ;;  %v1481_v8 = vunpack.c.l.bf16 %v1464_v40  ;;  %v1482_v10 = vunpack.c.h.bf16 %v1464_v40 }
 0x219   : > { %v2190_v57 = vadd.bf16 %v2174_v41, %v2154_v38  ;;  %v1881_v50 = vadd.bf16 %v1865_v9, %v1845_v46  ;;  %v2282_v12 = vmul.bf16 %v5897_v52, %v6328_v33  ;;  %v2571_v60 = vadd.bf16 %v2555_v36, %v9221_v44  ;;  %v9222_v46 = vld [vmem:[#allocation67_spill] sm:$0xff] }
 0x21a   : > { %9219 = vst [vmem:[#allocation96_spill] sm:$0xff] %v6338_v62  ;;  %v2627_v17 = vmul.bf16 %v5915_v59, %v6215_v63  ;;  %3732 = vadd.xlane.f32.xlu0 %v6338_v62  ;;  %v1547_v13 = vrot.slane %v1481_v8, 1  ;;  %v1548_v37 = vrot.slane %v1482_v10, 1  ;;  %v2663_v40 = vmul.bf16 %v5919_v1, %v6219_v42  ;;  %v6355_v59 = vld [vmem:[#allocation2 + $0x38] sm:$0x7c] }
 0x21b   : > { %v2226_v30 = vadd.bf16 %v2210_v54, %v2190_v57  ;;  %v1898_v41 = vunpack.c.l.bf16 %v1881_v50  ;;  %v1899_v9 = vunpack.c.h.bf16 %v1881_v50  ;;  %v2607_v38 = vadd.bf16 %v2591_v51, %v2571_v60  ;;  %v9223_v51 = vld [vmem:[#allocation93_spill] sm:$0xff] }
 0x21c   : > { %v2972_v25 = vmul.bf16 %v9222_v46, %v6224_v2  ;;  %v1549_v31 = vsel %vm1543_vm6, %v1547_v13, %v1548_v37  ;;  %v2699_v44 = vmul.bf16 %v5931_v24, %v6342_v49  ;;  %v3008_v54 = vmul.bf16 %v5909_v43, %v6230_v35 }
 0x21d   : > { %v2262_v36 = vadd.bf16 %v2246_v53, %v2226_v30  ;;  %v1609_v8 = vadd.f32 %v1549_v31, %v1192_v29  ;;  %v1964_v10 = vrot.slane %v1898_v41, 2  ;;  %v1965_v57 = vrot.slane %v1899_v9, 2  ;;  %v9224_v30 = vld [vmem:[#allocation69_spill] sm:$0xff] }
 0x21e   : > { %v2643_v62 = vadd.bf16 %v2627_v17, %v2607_v38  ;;  %v2988_v60 = vadd.bf16 %v2972_v25, %v9223_v51  ;;  %v3044_v46 = vmul.bf16 %v5937_v39, %v6238_v61  ;;  %v3080_v13 = vmul.bf16 %v5941_v45, %v6240_v20  ;;  %v6371_v38 = vld [vmem:[#allocation2 + $0x38] sm:$0x78] }
 0x21f   : > { %v2298_v50 = vadd.bf16 %v2282_v12, %v2262_v36  ;;  %v3116_v53 = vmul.bf16 %v5951_v32, %v6355_v59  ;;  %v3389_v43 = vmul.bf16 %v9224_v30, %v6232_v21  ;;  %v3425_v31 = vmul.bf16 %v5923_v0, %v6246_v11  ;;  %9225 = vst [vmem:[#allocation26_spill] sm:$0xff] %v6371_v38  ;;  %v9226_v36 = vld [vmem:[#allocation94_spill] sm:$0xff] }
 0x220   : > { %v2679_v37 = vadd.bf16 %v2663_v40, %v2643_v62  ;;  %v1966_v29 = vsel %vm884_vm2, %v1964_v10, %v1965_v57  ;;  %v3024_v17 = vadd.bf16 %v3008_v54, %v2988_v60  ;;  %v3461_v40 = vmul.bf16 %v5955_v6, %v6253_v56  ;;  %v9227_v54 = vld [vmem:[#allocation31_spill] sm:$0xff] }
 0x221   : > { %v2315_v12 = vunpack.c.l.bf16 %v2298_v50  ;;  %v2316_v25 = vunpack.c.h.bf16 %v2298_v50  ;;  %v2026_v41 = vadd.f32 %v1966_v29, %v1609_v8  ;;  %v3405_v62 = vadd.bf16 %v3389_v43, %v9226_v36  ;;  %v9228_v60 = vld [vmem:[#allocation19_spill] sm:$0xff]  ;;  %v6385_v36 = vld [vmem:[#allocation2 + $0x40] sm:$0xf] }
 0x222   : > { %v2715_v9 = vadd.bf16 %v2699_v44, %v2679_v37  ;;  %v3060_v30 = vadd.bf16 %v3044_v46, %v3024_v17  ;;  %v3497_v0 = vmul.bf16 %v5986_v23, %v6262_v26  ;;  %v981_v8 = vmul.bf16 %v9227_v54, %v6099_v16  ;;  %v9229_v37 = vld [vmem:[#allocation35_spill] sm:$0xff]  ;;  %v9233_v54 = vld [vmem:[#allocation20_spill] sm:$0xff] }
 0x223   : > { %v2381_v51 = vrot.slane %v2315_v12, 3  ;;  %v2382_v32 = vrot.slane %v2316_v25, 3  ;;  %v3441_v57 = vadd.bf16 %v3425_v31, %v3405_v62  ;;  %v3533_v43 = vmul.bf16 %v5995_v47, %v6371_v38  ;;  %v9230_v31 = vld [vmem:[#allocation30_spill] sm:$0xff]  ;;  %v9231_v62 = vld [vmem:[#allocation37_spill] sm:$0xff] }
 0x224   : > { %v2732_v11 = vunpack.c.l.bf16 %v2715_v9  ;;  %v2733_v10 = vunpack.c.h.bf16 %v2715_v9  ;;  %v3096_v50 = vadd.bf16 %v3080_v13, %v3060_v30  ;;  %v1017_v29 = vmul.bf16 %v9229_v37, %v9228_v60  ;;  %v9235_v30 = vld [vmem:[#allocation21_spill] sm:$0xff] }
 0x225   : > { %v2383_v44 = vsel %vm2377_vm7, %v2381_v51, %v2382_v32  ;;  %v3477_v17 = vadd.bf16 %v3461_v40, %v3441_v57  ;;  %v9232_v23 = vmul.bf16 %v9230_v31, %v9231_v62  ;;  %v9234_v32 = vld [vmem:[#allocation42_spill] sm:$0xff]  ;;  %v9236_v51 = vld [vmem:[#allocation51_spill] sm:$0xff]  ;;  %v9240_v57 = vld [vmem:[#allocation33_spill] sm:$0xff] }
 0x226   : > { %v2443_v12 = vadd.f32 %v2383_v44, %v2026_v41  ;;  %v2798_v46 = vrot.slane %v2732_v11, 4  ;;  %v2799_v25 = vrot.slane %v2733_v10, 4  ;;  %v3132_v9 = vadd.bf16 %v3116_v53, %v3096_v50  ;;  %v9237_v41 = vld [vmem:[#allocation102_spill] sm:$0xff]  ;;  %v9238_v11 = vld [vmem:[#allocation52_spill] sm:$0xff]  ;;  %v9243_v31 = vld [vmem:[#allocation39_spill] sm:$0xff] }
 0x227   : > { %v997_v16 = vadd.bf16 %v981_v8, %v9232_v23  ;;  %v1053_v13 = vmul.bf16 %v9234_v32, %v9233_v54  ;;  %v1089_v47 = vmul.bf16 %v9236_v51, %v9235_v30  ;;  %v3513_v37 = vadd.bf16 %v3497_v0, %v3477_v17  ;;  %v9239_v40 = vld [vmem:[#allocation22_spill] sm:$0xff]  ;;  %v9242_v54 = vld [vmem:[#allocation32_spill] sm:$0xff] }
 0x228   : > { %v2800_v38 = vsel %vm2794_vm8, %v2798_v46, %v2799_v25  ;;  %v1125_v10 = vmul.bf16 %v9238_v11, %v9237_v41  ;;  %v1269_v44 = vmul.bf16 %v9240_v57, %v9239_v40  ;;  %v3149_v53 = vunpack.c.l.bf16 %v3132_v9  ;;  %v9241_v23 = vld [vmem:[#allocation70_spill] sm:$0xff]  ;;  %v9245_v46 = vld [vmem:[#allocation23_spill] sm:$0xff] }
 0x229   : > { %v3150_v50 = vunpack.c.h.bf16 %v3132_v9  ;;  %v1033_v60 = vadd.bf16 %v1017_v29, %v997_v16  ;;  %v1161_v8 = vmul.bf16 %v9241_v23, %v6385_v36  ;;  %v2860_v62 = vadd.f32 %v2800_v38, %v2443_v12  ;;  %v9246_v0 = vld [vmem:[#allocation38_spill] sm:$0xff]  ;;  %v9247_v57 = vld [vmem:[#allocation43_spill] sm:$0xff] }
 0x22a   : > { %v3549_v32 = vadd.bf16 %v3533_v43, %v3513_v37  ;;  %v9244_v51 = vmul.bf16 %v9242_v54, %v9243_v31  ;;  %v1305_v25 = vmul.bf16 %v9246_v0, %v9245_v46  ;;  %v3215_v17 = vrot.slane %v3149_v53, 5  ;;  %v6408_v29 = vld [vmem:[#allocation2 + $0x40] sm:$0x1f] }
 0x22b   : > { %v3216_v11 = vrot.slane %v3150_v50, 5  ;;  %v1069_v41 = vadd.bf16 %v1053_v13, %v1033_v60  ;;  %v1341_v40 = vmul.bf16 %v9247_v57, %v9194_v34  ;;  %9248 = vst [vmem:[#allocation91_spill] sm:$0xff] %v6408_v29  ;;  %v9249_v38 = vld [vmem:[#allocation54_spill] sm:$0xff]  ;;  %v9250_v31 = vld [vmem:[#allocation103_spill] sm:$0xff]  ;;  %v9253_v50 = vld [vmem:[#allocation36_spill] sm:$0xff] }
 0x22c   : > { %v1285_v30 = vadd.bf16 %v1269_v44, %v9244_v51  ;;  %v3566_v9 = vunpack.c.l.bf16 %v3549_v32  ;;  %v3567_v16 = vunpack.c.h.bf16 %v3549_v32  ;;  %v1377_v43 = vmul.bf16 %v9249_v38, %v9197_v14  ;;  %v9251_v51 = vld [vmem:[#allocation62_spill] sm:$0xff]  ;;  %v9256_v14 = vld [vmem:[#allocation44_spill] sm:$0xff] }
 0x22d   : > { %v3217_v37 = vsel %vm3211_vm9, %v3215_v17, %v3216_v11  ;;  %v1105_v12 = vadd.bf16 %v1089_v47, %v1069_v41  ;;  %v1413_v44 = vmul.bf16 %v9251_v51, %v9250_v31  ;;  %v9252_v53 = vld [vmem:[#allocation46_spill] sm:$0xff]  ;;  %v9258_v41 = vld [vmem:[#allocation95_spill] sm:$0xff]  ;;  %v9259_v17 = vld [vmem:[#allocation40_spill] sm:$0xff] }
 0x22e   : > { %v1321_v23 = vadd.bf16 %v1305_v25, %v1285_v30  ;;  %v1686_v60 = vmul.bf16 %v9253_v50, %v9252_v53  ;;  %v3277_v13 = vadd.f32 %v3217_v37, %v2860_v62  ;;  %v3632_v0 = vrot.slane %v3566_v9, 6  ;;  %v9254_v46 = vld [vmem:[#allocation74_spill] sm:$0xff] }
 0x22f   : > { %v3633_v57 = vrot.slane %v3567_v16, 6  ;;  %v1141_v32 = vadd.bf16 %v1125_v10, %v1105_v12  ;;  %v1449_v30 = vmul.bf16 %v9254_v46, %v6408_v29  ;;  %v6419_v25 = vld [vmem:[#allocation2 + $0x40] sm:$0x1e]  ;;  %v1722_v51 = vmul.bf16 %v9259_v17, %v9258_v41 }
 0x230   : > { %v1357_v34 = vadd.bf16 %v1341_v40, %v1321_v23  ;;  %v9255_v38 = vld [vmem:[#allocation34_spill] sm:$0xff]  ;;  %v1794_v10 = vmul.bf16 %v9206_v22, %v9207_v3  ;;  %v1830_v37 = vmul.bf16 %v9208_v58, %v6308_v28  ;;  %v1866_v12 = vmul.bf16 %v9213_v4, %v6419_v25 }
 0x231   : > { %v9257_v11 = vmul.bf16 %v9255_v38, %v9256_v14  ;;  %v3634_v31 = vsel %vm865_vm0, %v3632_v0, %v3633_v57  ;;  %v9260_v62 = vld [vmem:[#allocation50_spill] sm:$0xff]  ;;  %v1177_v23 = vadd.bf16 %v1161_v8, %v1141_v32  ;;  %v9263_v0 = vld [vmem:[#allocation53_spill] sm:$0xff]  ;;  %v9267_v32 = vld [vmem:[#allocation55_spill] sm:$0xff]  ;;  %v2211_v58 = vmul.bf16 %v9214_v55, %v6204_v7 }
 0x232   : > { %v1393_v50 = vadd.bf16 %v1377_v43, %v1357_v34  ;;  %v1758_v9 = vmul.bf16 %v9260_v62, %v9205_v48  ;;  %v3694_v40 = vadd.f32 %v3634_v31, %v3277_v13  ;;  %v9262_v34 = vld [vmem:[#allocation45_spill] sm:$0xff]  ;;  %v2139_v43 = vmul.bf16 %v9263_v0, %v6167_v18 }
 0x233   : > { %v1702_v47 = vadd.bf16 %v1686_v60, %v9257_v11  ;;  %v6435_v60 = vld [vmem:[#allocation2 + $0x40] sm:$0x3e]  ;;  %v2103_v57 = vmul.bf16 %v9262_v34, %v9209_v19  ;;  %v1193_v8 = vunpack.c.l.bf16 %v1177_v23  ;;  %v2247_v34 = vmul.bf16 %v9217_v27, %v6328_v33  ;;  %v9274_v55 = vld [vmem:[#allocation77_spill] sm:$0xff] }
 0x234   : > { %v1429_v14 = vadd.bf16 %v1413_v44, %v1393_v50  ;;  %9261 = vst [vmem:[#allocation92_spill] sm:$0xff] %v6435_v60  ;;  %v6442_v11 = vadd.f32 %v6322_v15, %v3694_v40  ;;  %v9266_v50 = vld [vmem:[#allocation41_spill] sm:$0xff]  ;;  %v9269_v23 = vld [vmem:[#allocation63_spill] sm:$0xff]  ;;  %v2592_v27 = vmul.bf16 %v9274_v55, %v6215_v63  ;;  %v9282_v55 = vld [vmem:[#allocation68_spill] sm:$0xff] }
 0x235   : > { %v1738_v16 = vadd.bf16 %v1722_v51, %v1702_v47  ;;  %v9265_v51 = vld [vmem:[#allocation66_spill] sm:$0xff]  ;;  %v9268_v47 = vmul.bf16 %v9266_v50, %v9267_v32 }
 0x236   : > { %9264 = vst [vmem:[#allocation93_spill] sm:$0xff] %v6442_v11  ;;  %v2175_v13 = vmul.bf16 %v9265_v51, %v6175_v5  ;;  %v1465_v44 = vadd.bf16 %v1449_v30, %v1429_v14  ;;  %3734 = vadd.xlane.f32.xlu1 %v6442_v11  ;;  %v9271_v30 = vld [vmem:[#allocation28_spill] sm:$0xff]  ;;  %v6460_v5 = vld [vmem:[#allocation2 + $0x40] sm:$0x3c] }
 0x237   : > { %v1774_v31 = vadd.bf16 %v1758_v9, %v1738_v16  ;;  %v2119_v4 = vadd.bf16 %v2103_v57, %v9268_v47  ;;  %v2283_v9 = vmul.bf16 %v5897_v52, %v6435_v60  ;;  %v9270_v16 = vld [vmem:[#allocation48_spill] sm:$0xff]  ;;  %9273 = vst [vmem:[#allocation94_spill] sm:$0xff] %v6460_v5  ;;  %v9275_v11 = vld [vmem:[#allocation47_spill] sm:$0xff] }
 0x238   : > { %v2520_v51 = vmul.bf16 %v9270_v16, %v9269_v23  ;;  %v9272_v14 = vld [vmem:[#allocation56_spill] sm:$0xff]  ;;  %v1483_v32 = vunpack.c.l.bf16 %v1465_v44  ;;  %v1484_v57 = vunpack.c.h.bf16 %v1465_v44  ;;  %v9278_v52 = vld [vmem:[#allocation79_spill] sm:$0xff]  ;;  %v2664_v16 = vmul.bf16 %v5919_v1, %v6342_v49 }
 0x239   : > { %v1810_v40 = vadd.bf16 %v1794_v10, %v1774_v31  ;;  %v2556_v0 = vmul.bf16 %v9272_v14, %v9271_v30  ;;  %v2155_v47 = vadd.bf16 %v2139_v43, %v2119_v4  ;;  %v9276_v10 = vld [vmem:[#allocation59_spill] sm:$0xff]  ;;  %v2628_v60 = vmul.bf16 %v9278_v52, %v6219_v42  ;;  %v9279_v4 = vld [vmem:[#allocation58_spill] sm:$0xff]  ;;  %v9281_v52 = vld [vmem:[#allocation57_spill] sm:$0xff] }
 0x23a   : > { %v9277_v31 = vmul.bf16 %v9275_v11, %v9276_v10  ;;  %v1550_v14 = vrot.slane %v1483_v32, 1  ;;  %v1551_v30 = vrot.slane %v1484_v57, 1  ;;  %v2937_v43 = vmul.bf16 %v9279_v4, %v6224_v2 }
 0x23b   : > { %v1846_v33 = vadd.bf16 %v1830_v37, %v1810_v40  ;;  %v2191_v44 = vadd.bf16 %v2175_v13, %v2155_v47  ;;  %v2700_v37 = vmul.bf16 %v5931_v24, %v6460_v5  ;;  %v9280_v40 = vld [vmem:[#allocation67_spill] sm:$0xff]  ;;  %v9283_v1 = vmul.bf16 %v9281_v52, %v9282_v55  ;;  %v9284_v13 = vld [vmem:[#allocation78_spill] sm:$0xff] }
 0x23c   : > { %v2536_v7 = vadd.bf16 %v2520_v51, %v9277_v31  ;;  %v2973_v51 = vmul.bf16 %v9280_v40, %v6230_v35  ;;  %v1552_v10 = vsel %vm1543_vm6, %v1550_v14, %v1551_v30  ;;  %v3009_v57 = vmul.bf16 %v9284_v13, %v6238_v61  ;;  %v9285_v14 = vld [vmem:[#allocation61_spill] sm:$0xff]  ;;  %v9287_v13 = vld [vmem:[#allocation100_spill] sm:$0xff] }
 0x23d   : > { %v1882_v23 = vadd.bf16 %v1866_v12, %v1846_v33  ;;  %v2227_v31 = vadd.bf16 %v2211_v58, %v2191_v44  ;;  %v2953_v32 = vadd.bf16 %v2937_v43, %v9283_v1  ;;  %v3045_v12 = vmul.bf16 %v5937_v39, %v6240_v20  ;;  %v9288_v61 = vld [vmem:[#allocation69_spill] sm:$0xff] }
 0x23e   : > { %v2572_v15 = vadd.bf16 %v2556_v0, %v2536_v7  ;;  %v6483_v7 = vld [vmem:[#allocation2 + $0x40] sm:$0x7c]  ;;  %v1610_v0 = vadd.f32 %v1552_v10, %v1193_v8  ;;  %v3081_v58 = vmul.bf16 %v5941_v45, %v6355_v59  ;;  %v3354_v44 = vmul.bf16 %v9285_v14, %v6232_v21  ;;  %v9290_v10 = vld [vmem:[#allocation60_spill] sm:$0xff] }
 0x23f   : > { %v1900_v47 = vunpack.c.l.bf16 %v1882_v23  ;;  %v1901_v4 = vunpack.c.h.bf16 %v1882_v23  ;;  %v2263_v40 = vadd.bf16 %v2247_v34, %v2227_v31  ;;  %v2989_v35 = vadd.bf16 %v2973_v51, %v2953_v32  ;;  %v6496_v51 = vld [vmem:[#allocation2 + $0x40] sm:$0x78]  ;;  %v9291_v31 = vld [vmem:[#allocation73_spill] sm:$0xff] }
 0x240   : > { %v2608_v33 = vadd.bf16 %v2592_v27, %v2572_v15  ;;  %v9286_v15 = vld [vmem:[#allocation85_spill] sm:$0xff]  ;;  %v3390_v39 = vmul.bf16 %v9288_v61, %v9287_v13  ;;  %9289 = vst [vmem:[#allocation37_spill] sm:$0xff] %v6496_v51 }
 0x241   : > { %v1967_v30 = vrot.slane %v1900_v47, 2  ;;  %v1968_v55 = vrot.slane %v1901_v4, 2  ;;  %v2299_v43 = vadd.bf16 %v2283_v9, %v2263_v40  ;;  %v3025_v23 = vadd.bf16 %v3009_v57, %v2989_v35  ;;  %v9293_v32 = vld [vmem:[#allocation81_spill] sm:$0xff] }
 0x242   : > { %v2644_v1 = vadd.bf16 %v2628_v60, %v2608_v33  ;;  %v3117_v27 = vmul.bf16 %v9286_v15, %v6483_v7  ;;  %v9292_v4 = vmul.bf16 %v9290_v10, %v9291_v31  ;;  %v3426_v47 = vmul.bf16 %v9293_v32, %v6253_v56 }
 0x243   : > { %v1969_v34 = vsel %vm884_vm2, %v1967_v30, %v1968_v55  ;;  %v2317_v9 = vunpack.c.l.bf16 %v2299_v43  ;;  %v2318_v35 = vunpack.c.h.bf16 %v2299_v43  ;;  %v3061_v40 = vadd.bf16 %v3045_v12, %v3025_v23  ;;  %v9294_v30 = vld [vmem:[#allocation26_spill] sm:$0xff]  ;;  %v9297_v43 = vld [vmem:[#allocation19_spill] sm:$0xff] }
 0x244   : > { %v2680_v8 = vadd.bf16 %v2664_v16, %v2644_v1  ;;  %v3370_v60 = vadd.bf16 %v3354_v44, %v9292_v4  ;;  %v3462_v57 = vmul.bf16 %v5955_v6, %v6262_v26  ;;  %v2027_v33 = vadd.f32 %v1969_v34, %v1610_v0  ;;  %v9295_v16 = vld [vmem:[#allocation87_spill] sm:$0xff]  ;;  %v9296_v44 = vld [vmem:[#allocation90_spill] sm:$0xff] }
 0x245   : > { %v3498_v55 = vmul.bf16 %v9295_v16, %v9294_v30  ;;  %v2384_v1 = vrot.slane %v2317_v9, 3  ;;  %v2385_v14 = vrot.slane %v2318_v35, 3  ;;  %v3097_v13 = vadd.bf16 %v3081_v58, %v3061_v40  ;;  %v9298_v12 = vld [vmem:[#allocation31_spill] sm:$0xff] }
 0x246   : > { %v2716_v15 = vadd.bf16 %v2700_v37, %v2680_v8  ;;  %v3406_v61 = vadd.bf16 %v3390_v39, %v3370_v60  ;;  %v3534_v31 = vmul.bf16 %v9296_v44, %v6496_v51  ;;  %v982_v23 = vmul.bf16 %v9298_v12, %v9297_v43  ;;  %v9299_v37 = vld [vmem:[#allocation18_spill] sm:$0xff]  ;;  %v9301_v8 = vld [vmem:[#allocation20_spill] sm:$0xff]  ;;  %v9302_v60 = vld [vmem:[#allocation35_spill] sm:$0xff] }
 0x247   : > { %v2386_v6 = vsel %vm2377_vm7, %v2384_v1, %v2385_v14  ;;  %v3133_v0 = vadd.bf16 %v3117_v27, %v3097_v13  ;;  %v9300_v39 = vld [vmem:[#allocation30_spill] sm:$0xff]  ;;  %v1018_v9 = vmul.bf16 %v9302_v60, %v9301_v8  ;;  %v9307_v1 = vld [vmem:[#allocation51_spill] sm:$0xff]  ;;  %v9308_v8 = vld [vmem:[#allocation52_spill] sm:$0xff] }
 0x248   : > { %v2734_v4 = vunpack.c.l.bf16 %v2716_v15  ;;  %v2735_v32 = vunpack.c.h.bf16 %v2716_v15  ;;  %v3442_v56 = vadd.bf16 %v3426_v47, %v3406_v61  ;;  %v959_v34 = vmul.bf16 %v9300_v39, %v9299_v37  ;;  %v6516_v15 = vld [vmem:[#allocation2 + $0x48] sm:$0xf]  ;;  %v9304_v47 = vld [vmem:[#allocation21_spill] sm:$0xff]  ;;  %v9305_v43 = vld [vmem:[#allocation42_spill] sm:$0xff] }
 0x249   : > { %v2444_v35 = vadd.f32 %v2386_v6, %v2027_v33  ;;  %v3151_v44 = vunpack.c.l.bf16 %v3133_v0  ;;  %v3152_v51 = vunpack.c.h.bf16 %v3133_v0  ;;  %9303 = vst [vmem:[#allocation39_spill] sm:$0xff] %v6516_v15  ;;  %v1054_v12 = vmul.bf16 %v9305_v43, %v9304_v47  ;;  %v9306_v27 = vld [vmem:[#allocation102_spill] sm:$0xff]  ;;  %v9311_v43 = vld [vmem:[#allocation23_spill] sm:$0xff] }
 0x24a   : > { %v2801_v58 = vrot.slane %v2734_v4, 4  ;;  %v2802_v40 = vrot.slane %v2735_v32, 4  ;;  %v3478_v16 = vadd.bf16 %v3462_v57, %v3442_v56  ;;  %v998_v61 = vadd.bf16 %v982_v23, %v959_v34  ;;  %v9309_v0 = vld [vmem:[#allocation70_spill] sm:$0xff] }
 0x24b   : > { %v1090_v37 = vmul.bf16 %v9307_v1, %v9306_v27  ;;  %v1126_v6 = vmul.bf16 %v9308_v8, %v6385_v36  ;;  %v3218_v32 = vrot.slane %v3151_v44, 5  ;;  %v3219_v56 = vrot.slane %v3152_v51, 5  ;;  %v9310_v34 = vld [vmem:[#allocation22_spill] sm:$0xff]  ;;  %v9313_v1 = vld [vmem:[#allocation24_spill] sm:$0xff]  ;;  %v9316_v44 = vld [vmem:[#allocation43_spill] sm:$0xff] }
 0x24c   : > { %v2803_v13 = vsel %vm2794_vm8, %v2801_v58, %v2802_v40  ;;  %v3514_v14 = vadd.bf16 %v3498_v55, %v3478_v16  ;;  %v1034_v57 = vadd.bf16 %v1018_v9, %v998_v61  ;;  %v1162_v23 = vmul.bf16 %v9309_v0, %v6516_v15  ;;  %v9312_v58 = vld [vmem:[#allocation33_spill] sm:$0xff]  ;;  %v9314_v27 = vld [vmem:[#allocation38_spill] sm:$0xff]  ;;  %v6536_v61 = vld [vmem:[#allocation2 + $0x48] sm:$0x1f] }
 0x24d   : > { %v2861_v33 = vadd.f32 %v2803_v13, %v2444_v35  ;;  %v1247_v47 = vmul.bf16 %v9242_v54, %v9310_v34  ;;  %v1270_v16 = vmul.bf16 %v9312_v58, %v9311_v43  ;;  %v3220_v55 = vsel %vm3211_vm9, %v3218_v32, %v3219_v56  ;;  %v9315_v35 = vld [vmem:[#allocation25_spill] sm:$0xff]  ;;  %9317 = vst [vmem:[#allocation46_spill] sm:$0xff] %v6536_v61  ;;  %v9319_v0 = vld [vmem:[#allocation54_spill] sm:$0xff] }
 0x24e   : > { %v3550_v4 = vadd.bf16 %v3534_v31, %v3514_v14  ;;  %v1070_v40 = vadd.bf16 %v1054_v12, %v1034_v57  ;;  %v1306_v8 = vmul.bf16 %v9314_v27, %v9313_v1  ;;  %v1342_v51 = vmul.bf16 %v9316_v44, %v9315_v35  ;;  %v9318_v14 = vld [vmem:[#allocation103_spill] sm:$0xff]  ;;  %v9320_v43 = vld [vmem:[#allocation62_spill] sm:$0xff] }
 0x24f   : > { %v1286_v13 = vadd.bf16 %v1270_v16, %v1247_v47  ;;  %v1378_v34 = vmul.bf16 %v9319_v0, %v9318_v14  ;;  %v3278_v54 = vadd.f32 %v3220_v55, %v2861_v33  ;;  %v1414_v32 = vmul.bf16 %v9320_v43, %v6408_v29  ;;  %v6544_v35 = vld [vmem:[#allocation2 + $0x48] sm:$0x1e] }
 0x250   : > { %v3568_v9 = vunpack.c.l.bf16 %v3550_v4  ;;  %v3569_v31 = vunpack.c.h.bf16 %v3550_v4  ;;  %v1106_v15 = vadd.bf16 %v1090_v37, %v1070_v40  ;;  %v1664_v12 = vmul.bf16 %v9255_v38, %v9252_v53  ;;  %9321 = vst [vmem:[#allocation44_spill] sm:$0xff] %v6544_v35  ;;  %v9322_v4 = vld [vmem:[#allocation36_spill] sm:$0xff] }
 0x251   : > { %v1322_v57 = vadd.bf16 %v1306_v8, %v1286_v13  ;;  %v1687_v44 = vmul.bf16 %v9322_v4, %v9258_v41  ;;  %v1450_v16 = vmul.bf16 %v9254_v46, %v6536_v61  ;;  %v1723_v37 = vmul.bf16 %v9259_v17, %v9205_v48  ;;  %v9323_v41 = vld [vmem:[#allocation65_spill] sm:$0xff]  ;;  %v6561_v17 = vld [vmem:[#allocation2 + $0x48] sm:$0x3e] }
 0x252   : > { %v3635_v1 = vrot.slane %v3568_v9, 6  ;;  %v3636_v56 = vrot.slane %v3569_v31, 6  ;;  %v1142_v47 = vadd.bf16 %v1126_v6, %v1106_v15  ;;  %v1759_v33 = vmul.bf16 %v9260_v62, %v9207_v3  ;;  %v9324_v6 = vld [vmem:[#allocation75_spill] sm:$0xff]  ;;  %9325 = vst [vmem:[#allocation95_spill] sm:$0xff] %v6561_v17 }
 0x253   : > { %v1358_v55 = vadd.bf16 %v1342_v51, %v1322_v57  ;;  %v1703_v40 = vadd.bf16 %v1687_v44, %v1664_v12  ;;  %v1795_v8 = vmul.bf16 %v9206_v22, %v6308_v28  ;;  %v1831_v15 = vmul.bf16 %v9323_v41, %v6419_v25  ;;  %v9326_v44 = vld [vmem:[#allocation45_spill] sm:$0xff]  ;;  %v9327_v12 = vld [vmem:[#allocation88_spill] sm:$0xff]  ;;  %v9334_v41 = vld [vmem:[#allocation71_spill] sm:$0xff] }
 0x254   : > { %v3637_v53 = vsel %vm865_vm0, %v3635_v1, %v3636_v56  ;;  %v1178_v31 = vadd.bf16 %v1162_v23, %v1142_v47  ;;  %v1867_v13 = vmul.bf16 %v9324_v6, %v6544_v35  ;;  %v2081_v3 = vmul.bf16 %v9266_v50, %v9209_v19  ;;  %v9329_v23 = vld [vmem:[#allocation49_spill] sm:$0xff]  ;;  %v9331_v47 = vld [vmem:[#allocation27_spill] sm:$0xff]  ;;  %v9335_v19 = vld [vmem:[#allocation92_spill] sm:$0xff] }
 0x255   : > { %v3695_v9 = vadd.f32 %v3637_v53, %v3278_v54  ;;  %v1394_v46 = vadd.bf16 %v1378_v34, %v1358_v55  ;;  %v1739_v48 = vadd.bf16 %v1723_v37, %v1703_v40  ;;  %v2104_v51 = vmul.bf16 %v9326_v44, %v6167_v18  ;;  %v9330_v56 = vld [vmem:[#allocation53_spill] sm:$0xff]  ;;  %v9332_v53 = vld [vmem:[#allocation66_spill] sm:$0xff]  ;;  %v9336_v18 = vld [vmem:[#allocation72_spill] sm:$0xff] }
 0x256   : > { %v1194_v54 = vunpack.c.l.bf16 %v1178_v31  ;;  %v2140_v57 = vmul.bf16 %v9330_v56, %v9329_v23  ;;  %v2176_v6 = vmul.bf16 %v9332_v53, %v9331_v47  ;;  %v9333_v40 = vld [vmem:[#allocation89_spill] sm:$0xff]  ;;  %v2248_v44 = vmul.bf16 %v9336_v18, %v9335_v19  ;;  %v9339_v56 = vld [vmem:[#allocation28_spill] sm:$0xff] }
 0x257   : > { %v6568_v1 = vadd.f32 %v9327_v12, %v3695_v9  ;;  %v1430_v34 = vadd.bf16 %v1414_v32, %v1394_v46  ;;  %v1775_v37 = vadd.bf16 %v1759_v33, %v1739_v48  ;;  %v2120_v55 = vadd.bf16 %v2104_v51, %v2081_v3  ;;  %v9337_v9 = vld [vmem:[#allocation76_spill] sm:$0xff]  ;;  %v9338_v12 = vld [vmem:[#allocation63_spill] sm:$0xff]  ;;  %v9342_v18 = vld [vmem:[#allocation77_spill] sm:$0xff] }
 0x258   : > { %v2212_v35 = vmul.bf16 %v9334_v41, %v9333_v40  ;;  %v2284_v31 = vmul.bf16 %v9337_v9, %v6561_v17  ;;  %v2498_v23 = vmul.bf16 %v9275_v11, %v9338_v12  ;;  %v9340_v50 = vld [vmem:[#allocation48_spill] sm:$0xff]  ;;  %v2593_v41 = vmul.bf16 %v9342_v18, %v6219_v42  ;;  %v9343_v9 = vld [vmem:[#allocation79_spill] sm:$0xff] }
 0x259   : > { %9328 = vst [vmem:[#allocation55_spill] sm:$0xff] %v6568_v1  ;;  %3736 = vadd.xlane.f32.xlu0 %v6568_v1  ;;  %v2521_v47 = vmul.bf16 %v9340_v50, %v9339_v56  ;;  %v1466_v46 = vadd.bf16 %v1450_v16, %v1430_v34  ;;  %v1811_v32 = vadd.bf16 %v1795_v8, %v1775_v37  ;;  %v6585_v48 = vld [vmem:[#allocation2 + $0x48] sm:$0x3c] }
 0x25a   : > { %v2156_v33 = vadd.bf16 %v2140_v57, %v2120_v55  ;;  %v9341_v3 = vld [vmem:[#allocation56_spill] sm:$0xff]  ;;  %v2629_v17 = vmul.bf16 %v9343_v9, %v6342_v49  ;;  %v2701_v34 = vmul.bf16 %v5931_v24, %v6585_v48  ;;  %v2915_v37 = vmul.bf16 %v9281_v52, %v6224_v2  ;;  %v9345_v55 = vld [vmem:[#allocation98_spill] sm:$0xff] }
 0x25b   : > { %v2557_v51 = vmul.bf16 %v9341_v3, %v6215_v63  ;;  %v2537_v1 = vadd.bf16 %v2521_v47, %v2498_v23  ;;  %v9344_v12 = vld [vmem:[#allocation80_spill] sm:$0xff]  ;;  %v1485_v19 = vunpack.c.l.bf16 %v1466_v46  ;;  %v1486_v56 = vunpack.c.h.bf16 %v1466_v46  ;;  %v9346_v23 = vld [vmem:[#allocation58_spill] sm:$0xff]  ;;  %v9348_v46 = vld [vmem:[#allocation67_spill] sm:$0xff] }
 0x25c   : > { %v2665_v11 = vmul.bf16 %v9344_v12, %v6460_v5  ;;  %v1847_v16 = vadd.bf16 %v1831_v15, %v1811_v32  ;;  %v2192_v8 = vadd.bf16 %v2176_v6, %v2156_v33  ;;  %v2938_v47 = vmul.bf16 %v9346_v23, %v9345_v55  ;;  %v9347_v5 = vld [vmem:[#allocation99_spill] sm:$0xff]  ;;  %v9349_v6 = vld [vmem:[#allocation78_spill] sm:$0xff] }
 0x25d   : > { %v2573_v57 = vadd.bf16 %v2557_v51, %v2537_v1  ;;  %v1553_v18 = vrot.slane %v1485_v19, 1  ;;  %v1554_v3 = vrot.slane %v1486_v56, 1  ;;  %v2974_v15 = vmul.bf16 %v9348_v46, %v9347_v5  ;;  %v9350_v19 = vld [vmem:[#allocation83_spill] sm:$0xff] }
 0x25e   : > { %v1883_v9 = vadd.bf16 %v1867_v13, %v1847_v16  ;;  %v2228_v49 = vadd.bf16 %v2212_v35, %v2192_v8  ;;  %v2954_v12 = vadd.bf16 %v2938_v47, %v2915_v37  ;;  %v3010_v1 = vmul.bf16 %v9349_v6, %v6240_v20 }
 0x25f   : > { %v2609_v42 = vadd.bf16 %v2593_v41, %v2573_v57  ;;  %v1555_v32 = vsel %vm1543_vm6, %v1553_v18, %v1554_v3  ;;  %v3046_v13 = vmul.bf16 %v9350_v19, %v6355_v59  ;;  %v3082_v16 = vmul.bf16 %v5941_v45, %v6483_v7  ;;  %v6610_v57 = vld [vmem:[#allocation2 + $0x48] sm:$0x7c]  ;;  %v9353_v3 = vld [vmem:[#allocation101_spill] sm:$0xff] }
 0x260   : > { %v1902_v33 = vunpack.c.l.bf16 %v1883_v9  ;;  %v1903_v51 = vunpack.c.h.bf16 %v1883_v9  ;;  %v2264_v2 = vadd.bf16 %v2248_v44, %v2228_v49  ;;  %v1611_v24 = vadd.f32 %v1555_v32, %v1194_v54  ;;  %v9351_v49 = vld [vmem:[#allocation100_spill] sm:$0xff]  ;;  %v9352_v44 = vld [vmem:[#allocation61_spill] sm:$0xff] }
 0x261   : > { %v2645_v52 = vadd.bf16 %v2629_v17, %v2609_v42  ;;  %v2990_v23 = vadd.bf16 %v2974_v15, %v2954_v12  ;;  %v3332_v18 = vmul.bf16 %v9290_v10, %v6232_v21  ;;  %v3355_v42 = vmul.bf16 %v9352_v44, %v9351_v49  ;;  %v9354_v12 = vld [vmem:[#allocation69_spill] sm:$0xff] }
 0x262   : > { %v1970_v35 = vrot.slane %v1902_v33, 2  ;;  %v1971_v41 = vrot.slane %v1903_v51, 2  ;;  %v2300_v56 = vadd.bf16 %v2284_v31, %v2264_v2  ;;  %v3391_v31 = vmul.bf16 %v9354_v12, %v9353_v3  ;;  %v9356_v21 = vld [vmem:[#allocation81_spill] sm:$0xff] }
 0x263   : > { %v2681_v8 = vadd.bf16 %v2665_v11, %v2645_v52  ;;  %v3026_v37 = vadd.bf16 %v3010_v1, %v2990_v23  ;;  %v3371_v52 = vadd.bf16 %v3355_v42, %v3332_v18  ;;  %v9355_v23 = vld [vmem:[#allocation85_spill] sm:$0xff]  ;;  %v3427_v51 = vmul.bf16 %v9356_v21, %v6262_v26  ;;  %v4956_v18 = vld [vmem:[#allocation2 + $0x20] sm:$0xf] }
 0x264   : > { %v1972_v17 = vsel %vm884_vm2, %v1970_v35, %v1971_v41  ;;  %v2319_v54 = vunpack.c.l.bf16 %v2300_v56  ;;  %v2320_v9 = vunpack.c.h.bf16 %v2300_v56  ;;  %v3118_v1 = vmul.bf16 %v9355_v23, %v6610_v57  ;;  %v6623_v41 = vld [vmem:[#allocation2 + $0x48] sm:$0x78] }
 0x265   : > { %v2028_v47 = vadd.f32 %v1972_v17, %v1611_v24  ;;  %v2717_v15 = vadd.bf16 %v2701_v34, %v2681_v8  ;;  %v3062_v32 = vadd.bf16 %v3046_v13, %v3026_v37  ;;  %9357 = vst [vmem:[#allocation59_spill] sm:$0xff] %v6623_v41  ;;  %v3407_v56 = vadd.bf16 %v3391_v31, %v3371_v52  ;;  %v9358_v24 = vld [vmem:[#allocation86_spill] sm:$0xff]  ;;  %v9359_v13 = vld [vmem:[#allocation37_spill] sm:$0xff]  ;;  %v9360_v8 = vld [vmem:[#allocation87_spill] sm:$0xff] }
 0x266   : > { %v2387_v11 = vrot.slane %v2319_v54, 3  ;;  %v2388_v33 = vrot.slane %v2320_v9, 3  ;;  %v3463_v34 = vmul.bf16 %v9358_v24, %v9294_v30  ;;  %v3499_v37 = vmul.bf16 %v9360_v8, %v9359_v13  ;;  %v6633_v31 = vld [vmem:[#allocation2 + $0x28] sm:$0xf]  ;;  %v9370_v13 = vld [vmem:[#allocation52_spill] sm:$0xff] }
 0x267   : > { %v2736_v2 = vunpack.c.l.bf16 %v2717_v15  ;;  %v2737_v49 = vunpack.c.h.bf16 %v2717_v15  ;;  %v3098_v35 = vadd.bf16 %v3082_v16, %v3062_v32  ;;  %v960_v42 = vmul.bf16 %v4956_v18, %v9300_v39  ;;  %v9361_v16 = vld [vmem:[#allocation90_spill] sm:$0xff]  ;;  %9362 = vst [vmem:[#allocation68_spill] sm:$0xff] %v6633_v31  ;;  %v9363_v52 = vld [vmem:[#allocation31_spill] sm:$0xff] }
 0x268   : > { %v2389_v3 = vsel %vm2377_vm7, %v2387_v11, %v2388_v33  ;;  %v3443_v15 = vadd.bf16 %v3427_v51, %v3407_v56  ;;  %v3535_v32 = vmul.bf16 %v9361_v16, %v6623_v41  ;;  %v983_v11 = vmul.bf16 %v6633_v31, %v9363_v52  ;;  %v6637_v33 = vld [vmem:[#allocation2 + $0x30] sm:$0xf]  ;;  %v9368_v16 = vld [vmem:[#allocation51_spill] sm:$0xff] }
 0x269   : > { %v2445_v17 = vadd.f32 %v2389_v3, %v2028_v47  ;;  %v2804_v54 = vrot.slane %v2736_v2, 4  ;;  %v2805_v26 = vrot.slane %v2737_v49, 4  ;;  %v3134_v9 = vadd.bf16 %v3118_v1, %v3098_v35  ;;  %9364 = vst [vmem:[#allocation73_spill] sm:$0xff] %v6637_v33  ;;  %v9365_v49 = vld [vmem:[#allocation102_spill] sm:$0xff]  ;;  %v6644_v3 = vld [vmem:[#allocation2 + $0x50] sm:$0xf] }
 0x26a   : > { %v1019_v8 = vmul.bf16 %v6637_v33, %v9302_v60  ;;  %v9366_v1 = vld [vmem:[#allocation42_spill] sm:$0xff]  ;;  %v3479_v56 = vadd.bf16 %v3463_v34, %v3443_v15  ;;  %9367 = vst [vmem:[#allocation19_spill] sm:$0xff] %v6644_v3  ;;  %v999_v39 = vadd.bf16 %v983_v11, %v960_v42  ;;  %v1091_v52 = vmul.bf16 %v9368_v16, %v6385_v36  ;;  %v9369_v24 = vld [vmem:[#allocation39_spill] sm:$0xff] }
 0x26b   : > { %v2806_v18 = vsel %vm2794_vm8, %v2804_v54, %v2805_v26  ;;  %v3153_v47 = vunpack.c.l.bf16 %v3134_v9  ;;  %v3154_v2 = vunpack.c.h.bf16 %v3134_v9  ;;  %v1055_v51 = vmul.bf16 %v9366_v1, %v9365_v49  ;;  %v4959_v33 = vld [vmem:[#allocation2 + $0x20] sm:$0x1f]  ;;  %v9371_v54 = vld [vmem:[#allocation32_spill] sm:$0xff] }
 0x26c   : > { %v2862_v35 = vadd.f32 %v2806_v18, %v2445_v17  ;;  %v1127_v60 = vmul.bf16 %v9370_v13, %v9369_v24  ;;  %v1248_v26 = vmul.bf16 %v4959_v33, %v9371_v54  ;;  %v3515_v9 = vadd.bf16 %v3499_v37, %v3479_v56  ;;  %v6651_v30 = vld [vmem:[#allocation2 + $0x28] sm:$0x1f]  ;;  %v6655_v17 = vld [vmem:[#allocation2 + $0x30] sm:$0x1f]  ;;  %v9373_v11 = vld [vmem:[#allocation70_spill] sm:$0xff] }
 0x26d   : > { %v3221_v31 = vrot.slane %v3153_v47, 5  ;;  %v3222_v41 = vrot.slane %v3154_v2, 5  ;;  %v1035_v21 = vadd.bf16 %v1019_v8, %v999_v39  ;;  %v1271_v34 = vmul.bf16 %v6651_v30, %v9312_v58  ;;  %9372 = vst [vmem:[#allocation18_spill] sm:$0xff] %v6655_v17  ;;  %v9374_v47 = vld [vmem:[#allocation43_spill] sm:$0xff]  ;;  %v6666_v2 = vld [vmem:[#allocation2 + $0x50] sm:$0x1f] }
 0x26e   : > { %v1307_v42 = vmul.bf16 %v6655_v17, %v9314_v27  ;;  %v1163_v18 = vmul.bf16 %v9373_v11, %v6644_v3  ;;  %v1343_v33 = vmul.bf16 %v9374_v47, %v9318_v14  ;;  %v1379_v39 = vmul.bf16 %v9319_v0, %v6408_v29  ;;  %9375 = vst [vmem:[#allocation20_spill] sm:$0xff] %v6666_v2  ;;  %v4962_v17 = vld [vmem:[#allocation2 + $0x20] sm:$0x1e]  ;;  %v6675_v47 = vld [vmem:[#allocation2 + $0x30] sm:$0x1e] }
 0x26f   : > { %v3223_v15 = vsel %vm3211_vm9, %v3221_v31, %v3222_v41  ;;  %v3551_v8 = vadd.bf16 %v3535_v32, %v3515_v9  ;;  %v1071_v37 = vadd.bf16 %v1055_v51, %v1035_v21  ;;  %v1287_v49 = vadd.bf16 %v1271_v34, %v1248_v26  ;;  %v6671_v31 = vld [vmem:[#allocation2 + $0x28] sm:$0x1e]  ;;  %9377 = vst [vmem:[#allocation22_spill] sm:$0xff] %v6675_v47  ;;  %v9379_v34 = vld [vmem:[#allocation74_spill] sm:$0xff]  ;;  %v6685_v29 = vld [vmem:[#allocation2 + $0x50] sm:$0x1e] }
 0x270   : > { %v1415_v56 = vmul.bf16 %v9320_v43, %v6536_v61  ;;  %v3279_v27 = vadd.f32 %v3223_v15, %v2862_v35  ;;  %v1665_v41 = vmul.bf16 %v4962_v17, %v9255_v38  ;;  %9376 = vst [vmem:[#allocation21_spill] sm:$0xff] %v6671_v31  ;;  %v1688_v14 = vmul.bf16 %v6671_v31, %v9322_v4  ;;  %v9378_v0 = vld [vmem:[#allocation40_spill] sm:$0xff] }
 0x271   : > { %v1724_v21 = vmul.bf16 %v6675_v47, %v9378_v0  ;;  %v3570_v32 = vunpack.c.l.bf16 %v3551_v8  ;;  %v3571_v51 = vunpack.c.h.bf16 %v3551_v8  ;;  %v1107_v26 = vadd.bf16 %v1091_v52, %v1071_v37  ;;  %v9380_v8 = vld [vmem:[#allocation44_spill] sm:$0xff]  ;;  %v9381_v52 = vld [vmem:[#allocation65_spill] sm:$0xff]  ;;  %v4965_v37 = vld [vmem:[#allocation2 + $0x20] sm:$0x3e] }
 0x272   : > { %v1323_v9 = vadd.bf16 %v1307_v42, %v1287_v49  ;;  %v1451_v35 = vmul.bf16 %v9379_v34, %v6666_v2  ;;  %v1704_v15 = vadd.bf16 %v1688_v14, %v1665_v41  ;;  %v1760_v17 = vmul.bf16 %v9260_v62, %v6308_v28  ;;  %v9382_v49 = vld [vmem:[#allocation41_spill] sm:$0xff]  ;;  %v6690_v41 = vld [vmem:[#allocation2 + $0x28] sm:$0x3e] }
 0x273   : > { %v1796_v38 = vmul.bf16 %v9206_v22, %v6419_v25  ;;  %v3638_v4 = vrot.slane %v3570_v32, 6  ;;  %v3639_v31 = vrot.slane %v3571_v51, 6  ;;  %v1143_v43 = vadd.bf16 %v1127_v60, %v1107_v26  ;;  %v9383_v14 = vld [vmem:[#allocation45_spill] sm:$0xff] }
 0x274   : > { %v1359_v61 = vadd.bf16 %v1343_v33, %v1323_v9  ;;  %v1740_v0 = vadd.bf16 %v1724_v21, %v1704_v15  ;;  %v1832_v42 = vmul.bf16 %v9381_v52, %v9380_v8  ;;  %v2082_v47 = vmul.bf16 %v4965_v37, %v9382_v49  ;;  %v6695_v60 = vld [vmem:[#allocation2 + $0x30] sm:$0x3e]  ;;  %v9386_v15 = vld [vmem:[#allocation75_spill] sm:$0xff] }
 0x275   : > { %v2105_v28 = vmul.bf16 %v6690_v41, %v9383_v14  ;;  %v3640_v22 = vsel %vm865_vm0, %v3638_v4, %v3639_v31  ;;  %v1179_v32 = vadd.bf16 %v1163_v18, %v1143_v43  ;;  %9384 = vst [vmem:[#allocation23_spill] sm:$0xff] %v6695_v60  ;;  %v9385_v33 = vld [vmem:[#allocation53_spill] sm:$0xff]  ;;  %v1868_v52 = vmul.bf16 %v9386_v15, %v6685_v29  ;;  %v9387_v43 = vld [vmem:[#allocation92_spill] sm:$0xff] }
 0x276   : > { %v1395_v51 = vadd.bf16 %v1379_v39, %v1359_v61  ;;  %v2141_v21 = vmul.bf16 %v6695_v60, %v9385_v33  ;;  %v3696_v26 = vadd.f32 %v3640_v22, %v3279_v27  ;;  %v1776_v9 = vadd.bf16 %v1760_v17, %v1740_v0  ;;  %v6701_v62 = vld [vmem:[#allocation2 + $0x50] sm:$0x3e]  ;;  %v9388_v61 = vld [vmem:[#allocation71_spill] sm:$0xff] }
 0x277   : > { %v2121_v37 = vadd.bf16 %v2105_v28, %v2082_v47  ;;  %v1195_v49 = vunpack.c.l.bf16 %v1179_v32  ;;  %v2177_v4 = vmul.bf16 %v9332_v53, %v9333_v40  ;;  %v2213_v18 = vmul.bf16 %v9388_v61, %v9387_v43  ;;  %v9389_v39 = vld [vmem:[#allocation88_spill] sm:$0xff]  ;;  %v9391_v27 = vld [vmem:[#allocation95_spill] sm:$0xff] }
 0x278   : > { %v1431_v8 = vadd.bf16 %v1415_v56, %v1395_v51  ;;  %v6708_v31 = vadd.f32 %v9389_v39, %v3696_v26  ;;  %v1812_v33 = vadd.bf16 %v1796_v38, %v1776_v9  ;;  %v9392_v0 = vld [vmem:[#allocation72_spill] sm:$0xff]  ;;  %v4968_v47 = vld [vmem:[#allocation2 + $0x20] sm:$0x3c]  ;;  %v2522_v32 = vmul.bf16 %v9340_v50, %v6215_v63  ;;  %v9394_v51 = vld [vmem:[#allocation29_spill] sm:$0xff] }
 0x279   : > { %v2157_v22 = vadd.bf16 %v2141_v21, %v2121_v37  ;;  %v2249_v17 = vmul.bf16 %v9392_v0, %v9391_v27  ;;  %v9393_v28 = vld [vmem:[#allocation47_spill] sm:$0xff]  ;;  %v9395_v40 = vld [vmem:[#allocation56_spill] sm:$0xff]  ;;  %v9397_v9 = vld [vmem:[#allocation97_spill] sm:$0xff] }
 0x27a   : > { %9390 = vst [vmem:[#allocation24_spill] sm:$0xff] %v6708_v31  ;;  %v1467_v60 = vadd.bf16 %v1451_v35, %v1431_v8  ;;  %v2499_v56 = vmul.bf16 %v4968_v47, %v9393_v28  ;;  %v2558_v53 = vmul.bf16 %v9395_v40, %v9394_v51  ;;  %3738 = vadd.xlane.f32.xlu1 %v6708_v31  ;;  %v9396_v38 = vld [vmem:[#allocation76_spill] sm:$0xff]  ;;  %v9398_v37 = vld [vmem:[#allocation77_spill] sm:$0xff]  ;;  %v9399_v47 = vld [vmem:[#allocation94_spill] sm:$0xff] }
 0x27b   : > { %v1848_v61 = vadd.bf16 %v1832_v42, %v1812_v33  ;;  %v2193_v26 = vadd.bf16 %v2177_v4, %v2157_v22  ;;  %v2285_v21 = vmul.bf16 %v9396_v38, %v6701_v62  ;;  %v2594_v39 = vmul.bf16 %v9398_v37, %v9397_v9  ;;  %v9400_v28 = vld [vmem:[#allocation79_spill] sm:$0xff]  ;;  %v6724_v43 = vld [vmem:[#allocation2 + $0x50] sm:$0x3c]  ;;  %v9404_v9 = vld [vmem:[#allocation58_spill] sm:$0xff] }
 0x27c   : > { %v1487_v35 = vunpack.c.l.bf16 %v1467_v60  ;;  %v1488_v8 = vunpack.c.h.bf16 %v1467_v60  ;;  %v2538_v0 = vadd.bf16 %v2522_v32, %v2499_v56  ;;  %v2630_v27 = vmul.bf16 %v9400_v28, %v9399_v47  ;;  %9401 = vst [vmem:[#allocation25_spill] sm:$0xff] %v6724_v43  ;;  %v9402_v51 = vld [vmem:[#allocation80_spill] sm:$0xff]  ;;  %v9403_v33 = vld [vmem:[#allocation57_spill] sm:$0xff] }
 0x27d   : > { %v1884_v63 = vadd.bf16 %v1868_v52, %v1848_v61  ;;  %v2229_v50 = vadd.bf16 %v2213_v18, %v2193_v26  ;;  %v2666_v42 = vmul.bf16 %v9402_v51, %v6585_v48  ;;  %v2916_v4 = vmul.bf16 %v9403_v33, %v9345_v55  ;;  %v9405_v26 = vld [vmem:[#allocation82_spill] sm:$0xff] }
 0x27e   : > { %v1556_v22 = vrot.slane %v1487_v35, 1  ;;  %v1557_v31 = vrot.slane %v1488_v8, 1  ;;  %v2574_v40 = vadd.bf16 %v2558_v53, %v2538_v0  ;;  %v2939_v60 = vmul.bf16 %v9404_v9, %v9347_v5 }
 0x27f   : > { %v1904_v56 = vunpack.c.l.bf16 %v1884_v63  ;;  %v1905_v32 = vunpack.c.h.bf16 %v1884_v63  ;;  %v2265_v37 = vadd.bf16 %v2249_v17, %v2229_v50  ;;  %v2975_v52 = vmul.bf16 %v9348_v46, %v6240_v20 }
 0x280   : > { %v1558_v61 = vsel %vm1543_vm6, %v1556_v22, %v1557_v31  ;;  %v2610_v18 = vadd.bf16 %v2594_v39, %v2574_v40  ;;  %v2702_v51 = vmul.bf16 %v9405_v26, %v6724_v43  ;;  %v2955_v28 = vadd.bf16 %v2939_v60, %v2916_v4  ;;  %v6742_v40 = vld [vmem:[#allocation2 + $0x50] sm:$0x7c]  ;;  %v6749_v22 = vld [vmem:[#allocation2 + $0x28] sm:$0x78] }
 0x281   : > { %v1612_v55 = vadd.f32 %v1558_v61, %v1195_v49  ;;  %v1973_v35 = vrot.slane %v1904_v56, 2  ;;  %v1974_v8 = vrot.slane %v1905_v32, 2  ;;  %v2301_v53 = vadd.bf16 %v2285_v21, %v2265_v37  ;;  %v6747_v4 = vld [vmem:[#allocation2 + $0x50] sm:$0x78]  ;;  %v9408_v61 = vld [vmem:[#allocation26_spill] sm:$0xff] }
 0x282   : > { %v2646_v0 = vadd.bf16 %v2630_v27, %v2610_v18  ;;  %v2991_v33 = vadd.bf16 %v2975_v52, %v2955_v28  ;;  %v3011_v5 = vmul.bf16 %v9349_v6, %v6355_v59  ;;  %v3047_v50 = vmul.bf16 %v9350_v19, %v6483_v7  ;;  %v4969_v27 = vld [vmem:[#allocation2 + $0x20] sm:$0x78]  ;;  %9406 = vst [vmem:[#allocation103_spill] sm:$0xff] %v6747_v4  ;;  %v6753_v56 = vld [vmem:[#allocation2 + $0x30] sm:$0x78] }
 0x283   : > { %v1975_v20 = vsel %vm884_vm2, %v1973_v35, %v1974_v8  ;;  %v2321_v31 = vunpack.c.l.bf16 %v2301_v53  ;;  %v2322_v17 = vunpack.c.h.bf16 %v2301_v53  ;;  %v3083_v49 = vmul.bf16 %v5941_v45, %v6610_v57  ;;  %9407 = vst [vmem:[#allocation49_spill] sm:$0xff] %v6753_v56  ;;  %v9409_v18 = vld [vmem:[#allocation81_spill] sm:$0xff] }
 0x284   : > { %v2029_v39 = vadd.f32 %v1975_v20, %v1612_v55  ;;  %v2682_v63 = vadd.bf16 %v2666_v42, %v2646_v0  ;;  %v3027_v21 = vadd.bf16 %v3011_v5, %v2991_v33  ;;  %v3333_v28 = vmul.bf16 %v4969_v27, %v9290_v10  ;;  %v9410_v53 = vld [vmem:[#allocation37_spill] sm:$0xff]  ;;  %v9411_v0 = vld [vmem:[#allocation86_spill] sm:$0xff]  ;;  %v9412_v20 = vld [vmem:[#allocation59_spill] sm:$0xff] }
 0x285   : > { %v2390_v37 = vrot.slane %v2321_v31, 3  ;;  %v2391_v59 = vrot.slane %v2322_v17, 3  ;;  %v3356_v60 = vmul.bf16 %v6749_v22, %v9352_v44  ;;  %v3392_v32 = vmul.bf16 %v6753_v56, %v9354_v12  ;;  %v9413_v31 = vld [vmem:[#allocation87_spill] sm:$0xff]  ;;  %v9416_v56 = vld [vmem:[#allocation68_spill] sm:$0xff] }
 0x286   : > { %v2718_v52 = vadd.bf16 %v2702_v51, %v2682_v63  ;;  %v3063_v42 = vadd.bf16 %v3047_v50, %v3027_v21  ;;  %v3119_v33 = vmul.bf16 %v9355_v23, %v6742_v40  ;;  %v3428_v55 = vmul.bf16 %v9409_v18, %v9408_v61  ;;  %v9414_v51 = vld [vmem:[#allocation90_spill] sm:$0xff]  ;;  %v9417_v18 = vld [vmem:[#allocation31_spill] sm:$0xff] }
 0x287   : > { %v2392_v35 = vsel %vm2377_vm7, %v2390_v37, %v2391_v59  ;;  %v3372_v8 = vadd.bf16 %v3356_v60, %v3333_v28  ;;  %v3464_v5 = vmul.bf16 %v9411_v0, %v9410_v53  ;;  %v3500_v17 = vmul.bf16 %v9413_v31, %v9412_v20  ;;  %v9415_v23 = vld [vmem:[#allocation30_spill] sm:$0xff]  ;;  %v9418_v37 = vld [vmem:[#allocation73_spill] sm:$0xff] }
 0x288   : > { %v2738_v27 = vunpack.c.l.bf16 %v2718_v52  ;;  %v2739_v44 = vunpack.c.h.bf16 %v2718_v52  ;;  %v3099_v12 = vadd.bf16 %v3083_v49, %v3063_v42  ;;  %v3536_v50 = vmul.bf16 %v9414_v51, %v6747_v4  ;;  %v6772_v53 = vld [vmem:[#allocation2 + $0x58] sm:$0xf]  ;;  %v9421_v52 = vld [vmem:[#allocation35_spill] sm:$0xff] }
 0x289   : > { %v2446_v63 = vadd.f32 %v2392_v35, %v2029_v39  ;;  %v3408_v21 = vadd.bf16 %v3392_v32, %v3372_v8  ;;  %v961_v61 = vmul.bf16 %v9416_v56, %v9415_v23  ;;  %v984_v28 = vmul.bf16 %v9418_v37, %v9417_v18  ;;  %9419 = vst [vmem:[#allocation27_spill] sm:$0xff] %v6772_v53  ;;  %v6774_v31 = vld [vmem:[#allocation2 + $0x38] sm:$0xf] }
 0x28a   : > { %v2807_v59 = vrot.slane %v2738_v27, 4  ;;  %v2808_v60 = vrot.slane %v2739_v44, 4  ;;  %v3135_v0 = vadd.bf16 %v3119_v33, %v3099_v12  ;;  %9420 = vst [vmem:[#allocation89_spill] sm:$0xff] %v6774_v31  ;;  %v1020_v49 = vmul.bf16 %v6774_v31, %v9421_v52 }
 0x28b   : > { %v3444_v42 = vadd.bf16 %v3428_v55, %v3408_v21  ;;  %v1000_v51 = vadd.bf16 %v984_v28, %v961_v61  ;;  %v1056_v39 = vmul.bf16 %v9366_v1, %v6385_v36  ;;  %v1092_v56 = vmul.bf16 %v9368_v16, %v9369_v24  ;;  %v6787_v28 = vld [vmem:[#allocation2 + $0x58] sm:$0x1f] }
 0x28c   : > { %v2809_v32 = vsel %vm2794_vm8, %v2807_v59, %v2808_v60  ;;  %v3155_v35 = vunpack.c.l.bf16 %v3135_v0  ;;  %v3156_v44 = vunpack.c.h.bf16 %v3135_v0  ;;  %v1128_v12 = vmul.bf16 %v9370_v13, %v6644_v3  ;;  %9422 = vst [vmem:[#allocation63_spill] sm:$0xff] %v6787_v28  ;;  %v9423_v59 = vld [vmem:[#allocation18_spill] sm:$0xff] }
 0x28d   : > { %v2863_v33 = vadd.f32 %v2809_v32, %v2446_v63  ;;  %v3480_v8 = vadd.bf16 %v3464_v5, %v3444_v42  ;;  %v1036_v27 = vadd.bf16 %v1020_v49, %v1000_v51  ;;  %v1164_v55 = vmul.bf16 %v9373_v11, %v6772_v53  ;;  %v6793_v1 = vld [vmem:[#allocation2 + $0x38] sm:$0x1f]  ;;  %v9426_v51 = vld [vmem:[#allocation91_spill] sm:$0xff] }
 0x28e   : > { %v3224_v21 = vrot.slane %v3155_v35, 5  ;;  %v3225_v61 = vrot.slane %v3156_v44, 5  ;;  %v1249_v36 = vmul.bf16 %v6651_v30, %v9371_v54  ;;  %v1272_v60 = vmul.bf16 %v9423_v59, %v9312_v58  ;;  %9424 = vst [vmem:[#allocation28_spill] sm:$0xff] %v6793_v1  ;;  %v9425_v63 = vld [vmem:[#allocation38_spill] sm:$0xff]  ;;  %v9427_v49 = vld [vmem:[#allocation43_spill] sm:$0xff] }
 0x28f   : > { %v3516_v0 = vadd.bf16 %v3500_v17, %v3480_v8  ;;  %v1072_v16 = vadd.bf16 %v1056_v39, %v1036_v27  ;;  %v1308_v5 = vmul.bf16 %v6793_v1, %v9425_v63  ;;  %v1344_v42 = vmul.bf16 %v9427_v49, %v9426_v51  ;;  %v9428_v44 = vld [vmem:[#allocation46_spill] sm:$0xff]  ;;  %v9433_v51 = vld [vmem:[#allocation21_spill] sm:$0xff] }
 0x290   : > { %v3226_v32 = vsel %vm3211_vm9, %v3224_v21, %v3225_v61  ;;  %v1288_v35 = vadd.bf16 %v1272_v60, %v1249_v36  ;;  %v9429_v11 = vld [vmem:[#allocation54_spill] sm:$0xff]  ;;  %v1452_v8 = vmul.bf16 %v9379_v34, %v6787_v28  ;;  %v9434_v21 = vld [vmem:[#allocation36_spill] sm:$0xff] }
 0x291   : > { %v1380_v13 = vmul.bf16 %v9429_v11, %v9428_v44  ;;  %v9430_v30 = vld [vmem:[#allocation62_spill] sm:$0xff]  ;;  %v3280_v58 = vadd.f32 %v3226_v32, %v2863_v33  ;;  %v3552_v17 = vadd.bf16 %v3536_v50, %v3516_v0  ;;  %v1108_v39 = vadd.bf16 %v1092_v56, %v1072_v16  ;;  %v9437_v11 = vld [vmem:[#allocation40_spill] sm:$0xff] }
 0x292   : > { %v1416_v54 = vmul.bf16 %v9430_v30, %v6666_v2  ;;  %v1324_v27 = vadd.bf16 %v1308_v5, %v1288_v35  ;;  %v6806_v63 = vld [vmem:[#allocation2 + $0x58] sm:$0x1e]  ;;  %v9439_v35 = vld [vmem:[#allocation44_spill] sm:$0xff] }
 0x293   : > { %9431 = vst [vmem:[#allocation98_spill] sm:$0xff] %v6806_v63  ;;  %v9432_v1 = vld [vmem:[#allocation34_spill] sm:$0xff]  ;;  %v3572_v33 = vunpack.c.l.bf16 %v3552_v17  ;;  %v3573_v50 = vunpack.c.h.bf16 %v3552_v17  ;;  %v1144_v16 = vadd.bf16 %v1128_v12, %v1108_v39  ;;  %v9440_v34 = vld [vmem:[#allocation64_spill] sm:$0xff]  ;;  %v9442_v12 = vld [vmem:[#allocation41_spill] sm:$0xff] }
 0x294   : > { %v1666_v49 = vmul.bf16 %v9433_v51, %v9432_v1  ;;  %v9435_v61 = vld [vmem:[#allocation22_spill] sm:$0xff]  ;;  %v1360_v5 = vadd.bf16 %v1344_v42, %v1324_v27  ;;  %v1797_v28 = vmul.bf16 %v9440_v34, %v9439_v35  ;;  %v9441_v51 = vld [vmem:[#allocation65_spill] sm:$0xff]  ;;  %v2083_v39 = vmul.bf16 %v6690_v41, %v9442_v12  ;;  %v9450_v12 = vld [vmem:[#allocation71_spill] sm:$0xff] }
 0x295   : > { %v1689_v36 = vmul.bf16 %v9435_v61, %v9434_v21  ;;  %v6812_v60 = vld [vmem:[#allocation2 + $0x38] sm:$0x1e]  ;;  %v1833_v1 = vmul.bf16 %v9441_v51, %v6685_v29  ;;  %v3641_v21 = vrot.slane %v3572_v33, 6  ;;  %v3642_v61 = vrot.slane %v3573_v50, 6  ;;  %v6842_v34 = vld [vmem:[#allocation2 + $0x30] sm:$0x3c] }
 0x296   : > { %9436 = vst [vmem:[#allocation99_spill] sm:$0xff] %v6812_v60  ;;  %v1725_v30 = vmul.bf16 %v6812_v60, %v9437_v11  ;;  %v9438_v56 = vld [vmem:[#allocation50_spill] sm:$0xff]  ;;  %v1180_v2 = vadd.bf16 %v1164_v55, %v1144_v16  ;;  %v1869_v11 = vmul.bf16 %v9386_v15, %v6806_v63  ;;  %v1396_v60 = vadd.bf16 %v1380_v13, %v1360_v5  ;;  %v9445_v51 = vld [vmem:[#allocation53_spill] sm:$0xff]  ;;  %v9446_v55 = vld [vmem:[#allocation92_spill] sm:$0xff] }
 0x297   : > { %v1761_v0 = vmul.bf16 %v9438_v56, %v6419_v25  ;;  %v1705_v32 = vadd.bf16 %v1689_v36, %v1666_v49  ;;  %v9443_v25 = vld [vmem:[#allocation23_spill] sm:$0xff]  ;;  %v3643_v42 = vsel %vm865_vm0, %v3641_v21, %v3642_v61  ;;  %v6829_v36 = vld [vmem:[#allocation2 + $0x38] sm:$0x3e]  ;;  %v9451_v21 = vld [vmem:[#allocation72_spill] sm:$0xff]  ;;  %9453 = vst [vmem:[#allocation102_spill] sm:$0xff] %v6842_v34 }
 0x298   : > { %v2106_v49 = vmul.bf16 %v9443_v25, %v9383_v14  ;;  %v1196_v27 = vunpack.c.l.bf16 %v1180_v2  ;;  %9444 = vst [vmem:[#allocation100_spill] sm:$0xff] %v6829_v36  ;;  %v2142_v33 = vmul.bf16 %v6829_v36, %v9445_v51  ;;  %v9447_v50 = vld [vmem:[#allocation66_spill] sm:$0xff]  ;;  %v3697_v15 = vadd.f32 %v3643_v42, %v3280_v58  ;;  %v4976_v61 = vld [vmem:[#allocation2 + $0x28] sm:$0x3c] }
 0x299   : > { %v1741_v17 = vadd.bf16 %v1725_v30, %v1705_v32  ;;  %v2178_v16 = vmul.bf16 %v9447_v50, %v9446_v55  ;;  %v1432_v13 = vadd.bf16 %v1416_v54, %v1396_v60  ;;  %v6835_v5 = vld [vmem:[#allocation2 + $0x58] sm:$0x3e]  ;;  %v9449_v32 = vld [vmem:[#allocation95_spill] sm:$0xff]  ;;  %v2250_v2 = vmul.bf16 %v9451_v21, %v6701_v62  ;;  %v9454_v51 = vld [vmem:[#allocation48_spill] sm:$0xff] }
 0x29a   : > { %9448 = vst [vmem:[#allocation101_spill] sm:$0xff] %v6835_v5  ;;  %v2122_v41 = vadd.bf16 %v2106_v49, %v2083_v39  ;;  %v2214_v14 = vmul.bf16 %v9450_v12, %v9449_v32  ;;  %v9452_v25 = vld [vmem:[#allocation47_spill] sm:$0xff]  ;;  %v2523_v55 = vmul.bf16 %v6842_v34, %v9454_v51  ;;  %v6849_v58 = vld [vmem:[%s8547_s2] ss:$0 sm:$0xff]  ;;  %v6854_v39 = vld [vmem:[#allocation2 + $0x58] sm:$0x3c]  ;;  %v2286_v49 = vmul.bf16 %v9396_v38, %v6835_v5 }
 0x29b   : > { %v1777_v30 = vadd.bf16 %v1761_v0, %v1741_v17  ;;  %v2500_v63 = vmul.bf16 %v4976_v61, %v9452_v25  ;;  %9455 = vst [vmem:[#allocation39_spill] sm:$0xff] %v6849_v58  ;;  %v6852_v54 = vadd.f32 %v6849_v58, %v3697_v15  ;;  %v1468_v60 = vadd.bf16 %v1452_v8, %v1432_v13  ;;  %v6858_v61 = vld [vmem:[#allocation2 + $0x38] sm:$0x3c]  ;;  %v9458_v51 = vld [vmem:[#allocation56_spill] sm:$0xff] }
 0x29c   : > { %v2158_v17 = vadd.bf16 %v2142_v33, %v2122_v41  ;;  %9457 = vst [vmem:[#allocation29_spill] sm:$0xff] %v6858_v61  ;;  %v2559_v34 = vmul.bf16 %v6858_v61, %v9458_v51  ;;  %v9459_v25 = vld [vmem:[#allocation77_spill] sm:$0xff]  ;;  %v2703_v38 = vmul.bf16 %v9405_v26, %v6854_v39  ;;  %v3048_v26 = vmul.bf16 %v9350_v19, %v6610_v57 }
 0x29d   : > { %9456 = vst [vmem:[#allocation88_spill] sm:$0xff] %v6852_v54  ;;  %v1813_v0 = vadd.bf16 %v1797_v28, %v1777_v30  ;;  %v2539_v42 = vadd.bf16 %v2523_v55, %v2500_v63  ;;  %v2595_v21 = vmul.bf16 %v9459_v25, %v9399_v47  ;;  %3740 = vadd.xlane.f32.xlu0 %v6852_v54  ;;  %v1489_v15 = vunpack.c.l.bf16 %v1468_v60  ;;  %v9460_v30 = vld [vmem:[#allocation79_spill] sm:$0xff]  ;;  %v9461_v63 = vld [vmem:[#allocation80_spill] sm:$0xff]  ;;  %v9462_v12 = vld [vmem:[#allocation57_spill] sm:$0xff] }
 0x29e   : > { %v1490_v8 = vunpack.c.h.bf16 %v1468_v60  ;;  %v2194_v33 = vadd.bf16 %v2178_v16, %v2158_v17  ;;  %v2631_v41 = vmul.bf16 %v9460_v30, %v6585_v48  ;;  %v2667_v55 = vmul.bf16 %v9461_v63, %v6724_v43  ;;  %v4980_v54 = vld [vmem:[#allocation2 + $0x28] sm:$0x7c]  ;;  %v6876_v16 = vld [vmem:[#allocation2 + $0x38] sm:$0x7c] }
 0x29f   : > { %v1849_v28 = vadd.bf16 %v1833_v1, %v1813_v0  ;;  %v2575_v13 = vadd.bf16 %v2559_v34, %v2539_v42  ;;  %v1559_v51 = vrot.slane %v1489_v15, 1  ;;  %v2917_v60 = vmul.bf16 %v4980_v54, %v9462_v12  ;;  %v6872_v1 = vld [vmem:[#allocation2 + $0x30] sm:$0x7c]  ;;  %9464 = vst [vmem:[#allocation94_spill] sm:$0xff] %v6876_v16 }
 0x2a0   : > { %v1560_v61 = vrot.slane %v1490_v8, 1  ;;  %v2230_v47 = vadd.bf16 %v2214_v14, %v2194_v33  ;;  %9463 = vst [vmem:[#allocation97_spill] sm:$0xff] %v6872_v1  ;;  %v2940_v34 = vmul.bf16 %v6872_v1, %v9404_v9  ;;  %v2976_v0 = vmul.bf16 %v6876_v16, %v9348_v46 }
 0x2a1   : > { %v1885_v5 = vadd.bf16 %v1869_v11, %v1849_v28  ;;  %v2611_v25 = vadd.bf16 %v2595_v21, %v2575_v13  ;;  %v3012_v54 = vmul.bf16 %v9349_v6, %v6483_v7  ;;  %v9465_v7 = vld [vmem:[#allocation61_spill] sm:$0xff] }
 0x2a2   : > { %v1561_v17 = vsel %vm1543_vm6, %v1559_v51, %v1560_v61  ;;  %v2266_v11 = vadd.bf16 %v2250_v2, %v2230_v47  ;;  %v2956_v8 = vadd.bf16 %v2940_v34, %v2917_v60  ;;  %v3084_v51 = vmul.bf16 %v5941_v45, %v6742_v40  ;;  %v6890_v61 = vld [vmem:[#allocation2 + $0x58] sm:$0x7c] }
 0x2a3   : > { %v1906_v42 = vunpack.c.l.bf16 %v1885_v5  ;;  %v1907_v15 = vunpack.c.h.bf16 %v1885_v5  ;;  %v1613_v14 = vadd.f32 %v1561_v17, %v1196_v27  ;;  %v2647_v21 = vadd.bf16 %v2631_v41, %v2611_v25  ;;  %v9466_v41 = vld [vmem:[#allocation49_spill] sm:$0xff] }
 0x2a4   : > { %v2302_v13 = vadd.bf16 %v2286_v49, %v2266_v11  ;;  %v2992_v1 = vadd.bf16 %v2976_v0, %v2956_v8  ;;  %v3334_v5 = vmul.bf16 %v6749_v22, %v9290_v10  ;;  %v3357_v49 = vmul.bf16 %v9466_v41, %v9465_v7  ;;  %v9468_v0 = vld [vmem:[#allocation69_spill] sm:$0xff] }
 0x2a5   : > { %v1976_v28 = vrot.slane %v1906_v42, 2  ;;  %v1977_v33 = vrot.slane %v1907_v15, 2  ;;  %v2683_v9 = vadd.bf16 %v2667_v55, %v2647_v21  ;;  %v6894_v55 = vld [vmem:[#allocation2 + $0x38] sm:$0x78] }
 0x2a6   : > { %v2323_v27 = vunpack.c.l.bf16 %v2302_v13  ;;  %v2324_v2 = vunpack.c.h.bf16 %v2302_v13  ;;  %v3028_v34 = vadd.bf16 %v3012_v54, %v2992_v1  ;;  %9467 = vst [vmem:[#allocation26_spill] sm:$0xff] %v6894_v55  ;;  %v3393_v17 = vmul.bf16 %v6894_v55, %v9468_v0  ;;  %v9469_v11 = vld [vmem:[#allocation37_spill] sm:$0xff] }
 0x2a7   : > { %v1978_v25 = vsel %vm884_vm2, %v1976_v28, %v1977_v33  ;;  %v2719_v60 = vadd.bf16 %v2703_v38, %v2683_v9  ;;  %v3373_v22 = vadd.bf16 %v3357_v49, %v3334_v5  ;;  %v9470_v21 = vld [vmem:[#allocation81_spill] sm:$0xff] }
 0x2a8   : > { %v2030_v47 = vadd.f32 %v1978_v25, %v1613_v14  ;;  %v2393_v42 = vrot.slane %v2323_v27, 3  ;;  %v2394_v15 = vrot.slane %v2324_v2, 3  ;;  %v3429_v8 = vmul.bf16 %v9470_v21, %v9469_v11  ;;  %v9471_v10 = vld [vmem:[#allocation85_spill] sm:$0xff]  ;;  %v9473_v14 = vld [vmem:[#allocation86_spill] sm:$0xff]  ;;  %v9474_v25 = vld [vmem:[#allocation87_spill] sm:$0xff] }
 0x2a9   : > { %v2740_v28 = vunpack.c.l.bf16 %v2719_v60  ;;  %v2741_v33 = vunpack.c.h.bf16 %v2719_v60  ;;  %v3064_v13 = vadd.bf16 %v3048_v26, %v3028_v34  ;;  %v3120_v7 = vmul.bf16 %v9471_v10, %v6890_v61  ;;  %v6903_v9 = vld [vmem:[#allocation2 + $0x58] sm:$0x78] }
 0x2aa   : > { %v2395_v38 = vsel %vm2377_vm7, %v2393_v42, %v2394_v15  ;;  %9472 = vst [vmem:[#allocation59_spill] sm:$0xff] %v6903_v9  ;;  %v3409_v1 = vadd.bf16 %v3393_v17, %v3373_v22  ;;  %v3465_v54 = vmul.bf16 %v9473_v14, %v9412_v20  ;;  %v3501_v5 = vmul.bf16 %v9474_v25, %v6747_v4  ;;  %v6913_v42 = vld [vmem:[#allocation2 + $0x40] sm:$0xf] }
 0x2ab   : > { %v2447_v27 = vadd.f32 %v2395_v38, %v2030_v47  ;;  %v2810_v2 = vrot.slane %v2740_v28, 4  ;;  %v2811_v49 = vrot.slane %v2741_v33, 4  ;;  %v3100_v11 = vadd.bf16 %v3084_v51, %v3064_v13  ;;  %9475 = vst [vmem:[#allocation68_spill] sm:$0xff] %v6913_v42  ;;  %v9476_v47 = vld [vmem:[#allocation90_spill] sm:$0xff] }
 0x2ac   : > { %v3445_v60 = vadd.bf16 %v3429_v8, %v3409_v1  ;;  %v962_v26 = vmul.bf16 %v9418_v37, %v9415_v23  ;;  %v985_v34 = vmul.bf16 %v6774_v31, %v9417_v18  ;;  %v1021_v17 = vmul.bf16 %v6913_v42, %v9421_v52  ;;  %v6920_v33 = vld [vmem:[#allocation2 + $0x60] sm:$0xf]  ;;  %v9479_v1 = vld [vmem:[#allocation51_spill] sm:$0xff]  ;;  %v9480_v52 = vld [vmem:[#allocation52_spill] sm:$0xff] }
 0x2ad   : > { %v2812_v15 = vsel %vm2794_vm8, %v2810_v2, %v2811_v49  ;;  %v3136_v22 = vadd.bf16 %v3120_v7, %v3100_v11  ;;  %v3537_v28 = vmul.bf16 %v9476_v47, %v6903_v9  ;;  %9477 = vst [vmem:[#allocation73_spill] sm:$0xff] %v6920_v33  ;;  %v9478_v51 = vld [vmem:[#allocation42_spill] sm:$0xff]  ;;  %v1093_v18 = vmul.bf16 %v9479_v1, %v6644_v3  ;;  %v9481_v7 = vld [vmem:[#allocation32_spill] sm:$0xff]  ;;  %v9487_v1 = vld [vmem:[#allocation43_spill] sm:$0xff] }
 0x2ae   : > { %v1057_v8 = vmul.bf16 %v9478_v51, %v9369_v24  ;;  %v2864_v37 = vadd.f32 %v2812_v15, %v2447_v27  ;;  %v3481_v13 = vadd.bf16 %v3465_v54, %v3445_v60  ;;  %v1001_v38 = vadd.bf16 %v985_v34, %v962_v26  ;;  %v9482_v47 = vld [vmem:[#allocation70_spill] sm:$0xff]  ;;  %v9483_v24 = vld [vmem:[#allocation33_spill] sm:$0xff]  ;;  %v9484_v27 = vld [vmem:[#allocation28_spill] sm:$0xff] }
 0x2af   : > { %v3157_v31 = vunpack.c.l.bf16 %v3136_v22  ;;  %v3158_v23 = vunpack.c.h.bf16 %v3136_v22  ;;  %v1129_v2 = vmul.bf16 %v9480_v52, %v6772_v53  ;;  %v1250_v49 = vmul.bf16 %v9423_v59, %v9481_v7  ;;  %v6934_v34 = vld [vmem:[#allocation2 + $0x60] sm:$0x1f]  ;;  %v9494_v3 = vld [vmem:[#allocation36_spill] sm:$0xff] }
 0x2b0   : > { %v3517_v11 = vadd.bf16 %v3501_v5, %v3481_v13  ;;  %v1037_v42 = vadd.bf16 %v1021_v17, %v1001_v38  ;;  %v1165_v25 = vmul.bf16 %v9482_v47, %v6920_v33  ;;  %v1273_v54 = vmul.bf16 %v9484_v27, %v9483_v24  ;;  %v6936_v15 = vld [vmem:[#allocation2 + $0x40] sm:$0x1f]  ;;  %v9488_v38 = vld [vmem:[#allocation20_spill] sm:$0xff] }
 0x2b1   : > { %v3227_v60 = vrot.slane %v3157_v31, 5  ;;  %v3228_v26 = vrot.slane %v3158_v23, 5  ;;  %9485 = vst [vmem:[#allocation18_spill] sm:$0xff] %v6936_v15  ;;  %v9486_v22 = vld [vmem:[#allocation38_spill] sm:$0xff]  ;;  %v1345_v59 = vmul.bf16 %v9487_v1, %v9428_v44  ;;  %v9490_v31 = vld [vmem:[#allocation63_spill] sm:$0xff] }
 0x2b2   : > { %v1309_v52 = vmul.bf16 %v6936_v15, %v9486_v22  ;;  %v3553_v5 = vadd.bf16 %v3537_v28, %v3517_v11  ;;  %v1073_v17 = vadd.bf16 %v1057_v8, %v1037_v42  ;;  %v1289_v13 = vadd.bf16 %v1273_v54, %v1250_v49  ;;  %v9489_v7 = vld [vmem:[#allocation54_spill] sm:$0xff]  ;;  %v9495_v9 = vld [vmem:[#allocation99_spill] sm:$0xff] }
 0x2b3   : > { %v1381_v47 = vmul.bf16 %v9489_v7, %v9488_v38  ;;  %v3229_v24 = vsel %vm3211_vm9, %v3227_v60, %v3228_v26  ;;  %v9491_v23 = vld [vmem:[#allocation62_spill] sm:$0xff]  ;;  %v1690_v22 = vmul.bf16 %v9495_v9, %v9494_v3  ;;  %v9497_v60 = vld [vmem:[#allocation40_spill] sm:$0xff]  ;;  %v1762_v3 = vmul.bf16 %v9438_v56, %v9439_v35 }
 0x2b4   : > { %v1417_v27 = vmul.bf16 %v9491_v23, %v9490_v31  ;;  %v9492_v33 = vld [vmem:[#allocation34_spill] sm:$0xff]  ;;  %v3574_v15 = vunpack.c.l.bf16 %v3553_v5  ;;  %v3575_v14 = vunpack.c.h.bf16 %v3553_v5  ;;  %v1109_v44 = vadd.bf16 %v1093_v18, %v1073_v17  ;;  %v9498_v17 = vld [vmem:[#allocation64_spill] sm:$0xff] }
 0x2b5   : > { %v9493_v53 = vld [vmem:[#allocation22_spill] sm:$0xff]  ;;  %v3281_v8 = vadd.f32 %v3229_v24, %v2864_v37  ;;  %v1325_v49 = vadd.bf16 %v1309_v52, %v1289_v13  ;;  %v1798_v37 = vmul.bf16 %v9498_v17, %v6685_v29 }
 0x2b6   : > { %v1667_v51 = vmul.bf16 %v9493_v53, %v9492_v33  ;;  %v9496_v42 = vld [vmem:[#allocation74_spill] sm:$0xff]  ;;  %v3644_v23 = vrot.slane %v3574_v15, 6  ;;  %v3645_v7 = vrot.slane %v3575_v14, 6  ;;  %v1145_v53 = vadd.bf16 %v1129_v2, %v1109_v44  ;;  %v9502_v15 = vld [vmem:[#allocation23_spill] sm:$0xff]  ;;  %v9503_v2 = vld [vmem:[#allocation45_spill] sm:$0xff] }
 0x2b7   : > { %v1453_v28 = vmul.bf16 %v9496_v42, %v6934_v34  ;;  %v6953_v54 = vld [vmem:[#allocation2 + $0x40] sm:$0x1e]  ;;  %v1361_v9 = vadd.bf16 %v1345_v59, %v1325_v49  ;;  %v2107_v44 = vmul.bf16 %v6829_v36, %v9503_v2  ;;  %v9513_v36 = vld [vmem:[#allocation48_spill] sm:$0xff] }
 0x2b8   : > { %v1706_v11 = vadd.bf16 %v1690_v22, %v1667_v51  ;;  %v1726_v26 = vmul.bf16 %v6953_v54, %v9497_v60  ;;  %v6959_v5 = vld [vmem:[#allocation2 + $0x60] sm:$0x1e]  ;;  %v9500_v51 = vld [vmem:[#allocation65_spill] sm:$0xff]  ;;  %v3646_v22 = vsel %vm865_vm0, %v3644_v23, %v3645_v7  ;;  %v1181_v13 = vadd.bf16 %v1165_v25, %v1145_v53 }
 0x2b9   : > { %v9499_v52 = vld [vmem:[#allocation98_spill] sm:$0xff]  ;;  %v9501_v60 = vld [vmem:[#allocation41_spill] sm:$0xff]  ;;  %v3698_v35 = vadd.f32 %v3646_v22, %v3281_v8  ;;  %v1397_v59 = vadd.bf16 %v1381_v47, %v1361_v9  ;;  %v2179_v23 = vmul.bf16 %v9447_v50, %v9449_v32  ;;  %v9508_v47 = vld [vmem:[#allocation71_spill] sm:$0xff] }
 0x2ba   : > { %v1742_v18 = vadd.bf16 %v1726_v26, %v1706_v11  ;;  %v1834_v24 = vmul.bf16 %v9500_v51, %v9499_v52  ;;  %v2084_v14 = vmul.bf16 %v9502_v15, %v9501_v60  ;;  %v6970_v56 = vld [vmem:[#allocation2 + $0x40] sm:$0x3e]  ;;  %v9505_v11 = vld [vmem:[#allocation53_spill] sm:$0xff]  ;;  %v1197_v17 = vunpack.c.l.bf16 %v1181_v13  ;;  %v9510_v13 = vld [vmem:[#allocation72_spill] sm:$0xff] }
 0x2bb   : > { %9504 = vst [vmem:[#allocation91_spill] sm:$0xff] %v6970_v56  ;;  %v2143_v26 = vmul.bf16 %v6970_v56, %v9505_v11  ;;  %v9506_v51 = vld [vmem:[#allocation75_spill] sm:$0xff]  ;;  %v6981_v53 = vadd.f32 %v6849_v58, %v3698_v35  ;;  %v1433_v9 = vadd.bf16 %v1417_v27, %v1397_v59  ;;  %v2215_v8 = vmul.bf16 %v9508_v47, %v6701_v62  ;;  %v9509_v22 = vld [vmem:[#allocation101_spill] sm:$0xff]  ;;  %v9512_v56 = vld [vmem:[#allocation102_spill] sm:$0xff] }
 0x2bc   : > { %v1778_v49 = vadd.bf16 %v1762_v3, %v1742_v18  ;;  %v1870_v52 = vmul.bf16 %v9506_v51, %v6959_v5  ;;  %v6976_v7 = vld [vmem:[#allocation2 + $0x60] sm:$0x3e]  ;;  %v2123_v25 = vadd.bf16 %v2107_v44, %v2084_v14  ;;  %v2251_v15 = vmul.bf16 %v9510_v13, %v9509_v22  ;;  %v9514_v14 = vld [vmem:[#allocation29_spill] sm:$0xff]  ;;  %v9515_v27 = vld [vmem:[#allocation76_spill] sm:$0xff] }
 0x2bd   : > { %9507 = vst [vmem:[#allocation46_spill] sm:$0xff] %v6981_v53  ;;  %v9511_v11 = vld [vmem:[#allocation47_spill] sm:$0xff]  ;;  %v2524_v44 = vmul.bf16 %v9514_v14, %v9513_v36  ;;  %3742 = vadd.xlane.f32.xlu1 %v6981_v53  ;;  %v1469_v32 = vadd.bf16 %v1453_v28, %v1433_v9  ;;  %v9517_v13 = vld [vmem:[#allocation77_spill] sm:$0xff]  ;;  %v2632_v36 = vmul.bf16 %v9460_v30, %v6724_v43 }
 0x2be   : > { %v1814_v3 = vadd.bf16 %v1798_v37, %v1778_v49  ;;  %v2159_v18 = vadd.bf16 %v2143_v26, %v2123_v25  ;;  %v2501_v2 = vmul.bf16 %v9512_v56, %v9511_v11  ;;  %v2287_v37 = vmul.bf16 %v9515_v27, %v6976_v7  ;;  %v6994_v59 = vld [vmem:[#allocation2 + $0x40] sm:$0x3c]  ;;  %v9516_v49 = vld [vmem:[#allocation56_spill] sm:$0xff] }
 0x2bf   : > { %v2560_v26 = vmul.bf16 %v6994_v59, %v9516_v49  ;;  %v2596_v56 = vmul.bf16 %v9517_v13, %v6585_v48  ;;  %v1491_v14 = vunpack.c.l.bf16 %v1469_v32  ;;  %v1492_v53 = vunpack.c.h.bf16 %v1469_v32  ;;  %v9518_v49 = vld [vmem:[#allocation97_spill] sm:$0xff] }
 0x2c0   : > { %v1850_v35 = vadd.bf16 %v1834_v24, %v1814_v3  ;;  %v2195_v25 = vadd.bf16 %v2179_v23, %v2159_v18  ;;  %v2540_v58 = vadd.bf16 %v2524_v44, %v2501_v2  ;;  %v2668_v24 = vmul.bf16 %v9461_v63, %v6854_v39  ;;  %v7004_v3 = vld [vmem:[#allocation2 + $0x60] sm:$0x3c] }
 0x2c1   : > { %v2918_v23 = vmul.bf16 %v9518_v49, %v9462_v12  ;;  %v9519_v2 = vld [vmem:[#allocation58_spill] sm:$0xff]  ;;  %v1562_v48 = vrot.slane %v1491_v14, 1  ;;  %v1563_v44 = vrot.slane %v1492_v53, 1 }
 0x2c2   : > { %v1886_v28 = vadd.bf16 %v1870_v52, %v1850_v35  ;;  %v2231_v9 = vadd.bf16 %v2215_v8, %v2195_v25  ;;  %v2576_v11 = vadd.bf16 %v2560_v26, %v2540_v58  ;;  %v2941_v18 = vmul.bf16 %v6876_v16, %v9519_v2  ;;  %v7010_v35 = vld [vmem:[#allocation2 + $0x40] sm:$0x7c] }
 0x2c3   : > { %v2977_v8 = vmul.bf16 %v7010_v35, %v9348_v46  ;;  %v1564_v58 = vsel %vm1543_vm6, %v1562_v48, %v1563_v44  ;;  %v9520_v49 = vld [vmem:[#allocation82_spill] sm:$0xff] }
 0x2c4   : > { %v1908_v13 = vunpack.c.l.bf16 %v1886_v28  ;;  %v1909_v30 = vunpack.c.h.bf16 %v1886_v28  ;;  %v2267_v43 = vadd.bf16 %v2251_v15, %v2231_v9  ;;  %v2612_v32 = vadd.bf16 %v2596_v56, %v2576_v11  ;;  %v7018_v11 = vld [vmem:[#allocation2 + $0x60] sm:$0x7c] }
 0x2c5   : > { %v2957_v52 = vadd.bf16 %v2941_v18, %v2918_v23  ;;  %v2704_v12 = vmul.bf16 %v9520_v49, %v7004_v3  ;;  %v1614_v2 = vadd.f32 %v1564_v58, %v1197_v17  ;;  %v3013_v56 = vmul.bf16 %v9349_v6, %v6610_v57  ;;  %v9522_v18 = vld [vmem:[#allocation61_spill] sm:$0xff]  ;;  %v7030_v44 = vld [vmem:[#allocation2 + $0x40] sm:$0x78] }
 0x2c6   : > { %v1979_v26 = vrot.slane %v1908_v13, 2  ;;  %v1980_v25 = vrot.slane %v1909_v30, 2  ;;  %v2303_v14 = vadd.bf16 %v2287_v37, %v2267_v43  ;;  %v2648_v53 = vadd.bf16 %v2632_v36, %v2612_v32  ;;  %v9521_v36 = vld [vmem:[#allocation60_spill] sm:$0xff]  ;;  %9523 = vst [vmem:[#allocation21_spill] sm:$0xff] %v7030_v44  ;;  %v7036_v58 = vld [vmem:[#allocation2 + $0x60] sm:$0x78] }
 0x2c7   : > { %v2993_v16 = vadd.bf16 %v2977_v8, %v2957_v52  ;;  %v3049_v28 = vmul.bf16 %v9350_v19, %v6742_v40  ;;  %v3085_v30 = vmul.bf16 %v5941_v45, %v6890_v61  ;;  %v3335_v37 = vmul.bf16 %v9466_v41, %v9521_v36  ;;  %9524 = vst [vmem:[#allocation44_spill] sm:$0xff] %v7036_v58  ;;  %v9533_v36 = vld [vmem:[#allocation35_spill] sm:$0xff] }
 0x2c8   : > { %v1981_v15 = vsel %vm884_vm2, %v1979_v26, %v1980_v25  ;;  %v2325_v9 = vunpack.c.l.bf16 %v2303_v14  ;;  %v2326_v23 = vunpack.c.h.bf16 %v2303_v14  ;;  %v2684_v17 = vadd.bf16 %v2668_v24, %v2648_v53  ;;  %v9525_v26 = vld [vmem:[#allocation86_spill] sm:$0xff] }
 0x2c9   : > { %v2031_v13 = vadd.f32 %v1981_v15, %v1614_v2  ;;  %v3029_v43 = vadd.bf16 %v3013_v56, %v2993_v16  ;;  %v3358_v48 = vmul.bf16 %v6894_v55, %v9522_v18  ;;  %v3394_v57 = vmul.bf16 %v7030_v44, %v9468_v0  ;;  %v9526_v56 = vld [vmem:[#allocation59_spill] sm:$0xff]  ;;  %v9528_v44 = vld [vmem:[#allocation90_spill] sm:$0xff] }
 0x2ca   : > { %v2396_v32 = vrot.slane %v2325_v9, 3  ;;  %v2397_v52 = vrot.slane %v2326_v23, 3  ;;  %v2720_v8 = vadd.bf16 %v2704_v12, %v2684_v17  ;;  %v3121_v2 = vmul.bf16 %v9471_v10, %v7018_v11  ;;  %v9527_v9 = vld [vmem:[#allocation87_spill] sm:$0xff]  ;;  %v9545_v10 = vld [vmem:[#allocation38_spill] sm:$0xff] }
 0x2cb   : > { %v3065_v16 = vadd.bf16 %v3049_v28, %v3029_v43  ;;  %v3374_v24 = vadd.bf16 %v3358_v48, %v3335_v37  ;;  %v3430_v41 = vmul.bf16 %v9470_v21, %v9412_v20  ;;  %v3466_v25 = vmul.bf16 %v9525_v26, %v6747_v4  ;;  %v934_v48 = vld [vmem:[#allocation2 + $0x68] sm:$0xf]  ;;  %v9529_v20 = vld [vmem:[#allocation30_spill] sm:$0xff]  ;;  %v9530_v21 = vld [vmem:[#allocation89_spill] sm:$0xff] }
 0x2cc   : > { %v2398_v14 = vsel %vm2377_vm7, %v2396_v32, %v2397_v52  ;;  %v2742_v53 = vunpack.c.l.bf16 %v2720_v8  ;;  %v2743_v15 = vunpack.c.h.bf16 %v2720_v8  ;;  %v3502_v12 = vmul.bf16 %v9527_v9, %v9526_v56  ;;  %v9531_v26 = vld [vmem:[#allocation31_spill] sm:$0xff]  ;;  %v9532_v4 = vld [vmem:[#allocation68_spill] sm:$0xff] }
 0x2cd   : > { %v2448_v23 = vadd.f32 %v2398_v14, %v2031_v13  ;;  %v3101_v17 = vadd.bf16 %v3085_v30, %v3065_v16  ;;  %v3410_v0 = vadd.bf16 %v3394_v57, %v3374_v24  ;;  %v3538_v28 = vmul.bf16 %v9528_v44, %v7036_v58  ;;  %v4991_v55 = vld [vmem:[#allocation2 + $0x48] sm:$0xf]  ;;  %v9535_v30 = vld [vmem:[#allocation42_spill] sm:$0xff]  ;;  %v9538_v44 = vld [vmem:[#allocation73_spill] sm:$0xff] }
 0x2ce   : > { %v2813_v43 = vrot.slane %v2742_v53, 4  ;;  %v2814_v37 = vrot.slane %v2743_v15, 4  ;;  %v963_v18 = vmul.bf16 %v9530_v21, %v9529_v20  ;;  %v986_v32 = vmul.bf16 %v9532_v4, %v9531_v26  ;;  %v9534_v13 = vld [vmem:[#allocation19_spill] sm:$0xff]  ;;  %v9539_v58 = vld [vmem:[#allocation52_spill] sm:$0xff] }
 0x2cf   : > { %v3137_v52 = vadd.bf16 %v3121_v2, %v3101_v17  ;;  %v3446_v8 = vadd.bf16 %v3430_v41, %v3410_v0  ;;  %v1022_v9 = vmul.bf16 %v4991_v55, %v9533_v36  ;;  %v1058_v57 = vmul.bf16 %v9535_v30, %v9534_v13  ;;  %v9536_v14 = vld [vmem:[#allocation27_spill] sm:$0xff]  ;;  %v9540_v2 = vld [vmem:[#allocation70_spill] sm:$0xff]  ;;  %v9541_v36 = vld [vmem:[#allocation32_spill] sm:$0xff] }
 0x2d0   : > { %v2815_v16 = vsel %vm2794_vm8, %v2813_v43, %v2814_v37  ;;  %v1002_v24 = vadd.bf16 %v986_v32, %v963_v18  ;;  %v9537_v53 = vld [vmem:[#allocation51_spill] sm:$0xff]  ;;  %v1130_v21 = vmul.bf16 %v9539_v58, %v9538_v44  ;;  %v1166_v0 = vmul.bf16 %v9540_v2, %v934_v48  ;;  %v9542_v26 = vld [vmem:[#allocation28_spill] sm:$0xff]  ;;  %v9543_v30 = vld [vmem:[#allocation33_spill] sm:$0xff] }
 0x2d1   : > { %v1094_v15 = vmul.bf16 %v9537_v53, %v9536_v14  ;;  %v3159_v20 = vunpack.c.l.bf16 %v3137_v52  ;;  %v3160_v56 = vunpack.c.h.bf16 %v3137_v52  ;;  %v3482_v4 = vadd.bf16 %v3466_v25, %v3446_v8  ;;  %v1222_v55 = vld [vmem:[#allocation2 + $0x68] sm:$0x1f]  ;;  %v9544_v43 = vld [vmem:[#allocation18_spill] sm:$0xff] }
 0x2d2   : > { %v2865_v41 = vadd.f32 %v2815_v16, %v2448_v23  ;;  %v1038_v17 = vadd.bf16 %v1022_v9, %v1002_v24  ;;  %v1251_v13 = vmul.bf16 %v9542_v26, %v9541_v36  ;;  %v1274_v18 = vmul.bf16 %v9544_v43, %v9543_v30  ;;  %v4992_v53 = vld [vmem:[#allocation2 + $0x48] sm:$0x1f]  ;;  %v9546_v9 = vld [vmem:[#allocation54_spill] sm:$0xff] }
 0x2d3   : > { %v3230_v37 = vrot.slane %v3159_v20, 5  ;;  %v3231_v32 = vrot.slane %v3160_v56, 5  ;;  %v3518_v14 = vadd.bf16 %v3502_v12, %v3482_v4  ;;  %v1310_v44 = vmul.bf16 %v4992_v53, %v9545_v10  ;;  %v9547_v8 = vld [vmem:[#allocation62_spill] sm:$0xff]  ;;  %v9548_v24 = vld [vmem:[#allocation99_spill] sm:$0xff]  ;;  %v9549_v53 = vld [vmem:[#allocation36_spill] sm:$0xff] }
 0x2d4   : > { %v1074_v58 = vadd.bf16 %v1058_v57, %v1038_v17  ;;  %v1290_v52 = vadd.bf16 %v1274_v18, %v1251_v13  ;;  %v1346_v25 = vmul.bf16 %v9487_v1, %v9488_v38  ;;  %v1382_v23 = vmul.bf16 %v9546_v9, %v9490_v31  ;;  %v1639_v31 = vld [vmem:[#allocation2 + $0x68] sm:$0x1e] }
 0x2d5   : > { %v3232_v48 = vsel %vm3211_vm9, %v3230_v37, %v3231_v32  ;;  %v3554_v26 = vadd.bf16 %v3538_v28, %v3518_v14  ;;  %v1418_v16 = vmul.bf16 %v9547_v8, %v6934_v34  ;;  %v1454_v56 = vmul.bf16 %v9496_v42, %v1222_v55  ;;  %v4993_v43 = vld [vmem:[#allocation2 + $0x48] sm:$0x1e]  ;;  %v9551_v55 = vld [vmem:[#allocation50_spill] sm:$0xff] }
 0x2d6   : > { %v1110_v12 = vadd.bf16 %v1094_v15, %v1074_v58  ;;  %v1326_v20 = vadd.bf16 %v1310_v44, %v1290_v52  ;;  %v1668_v57 = vmul.bf16 %v9548_v24, %v9492_v33  ;;  %v1691_v4 = vmul.bf16 %v6953_v54, %v9549_v53  ;;  %v9550_v18 = vld [vmem:[#allocation40_spill] sm:$0xff]  ;;  %v9552_v44 = vld [vmem:[#allocation98_spill] sm:$0xff]  ;;  %v9554_v54 = vld [vmem:[#allocation65_spill] sm:$0xff] }
 0x2d7   : > { %v3282_v38 = vadd.f32 %v3232_v48, %v2865_v41  ;;  %v3576_v17 = vunpack.c.l.bf16 %v3554_v26  ;;  %v3577_v13 = vunpack.c.h.bf16 %v3554_v26  ;;  %v1727_v28 = vmul.bf16 %v4993_v43, %v9550_v18  ;;  %v9553_v52 = vld [vmem:[#allocation64_spill] sm:$0xff] }
 0x2d8   : > { %v1146_v37 = vadd.bf16 %v1130_v21, %v1110_v12  ;;  %v1362_v32 = vadd.bf16 %v1346_v25, %v1326_v20  ;;  %v1707_v34 = vadd.bf16 %v1691_v4, %v1668_v57  ;;  %v1763_v58 = vmul.bf16 %v9551_v55, %v6685_v29  ;;  %v2056_v25 = vld [vmem:[#allocation2 + $0x68] sm:$0x3e]  ;;  %v9556_v29 = vld [vmem:[#allocation45_spill] sm:$0xff] }
 0x2d9   : > { %v3647_v15 = vrot.slane %v3576_v17, 6  ;;  %v3648_v14 = vrot.slane %v3577_v13, 6  ;;  %v1799_v24 = vmul.bf16 %v9553_v52, %v9552_v44  ;;  %v1835_v41 = vmul.bf16 %v9554_v54, %v6959_v5  ;;  %v9555_v12 = vld [vmem:[#allocation100_spill] sm:$0xff]  ;;  %v9557_v57 = vld [vmem:[#allocation91_spill] sm:$0xff]  ;;  %v9558_v13 = vld [vmem:[#allocation53_spill] sm:$0xff] }
 0x2da   : > { %v1182_v48 = vadd.bf16 %v1166_v0, %v1146_v37  ;;  %v1398_v26 = vadd.bf16 %v1382_v23, %v1362_v32  ;;  %v1743_v42 = vadd.bf16 %v1727_v28, %v1707_v34  ;;  %v1871_v53 = vmul.bf16 %v9506_v51, %v1639_v31  ;;  %v4994_v17 = vld [vmem:[#allocation2 + $0x48] sm:$0x3e] }
 0x2db   : > { %v3649_v21 = vsel %vm865_vm0, %v3647_v15, %v3648_v14  ;;  %v2085_v20 = vmul.bf16 %v9555_v12, %v9501_v60  ;;  %v2108_v4 = vmul.bf16 %v9557_v57, %v9556_v29  ;;  %v2144_v43 = vmul.bf16 %v4994_v17, %v9558_v13  ;;  %v9559_v37 = vld [vmem:[#allocation72_spill] sm:$0xff]  ;;  %v9560_v34 = vld [vmem:[#allocation39_spill] sm:$0xff] }
 0x2dc   : > { %v3699_v44 = vadd.f32 %v3649_v21, %v3282_v38  ;;  %v1434_v52 = vadd.bf16 %v1418_v16, %v1398_v26  ;;  %v1779_v5 = vadd.bf16 %v1763_v58, %v1743_v42  ;;  %v2180_v0 = vmul.bf16 %v9447_v50, %v6701_v62  ;;  %v2473_v42 = vld [vmem:[#allocation2 + $0x68] sm:$0x3c]  ;;  %v9563_v26 = vld [vmem:[#allocation29_spill] sm:$0xff] }
 0x2dd   : > { %v1198_v23 = vunpack.c.l.bf16 %v1182_v48  ;;  %v2124_v31 = vadd.bf16 %v2108_v4, %v2085_v20  ;;  %v2216_v28 = vmul.bf16 %v9508_v47, %v9509_v22  ;;  %v2252_v32 = vmul.bf16 %v9559_v37, %v6976_v7  ;;  %v9562_v58 = vld [vmem:[#allocation47_spill] sm:$0xff]  ;;  %v9564_v48 = vld [vmem:[#allocation48_spill] sm:$0xff] }
 0x2de   : > { %v7098_v15 = vadd.f32 %v9560_v34, %v3699_v44  ;;  %v1470_v14 = vadd.bf16 %v1454_v56, %v1434_v52  ;;  %v1815_v12 = vadd.bf16 %v1799_v24, %v1779_v5  ;;  %v2288_v38 = vmul.bf16 %v9515_v27, %v2056_v25  ;;  %v4995_v20 = vld [vmem:[#allocation2 + $0x48] sm:$0x3c]  ;;  %v9566_v56 = vld [vmem:[#allocation25_spill] sm:$0xff] }
 0x2df   : > { %v2160_v16 = vadd.bf16 %v2144_v43, %v2124_v31  ;;  %v2502_v62 = vmul.bf16 %v9563_v26, %v9562_v58  ;;  %v2525_v21 = vmul.bf16 %v6994_v59, %v9564_v48  ;;  %v9565_v22 = vld [vmem:[#allocation56_spill] sm:$0xff]  ;;  %v9567_v52 = vld [vmem:[#allocation77_spill] sm:$0xff]  ;;  %v9568_v44 = vld [vmem:[#allocation79_spill] sm:$0xff]  ;;  %v2669_v31 = vmul.bf16 %v9461_v63, %v7004_v3 }
 0x2e0   : > { %9561 = vst [vmem:[#allocation92_spill] sm:$0xff] %v7098_v15  ;;  %v2561_v57 = vmul.bf16 %v4995_v20, %v9565_v22  ;;  %3744 = vadd.xlane.f32.xlu0 %v7098_v15  ;;  %v1493_v7 = vunpack.c.l.bf16 %v1470_v14  ;;  %v1494_v4 = vunpack.c.h.bf16 %v1470_v14  ;;  %v1851_v17 = vadd.bf16 %v1835_v41, %v1815_v12  ;;  %v9569_v14 = vld [vmem:[#allocation57_spill] sm:$0xff]  ;;  %v9570_v41 = vld [vmem:[#allocation94_spill] sm:$0xff] }
 0x2e1   : > { %v2597_v24 = vmul.bf16 %v9567_v52, %v9566_v56  ;;  %v2196_v25 = vadd.bf16 %v2180_v0, %v2160_v16  ;;  %v2541_v43 = vadd.bf16 %v2525_v21, %v2502_v62  ;;  %v2633_v5 = vmul.bf16 %v9568_v44, %v6854_v39  ;;  %v9571_v48 = vld [vmem:[#allocation58_spill] sm:$0xff]  ;;  %v4996_v21 = vld [vmem:[#allocation2 + $0x48] sm:$0x7c] }
 0x2e2   : > { %v1565_v59 = vrot.slane %v1493_v7, 1  ;;  %v1566_v26 = vrot.slane %v1494_v4, 1  ;;  %v1887_v27 = vadd.bf16 %v1871_v53, %v1851_v17  ;;  %v2705_v20 = vmul.bf16 %v9520_v49, %v2473_v42  ;;  %v2890_v53 = vld [vmem:[#allocation2 + $0x68] sm:$0x7c] }
 0x2e3   : > { %v2232_v15 = vadd.bf16 %v2216_v28, %v2196_v25  ;;  %v2577_v22 = vadd.bf16 %v2561_v57, %v2541_v43  ;;  %v2919_v12 = vmul.bf16 %v9570_v41, %v9569_v14  ;;  %v2942_v0 = vmul.bf16 %v7010_v35, %v9571_v48 }
 0x2e4   : > { %v1567_v16 = vsel %vm1543_vm6, %v1565_v59, %v1566_v26  ;;  %v1910_v62 = vunpack.c.l.bf16 %v1887_v27  ;;  %v1911_v39 = vunpack.c.h.bf16 %v1887_v27  ;;  %v2978_v3 = vmul.bf16 %v4996_v21, %v9348_v46  ;;  %v9574_v26 = vld [vmem:[#allocation26_spill] sm:$0xff] }
 0x2e5   : > { %v2268_v7 = vadd.bf16 %v2252_v32, %v2232_v15  ;;  %v2613_v4 = vadd.bf16 %v2597_v24, %v2577_v22  ;;  %v2958_v17 = vadd.bf16 %v2942_v0, %v2919_v12  ;;  %v3014_v28 = vmul.bf16 %v9349_v6, %v6742_v40  ;;  %v9572_v15 = vld [vmem:[#allocation85_spill] sm:$0xff]  ;;  %v9573_v24 = vld [vmem:[#allocation60_spill] sm:$0xff] }
 0x2e6   : > { %v1615_v42 = vadd.f32 %v1567_v16, %v1198_v23  ;;  %v1982_v57 = vrot.slane %v1910_v62, 2  ;;  %v1983_v56 = vrot.slane %v1911_v39, 2  ;;  %v3050_v35 = vmul.bf16 %v9350_v19, %v6890_v61  ;;  %v9575_v40 = vld [vmem:[#allocation61_spill] sm:$0xff]  ;;  %v4997_v61 = vld [vmem:[#allocation2 + $0x48] sm:$0x78] }
 0x2e7   : > { %v2304_v25 = vadd.bf16 %v2288_v38, %v2268_v7  ;;  %v2649_v43 = vadd.bf16 %v2633_v5, %v2613_v4  ;;  %v2994_v59 = vadd.bf16 %v2978_v3, %v2958_v17  ;;  %v3086_v27 = vmul.bf16 %v5941_v45, %v7018_v11  ;;  %v9576_v23 = vld [vmem:[#allocation21_spill] sm:$0xff]  ;;  %v935_v39 = vld [vmem:[#allocation2 + $0x70] sm:$0xf]  ;;  %v9578_v7 = vld [vmem:[#allocation103_spill] sm:$0xff] }
 0x2e8   : > { %v1984_v32 = vsel %vm884_vm2, %v1982_v57, %v1983_v56  ;;  %v3122_v22 = vmul.bf16 %v9572_v15, %v2890_v53  ;;  %v3336_v41 = vmul.bf16 %v9574_v26, %v9573_v24  ;;  %v3359_v12 = vmul.bf16 %v9576_v23, %v9575_v40  ;;  %v9577_v38 = vld [vmem:[#allocation69_spill] sm:$0xff]  ;;  %v9580_v24 = vld [vmem:[#allocation59_spill] sm:$0xff]  ;;  %v9581_v23 = vld [vmem:[#allocation86_spill] sm:$0xff] }
 0x2e9   : > { %v2327_v0 = vunpack.c.l.bf16 %v2304_v25  ;;  %v2328_v16 = vunpack.c.h.bf16 %v2304_v25  ;;  %v2685_v62 = vadd.bf16 %v2669_v31, %v2649_v43  ;;  %v3395_v5 = vmul.bf16 %v4997_v61, %v9577_v38  ;;  %v9579_v4 = vld [vmem:[#allocation81_spill] sm:$0xff]  ;;  %v7139_v25 = vld [vmem:[#allocation2 + $0x80] sm:$0xf]  ;;  %v9582_v61 = vld [vmem:[#allocation44_spill] sm:$0xff] }
 0x2ea   : > { %v2032_v21 = vadd.f32 %v1984_v32, %v1615_v42  ;;  %v3030_v3 = vadd.bf16 %v3014_v28, %v2994_v59  ;;  %v3375_v11 = vadd.bf16 %v3359_v12, %v3336_v41  ;;  %v3431_v17 = vmul.bf16 %v9579_v4, %v9578_v7  ;;  %v7135_v53 = vld [vmem:[#allocation2 + $0x78] sm:$0xf]  ;;  %v9583_v38 = vld [vmem:[#allocation87_spill] sm:$0xff]  ;;  %v9584_v59 = vld [vmem:[#allocation30_spill] sm:$0xff] }
 0x2eb   : > { %v2399_v57 = vrot.slane %v2327_v0, 3  ;;  %v2400_v56 = vrot.slane %v2328_v16, 3  ;;  %v2721_v26 = vadd.bf16 %v2705_v20, %v2685_v62  ;;  %v3467_v40 = vmul.bf16 %v9581_v23, %v9580_v24  ;;  %v7143_v28 = vld [vmem:[#allocation2 + $0x88] sm:$0xf]  ;;  %v7147_v20 = vld [vmem:[#allocation2 + $0x90] sm:$0xf] }
 0x2ec   : > { %v3066_v31 = vadd.bf16 %v3050_v35, %v3030_v3  ;;  %v3411_v43 = vadd.bf16 %v3395_v5, %v3375_v11  ;;  %v3503_v42 = vmul.bf16 %v9583_v38, %v9582_v61  ;;  %v964_v32 = vmul.bf16 %v9584_v59, %v935_v39  ;;  %v3307_v16 = vld [vmem:[#allocation2 + $0x68] sm:$0x78]  ;;  %9585 = vst [vmem:[#allocation95_spill] sm:$0xff] %v7147_v20  ;;  %v7151_v3 = vld [vmem:[#allocation2 + $0x98] sm:$0xf] }
 0x2ed   : > { %v2401_v41 = vsel %vm2377_vm7, %v2399_v57, %v2400_v56  ;;  %v2744_v12 = vunpack.c.l.bf16 %v2721_v26  ;;  %v2745_v0 = vunpack.c.h.bf16 %v2721_v26  ;;  %v9586_v24 = vld [vmem:[#allocation31_spill] sm:$0xff]  ;;  %9587 = vst [vmem:[#allocation49_spill] sm:$0xff] %v7151_v3  ;;  %v1223_v38 = vld [vmem:[#allocation2 + $0x70] sm:$0x1f]  ;;  %v7155_v57 = vld [vmem:[#allocation2 + $0xa0] sm:$0xf] }
 0x2ee   : > { %v987_v62 = vmul.bf16 %v9586_v24, %v7135_v53  ;;  %v2449_v7 = vadd.f32 %v2401_v41, %v2032_v21  ;;  %v3102_v35 = vadd.bf16 %v3086_v27, %v3066_v31  ;;  %v3447_v5 = vadd.bf16 %v3431_v17, %v3411_v43  ;;  %v9588_v11 = vld [vmem:[#allocation35_spill] sm:$0xff]  ;;  %9589 = vst [vmem:[#allocation37_spill] sm:$0xff] %v7155_v57  ;;  %v9590_v26 = vld [vmem:[#allocation42_spill] sm:$0xff] }
 0x2ef   : > { %v1023_v61 = vmul.bf16 %v9588_v11, %v7139_v25  ;;  %v2816_v39 = vrot.slane %v2744_v12, 4  ;;  %v2817_v59 = vrot.slane %v2745_v0, 4  ;;  %v1059_v23 = vmul.bf16 %v9590_v26, %v7143_v28  ;;  %v9591_v24 = vld [vmem:[#allocation90_spill] sm:$0xff]  ;;  %v9592_v27 = vld [vmem:[#allocation51_spill] sm:$0xff]  ;;  %v9593_v0 = vld [vmem:[#allocation52_spill] sm:$0xff] }
 0x2f0   : > { %v1003_v56 = vadd.bf16 %v987_v62, %v964_v32  ;;  %v3138_v4 = vadd.bf16 %v3122_v22, %v3102_v35  ;;  %v3483_v15 = vadd.bf16 %v3467_v40, %v3447_v5  ;;  %v3539_v21 = vmul.bf16 %v9591_v24, %v3307_v16  ;;  %v7162_v31 = vld [vmem:[#allocation2 + $0x78] sm:$0x1f]  ;;  %v7164_v43 = vld [vmem:[#allocation2 + $0x80] sm:$0x1f]  ;;  %v7169_v62 = vld [vmem:[#allocation2 + $0x88] sm:$0x1f] }
 0x2f1   : > { %v1095_v17 = vmul.bf16 %v9592_v27, %v7147_v20  ;;  %v2818_v41 = vsel %vm2794_vm8, %v2816_v39, %v2817_v59  ;;  %v1131_v32 = vmul.bf16 %v9593_v0, %v7151_v3  ;;  %9594 = vst [vmem:[#allocation20_spill] sm:$0xff] %v7169_v62  ;;  %v1252_v22 = vmul.bf16 %v9541_v36, %v1223_v38  ;;  %v7174_v27 = vld [vmem:[#allocation2 + $0x90] sm:$0x1f]  ;;  %v7176_v26 = vld [vmem:[#allocation2 + $0x98] sm:$0x1f] }
 0x2f2   : > { %v1039_v12 = vadd.bf16 %v1023_v61, %v1003_v56  ;;  %v3161_v40 = vunpack.c.l.bf16 %v3138_v4  ;;  %v3162_v35 = vunpack.c.h.bf16 %v3138_v4  ;;  %v3519_v16 = vadd.bf16 %v3503_v42, %v3483_v15  ;;  %9595 = vst [vmem:[#allocation63_spill] sm:$0xff] %v7174_v27  ;;  %9596 = vst [vmem:[#allocation22_spill] sm:$0xff] %v7176_v26  ;;  %v1640_v56 = vld [vmem:[#allocation2 + $0x70] sm:$0x1e]  ;;  %v7184_v42 = vld [vmem:[#allocation2 + $0x78] sm:$0x1e] }
 0x2f3   : > { %v1167_v5 = vmul.bf16 %v9540_v2, %v7155_v57  ;;  %v2866_v20 = vadd.f32 %v2818_v41, %v2449_v7  ;;  %v1275_v61 = vmul.bf16 %v9543_v30, %v7162_v31  ;;  %v1311_v39 = vmul.bf16 %v9545_v10, %v7164_v43  ;;  %v7186_v0 = vld [vmem:[#allocation2 + $0xa0] sm:$0x1f] }
 0x2f4   : > { %v1075_v59 = vadd.bf16 %v1059_v23, %v1039_v12  ;;  %v3233_v38 = vrot.slane %v3161_v40, 5  ;;  %v3234_v36 = vrot.slane %v3162_v35, 5  ;;  %v3555_v4 = vadd.bf16 %v3539_v21, %v3519_v16  ;;  %9597 = vst [vmem:[#allocation23_spill] sm:$0xff] %v7186_v0  ;;  %v7192_v12 = vld [vmem:[#allocation2 + $0x80] sm:$0x1e] }
 0x2f5   : > { %v1347_v15 = vmul.bf16 %v9487_v1, %v7169_v62  ;;  %v1291_v7 = vadd.bf16 %v1275_v61, %v1252_v22  ;;  %v1383_v23 = vmul.bf16 %v9546_v9, %v7174_v27  ;;  %v1419_v41 = vmul.bf16 %v9547_v8, %v7176_v26  ;;  %v7195_v16 = vld [vmem:[#allocation2 + $0x88] sm:$0x1e]  ;;  %v7198_v22 = vld [vmem:[#allocation2 + $0x90] sm:$0x1e]  ;;  %v7200_v61 = vld [vmem:[#allocation2 + $0x98] sm:$0x1e] }
 0x2f6   : > { %v1111_v2 = vadd.bf16 %v1095_v17, %v1075_v59  ;;  %v3235_v40 = vsel %vm3211_vm9, %v3233_v38, %v3234_v36  ;;  %v3578_v21 = vunpack.c.l.bf16 %v3555_v4  ;;  %v3579_v35 = vunpack.c.h.bf16 %v3555_v4  ;;  %9598 = vst [vmem:[#allocation101_spill] sm:$0xff] %v7195_v16  ;;  %9599 = vst [vmem:[#allocation102_spill] sm:$0xff] %v7198_v22  ;;  %v9600_v9 = vld [vmem:[#allocation36_spill] sm:$0xff]  ;;  %v9601_v36 = vld [vmem:[#allocation74_spill] sm:$0xff] }
 0x2f7   : > { %v1669_v1 = vmul.bf16 %v9492_v33, %v1640_v56  ;;  %v3283_v17 = vadd.f32 %v3235_v40, %v2866_v20  ;;  %v1327_v10 = vadd.bf16 %v1311_v39, %v1291_v7  ;;  %v1692_v8 = vmul.bf16 %v9600_v9, %v7184_v42  ;;  %v2057_v26 = vld [vmem:[#allocation2 + $0x70] sm:$0x3e]  ;;  %v7206_v4 = vld [vmem:[#allocation2 + $0xa0] sm:$0x1e]  ;;  %v7214_v7 = vld [vmem:[#allocation2 + $0x78] sm:$0x3e] }
 0x2f8   : > { %v1147_v59 = vadd.bf16 %v1131_v32, %v1111_v2  ;;  %v3650_v27 = vrot.slane %v3578_v21, 6  ;;  %v3651_v62 = vrot.slane %v3579_v35, 6  ;;  %v1455_v38 = vmul.bf16 %v9601_v36, %v7186_v0  ;;  %9602 = vst [vmem:[#allocation97_spill] sm:$0xff] %v7206_v4  ;;  %v7216_v40 = vld [vmem:[#allocation2 + $0x80] sm:$0x3e]  ;;  %v9604_v36 = vld [vmem:[#allocation64_spill] sm:$0xff] }
 0x2f9   : > { %v1728_v20 = vmul.bf16 %v9550_v18, %v7192_v12  ;;  %v1363_v32 = vadd.bf16 %v1347_v15, %v1327_v10  ;;  %v1708_v39 = vadd.bf16 %v1692_v8, %v1669_v1  ;;  %v1764_v56 = vmul.bf16 %v9551_v55, %v7195_v16  ;;  %9603 = vst [vmem:[#allocation89_spill] sm:$0xff] %v7216_v40  ;;  %v7218_v21 = vld [vmem:[#allocation2 + $0x88] sm:$0x3e]  ;;  %v7230_v18 = vld [vmem:[#allocation2 + $0x98] sm:$0x3e] }
 0x2fa   : > { %v7210_v2 = vadd.bf16 %v1167_v5, %v1147_v59  ;;  %v3652_v35 = vsel %vm865_vm0, %v3650_v27, %v3651_v62  ;;  %v1800_v9 = vmul.bf16 %v9604_v36, %v7198_v22  ;;  %v1836_v5 = vmul.bf16 %v9554_v54, %v7200_v61  ;;  %v7225_v59 = vld [vmem:[#allocation2 + $0x90] sm:$0x3e]  ;;  %9606 = vst [vmem:[#allocation19_spill] sm:$0xff] %v7230_v18  ;;  %v7232_v27 = vld [vmem:[#allocation2 + $0x78] sm:$0x3c] }
 0x2fb   : > { %9605 = vst [vmem:[#allocation68_spill] sm:$0xff] %v7225_v59  ;;  %v2086_v10 = vmul.bf16 %v9501_v60, %v2057_v26  ;;  %v3700_v1 = vadd.f32 %v3652_v35, %v3283_v17  ;;  %v1399_v8 = vadd.bf16 %v1383_v23, %v1363_v32  ;;  %v1744_v15 = vadd.bf16 %v1728_v20, %v1708_v39  ;;  %v2474_v16 = vld [vmem:[#allocation2 + $0x70] sm:$0x3c]  ;;  %v7235_v36 = vld [vmem:[#allocation2 + $0xa0] sm:$0x3e] }
 0x2fc   : > { %v1872_v55 = vmul.bf16 %v9506_v51, %v7206_v4  ;;  %v1199_v62 = vunpack.c.l.bf16 %v7210_v2  ;;  %9607 = vst [vmem:[#allocation27_spill] sm:$0xff] %v7235_v36  ;;  %v2109_v54 = vmul.bf16 %v9556_v29, %v7214_v7  ;;  %v2145_v26 = vmul.bf16 %v9558_v13, %v7216_v40  ;;  %v7243_v17 = vld [vmem:[#allocation2 + $0x80] sm:$0x3c]  ;;  %v7250_v35 = vld [vmem:[#allocation2 + $0x88] sm:$0x3c] }
 0x2fd   : > { %v2181_v23 = vmul.bf16 %v9447_v50, %v7218_v21  ;;  %9608 = vst [vmem:[#allocation73_spill] sm:$0xff] %v7243_v17  ;;  %v7246_v20 = vadd.f32 %v9560_v34, %v3700_v1  ;;  %v1435_v32 = vadd.bf16 %v1419_v41, %v1399_v8  ;;  %v1780_v39 = vadd.bf16 %v1764_v56, %v1744_v15  ;;  %v7252_v51 = vld [vmem:[#allocation2 + $0x90] sm:$0x3c]  ;;  %v7256_v40 = vld [vmem:[#allocation2 + $0x98] sm:$0x3c] }
 0x2fe   : > { %v2217_v2 = vmul.bf16 %v9508_v47, %v7225_v59  ;;  %9610 = vst [vmem:[#allocation18_spill] sm:$0xff] %v7250_v35  ;;  %9611 = vst [vmem:[#allocation99_spill] sm:$0xff] %v7252_v51  ;;  %v2125_v29 = vadd.bf16 %v2109_v54, %v2086_v10  ;;  %v2253_v13 = vmul.bf16 %v9559_v37, %v7230_v18  ;;  %v9613_v34 = vld [vmem:[#allocation48_spill] sm:$0xff]  ;;  %v7266_v59 = vld [vmem:[#allocation2 + $0x78] sm:$0x7c] }
 0x2ff   : > { %9609 = vst [vmem:[#allocation28_spill] sm:$0xff] %v7246_v20  ;;  %9612 = vst [vmem:[#allocation98_spill] sm:$0xff] %v7256_v40  ;;  %v2503_v50 = vmul.bf16 %v9562_v58, %v2474_v16  ;;  %v2526_v1 = vmul.bf16 %v9613_v34, %v7232_v27  ;;  %3746 = vadd.xlane.f32.xlu1 %v7246_v20  ;;  %v1471_v41 = vadd.bf16 %v1455_v38, %v1435_v32  ;;  %v9614_v8 = vld [vmem:[#allocation76_spill] sm:$0xff]  ;;  %v7272_v20 = vld [vmem:[#allocation2 + $0x80] sm:$0x7c] }
 0x300   : > { %v1816_v56 = vadd.bf16 %v1800_v9, %v1780_v39  ;;  %v2289_v15 = vmul.bf16 %v9614_v8, %v7235_v36  ;;  %v9615_v47 = vld [vmem:[#allocation56_spill] sm:$0xff]  ;;  %v2161_v37 = vadd.bf16 %v2145_v26, %v2125_v29  ;;  %v2598_v16 = vmul.bf16 %v9567_v52, %v7250_v35  ;;  %v7274_v39 = vld [vmem:[#allocation2 + $0xa0] sm:$0x3c] }
 0x301   : > { %v2562_v54 = vmul.bf16 %v9615_v47, %v7243_v17  ;;  %v2891_v10 = vld [vmem:[#allocation2 + $0x70] sm:$0x7c]  ;;  %v2542_v18 = vadd.bf16 %v2526_v1, %v2503_v50  ;;  %v2634_v34 = vmul.bf16 %v9568_v44, %v7252_v51  ;;  %v1495_v9 = vunpack.c.l.bf16 %v1471_v41  ;;  %9616 = vst [vmem:[#allocation100_spill] sm:$0xff] %v7274_v39  ;;  %v7278_v29 = vld [vmem:[#allocation2 + $0x88] sm:$0x7c] }
 0x302   : > { %v1496_v38 = vunpack.c.h.bf16 %v1471_v41  ;;  %v1852_v32 = vadd.bf16 %v1836_v5, %v1816_v56  ;;  %v2670_v47 = vmul.bf16 %v9461_v63, %v7256_v40  ;;  %v2197_v8 = vadd.bf16 %v2181_v23, %v2161_v37  ;;  %9617 = vst [vmem:[#allocation91_spill] sm:$0xff] %v7278_v29  ;;  %v7283_v51 = vld [vmem:[#allocation2 + $0x90] sm:$0x7c]  ;;  %v7289_v37 = vld [vmem:[#allocation2 + $0x98] sm:$0x7c] }
 0x303   : > { %v2578_v17 = vadd.bf16 %v2562_v54, %v2542_v18  ;;  %v2920_v50 = vmul.bf16 %v9569_v14, %v2891_v10  ;;  %v2943_v26 = vmul.bf16 %v9571_v48, %v7266_v59  ;;  %v1568_v1 = vrot.slane %v1495_v9, 1  ;;  %9618 = vst [vmem:[#allocation39_spill] sm:$0xff] %v7283_v51  ;;  %9619 = vst [vmem:[#allocation29_spill] sm:$0xff] %v7289_v37  ;;  %v7292_v9 = vld [vmem:[#allocation2 + $0xa0] sm:$0x7c] }
 0x304   : > { %v1569_v44 = vrot.slane %v1496_v38, 1  ;;  %v1888_v52 = vadd.bf16 %v1872_v55, %v1852_v32  ;;  %v2979_v5 = vmul.bf16 %v9348_v46, %v7272_v20  ;;  %v2233_v41 = vadd.bf16 %v2217_v2, %v2197_v8  ;;  %9620 = vst [vmem:[#allocation25_spill] sm:$0xff] %v7292_v9  ;;  %v3308_v38 = vld [vmem:[#allocation2 + $0x70] sm:$0x78]  ;;  %v7298_v8 = vld [vmem:[#allocation2 + $0x78] sm:$0x78] }
 0x305   : > { %v2614_v56 = vadd.bf16 %v2598_v16, %v2578_v17  ;;  %v2706_v18 = vmul.bf16 %v9520_v49, %v7274_v39  ;;  %v2959_v23 = vadd.bf16 %v2943_v26, %v2920_v50  ;;  %v3015_v55 = vmul.bf16 %v9349_v6, %v7278_v29  ;;  %9621 = vst [vmem:[#allocation94_spill] sm:$0xff] %v7298_v8  ;;  %v7300_v16 = vld [vmem:[#allocation2 + $0x80] sm:$0x78] }
 0x306   : > { %v1570_v54 = vsel %vm1543_vm6, %v1568_v1, %v1569_v44  ;;  %v1912_v10 = vunpack.c.l.bf16 %v1888_v52  ;;  %v1913_v48 = vunpack.c.h.bf16 %v1888_v52  ;;  %v2269_v32 = vadd.bf16 %v2253_v13, %v2233_v41  ;;  %9622 = vst [vmem:[#allocation26_spill] sm:$0xff] %v7300_v16  ;;  %v7304_v1 = vld [vmem:[#allocation2 + $0x88] sm:$0x78]  ;;  %v9623_v13 = vld [vmem:[#allocation85_spill] sm:$0xff] }
 0x307   : > { %v2650_v46 = vadd.bf16 %v2634_v34, %v2614_v56  ;;  %v2995_v2 = vadd.bf16 %v2979_v5, %v2959_v23  ;;  %v3051_v17 = vmul.bf16 %v9350_v19, %v7283_v51  ;;  %v1616_v50 = vadd.f32 %v1570_v54, %v1199_v62  ;;  %v7308_v5 = vld [vmem:[#allocation2 + $0x90] sm:$0x78] }
 0x308   : > { %v1985_v44 = vrot.slane %v1912_v10, 2  ;;  %v1986_v26 = vrot.slane %v1913_v48, 2  ;;  %v3087_v52 = vmul.bf16 %v5941_v45, %v7289_v37  ;;  %v2305_v49 = vadd.bf16 %v2289_v15, %v2269_v32  ;;  %v9624_v41 = vld [vmem:[#allocation60_spill] sm:$0xff]  ;;  %v9625_v62 = vld [vmem:[#allocation61_spill] sm:$0xff] }
 0x309   : > { %v2686_v6 = vadd.bf16 %v2670_v47, %v2650_v46  ;;  %v3123_v34 = vmul.bf16 %v9623_v13, %v7292_v9  ;;  %v3337_v56 = vmul.bf16 %v9624_v41, %v3308_v38  ;;  %v3031_v19 = vadd.bf16 %v3015_v55, %v2995_v2  ;;  %v9626_v54 = vld [vmem:[#allocation69_spill] sm:$0xff] }
 0x30a   : > { %v1987_v23 = vsel %vm884_vm2, %v1985_v44, %v1986_v26  ;;  %v3360_v48 = vmul.bf16 %v9625_v62, %v7298_v8  ;;  %v3396_v10 = vmul.bf16 %v9626_v54, %v7300_v16  ;;  %v2329_v45 = vunpack.c.l.bf16 %v2305_v49  ;;  %v7316_v46 = vld [vmem:[#allocation2 + $0x98] sm:$0x78]  ;;  %v7322_v54 = vld [vmem:[#allocation2 + $0xa0] sm:$0x78] }
 0x30b   : > { %v2330_v37 = vunpack.c.h.bf16 %v2305_v49  ;;  %v2722_v15 = vadd.bf16 %v2706_v18, %v2686_v6  ;;  %v9627_v47 = vld [vmem:[#allocation81_spill] sm:$0xff]  ;;  %v2033_v13 = vadd.f32 %v1987_v23, %v1616_v50  ;;  %v3067_v9 = vadd.bf16 %v3051_v17, %v3031_v19  ;;  %v9628_v44 = vld [vmem:[#allocation86_spill] sm:$0xff]  ;;  %9629 = vst [vmem:[#allocation21_spill] sm:$0xff] %v7322_v54  ;;  %v9630_v6 = vld [vmem:[#allocation87_spill] sm:$0xff] }
 0x30c   : > { %v3432_v32 = vmul.bf16 %v9627_v47, %v7304_v1  ;;  %v3376_v38 = vadd.bf16 %v3360_v48, %v3337_v56  ;;  %v3468_v55 = vmul.bf16 %v9628_v44, %v7308_v5  ;;  %v2402_v2 = vrot.slane %v2329_v45, 3  ;;  %v9631_v16 = vld [vmem:[#allocation30_spill] sm:$0xff]  ;;  %v9632_v56 = vld [vmem:[#allocation31_spill] sm:$0xff] }
 0x30d   : > { %v2403_v26 = vrot.slane %v2330_v37, 3  ;;  %v2746_v62 = vunpack.c.l.bf16 %v2722_v15  ;;  %v2747_v41 = vunpack.c.h.bf16 %v2722_v15  ;;  %v3103_v8 = vadd.bf16 %v3087_v52, %v3067_v9 }
 0x30e   : > { %v3412_v49 = vadd.bf16 %v3396_v10, %v3376_v38  ;;  %v3504_v18 = vmul.bf16 %v9630_v6, %v7316_v46  ;;  %v965_v47 = vmul.bf16 %v9631_v16, %v7135_v53  ;;  %v988_v45 = vmul.bf16 %v9632_v56, %v7139_v25  ;;  %v9633_v53 = vld [vmem:[#allocation95_spill] sm:$0xff]  ;;  %v9634_v38 = vld [vmem:[#allocation42_spill] sm:$0xff] }
 0x30f   : > { %v2404_v19 = vsel %vm2377_vm7, %v2402_v2, %v2403_v26  ;;  %v2819_v17 = vrot.slane %v2746_v62, 4  ;;  %v2820_v50 = vrot.slane %v2747_v41, 4  ;;  %v3139_v23 = vadd.bf16 %v3123_v34, %v3103_v8  ;;  %v7338_v16 = vld [vmem:[#allocation2 + $0xa8] sm:$0xf] }
 0x310   : > { %v2450_v37 = vadd.f32 %v2404_v19, %v2033_v13  ;;  %v3448_v48 = vadd.bf16 %v3432_v32, %v3412_v49  ;;  %v1024_v9 = vmul.bf16 %v9588_v11, %v7143_v28  ;;  %v3540_v10 = vmul.bf16 %v9591_v24, %v7322_v54  ;;  %9635 = vst [vmem:[#allocation103_spill] sm:$0xff] %v7338_v16  ;;  %v9636_v8 = vld [vmem:[#allocation51_spill] sm:$0xff]  ;;  %v9637_v49 = vld [vmem:[#allocation52_spill] sm:$0xff] }
 0x311   : > { %v2821_v52 = vsel %vm2794_vm8, %v2819_v17, %v2820_v50  ;;  %v1004_v15 = vadd.bf16 %v988_v45, %v965_v47  ;;  %v1060_v2 = vmul.bf16 %v9634_v38, %v9633_v53  ;;  %v3163_v62 = vunpack.c.l.bf16 %v3139_v23  ;;  %v9638_v17 = vld [vmem:[#allocation32_spill] sm:$0xff] }
 0x312   : > { %v3164_v41 = vunpack.c.h.bf16 %v3139_v23  ;;  %v3484_v26 = vadd.bf16 %v3468_v55, %v3448_v48  ;;  %v1096_v13 = vmul.bf16 %v9636_v8, %v7151_v3  ;;  %v2867_v34 = vadd.f32 %v2821_v52, %v2450_v37  ;;  %v9639_v48 = vld [vmem:[#allocation70_spill] sm:$0xff]  ;;  %v9640_v53 = vld [vmem:[#allocation20_spill] sm:$0xff]  ;;  %v9643_v52 = vld [vmem:[#allocation43_spill] sm:$0xff] }
 0x313   : > { %v1040_v32 = vadd.bf16 %v1024_v9, %v1004_v15  ;;  %v1132_v19 = vmul.bf16 %v9637_v49, %v7155_v57  ;;  %v1253_v50 = vmul.bf16 %v9638_v17, %v7162_v31  ;;  %v3236_v47 = vrot.slane %v3163_v62, 5  ;;  %v9641_v8 = vld [vmem:[#allocation38_spill] sm:$0xff]  ;;  %v9642_v9 = vld [vmem:[#allocation63_spill] sm:$0xff] }
 0x314   : > { %v3237_v45 = vrot.slane %v3164_v41, 5  ;;  %v3520_v11 = vadd.bf16 %v3504_v18, %v3484_v26  ;;  %v1276_v23 = vmul.bf16 %v9543_v30, %v7164_v43  ;;  %v1168_v38 = vmul.bf16 %v9639_v48, %v7338_v16  ;;  %v7355_v31 = vld [vmem:[#allocation2 + $0xa8] sm:$0x1f]  ;;  %v9645_v18 = vld [vmem:[#allocation22_spill] sm:$0xff] }
 0x315   : > { %v1076_v55 = vadd.bf16 %v1060_v2, %v1040_v32  ;;  %v1312_v37 = vmul.bf16 %v9641_v8, %v9640_v53  ;;  %v1348_v15 = vmul.bf16 %v9643_v52, %v9642_v9  ;;  %9644 = vst [vmem:[#allocation59_spill] sm:$0xff] %v7355_v31  ;;  %v9646_v41 = vld [vmem:[#allocation54_spill] sm:$0xff]  ;;  %v1670_v8 = vmul.bf16 %v9492_v33, %v7184_v42  ;;  %v7371_v42 = vld [vmem:[#allocation2 + $0xa8] sm:$0x1e] }
 0x316   : > { %v3238_v49 = vsel %vm3211_vm9, %v3236_v47, %v3237_v45  ;;  %v3556_v57 = vadd.bf16 %v3540_v10, %v3520_v11  ;;  %v1292_v62 = vadd.bf16 %v1276_v23, %v1253_v50  ;;  %v1384_v26 = vmul.bf16 %v9646_v41, %v9645_v18  ;;  %v9647_v32 = vld [vmem:[#allocation62_spill] sm:$0xff]  ;;  %v9648_v47 = vld [vmem:[#allocation36_spill] sm:$0xff]  ;;  %v9650_v23 = vld [vmem:[#allocation101_spill] sm:$0xff] }
 0x317   : > { %v3284_v30 = vadd.f32 %v3238_v49, %v2867_v34  ;;  %v1112_v2 = vadd.bf16 %v1096_v13, %v1076_v55  ;;  %v1420_v48 = vmul.bf16 %v9647_v32, %v7186_v0  ;;  %v1693_v11 = vmul.bf16 %v9648_v47, %v7192_v12  ;;  %v9649_v50 = vld [vmem:[#allocation74_spill] sm:$0xff]  ;;  %v9651_v41 = vld [vmem:[#allocation40_spill] sm:$0xff] }
 0x318   : > { %v3580_v53 = vunpack.c.l.bf16 %v3556_v57  ;;  %v3581_v17 = vunpack.c.h.bf16 %v3556_v57  ;;  %v1328_v52 = vadd.bf16 %v1312_v37, %v1292_v62  ;;  %v1456_v45 = vmul.bf16 %v9649_v50, %v7355_v31  ;;  %v9652_v13 = vld [vmem:[#allocation50_spill] sm:$0xff]  ;;  %v9653_v62 = vld [vmem:[#allocation64_spill] sm:$0xff] }
 0x319   : > { %v1148_v10 = vadd.bf16 %v1132_v19, %v1112_v2  ;;  %v1729_v34 = vmul.bf16 %v9651_v41, %v9650_v23  ;;  %v1765_v49 = vmul.bf16 %v9652_v13, %v7198_v22  ;;  %v1709_v57 = vadd.bf16 %v1693_v11, %v1670_v8  ;;  %v9654_v19 = vld [vmem:[#allocation65_spill] sm:$0xff] }
 0x31a   : > { %v3653_v55 = vrot.slane %v3580_v53, 6  ;;  %v3654_v32 = vrot.slane %v3581_v17, 6  ;;  %v1364_v0 = vadd.bf16 %v1348_v15, %v1328_v52  ;;  %v1801_v47 = vmul.bf16 %v9653_v62, %v7200_v61  ;;  %v9655_v53 = vld [vmem:[#allocation89_spill] sm:$0xff] }
 0x31b   : > { %v1184_v37 = vadd.bf16 %v1168_v38, %v1148_v10  ;;  %v1837_v2 = vmul.bf16 %v9654_v19, %v7206_v4  ;;  %v2087_v50 = vmul.bf16 %v9501_v60, %v7214_v7  ;;  %v1745_v13 = vadd.bf16 %v1729_v34, %v1709_v57  ;;  %v9656_v17 = vld [vmem:[#allocation45_spill] sm:$0xff]  ;;  %v9657_v38 = vld [vmem:[#allocation75_spill] sm:$0xff]  ;;  %v9660_v60 = vld [vmem:[#allocation68_spill] sm:$0xff] }
 0x31c   : > { %v3655_v41 = vsel %vm865_vm0, %v3653_v55, %v3654_v32  ;;  %v1400_v23 = vadd.bf16 %v1384_v26, %v1364_v0  ;;  %v2110_v52 = vmul.bf16 %v9656_v17, %v9655_v53  ;;  %v1873_v8 = vmul.bf16 %v9657_v38, %v7371_v42  ;;  %v9658_v11 = vld [vmem:[#allocation53_spill] sm:$0xff]  ;;  %v7386_v4 = vld [vmem:[#allocation2 + $0xa8] sm:$0x3e]  ;;  %v9661_v32 = vld [vmem:[#allocation66_spill] sm:$0xff] }
 0x31d   : > { %v3701_v15 = vadd.f32 %v3655_v41, %v3284_v30  ;;  %v1200_v22 = vunpack.c.l.bf16 %v1184_v37  ;;  %v2146_v10 = vmul.bf16 %v9658_v11, %v7218_v21  ;;  %v1781_v19 = vadd.bf16 %v1765_v49, %v1745_v13  ;;  %9659 = vst [vmem:[#allocation44_spill] sm:$0xff] %v7386_v4  ;;  %v7393_v26 = vld [vmem:[%s8547_s2] ss:$0 sm:$0xff]  ;;  %v9664_v41 = vld [vmem:[#allocation19_spill] sm:$0xff]  ;;  %v9667_v37 = vld [vmem:[#allocation73_spill] sm:$0xff] }
 0x31e   : > { %v1436_v62 = vadd.bf16 %v1420_v48, %v1400_v23  ;;  %v2126_v7 = vadd.bf16 %v2110_v52, %v2087_v50  ;;  %v2182_v0 = vmul.bf16 %v9661_v32, %v9660_v60  ;;  %9662 = vst [vmem:[#allocation89_spill] sm:$0xff] %v7393_v26  ;;  %v9665_v34 = vld [vmem:[#allocation71_spill] sm:$0xff]  ;;  %v9666_v48 = vld [vmem:[#allocation72_spill] sm:$0xff]  ;;  %v2504_v50 = vmul.bf16 %v9562_v58, %v7232_v27  ;;  %v9672_v60 = vld [vmem:[#allocation77_spill] sm:$0xff] }
 0x31f   : > { %v7396_v30 = vadd.f32 %v7393_v26, %v3701_v15  ;;  %v2218_v55 = vmul.bf16 %v9665_v34, %v9664_v41  ;;  %v2254_v23 = vmul.bf16 %v9666_v48, %v7235_v36  ;;  %v1817_v49 = vadd.bf16 %v1801_v47, %v1781_v19  ;;  %v9668_v52 = vld [vmem:[#allocation48_spill] sm:$0xff]  ;;  %v9671_v41 = vld [vmem:[#allocation99_spill] sm:$0xff] }
 0x320   : > { %v1472_v13 = vadd.bf16 %v1456_v45, %v1436_v62  ;;  %v2162_v57 = vadd.bf16 %v2146_v10, %v2126_v7  ;;  %v2527_v32 = vmul.bf16 %v9668_v52, %v9667_v37  ;;  %v9669_v15 = vld [vmem:[#allocation76_spill] sm:$0xff]  ;;  %v2599_v48 = vmul.bf16 %v9672_v60, %v9671_v41  ;;  %v9673_v36 = vld [vmem:[#allocation79_spill] sm:$0xff] }
 0x321   : > { %9663 = vst [vmem:[#allocation104_spill] sm:$0xff] %v7396_v30  ;;  %3748 = vadd.xlane.f32.xlu0 %v7396_v30  ;;  %v2290_v26 = vmul.bf16 %v9669_v15, %v7386_v4  ;;  %v9670_v11 = vld [vmem:[#allocation56_spill] sm:$0xff]  ;;  %v2635_v27 = vmul.bf16 %v9673_v36, %v7256_v40  ;;  %v1853_v62 = vadd.bf16 %v1837_v2, %v1817_v49  ;;  %v9674_v15 = vld [vmem:[#allocation58_spill] sm:$0xff]  ;;  %v9676_v2 = vld [vmem:[#allocation67_spill] sm:$0xff] }
 0x322   : > { %v2563_v34 = vmul.bf16 %v9670_v11, %v7250_v35  ;;  %v1497_v45 = vunpack.c.l.bf16 %v1472_v13  ;;  %v1498_v47 = vunpack.c.h.bf16 %v1472_v13  ;;  %v2198_v19 = vadd.bf16 %v2182_v0, %v2162_v57  ;;  %v7421_v58 = vld [vmem:[#allocation2 + $0xa8] sm:$0x3c]  ;;  %v9677_v0 = vld [vmem:[#allocation78_spill] sm:$0xff] }
 0x323   : > { %v2543_v10 = vadd.bf16 %v2527_v32, %v2504_v50  ;;  %v2671_v7 = vmul.bf16 %v9461_v63, %v7274_v39  ;;  %v2921_v30 = vmul.bf16 %v9569_v14, %v7266_v59  ;;  %v2944_v11 = vmul.bf16 %v9674_v15, %v7272_v20  ;;  %9675 = vst [vmem:[#allocation73_spill] sm:$0xff] %v7421_v58 }
 0x324   : > { %v1571_v52 = vrot.slane %v1497_v45, 1  ;;  %v1572_v35 = vrot.slane %v1498_v47, 1  ;;  %v1889_v60 = vadd.bf16 %v1873_v8, %v1853_v62  ;;  %v2234_v41 = vadd.bf16 %v2218_v55, %v2198_v19  ;;  %v9678_v8 = vld [vmem:[#allocation82_spill] sm:$0xff]  ;;  %v9680_v19 = vld [vmem:[#allocation83_spill] sm:$0xff] }
 0x325   : > { %v2579_v36 = vadd.bf16 %v2563_v34, %v2543_v10  ;;  %v2960_v13 = vadd.bf16 %v2944_v11, %v2921_v30  ;;  %v2980_v32 = vmul.bf16 %v9676_v2, %v7278_v29  ;;  %v3016_v50 = vmul.bf16 %v9677_v0, %v7283_v51  ;;  %v9679_v30 = vld [vmem:[#allocation29_spill] sm:$0xff]  ;;  %v9682_v51 = vld [vmem:[#allocation84_spill] sm:$0xff] }
 0x326   : > { %v1573_v49 = vsel %vm1543_vm6, %v1571_v52, %v1572_v35  ;;  %v1914_v59 = vunpack.c.l.bf16 %v1889_v60  ;;  %v1915_v57 = vunpack.c.h.bf16 %v1889_v60  ;;  %v2270_v14 = vadd.bf16 %v2254_v23, %v2234_v41  ;;  %v9681_v0 = vld [vmem:[#allocation25_spill] sm:$0xff]  ;;  %v9683_v52 = vld [vmem:[#allocation94_spill] sm:$0xff]  ;;  %v9684_v60 = vld [vmem:[#allocation60_spill] sm:$0xff] }
 0x327   : > { %v1617_v15 = vadd.f32 %v1573_v49, %v1200_v22  ;;  %v2615_v45 = vadd.bf16 %v2599_v48, %v2579_v36  ;;  %v2707_v55 = vmul.bf16 %v9678_v8, %v7421_v58  ;;  %v2996_v47 = vadd.bf16 %v2980_v32, %v2960_v13  ;;  %v7437_v23 = vld [vmem:[#allocation2 + $0xa8] sm:$0x7c]  ;;  %v9685_v13 = vld [vmem:[#allocation26_spill] sm:$0xff]  ;;  %v9686_v32 = vld [vmem:[#allocation61_spill] sm:$0xff] }
 0x328   : > { %v1988_v62 = vrot.slane %v1914_v59, 2  ;;  %v1989_v34 = vrot.slane %v1915_v57, 2  ;;  %v2306_v11 = vadd.bf16 %v2290_v26, %v2270_v14  ;;  %v3052_v10 = vmul.bf16 %v9680_v19, %v9679_v30 }
 0x329   : > { %v2651_v2 = vadd.bf16 %v2635_v27, %v2615_v45  ;;  %v3032_v29 = vadd.bf16 %v3016_v50, %v2996_v47  ;;  %v3088_v35 = vmul.bf16 %v9682_v51, %v9681_v0  ;;  %v3338_v41 = vmul.bf16 %v9684_v60, %v9683_v52  ;;  %v9687_v27 = vld [vmem:[#allocation69_spill] sm:$0xff]  ;;  %v7443_v47 = vld [vmem:[#allocation2 + $0xa8] sm:$0x78] }
 0x32a   : > { %v1990_v22 = vsel %vm884_vm2, %v1988_v62, %v1989_v34  ;;  %v2331_v36 = vunpack.c.l.bf16 %v2306_v11  ;;  %v2332_v48 = vunpack.c.h.bf16 %v2306_v11  ;;  %v3361_v14 = vmul.bf16 %v9686_v32, %v9685_v13  ;;  %v9688_v62 = vld [vmem:[#allocation81_spill] sm:$0xff] }
 0x32b   : > { %v2034_v26 = vadd.f32 %v1990_v22, %v1617_v15  ;;  %v2687_v49 = vadd.bf16 %v2671_v7, %v2651_v2  ;;  %v3068_v59 = vadd.bf16 %v3052_v10, %v3032_v29  ;;  %v3397_v50 = vmul.bf16 %v9687_v27, %v7304_v1  ;;  %v9689_v51 = vld [vmem:[#allocation85_spill] sm:$0xff]  ;;  %v9690_v10 = vld [vmem:[#allocation30_spill] sm:$0xff] }
 0x32c   : > { %v2405_v57 = vrot.slane %v2331_v36, 3  ;;  %v2406_v45 = vrot.slane %v2332_v48, 3  ;;  %v3377_v52 = vadd.bf16 %v3361_v14, %v3338_v41  ;;  %v3433_v34 = vmul.bf16 %v9688_v62, %v7308_v5 }
 0x32d   : > { %v2723_v11 = vadd.bf16 %v2707_v55, %v2687_v49  ;;  %v3104_v60 = vadd.bf16 %v3088_v35, %v3068_v59  ;;  %v3124_v19 = vmul.bf16 %v9689_v51, %v7437_v23  ;;  %v3469_v15 = vmul.bf16 %v9628_v44, %v7316_v46  ;;  %v9691_v59 = vld [vmem:[#allocation95_spill] sm:$0xff] }
 0x32e   : > { %v2407_v29 = vsel %vm2377_vm7, %v2405_v57, %v2406_v45  ;;  %v3413_v7 = vadd.bf16 %v3397_v50, %v3377_v52  ;;  %v3505_v2 = vmul.bf16 %v9630_v6, %v7322_v54  ;;  %v966_v41 = vmul.bf16 %v9690_v10, %v7139_v25  ;;  %v9692_v57 = vld [vmem:[#allocation35_spill] sm:$0xff]  ;;  %v7462_v25 = vld [vmem:[#allocation2 + $0xb0] sm:$0xf]  ;;  %v9695_v10 = vld [vmem:[#allocation37_spill] sm:$0xff] }
 0x32f   : > { %v2748_v22 = vunpack.c.l.bf16 %v2723_v11  ;;  %v2749_v36 = vunpack.c.h.bf16 %v2723_v11  ;;  %v3140_v48 = vadd.bf16 %v3124_v19, %v3104_v60  ;;  %v3541_v55 = vmul.bf16 %v9591_v24, %v7443_v47  ;;  %9693 = vst [vmem:[#allocation29_spill] sm:$0xff] %v7462_v25  ;;  %v9694_v19 = vld [vmem:[#allocation42_spill] sm:$0xff] }
 0x330   : > { %v2451_v35 = vadd.f32 %v2407_v29, %v2034_v26  ;;  %v3449_v14 = vadd.bf16 %v3433_v34, %v3413_v7  ;;  %v989_v49 = vmul.bf16 %v9632_v56, %v7143_v28  ;;  %v1025_v50 = vmul.bf16 %v9692_v57, %v9691_v59  ;;  %v9696_v26 = vld [vmem:[#allocation51_spill] sm:$0xff]  ;;  %v9697_v57 = vld [vmem:[#allocation52_spill] sm:$0xff] }
 0x331   : > { %v2822_v45 = vrot.slane %v2748_v22, 4  ;;  %v2823_v52 = vrot.slane %v2749_v36, 4  ;;  %v3165_v6 = vunpack.c.l.bf16 %v3140_v48  ;;  %v3166_v44 = vunpack.c.h.bf16 %v3140_v48 }
 0x332   : > { %v3485_v54 = vadd.bf16 %v3469_v15, %v3449_v14  ;;  %v1005_v11 = vadd.bf16 %v989_v49, %v966_v41  ;;  %v1061_v60 = vmul.bf16 %v9694_v19, %v7151_v3  ;;  %v1097_v34 = vmul.bf16 %v9696_v26, %v9695_v10  ;;  %v9698_v15 = vld [vmem:[#allocation32_spill] sm:$0xff]  ;;  %v9699_v49 = vld [vmem:[#allocation70_spill] sm:$0xff]  ;;  %v9701_v26 = vld [vmem:[#allocation33_spill] sm:$0xff] }
 0x333   : > { %v2824_v29 = vsel %vm2794_vm8, %v2822_v45, %v2823_v52  ;;  %v3239_v7 = vrot.slane %v3165_v6, 5  ;;  %v3240_v56 = vrot.slane %v3166_v44, 5  ;;  %v1133_v22 = vmul.bf16 %v9697_v57, %v7338_v16  ;;  %v9700_v3 = vld [vmem:[#allocation20_spill] sm:$0xff]  ;;  %v9702_v6 = vld [vmem:[#allocation38_spill] sm:$0xff] }
 0x334   : > { %v2868_v36 = vadd.f32 %v2824_v29, %v2451_v35  ;;  %v3521_v59 = vadd.bf16 %v3505_v2, %v3485_v54  ;;  %v1041_v48 = vadd.bf16 %v1025_v50, %v1005_v11  ;;  %v1254_v14 = vmul.bf16 %v9698_v15, %v7164_v43  ;;  %v7480_v35 = vld [vmem:[#allocation2 + $0xb0] sm:$0x1f]  ;;  %v9704_v54 = vld [vmem:[#allocation43_spill] sm:$0xff]  ;;  %v9707_v29 = vld [vmem:[#allocation62_spill] sm:$0xff] }
 0x335   : > { %v3241_v41 = vsel %vm3211_vm9, %v3239_v7, %v3240_v56  ;;  %v1169_v19 = vmul.bf16 %v9699_v49, %v7462_v25  ;;  %v1277_v10 = vmul.bf16 %v9701_v26, %v9700_v3  ;;  %v1313_v44 = vmul.bf16 %v9702_v6, %v9642_v9  ;;  %9703 = vst [vmem:[#allocation25_spill] sm:$0xff] %v7480_v35  ;;  %v9705_v50 = vld [vmem:[#allocation23_spill] sm:$0xff]  ;;  %v9706_v56 = vld [vmem:[#allocation54_spill] sm:$0xff] }
 0x336   : > { %v3285_v45 = vadd.f32 %v3241_v41, %v2868_v36  ;;  %v3557_v52 = vadd.bf16 %v3541_v55, %v3521_v59  ;;  %v1077_v57 = vadd.bf16 %v1061_v60, %v1041_v48  ;;  %v1349_v2 = vmul.bf16 %v9704_v54, %v9645_v18  ;;  %v9708_v55 = vld [vmem:[#allocation101_spill] sm:$0xff]  ;;  %v9709_v59 = vld [vmem:[#allocation36_spill] sm:$0xff]  ;;  %v9710_v41 = vld [vmem:[#allocation74_spill] sm:$0xff] }
 0x337   : > { %v1293_v43 = vadd.bf16 %v1277_v10, %v1254_v14  ;;  %v1385_v11 = vmul.bf16 %v9706_v56, %v9705_v50  ;;  %v1421_v7 = vmul.bf16 %v9707_v29, %v7355_v31  ;;  %v1671_v26 = vmul.bf16 %v9492_v33, %v7192_v12  ;;  %v9711_v10 = vld [vmem:[#allocation102_spill] sm:$0xff]  ;;  %v9712_v14 = vld [vmem:[#allocation40_spill] sm:$0xff] }
 0x338   : > { %v3582_v15 = vunpack.c.l.bf16 %v3557_v52  ;;  %v3583_v6 = vunpack.c.h.bf16 %v3557_v52  ;;  %v1113_v36 = vadd.bf16 %v1097_v34, %v1077_v57  ;;  %v1694_v60 = vmul.bf16 %v9709_v59, %v9708_v55  ;;  %v9713_v56 = vld [vmem:[#allocation50_spill] sm:$0xff]  ;;  %v7498_v12 = vld [vmem:[#allocation2 + $0xb0] sm:$0x1e] }
 0x339   : > { %v1329_v48 = vadd.bf16 %v1313_v44, %v1293_v43  ;;  %v1457_v54 = vmul.bf16 %v9710_v41, %v7480_v35  ;;  %v1730_v18 = vmul.bf16 %v9712_v14, %v9711_v10  ;;  %v1766_v50 = vmul.bf16 %v9713_v56, %v7200_v61  ;;  %v9714_v34 = vld [vmem:[#allocation97_spill] sm:$0xff]  ;;  %v9715_v33 = vld [vmem:[#allocation64_spill] sm:$0xff] }
 0x33a   : > { %v3656_v29 = vrot.slane %v3582_v15, 6  ;;  %v3657_v31 = vrot.slane %v3583_v6, 6  ;;  %v1149_v9 = vadd.bf16 %v1133_v22, %v1113_v36  ;;  %v1710_v52 = vadd.bf16 %v1694_v60, %v1671_v26  ;;  %v9716_v44 = vld [vmem:[#allocation65_spill] sm:$0xff] }
 0x33b   : > { %v1365_v57 = vadd.bf16 %v1349_v2, %v1329_v48  ;;  %v1802_v59 = vmul.bf16 %v9715_v33, %v9714_v34  ;;  %v1838_v43 = vmul.bf16 %v9716_v44, %v7371_v42  ;;  %v9717_v55 = vld [vmem:[#allocation41_spill] sm:$0xff]  ;;  %v2111_v22 = vmul.bf16 %v9656_v17, %v7218_v21  ;;  %v9718_v2 = vld [vmem:[#allocation68_spill] sm:$0xff] }
 0x33c   : > { %v2088_v41 = vmul.bf16 %v9717_v55, %v9655_v53  ;;  %v3658_v14 = vsel %vm865_vm0, %v3656_v29, %v3657_v31  ;;  %v1185_v10 = vadd.bf16 %v1169_v19, %v1149_v9  ;;  %v1746_v56 = vadd.bf16 %v1730_v18, %v1710_v52  ;;  %v9719_v36 = vld [vmem:[#allocation53_spill] sm:$0xff]  ;;  %v9721_v55 = vld [vmem:[#allocation19_spill] sm:$0xff]  ;;  %v9722_v31 = vld [vmem:[#allocation66_spill] sm:$0xff] }
 0x33d   : > { %v3702_v15 = vadd.f32 %v3658_v14, %v3285_v45  ;;  %v1401_v6 = vadd.bf16 %v1385_v11, %v1365_v57  ;;  %v1874_v26 = vmul.bf16 %v9657_v38, %v7498_v12  ;;  %v2147_v60 = vmul.bf16 %v9719_v36, %v9718_v2  ;;  %v7513_v33 = vld [vmem:[#allocation2 + $0xb0] sm:$0x3e]  ;;  %v9725_v45 = vld [vmem:[#allocation27_spill] sm:$0xff] }
 0x33e   : > { %v1201_v48 = vunpack.c.l.bf16 %v1185_v10  ;;  %v1782_v44 = vadd.bf16 %v1766_v50, %v1746_v56  ;;  %9720 = vst [vmem:[#allocation94_spill] sm:$0xff] %v7513_v33  ;;  %v2127_v53 = vadd.bf16 %v2111_v22, %v2088_v41  ;;  %v2183_v9 = vmul.bf16 %v9722_v31, %v9721_v55  ;;  %v9723_v18 = vld [vmem:[#allocation89_spill] sm:$0xff]  ;;  %v9726_v11 = vld [vmem:[#allocation71_spill] sm:$0xff]  ;;  %v9727_v52 = vld [vmem:[#allocation72_spill] sm:$0xff] }
 0x33f   : > { %v7518_v19 = vadd.f32 %v9723_v18, %v3702_v15  ;;  %v1437_v29 = vadd.bf16 %v1421_v7, %v1401_v6  ;;  %v2219_v14 = vmul.bf16 %v9726_v11, %v9725_v45  ;;  %v2255_v57 = vmul.bf16 %v9727_v52, %v7386_v4  ;;  %v9728_v50 = vld [vmem:[#allocation47_spill] sm:$0xff]  ;;  %v9729_v10 = vld [vmem:[#allocation18_spill] sm:$0xff]  ;;  %v9730_v41 = vld [vmem:[#allocation48_spill] sm:$0xff] }
 0x340   : > { %v1818_v38 = vadd.bf16 %v1802_v59, %v1782_v44  ;;  %v2163_v36 = vadd.bf16 %v2147_v60, %v2127_v53  ;;  %v2505_v56 = vmul.bf16 %v9728_v50, %v9667_v37  ;;  %v2528_v22 = vmul.bf16 %v9730_v41, %v9729_v10  ;;  %v9731_v15 = vld [vmem:[#allocation76_spill] sm:$0xff]  ;;  %v9732_v6 = vld [vmem:[#allocation99_spill] sm:$0xff]  ;;  %v9734_v45 = vld [vmem:[#allocation77_spill] sm:$0xff] }
 0x341   : > { %9724 = vst [vmem:[#allocation26_spill] sm:$0xff] %v7518_v19  ;;  %3750 = vadd.xlane.f32.xlu1 %v7518_v19  ;;  %v1473_v31 = vadd.bf16 %v1457_v54, %v1437_v29  ;;  %v2291_v7 = vmul.bf16 %v9731_v15, %v7513_v33  ;;  %v9733_v18 = vld [vmem:[#allocation56_spill] sm:$0xff]  ;;  %v2600_v52 = vmul.bf16 %v9734_v45, %v7256_v40  ;;  %v9735_v53 = vld [vmem:[#allocation79_spill] sm:$0xff]  ;;  %v9736_v29 = vld [vmem:[#allocation57_spill] sm:$0xff] }
 0x342   : > { %v2564_v11 = vmul.bf16 %v9733_v18, %v9732_v6  ;;  %v1854_v59 = vadd.bf16 %v1838_v43, %v1818_v38  ;;  %v2199_v44 = vadd.bf16 %v2183_v9, %v2163_v36  ;;  %v7535_v60 = vld [vmem:[#allocation2 + $0xb0] sm:$0x3c]  ;;  %v2544_v37 = vadd.bf16 %v2528_v22, %v2505_v56  ;;  %v9737_v45 = vld [vmem:[#allocation91_spill] sm:$0xff]  ;;  %v9738_v38 = vld [vmem:[#allocation58_spill] sm:$0xff] }
 0x343   : > { %v2636_v41 = vmul.bf16 %v9735_v53, %v7274_v39  ;;  %v1499_v50 = vunpack.c.l.bf16 %v1473_v31  ;;  %v1500_v19 = vunpack.c.h.bf16 %v1473_v31  ;;  %v2672_v54 = vmul.bf16 %v9461_v63, %v7421_v58  ;;  %v9739_v22 = vld [vmem:[#allocation39_spill] sm:$0xff] }
 0x344   : > { %v2922_v15 = vmul.bf16 %v9736_v29, %v7272_v20  ;;  %v1890_v18 = vadd.bf16 %v1874_v26, %v1854_v59  ;;  %v2235_v6 = vadd.bf16 %v2219_v14, %v2199_v44  ;;  %v2580_v10 = vadd.bf16 %v2564_v11, %v2544_v37  ;;  %v9740_v53 = vld [vmem:[#allocation67_spill] sm:$0xff]  ;;  %v7550_v26 = vld [vmem:[#allocation2 + $0xb0] sm:$0x7c]  ;;  %v9741_v14 = vld [vmem:[#allocation78_spill] sm:$0xff] }
 0x345   : > { %v2945_v43 = vmul.bf16 %v9738_v38, %v9737_v45  ;;  %v1574_v36 = vrot.slane %v1499_v50, 1  ;;  %v1575_v9 = vrot.slane %v1500_v19, 1  ;;  %v2708_v56 = vmul.bf16 %v9678_v8, %v7535_v60  ;;  %v9742_v19 = vld [vmem:[#allocation83_spill] sm:$0xff] }
 0x346   : > { %v2981_v31 = vmul.bf16 %v9740_v53, %v9739_v22  ;;  %v1916_v39 = vunpack.c.l.bf16 %v1890_v18  ;;  %v1917_v40 = vunpack.c.h.bf16 %v1890_v18  ;;  %v2271_v63 = vadd.bf16 %v2255_v57, %v2235_v6  ;;  %v9743_v18 = vld [vmem:[#allocation84_spill] sm:$0xff] }
 0x347   : > { %v2616_v58 = vadd.bf16 %v2600_v52, %v2580_v10  ;;  %v1576_v20 = vsel %vm1543_vm6, %v1574_v36, %v1575_v9  ;;  %v2961_v11 = vadd.bf16 %v2945_v43, %v2922_v15  ;;  %v3017_v59 = vmul.bf16 %v9741_v14, %v9679_v30  ;;  %v9744_v57 = vld [vmem:[#allocation60_spill] sm:$0xff] }
 0x348   : > { %v3053_v50 = vmul.bf16 %v9742_v19, %v9681_v0  ;;  %v1618_v44 = vadd.f32 %v1576_v20, %v1201_v48  ;;  %v1991_v37 = vrot.slane %v1916_v39, 2  ;;  %v1992_v8 = vrot.slane %v1917_v40, 2 }
 0x349   : > { %v2307_v38 = vadd.bf16 %v2291_v7, %v2271_v63  ;;  %v2652_v53 = vadd.bf16 %v2636_v41, %v2616_v58  ;;  %v2997_v22 = vadd.bf16 %v2981_v31, %v2961_v11  ;;  %v3089_v52 = vmul.bf16 %v9743_v18, %v7437_v23  ;;  %v7565_v58 = vld [vmem:[#allocation2 + $0xb0] sm:$0x78] }
 0x34a   : > { %v3339_v10 = vmul.bf16 %v9744_v57, %v9685_v13  ;;  %v3125_v43 = vmul.bf16 %v9689_v51, %v7550_v26  ;;  %v3362_v36 = vmul.bf16 %v9686_v32, %v7304_v1  ;;  %v1993_v39 = vsel %vm884_vm2, %v1991_v37, %v1992_v8  ;;  %9745 = vst [vmem:[#allocation20_spill] sm:$0xff] %v7565_v58  ;;  %v9746_v11 = vld [vmem:[#allocation21_spill] sm:$0xff]  ;;  %v9747_v32 = vld [vmem:[#allocation86_spill] sm:$0xff] }
 0x34b   : > { %v2333_v6 = vunpack.c.l.bf16 %v2307_v38  ;;  %v2334_v15 = vunpack.c.h.bf16 %v2307_v38  ;;  %v2688_v40 = vadd.bf16 %v2672_v54, %v2652_v53  ;;  %v3033_v63 = vadd.bf16 %v3017_v59, %v2997_v22  ;;  %v9748_v54 = vld [vmem:[#allocation87_spill] sm:$0xff] }
 0x34c   : > { %v3398_v48 = vmul.bf16 %v9687_v27, %v7308_v5  ;;  %v2035_v41 = vadd.f32 %v1993_v39, %v1618_v44  ;;  %v3378_v9 = vadd.bf16 %v3362_v36, %v3339_v10  ;;  %v3434_v20 = vmul.bf16 %v9688_v62, %v7316_v46  ;;  %v7580_v36 = vld [vmem:[#allocation2 + $0xb8] sm:$0xf]  ;;  %v9751_v39 = vld [vmem:[#allocation95_spill] sm:$0xff] }
 0x34d   : > { %v2408_v7 = vrot.slane %v2333_v6, 3  ;;  %v2409_v13 = vrot.slane %v2334_v15, 3  ;;  %v2724_v38 = vadd.bf16 %v2708_v56, %v2688_v40  ;;  %v3069_v31 = vadd.bf16 %v3053_v50, %v3033_v63  ;;  %v9749_v56 = vld [vmem:[#allocation30_spill] sm:$0xff]  ;;  %9750 = vst [vmem:[#allocation97_spill] sm:$0xff] %v7580_v36  ;;  %v9752_v40 = vld [vmem:[#allocation31_spill] sm:$0xff] }
 0x34e   : > { %v3470_v57 = vmul.bf16 %v9747_v32, %v9746_v11  ;;  %v3414_v53 = vadd.bf16 %v3398_v48, %v3378_v9  ;;  %v3506_v22 = vmul.bf16 %v9748_v54, %v7443_v47  ;;  %v3542_v59 = vmul.bf16 %v9591_v24, %v7565_v58  ;;  %v9753_v48 = vld [vmem:[#allocation49_spill] sm:$0xff]  ;;  %v9756_v58 = vld [vmem:[#allocation42_spill] sm:$0xff] }
 0x34f   : > { %v2410_v8 = vsel %vm2377_vm7, %v2408_v7, %v2409_v13  ;;  %v2750_v44 = vunpack.c.l.bf16 %v2724_v38  ;;  %v2751_v37 = vunpack.c.h.bf16 %v2724_v38  ;;  %v3105_v10 = vadd.bf16 %v3089_v52, %v3069_v31  ;;  %v9754_v7 = vld [vmem:[#allocation35_spill] sm:$0xff]  ;;  %v9755_v24 = vld [vmem:[#allocation37_spill] sm:$0xff] }
 0x350   : > { %v967_v50 = vmul.bf16 %v9749_v56, %v7143_v28  ;;  %v2452_v6 = vadd.f32 %v2410_v8, %v2035_v41  ;;  %v3450_v15 = vadd.bf16 %v3434_v20, %v3414_v53  ;;  %v990_v63 = vmul.bf16 %v9752_v40, %v9751_v39  ;;  %v9757_v28 = vld [vmem:[#allocation51_spill] sm:$0xff]  ;;  %v9758_v20 = vld [vmem:[#allocation52_spill] sm:$0xff] }
 0x351   : > { %v1026_v13 = vmul.bf16 %v9754_v7, %v9753_v48  ;;  %v2825_v9 = vrot.slane %v2750_v44, 4  ;;  %v2826_v54 = vrot.slane %v2751_v37, 4  ;;  %v3141_v32 = vadd.bf16 %v3125_v43, %v3105_v10  ;;  %v7595_v10 = vld [vmem:[#allocation2 + $0xb8] sm:$0x1f] }
 0x352   : > { %v1062_v38 = vmul.bf16 %v9756_v58, %v9755_v24  ;;  %v3486_v52 = vadd.bf16 %v3470_v57, %v3450_v15  ;;  %v1006_v31 = vadd.bf16 %v990_v63, %v967_v50  ;;  %v1098_v41 = vmul.bf16 %v9757_v28, %v7338_v16  ;;  %v9759_v24 = vld [vmem:[#allocation32_spill] sm:$0xff]  ;;  %v9760_v50 = vld [vmem:[#allocation63_spill] sm:$0xff]  ;;  %v9761_v15 = vld [vmem:[#allocation33_spill] sm:$0xff] }
 0x353   : > { %v1134_v8 = vmul.bf16 %v9758_v20, %v7462_v25  ;;  %v2827_v53 = vsel %vm2794_vm8, %v2825_v9, %v2826_v54  ;;  %v3167_v39 = vunpack.c.l.bf16 %v3141_v32  ;;  %v3168_v40 = vunpack.c.h.bf16 %v3141_v32  ;;  %v9762_v25 = vld [vmem:[#allocation22_spill] sm:$0xff] }
 0x354   : > { %v1170_v44 = vmul.bf16 %v9699_v49, %v7580_v36  ;;  %v3522_v37 = vadd.bf16 %v3506_v22, %v3486_v52  ;;  %v1042_v43 = vadd.bf16 %v1026_v13, %v1006_v31  ;;  %v1255_v57 = vmul.bf16 %v9759_v24, %v9700_v3  ;;  %v9763_v54 = vld [vmem:[#allocation38_spill] sm:$0xff]  ;;  %v9764_v49 = vld [vmem:[#allocation23_spill] sm:$0xff] }
 0x355   : > { %v1278_v63 = vmul.bf16 %v9761_v15, %v9760_v50  ;;  %v2869_v48 = vadd.f32 %v2827_v53, %v2452_v6  ;;  %v3242_v28 = vrot.slane %v3167_v39, 5  ;;  %v3243_v20 = vrot.slane %v3168_v40, 5  ;;  %v9765_v22 = vld [vmem:[#allocation43_spill] sm:$0xff]  ;;  %v9767_v36 = vld [vmem:[#allocation54_spill] sm:$0xff] }
 0x356   : > { %v1314_v9 = vmul.bf16 %v9763_v54, %v9762_v25  ;;  %v3558_v32 = vadd.bf16 %v3542_v59, %v3522_v37  ;;  %v1078_v58 = vadd.bf16 %v1062_v38, %v1042_v43  ;;  %v1350_v13 = vmul.bf16 %v9765_v22, %v9764_v49  ;;  %v9766_v31 = vld [vmem:[#allocation59_spill] sm:$0xff]  ;;  %v9768_v24 = vld [vmem:[#allocation62_spill] sm:$0xff]  ;;  %v9770_v59 = vld [vmem:[#allocation101_spill] sm:$0xff] }
 0x357   : > { %v1294_v16 = vadd.bf16 %v1278_v63, %v1255_v57  ;;  %v3244_v52 = vsel %vm3211_vm9, %v3242_v28, %v3243_v20  ;;  %v1386_v3 = vmul.bf16 %v9767_v36, %v9766_v31  ;;  %v1422_v50 = vmul.bf16 %v9768_v24, %v7480_v35  ;;  %v9769_v6 = vld [vmem:[#allocation74_spill] sm:$0xff]  ;;  %v9773_v63 = vld [vmem:[#allocation36_spill] sm:$0xff] }
 0x358   : > { %v1458_v40 = vmul.bf16 %v9769_v6, %v7595_v10  ;;  %v3584_v53 = vunpack.c.l.bf16 %v3558_v32  ;;  %v3585_v39 = vunpack.c.h.bf16 %v3558_v32  ;;  %v1114_v25 = vadd.bf16 %v1098_v41, %v1078_v58  ;;  %v9771_v38 = vld [vmem:[#allocation34_spill] sm:$0xff]  ;;  %v9774_v20 = vld [vmem:[#allocation40_spill] sm:$0xff] }
 0x359   : > { %v1672_v37 = vmul.bf16 %v9771_v38, %v9770_v59  ;;  %v3286_v43 = vadd.f32 %v3244_v52, %v2869_v48  ;;  %v1330_v57 = vadd.bf16 %v1314_v9, %v1294_v16  ;;  %v9772_v49 = vld [vmem:[#allocation102_spill] sm:$0xff]  ;;  %v1731_v36 = vmul.bf16 %v9774_v20, %v7200_v61  ;;  %v9776_v59 = vld [vmem:[#allocation64_spill] sm:$0xff]  ;;  %v9777_v16 = vld [vmem:[#allocation65_spill] sm:$0xff] }
 0x35a   : > { %v1695_v28 = vmul.bf16 %v9773_v63, %v9772_v49  ;;  %v3659_v22 = vrot.slane %v3584_v53, 6  ;;  %v3660_v31 = vrot.slane %v3585_v39, 6  ;;  %v1150_v24 = vadd.bf16 %v1134_v8, %v1114_v25  ;;  %v7618_v35 = vld [vmem:[#allocation2 + $0xb8] sm:$0x1e] }
 0x35b   : > { %v9775_v6 = vld [vmem:[#allocation50_spill] sm:$0xff]  ;;  %v1366_v58 = vadd.bf16 %v1350_v13, %v1330_v57  ;;  %v1803_v48 = vmul.bf16 %v9776_v59, %v7371_v42  ;;  %v1839_v9 = vmul.bf16 %v9777_v16, %v7498_v12  ;;  %v9778_v61 = vld [vmem:[#allocation41_spill] sm:$0xff]  ;;  %v2112_v8 = vmul.bf16 %v9656_v17, %v9718_v2  ;;  %v9779_v13 = vld [vmem:[#allocation75_spill] sm:$0xff] }
 0x35c   : > { %v1767_v32 = vmul.bf16 %v9775_v6, %v9714_v34  ;;  %v1711_v41 = vadd.bf16 %v1695_v28, %v1672_v37  ;;  %v3661_v52 = vsel %vm865_vm0, %v3659_v22, %v3660_v31  ;;  %v1186_v49 = vadd.bf16 %v1170_v44, %v1150_v24  ;;  %v7633_v28 = vld [vmem:[#allocation2 + $0xb8] sm:$0x3e]  ;;  %v9782_v44 = vld [vmem:[#allocation27_spill] sm:$0xff] }
 0x35d   : > { %v2089_v53 = vmul.bf16 %v9778_v61, %v7218_v21  ;;  %v3703_v39 = vadd.f32 %v3661_v52, %v3286_v43  ;;  %v1402_v25 = vadd.bf16 %v1386_v3, %v1366_v58  ;;  %v1875_v37 = vmul.bf16 %v9779_v13, %v7618_v35  ;;  %9780 = vst [vmem:[#allocation68_spill] sm:$0xff] %v7633_v28  ;;  %v9781_v16 = vld [vmem:[#allocation53_spill] sm:$0xff]  ;;  %v9783_v24 = vld [vmem:[#allocation66_spill] sm:$0xff]  ;;  %v9790_v13 = vld [vmem:[#allocation99_spill] sm:$0xff] }
 0x35e   : > { %v1747_v34 = vadd.bf16 %v1731_v36, %v1711_v41  ;;  %v1202_v57 = vunpack.c.l.bf16 %v1186_v49  ;;  %v2148_v22 = vmul.bf16 %v9781_v16, %v9721_v55  ;;  %v2184_v31 = vmul.bf16 %v9783_v24, %v9782_v44  ;;  %v9784_v21 = vld [vmem:[#allocation89_spill] sm:$0xff]  ;;  %v9786_v36 = vld [vmem:[#allocation71_spill] sm:$0xff]  ;;  %v9787_v41 = vld [vmem:[#allocation72_spill] sm:$0xff] }
 0x35f   : > { %v2128_v59 = vadd.bf16 %v2112_v8, %v2089_v53  ;;  %v7640_v61 = vadd.f32 %v9784_v21, %v3703_v39  ;;  %v1438_v2 = vadd.bf16 %v1422_v50, %v1402_v25  ;;  %v2220_v3 = vmul.bf16 %v9786_v36, %v7386_v4  ;;  %v9788_v49 = vld [vmem:[#allocation18_spill] sm:$0xff]  ;;  %v9789_v53 = vld [vmem:[#allocation47_spill] sm:$0xff]  ;;  %v9791_v55 = vld [vmem:[#allocation48_spill] sm:$0xff] }
 0x360   : > { %v1783_v43 = vadd.bf16 %v1767_v32, %v1747_v34  ;;  %v2256_v52 = vmul.bf16 %v9787_v41, %v7513_v33  ;;  %v2506_v8 = vmul.bf16 %v9789_v53, %v9788_v49  ;;  %v2529_v16 = vmul.bf16 %v9791_v55, %v9790_v13  ;;  %v9792_v50 = vld [vmem:[#allocation76_spill] sm:$0xff]  ;;  %v9793_v25 = vld [vmem:[#allocation98_spill] sm:$0xff]  ;;  %v9796_v41 = vld [vmem:[#allocation77_spill] sm:$0xff] }
 0x361   : > { %9785 = vst [vmem:[#allocation19_spill] sm:$0xff] %v7640_v61  ;;  %v2164_v58 = vadd.bf16 %v2148_v22, %v2128_v59  ;;  %3752 = vadd.xlane.f32.xlu0 %v7640_v61  ;;  %v1474_v44 = vadd.bf16 %v1458_v40, %v1438_v2  ;;  %v2292_v32 = vmul.bf16 %v9792_v50, %v7633_v28  ;;  %v9794_v34 = vld [vmem:[#allocation56_spill] sm:$0xff]  ;;  %v9797_v24 = vld [vmem:[#allocation73_spill] sm:$0xff]  ;;  %v9798_v49 = vld [vmem:[#allocation79_spill] sm:$0xff] }
 0x362   : > { %v1819_v39 = vadd.bf16 %v1803_v48, %v1783_v43  ;;  %v2565_v21 = vmul.bf16 %v9794_v34, %v9793_v25  ;;  %v2545_v22 = vadd.bf16 %v2529_v16, %v2506_v8  ;;  %v9795_v36 = vld [vmem:[#allocation100_spill] sm:$0xff]  ;;  %v2637_v53 = vmul.bf16 %v9798_v49, %v9797_v24  ;;  %v7661_v43 = vld [vmem:[#allocation2 + $0xb8] sm:$0x3c]  ;;  %v9800_v16 = vld [vmem:[#allocation39_spill] sm:$0xff] }
 0x363   : > { %v2200_v59 = vadd.bf16 %v2184_v31, %v2164_v58  ;;  %v2601_v33 = vmul.bf16 %v9796_v41, %v9795_v36  ;;  %v1501_v4 = vunpack.c.l.bf16 %v1474_v44  ;;  %v1502_v13 = vunpack.c.h.bf16 %v1474_v44  ;;  %v9799_v40 = vld [vmem:[#allocation80_spill] sm:$0xff]  ;;  %v9801_v58 = vld [vmem:[#allocation58_spill] sm:$0xff]  ;;  %v9802_v49 = vld [vmem:[#allocation67_spill] sm:$0xff] }
 0x364   : > { %v1855_v55 = vadd.bf16 %v1839_v9, %v1819_v39  ;;  %v2673_v48 = vmul.bf16 %v9799_v40, %v7535_v60  ;;  %v2581_v61 = vadd.bf16 %v2565_v21, %v2545_v22  ;;  %v2923_v31 = vmul.bf16 %v9736_v29, %v9737_v45  ;;  %v9803_v45 = vld [vmem:[#allocation82_spill] sm:$0xff] }
 0x365   : > { %v2236_v2 = vadd.bf16 %v2220_v3, %v2200_v59  ;;  %v2946_v8 = vmul.bf16 %v9801_v58, %v9800_v16  ;;  %v1577_v36 = vrot.slane %v1501_v4, 1  ;;  %v1578_v25 = vrot.slane %v1502_v13, 1 }
 0x366   : > { %v1891_v41 = vadd.bf16 %v1875_v37, %v1855_v55  ;;  %v2982_v44 = vmul.bf16 %v9802_v49, %v9679_v30  ;;  %v2617_v39 = vadd.bf16 %v2601_v33, %v2581_v61  ;;  %v3018_v3 = vmul.bf16 %v9741_v14, %v9681_v0  ;;  %v7674_v37 = vld [vmem:[#allocation2 + $0xb8] sm:$0x7c] }
 0x367   : > { %v2272_v9 = vadd.bf16 %v2256_v52, %v2236_v2  ;;  %v2962_v24 = vadd.bf16 %v2946_v8, %v2923_v31  ;;  %v1579_v21 = vsel %vm1543_vm6, %v1577_v36, %v1578_v25  ;;  %v2709_v29 = vmul.bf16 %v9803_v45, %v7661_v43 }
 0x368   : > { %v1918_v59 = vunpack.c.l.bf16 %v1891_v41  ;;  %v1919_v22 = vunpack.c.h.bf16 %v1891_v41  ;;  %v1619_v16 = vadd.f32 %v1579_v21, %v1202_v57  ;;  %v2653_v13 = vadd.bf16 %v2637_v53, %v2617_v39  ;;  %v9804_v53 = vld [vmem:[#allocation60_spill] sm:$0xff] }
 0x369   : > { %v2308_v4 = vadd.bf16 %v2292_v32, %v2272_v9  ;;  %v2998_v55 = vadd.bf16 %v2982_v44, %v2962_v24  ;;  %v3054_v33 = vmul.bf16 %v9742_v19, %v7437_v23  ;;  %v3090_v0 = vmul.bf16 %v9743_v18, %v7550_v26  ;;  %v9805_v32 = vld [vmem:[#allocation61_spill] sm:$0xff] }
 0x36a   : > { %v1994_v30 = vrot.slane %v1918_v59, 2  ;;  %v1995_v52 = vrot.slane %v1919_v22, 2  ;;  %v2689_v41 = vadd.bf16 %v2673_v48, %v2653_v13  ;;  %v3126_v57 = vmul.bf16 %v9689_v51, %v7674_v37 }
 0x36b   : > { %v2335_v61 = vunpack.c.l.bf16 %v2308_v4  ;;  %v2336_v2 = vunpack.c.h.bf16 %v2308_v4  ;;  %v3034_v31 = vadd.bf16 %v3018_v3, %v2998_v55  ;;  %v3340_v24 = vmul.bf16 %v9804_v53, %v7304_v1  ;;  %v7692_v1 = vld [vmem:[#allocation2 + $0xb8] sm:$0x78] }
 0x36c   : > { %v1996_v8 = vsel %vm884_vm2, %v1994_v30, %v1995_v52  ;;  %v3363_v36 = vmul.bf16 %v9805_v32, %v7308_v5  ;;  %v2725_v39 = vadd.bf16 %v2709_v29, %v2689_v41  ;;  %v3399_v48 = vmul.bf16 %v9687_v27, %v7316_v46  ;;  %9806 = vst [vmem:[#allocation91_spill] sm:$0xff] %v7692_v1  ;;  %v9807_v5 = vld [vmem:[#allocation86_spill] sm:$0xff]  ;;  %v9808_v52 = vld [vmem:[#allocation20_spill] sm:$0xff] }
 0x36d   : > { %v2036_v25 = vadd.f32 %v1996_v8, %v1619_v16  ;;  %v2411_v44 = vrot.slane %v2335_v61, 3  ;;  %v2412_v9 = vrot.slane %v2336_v2, 3  ;;  %v3070_v21 = vadd.bf16 %v3054_v33, %v3034_v31  ;;  %v9809_v33 = vld [vmem:[#allocation87_spill] sm:$0xff]  ;;  %v4999_v41 = vld [vmem:[#allocation2 + $0x90] sm:$0xf] }
 0x36e   : > { %v3379_v59 = vadd.bf16 %v3363_v36, %v3340_v24  ;;  %v3435_v3 = vmul.bf16 %v9688_v62, %v9746_v11  ;;  %v2752_v4 = vunpack.c.l.bf16 %v2725_v39  ;;  %v2753_v13 = vunpack.c.h.bf16 %v2725_v39  ;;  %v7699_v31 = vld [vmem:[#allocation2 + $0x98] sm:$0xf]  ;;  %v9811_v8 = vld [vmem:[#allocation31_spill] sm:$0xff] }
 0x36f   : > { %v2413_v22 = vsel %vm2377_vm7, %v2411_v44, %v2412_v9  ;;  %v3471_v16 = vmul.bf16 %v9807_v5, %v7443_v47  ;;  %v3106_v30 = vadd.bf16 %v3090_v0, %v3070_v21  ;;  %v3507_v61 = vmul.bf16 %v9809_v33, %v9808_v52  ;;  %9810 = vst [vmem:[#allocation84_spill] sm:$0xff] %v7699_v31  ;;  %v9812_v9 = vld [vmem:[#allocation90_spill] sm:$0xff] }
 0x370   : > { %v2453_v55 = vadd.f32 %v2413_v22, %v2036_v25  ;;  %v3415_v29 = vadd.bf16 %v3399_v48, %v3379_v59  ;;  %v2828_v2 = vrot.slane %v2752_v4, 4  ;;  %v2829_v46 = vrot.slane %v2753_v13, 4  ;;  %v7705_v0 = vld [vmem:[#allocation2 + $0xa0] sm:$0xf]  ;;  %v9814_v48 = vld [vmem:[#allocation103_spill] sm:$0xff]  ;;  %v9816_v13 = vld [vmem:[#allocation29_spill] sm:$0xff] }
 0x371   : > { %v968_v11 = vmul.bf16 %v4999_v41, %v9749_v56  ;;  %v991_v24 = vmul.bf16 %v7699_v31, %v9811_v8  ;;  %v3142_v36 = vadd.bf16 %v3126_v57, %v3106_v30  ;;  %v3543_v25 = vmul.bf16 %v9812_v9, %v7692_v1  ;;  %9813 = vst [vmem:[#allocation21_spill] sm:$0xff] %v7705_v0  ;;  %v9815_v22 = vld [vmem:[#allocation42_spill] sm:$0xff]  ;;  %v9817_v41 = vld [vmem:[#allocation51_spill] sm:$0xff]  ;;  %v9820_v31 = vld [vmem:[#allocation52_spill] sm:$0xff] }
 0x372   : > { %v3451_v44 = vadd.bf16 %v3435_v3, %v3415_v29  ;;  %v1027_v39 = vmul.bf16 %v7705_v0, %v9754_v7  ;;  %v2830_v21 = vsel %vm2794_vm8, %v2828_v2, %v2829_v46  ;;  %v1063_v4 = vmul.bf16 %v9815_v22, %v9814_v48  ;;  %v7714_v30 = vld [vmem:[#allocation2 + $0xc0] sm:$0xf]  ;;  %v9819_v29 = vld [vmem:[#allocation97_spill] sm:$0xff]  ;;  %v9821_v0 = vld [vmem:[#allocation32_spill] sm:$0xff] }
 0x373   : > { %v1007_v59 = vadd.bf16 %v991_v24, %v968_v11  ;;  %v1099_v56 = vmul.bf16 %v9817_v41, %v9816_v13  ;;  %v3169_v8 = vunpack.c.l.bf16 %v3142_v36  ;;  %v3170_v57 = vunpack.c.h.bf16 %v3142_v36  ;;  %9818 = vst [vmem:[#allocation95_spill] sm:$0xff] %v7714_v30  ;;  %v5002_v7 = vld [vmem:[#allocation2 + $0x90] sm:$0x1f]  ;;  %v7719_v46 = vld [vmem:[#allocation2 + $0x98] sm:$0x1f] }
 0x374   : > { %v3487_v3 = vadd.bf16 %v3471_v16, %v3451_v44  ;;  %v1135_v9 = vmul.bf16 %v9820_v31, %v9819_v29  ;;  %v2870_v33 = vadd.f32 %v2830_v21, %v2453_v55  ;;  %v1256_v2 = vmul.bf16 %v5002_v7, %v9821_v0  ;;  %9822 = vst [vmem:[#allocation49_spill] sm:$0xff] %v7719_v46  ;;  %v7723_v36 = vld [vmem:[#allocation2 + $0xc0] sm:$0x1f] }
 0x375   : > { %v1043_v1 = vadd.bf16 %v1027_v39, %v1007_v59  ;;  %v1279_v11 = vmul.bf16 %v7719_v46, %v9761_v15  ;;  %v3245_v24 = vrot.slane %v3169_v8, 5  ;;  %v3246_v48 = vrot.slane %v3170_v57, 5  ;;  %9823 = vst [vmem:[#allocation37_spill] sm:$0xff] %v7723_v36  ;;  %v7725_v16 = vld [vmem:[#allocation2 + $0xa0] sm:$0x1f]  ;;  %v9828_v57 = vld [vmem:[#allocation25_spill] sm:$0xff] }
 0x376   : > { %v3523_v41 = vadd.bf16 %v3507_v61, %v3487_v3  ;;  %9824 = vst [vmem:[#allocation63_spill] sm:$0xff] %v7725_v16  ;;  %v1315_v44 = vmul.bf16 %v7725_v16, %v9763_v54  ;;  %v9825_v39 = vld [vmem:[#allocation70_spill] sm:$0xff]  ;;  %v9826_v59 = vld [vmem:[#allocation59_spill] sm:$0xff]  ;;  %v5005_v54 = vld [vmem:[#allocation2 + $0x90] sm:$0x1e] }
 0x377   : > { %v1079_v55 = vadd.bf16 %v1063_v4, %v1043_v1  ;;  %v1171_v21 = vmul.bf16 %v9825_v39, %v7714_v30  ;;  %v1295_v7 = vadd.bf16 %v1279_v11, %v1256_v2  ;;  %v9827_v0 = vld [vmem:[#allocation43_spill] sm:$0xff]  ;;  %v3247_v15 = vsel %vm3211_vm9, %v3245_v24, %v3246_v48  ;;  %v9829_v61 = vld [vmem:[#allocation54_spill] sm:$0xff] }
 0x378   : > { %v1351_v31 = vmul.bf16 %v9827_v0, %v9826_v59  ;;  %v3559_v8 = vadd.bf16 %v3543_v25, %v3523_v41  ;;  %v1387_v3 = vmul.bf16 %v9829_v61, %v9828_v57  ;;  %v9830_v46 = vld [vmem:[#allocation62_spill] sm:$0xff]  ;;  %v1673_v2 = vmul.bf16 %v5005_v54, %v9771_v38 }
 0x379   : > { %v1423_v29 = vmul.bf16 %v9830_v46, %v7595_v10  ;;  %v1115_v22 = vadd.bf16 %v1099_v56, %v1079_v55  ;;  %v1331_v13 = vadd.bf16 %v1315_v44, %v1295_v7  ;;  %v9831_v1 = vld [vmem:[#allocation74_spill] sm:$0xff]  ;;  %v3287_v56 = vadd.f32 %v3247_v15, %v2870_v33  ;;  %v9835_v15 = vld [vmem:[#allocation41_spill] sm:$0xff] }
 0x37a   : > { %v1459_v4 = vmul.bf16 %v9831_v1, %v7723_v36  ;;  %v3586_v11 = vunpack.c.l.bf16 %v3559_v8  ;;  %v3587_v39 = vunpack.c.h.bf16 %v3559_v8  ;;  %v7741_v59 = vld [vmem:[#allocation2 + $0x98] sm:$0x1e]  ;;  %v7745_v41 = vld [vmem:[#allocation2 + $0xa0] sm:$0x1e]  ;;  %v1768_v55 = vmul.bf16 %v9775_v6, %v7371_v42  ;;  %v9833_v1 = vld [vmem:[#allocation64_spill] sm:$0xff] }
 0x37b   : > { %9832 = vst [vmem:[#allocation22_spill] sm:$0xff] %v7741_v59  ;;  %v1696_v25 = vmul.bf16 %v7741_v59, %v9773_v63  ;;  %v1732_v24 = vmul.bf16 %v7745_v41, %v9774_v20  ;;  %v1151_v48 = vadd.bf16 %v1135_v9, %v1115_v22  ;;  %v1367_v44 = vadd.bf16 %v1351_v31, %v1331_v13  ;;  %v7751_v38 = vld [vmem:[#allocation2 + $0xc0] sm:$0x1e]  ;;  %v9834_v36 = vld [vmem:[#allocation65_spill] sm:$0xff] }
 0x37c   : > { %v3662_v7 = vrot.slane %v3586_v11, 6  ;;  %v3663_v54 = vrot.slane %v3587_v39, 6  ;;  %v1804_v46 = vmul.bf16 %v9833_v1, %v7498_v12  ;;  %v1840_v61 = vmul.bf16 %v9834_v36, %v7618_v35  ;;  %v5008_v20 = vld [vmem:[#allocation2 + $0x90] sm:$0x3e]  ;;  %v7759_v42 = vld [vmem:[#allocation2 + $0x98] sm:$0x3e] }
 0x37d   : > { %v1712_v8 = vadd.bf16 %v1696_v25, %v1673_v2  ;;  %v1187_v63 = vadd.bf16 %v1171_v21, %v1151_v48  ;;  %v1403_v59 = vadd.bf16 %v1387_v3, %v1367_v44  ;;  %v2090_v33 = vmul.bf16 %v5008_v20, %v9835_v15  ;;  %9836 = vst [vmem:[#allocation23_spill] sm:$0xff] %v7759_v42  ;;  %v7763_v13 = vld [vmem:[#allocation2 + $0xa0] sm:$0x3e]  ;;  %v9838_v39 = vld [vmem:[#allocation53_spill] sm:$0xff] }
 0x37e   : > { %v3664_v31 = vsel %vm865_vm0, %v3662_v7, %v3663_v54  ;;  %v2113_v22 = vmul.bf16 %v7759_v42, %v9656_v17  ;;  %9837 = vst [vmem:[#allocation101_spill] sm:$0xff] %v7763_v13  ;;  %v2149_v21 = vmul.bf16 %v7763_v13, %v9838_v39  ;;  %v9839_v25 = vld [vmem:[#allocation75_spill] sm:$0xff]  ;;  %v9841_v7 = vld [vmem:[#allocation44_spill] sm:$0xff]  ;;  %v9842_v54 = vld [vmem:[#allocation66_spill] sm:$0xff] }
 0x37f   : > { %v1748_v9 = vadd.bf16 %v1732_v24, %v1712_v8  ;;  %v3704_v3 = vadd.f32 %v3664_v31, %v3287_v56  ;;  %v1203_v2 = vunpack.c.l.bf16 %v1187_v63  ;;  %v1439_v11 = vadd.bf16 %v1423_v29, %v1403_v59  ;;  %v7769_v44 = vld [vmem:[#allocation2 + $0xc0] sm:$0x3e]  ;;  %v9845_v36 = vld [vmem:[#allocation89_spill] sm:$0xff]  ;;  %v9847_v63 = vld [vmem:[#allocation72_spill] sm:$0xff] }
 0x380   : > { %v1876_v48 = vmul.bf16 %v9839_v25, %v7751_v38  ;;  %9840 = vst [vmem:[#allocation102_spill] sm:$0xff] %v7769_v44  ;;  %v2129_v24 = vadd.bf16 %v2113_v22, %v2090_v33  ;;  %v2185_v8 = vmul.bf16 %v9842_v54, %v9841_v7  ;;  %v9843_v15 = vld [vmem:[#allocation94_spill] sm:$0xff]  ;;  %v9844_v17 = vld [vmem:[#allocation71_spill] sm:$0xff]  ;;  %v2257_v29 = vmul.bf16 %v9847_v63, %v7633_v28  ;;  %v5011_v59 = vld [vmem:[#allocation2 + $0x90] sm:$0x3c] }
 0x381   : > { %v1784_v20 = vadd.bf16 %v1768_v55, %v1748_v9  ;;  %v2221_v42 = vmul.bf16 %v9844_v17, %v9843_v15  ;;  %v7776_v1 = vadd.f32 %v9845_v36, %v3704_v3  ;;  %v1475_v39 = vadd.bf16 %v1459_v4, %v1439_v11  ;;  %v9848_v56 = vld [vmem:[#allocation47_spill] sm:$0xff]  ;;  %v7781_v13 = vld [vmem:[#allocation2 + $0x98] sm:$0x3c]  ;;  %v9850_v33 = vld [vmem:[#allocation48_spill] sm:$0xff] }
 0x382   : > { %v2507_v31 = vmul.bf16 %v5011_v59, %v9848_v56  ;;  %v2165_v9 = vadd.bf16 %v2149_v21, %v2129_v24  ;;  %9849 = vst [vmem:[#allocation18_spill] sm:$0xff] %v7781_v13  ;;  %v2530_v22 = vmul.bf16 %v7781_v13, %v9850_v33  ;;  %v7785_v7 = vld [vmem:[#allocation2 + $0xa0] sm:$0x3c]  ;;  %v2293_v11 = vmul.bf16 %v9792_v50, %v7769_v44  ;;  %v9852_v59 = vld [vmem:[#allocation73_spill] sm:$0xff] }
 0x383   : > { %9846 = vst [vmem:[#allocation27_spill] sm:$0xff] %v7776_v1  ;;  %v1820_v55 = vadd.bf16 %v1804_v46, %v1784_v20  ;;  %9851 = vst [vmem:[#allocation99_spill] sm:$0xff] %v7785_v7  ;;  %v2566_v36 = vmul.bf16 %v7785_v7, %v9794_v34  ;;  %3754 = vadd.xlane.f32.xlu1 %v7776_v1  ;;  %v1503_v4 = vunpack.c.l.bf16 %v1475_v39  ;;  %v1504_v3 = vunpack.c.h.bf16 %v1475_v39  ;;  %v9853_v46 = vld [vmem:[#allocation77_spill] sm:$0xff]  ;;  %v7794_v56 = vld [vmem:[#allocation2 + $0xc0] sm:$0x3c] }
 0x384   : > { %v2602_v21 = vmul.bf16 %v9853_v46, %v9852_v59  ;;  %v2201_v24 = vadd.bf16 %v2185_v8, %v2165_v9  ;;  %v2546_v33 = vadd.bf16 %v2530_v22, %v2507_v31  ;;  %v9854_v13 = vld [vmem:[#allocation79_spill] sm:$0xff]  ;;  %v2674_v1 = vmul.bf16 %v9799_v40, %v7661_v43  ;;  %v5014_v39 = vld [vmem:[#allocation2 + $0x90] sm:$0x7c]  ;;  %v7801_v59 = vld [vmem:[#allocation2 + $0x98] sm:$0x7c] }
 0x385   : > { %v1856_v20 = vadd.bf16 %v1840_v61, %v1820_v55  ;;  %v2638_v63 = vmul.bf16 %v9854_v13, %v7535_v60  ;;  %v1580_v17 = vrot.slane %v1503_v4, 1  ;;  %v1581_v34 = vrot.slane %v1504_v3, 1  ;;  %v9855_v7 = vld [vmem:[#allocation57_spill] sm:$0xff]  ;;  %v7808_v55 = vld [vmem:[#allocation2 + $0xa0] sm:$0x7c] }
 0x386   : > { %v2924_v28 = vmul.bf16 %v5014_v39, %v9855_v7  ;;  %v2237_v44 = vadd.bf16 %v2221_v42, %v2201_v24  ;;  %v2582_v54 = vadd.bf16 %v2566_v36, %v2546_v33  ;;  %v2947_v61 = vmul.bf16 %v7801_v59, %v9801_v58  ;;  %9856 = vst [vmem:[#allocation98_spill] sm:$0xff] %v7808_v55 }
 0x387   : > { %v1892_v50 = vadd.bf16 %v1876_v48, %v1856_v20  ;;  %v1582_v8 = vsel %vm1543_vm6, %v1580_v17, %v1581_v34  ;;  %v2710_v31 = vmul.bf16 %v9803_v45, %v7794_v56  ;;  %v2983_v9 = vmul.bf16 %v7808_v55, %v9802_v49  ;;  %v7816_v17 = vld [vmem:[#allocation2 + $0xc0] sm:$0x7c]  ;;  %v5017_v45 = vld [vmem:[#allocation2 + $0x90] sm:$0x78] }
 0x388   : > { %v3019_v48 = vmul.bf16 %v9741_v14, %v7437_v23  ;;  %v2273_v22 = vadd.bf16 %v2257_v29, %v2237_v44  ;;  %v3055_v36 = vmul.bf16 %v9742_v19, %v7550_v26  ;;  %v1620_v4 = vadd.f32 %v1582_v8, %v1203_v2  ;;  %v7821_v44 = vld [vmem:[#allocation2 + $0x98] sm:$0x78]  ;;  %v7832_v8 = vld [vmem:[#allocation2 + $0xc0] sm:$0x78] }
 0x389   : > { %v1920_v42 = vunpack.c.l.bf16 %v1892_v50  ;;  %v1921_v33 = vunpack.c.h.bf16 %v1892_v50  ;;  %v2618_v3 = vadd.bf16 %v2602_v21, %v2582_v54  ;;  %v2963_v34 = vadd.bf16 %v2947_v61, %v2924_v28  ;;  %v7825_v54 = vld [vmem:[#allocation2 + $0xa0] sm:$0x78]  ;;  %9858 = vst [vmem:[#allocation80_spill] sm:$0xff] %v7832_v8 }
 0x38a   : > { %v3091_v20 = vmul.bf16 %v9743_v18, %v7674_v37  ;;  %v2309_v49 = vadd.bf16 %v2293_v11, %v2273_v22  ;;  %v3341_v23 = vmul.bf16 %v5017_v45, %v9804_v53  ;;  %v3364_v2 = vmul.bf16 %v7821_v44, %v9805_v32  ;;  %9857 = vst [vmem:[#allocation100_spill] sm:$0xff] %v7825_v54 }
 0x38b   : > { %v1997_v24 = vrot.slane %v1920_v42, 2  ;;  %v1998_v39 = vrot.slane %v1921_v33, 2  ;;  %v2654_v14 = vadd.bf16 %v2638_v63, %v2618_v3  ;;  %v2999_v50 = vadd.bf16 %v2983_v9, %v2963_v34 }
 0x38c   : > { %v3400_v28 = vmul.bf16 %v7825_v54, %v9687_v27  ;;  %v2337_v21 = vunpack.c.l.bf16 %v2309_v49  ;;  %v2338_v61 = vunpack.c.h.bf16 %v2309_v49  ;;  %v3127_v11 = vmul.bf16 %v9689_v51, %v7816_v17  ;;  %v9859_v27 = vld [vmem:[#allocation91_spill] sm:$0xff] }
 0x38d   : > { %v1999_v29 = vsel %vm884_vm2, %v1997_v24, %v1998_v39  ;;  %v2690_v45 = vadd.bf16 %v2674_v1, %v2654_v14  ;;  %v3035_v63 = vadd.bf16 %v3019_v48, %v2999_v50  ;;  %v3380_v9 = vadd.bf16 %v3364_v2, %v3341_v23  ;;  %v9860_v54 = vld [vmem:[#allocation87_spill] sm:$0xff]  ;;  %v9861_v1 = vld [vmem:[#allocation90_spill] sm:$0xff]  ;;  %v9863_v50 = vld [vmem:[#allocation84_spill] sm:$0xff] }
 0x38e   : > { %v3436_v42 = vmul.bf16 %v9688_v62, %v7443_v47  ;;  %v2037_v33 = vadd.f32 %v1999_v29, %v1620_v4  ;;  %v2414_v22 = vrot.slane %v2337_v21, 3  ;;  %v2415_v3 = vrot.slane %v2338_v61, 3  ;;  %v9862_v23 = vld [vmem:[#allocation30_spill] sm:$0xff]  ;;  %v9864_v4 = vld [vmem:[#allocation31_spill] sm:$0xff]  ;;  %v9865_v2 = vld [vmem:[#allocation21_spill] sm:$0xff] }
 0x38f   : > { %v3472_v34 = vmul.bf16 %v9807_v5, %v9808_v52  ;;  %v2726_v24 = vadd.bf16 %v2710_v31, %v2690_v45  ;;  %v3071_v39 = vadd.bf16 %v3055_v36, %v3035_v63  ;;  %v3416_v49 = vadd.bf16 %v3400_v28, %v3380_v9  ;;  %v7847_v31 = vld [vmem:[#allocation2 + $0xa8] sm:$0xf]  ;;  %v9872_v62 = vld [vmem:[#allocation32_spill] sm:$0xff]  ;;  %v9873_v52 = vld [vmem:[#allocation49_spill] sm:$0xff] }
 0x390   : > { %v3508_v51 = vmul.bf16 %v9860_v54, %v9859_v27  ;;  %v2416_v14 = vsel %vm2377_vm7, %v2414_v22, %v2415_v3  ;;  %v3544_v48 = vmul.bf16 %v9861_v1, %v7832_v8  ;;  %v969_v47 = vmul.bf16 %v9863_v50, %v9862_v23  ;;  %v9866_v36 = vld [vmem:[#allocation35_spill] sm:$0xff]  ;;  %v9867_v22 = vld [vmem:[#allocation29_spill] sm:$0xff]  ;;  %v9868_v3 = vld [vmem:[#allocation42_spill] sm:$0xff] }
 0x391   : > { %v992_v29 = vmul.bf16 %v9865_v2, %v9864_v4  ;;  %v2754_v21 = vunpack.c.l.bf16 %v2726_v24  ;;  %v2755_v61 = vunpack.c.h.bf16 %v2726_v24  ;;  %v3107_v5 = vadd.bf16 %v3091_v20, %v3071_v39  ;;  %v9869_v23 = vld [vmem:[#allocation97_spill] sm:$0xff]  ;;  %v9870_v27 = vld [vmem:[#allocation51_spill] sm:$0xff]  ;;  %v9871_v20 = vld [vmem:[#allocation52_spill] sm:$0xff] }
 0x392   : > { %v1028_v28 = vmul.bf16 %v7847_v31, %v9866_v36  ;;  %v2454_v45 = vadd.f32 %v2416_v14, %v2037_v33  ;;  %v3452_v63 = vadd.bf16 %v3436_v42, %v3416_v49  ;;  %v1064_v1 = vmul.bf16 %v9868_v3, %v9867_v22  ;;  %v7860_v14 = vld [vmem:[#allocation2 + $0xc8] sm:$0xf] }
 0x393   : > { %v1008_v9 = vadd.bf16 %v992_v29, %v969_v47  ;;  %v2831_v54 = vrot.slane %v2754_v21, 4  ;;  %v2832_v8 = vrot.slane %v2755_v61, 4  ;;  %v3143_v50 = vadd.bf16 %v3127_v11, %v3107_v5  ;;  %v9874_v47 = vld [vmem:[#allocation33_spill] sm:$0xff]  ;;  %v7866_v61 = vld [vmem:[#allocation2 + $0xa8] sm:$0x1f] }
 0x394   : > { %v1100_v4 = vmul.bf16 %v9870_v27, %v9869_v23  ;;  %v3488_v2 = vadd.bf16 %v3472_v34, %v3452_v63  ;;  %v1136_v39 = vmul.bf16 %v9871_v20, %v7714_v30  ;;  %v1257_v36 = vmul.bf16 %v9873_v52, %v9872_v62  ;;  %v7864_v34 = vld [vmem:[#allocation2 + $0xc8] sm:$0x1f]  ;;  %9876 = vst [vmem:[#allocation103_spill] sm:$0xff] %v7866_v61 }
 0x395   : > { %v1044_v24 = vadd.bf16 %v1028_v28, %v1008_v9  ;;  %v2833_v42 = vsel %vm2794_vm8, %v2831_v54, %v2832_v8  ;;  %v3171_v33 = vunpack.c.l.bf16 %v3143_v50  ;;  %v3172_v49 = vunpack.c.h.bf16 %v3143_v50  ;;  %9875 = vst [vmem:[#allocation39_spill] sm:$0xff] %v7864_v34  ;;  %v9877_v28 = vld [vmem:[#allocation38_spill] sm:$0xff] }
 0x396   : > { %v1280_v5 = vmul.bf16 %v7725_v16, %v9874_v47  ;;  %v2871_v11 = vadd.f32 %v2833_v42, %v2454_v45  ;;  %v3524_v29 = vadd.bf16 %v3508_v51, %v3488_v2  ;;  %v1316_v63 = vmul.bf16 %v7866_v61, %v9877_v28  ;;  %v9878_v47 = vld [vmem:[#allocation70_spill] sm:$0xff]  ;;  %v9880_v42 = vld [vmem:[#allocation37_spill] sm:$0xff] }
 0x397   : > { %v1080_v21 = vadd.bf16 %v1064_v1, %v1044_v24  ;;  %v3248_v52 = vrot.slane %v3171_v33, 5  ;;  %v3249_v9 = vrot.slane %v3172_v49, 5  ;;  %v1352_v8 = vmul.bf16 %v9827_v0, %v9828_v57  ;;  %v9879_v51 = vld [vmem:[#allocation54_spill] sm:$0xff] }
 0x398   : > { %v1296_v54 = vadd.bf16 %v1280_v5, %v1257_v36  ;;  %v3560_v22 = vadd.bf16 %v3544_v48, %v3524_v29  ;;  %v1172_v45 = vmul.bf16 %v9878_v47, %v7860_v14  ;;  %v1388_v1 = vmul.bf16 %v9879_v51, %v7595_v10  ;;  %v9881_v16 = vld [vmem:[#allocation62_spill] sm:$0xff]  ;;  %v7883_v47 = vld [vmem:[#allocation2 + $0xc8] sm:$0x1e] }
 0x399   : > { %v1116_v50 = vadd.bf16 %v1100_v4, %v1080_v21  ;;  %v3250_v2 = vsel %vm3211_vm9, %v3248_v52, %v3249_v9  ;;  %v1424_v28 = vmul.bf16 %v9881_v16, %v9880_v42  ;;  %v9882_v33 = vld [vmem:[#allocation74_spill] sm:$0xff]  ;;  %9885 = vst [vmem:[#allocation59_spill] sm:$0xff] %v7883_v47  ;;  %v9886_v51 = vld [vmem:[#allocation36_spill] sm:$0xff] }
 0x39a   : > { %v1332_v24 = vadd.bf16 %v1316_v63, %v1296_v54  ;;  %v1460_v36 = vmul.bf16 %v9882_v33, %v7864_v34  ;;  %v3588_v49 = vunpack.c.l.bf16 %v3560_v22  ;;  %v3589_v5 = vunpack.c.h.bf16 %v3560_v22  ;;  %v9883_v48 = vld [vmem:[#allocation34_spill] sm:$0xff]  ;;  %v7887_v63 = vld [vmem:[#allocation2 + $0xa8] sm:$0x1e] }
 0x39b   : > { %v1152_v57 = vadd.bf16 %v1136_v39, %v1116_v50  ;;  %v9884_v4 = vld [vmem:[#allocation22_spill] sm:$0xff]  ;;  %v3288_v21 = vadd.f32 %v3250_v2, %v2871_v11  ;;  %v1697_v52 = vmul.bf16 %v7745_v41, %v9886_v51  ;;  %9887 = vst [vmem:[#allocation25_spill] sm:$0xff] %v7887_v63  ;;  %v9888_v9 = vld [vmem:[#allocation40_spill] sm:$0xff]  ;;  %v1769_v39 = vmul.bf16 %v9775_v6, %v7498_v12  ;;  %v9890_v2 = vld [vmem:[#allocation65_spill] sm:$0xff] }
 0x39c   : > { %v1674_v29 = vmul.bf16 %v9884_v4, %v9883_v48  ;;  %v1368_v0 = vadd.bf16 %v1352_v8, %v1332_v24  ;;  %v1733_v54 = vmul.bf16 %v7887_v63, %v9888_v9  ;;  %v3665_v16 = vrot.slane %v3588_v49, 6  ;;  %v9889_v11 = vld [vmem:[#allocation64_spill] sm:$0xff]  ;;  %v9891_v9 = vld [vmem:[#allocation41_spill] sm:$0xff]  ;;  %v9892_v49 = vld [vmem:[#allocation23_spill] sm:$0xff] }
 0x39d   : > { %v3666_v33 = vrot.slane %v3589_v5, 6  ;;  %v1188_v34 = vadd.bf16 %v1172_v45, %v1152_v57  ;;  %v1805_v8 = vmul.bf16 %v9889_v11, %v7618_v35  ;;  %v1841_v24 = vmul.bf16 %v9890_v2, %v7751_v38  ;;  %v9893_v45 = vld [vmem:[#allocation45_spill] sm:$0xff]  ;;  %v7906_v6 = vld [vmem:[#allocation2 + $0xa8] sm:$0x3e] }
 0x39e   : > { %v1404_v22 = vadd.bf16 %v1388_v1, %v1368_v0  ;;  %v1713_v50 = vadd.bf16 %v1697_v52, %v1674_v29  ;;  %v1877_v51 = vmul.bf16 %v9839_v25, %v7883_v47  ;;  %v2091_v5 = vmul.bf16 %v9892_v49, %v9891_v9  ;;  %v9894_v57 = vld [vmem:[#allocation101_spill] sm:$0xff]  ;;  %v7904_v52 = vld [vmem:[#allocation2 + $0xc8] sm:$0x3e]  ;;  %9895 = vst [vmem:[#allocation44_spill] sm:$0xff] %v7906_v6 }
 0x39f   : > { %v3667_v4 = vsel %vm865_vm0, %v3665_v16, %v3666_v33  ;;  %v2114_v63 = vmul.bf16 %v9894_v57, %v9893_v45  ;;  %v1204_v0 = vunpack.c.l.bf16 %v1188_v34  ;;  %v9896_v2 = vld [vmem:[#allocation53_spill] sm:$0xff]  ;;  %v9897_v33 = vld [vmem:[#allocation66_spill] sm:$0xff]  ;;  %v9898_v47 = vld [vmem:[#allocation68_spill] sm:$0xff] }
 0x3a0   : > { %v3705_v12 = vadd.f32 %v3667_v4, %v3288_v21  ;;  %v1440_v1 = vadd.bf16 %v1424_v28, %v1404_v22  ;;  %v1749_v29 = vadd.bf16 %v1733_v54, %v1713_v50  ;;  %v2150_v16 = vmul.bf16 %v7906_v6, %v9896_v2  ;;  %v9899_v49 = vld [vmem:[#allocation71_spill] sm:$0xff]  ;;  %v7917_v34 = vld [vmem:[%s8547_s2] ss:$0 sm:$0xff]  ;;  %v9903_v22 = vld [vmem:[#allocation72_spill] sm:$0xff] }
 0x3a1   : > { %v2130_v11 = vadd.bf16 %v2114_v63, %v2091_v5  ;;  %v2186_v25 = vmul.bf16 %v9897_v33, %v9843_v15  ;;  %v2222_v9 = vmul.bf16 %v9899_v49, %v9898_v47  ;;  %9900 = vst [vmem:[#allocation94_spill] sm:$0xff] %v7917_v34  ;;  %v9902_v54 = vld [vmem:[#allocation102_spill] sm:$0xff]  ;;  %v9904_v5 = vld [vmem:[#allocation76_spill] sm:$0xff]  ;;  %v9905_v33 = vld [vmem:[#allocation47_spill] sm:$0xff] }
 0x3a2   : > { %v7920_v28 = vadd.f32 %v7917_v34, %v3705_v12  ;;  %v1476_v21 = vadd.bf16 %v1460_v36, %v1440_v1  ;;  %v1785_v63 = vadd.bf16 %v1769_v39, %v1749_v29  ;;  %v2258_v50 = vmul.bf16 %v9903_v22, %v9902_v54  ;;  %v9906_v2 = vld [vmem:[#allocation18_spill] sm:$0xff]  ;;  %v9907_v47 = vld [vmem:[#allocation48_spill] sm:$0xff]  ;;  %v9908_v6 = vld [vmem:[#allocation99_spill] sm:$0xff] }
 0x3a3   : > { %v2166_v4 = vadd.bf16 %v2150_v16, %v2130_v11  ;;  %v2294_v15 = vmul.bf16 %v9904_v5, %v7904_v52  ;;  %v2508_v49 = vmul.bf16 %v9906_v2, %v9905_v33  ;;  %v2531_v45 = vmul.bf16 %v9908_v6, %v9907_v47  ;;  %v7931_v36 = vld [vmem:[#allocation2 + $0xa8] sm:$0x3c] }
 0x3a4   : > { %9901 = vst [vmem:[#allocation89_spill] sm:$0xff] %v7920_v28  ;;  %3756 = vadd.xlane.f32.xlu0 %v7920_v28  ;;  %v1505_v57 = vunpack.c.l.bf16 %v1476_v21  ;;  %v1506_v12 = vunpack.c.h.bf16 %v1476_v21  ;;  %v1821_v34 = vadd.bf16 %v1805_v8, %v1785_v63  ;;  %9909 = vst [vmem:[#allocation73_spill] sm:$0xff] %v7931_v36  ;;  %v9910_v39 = vld [vmem:[#allocation56_spill] sm:$0xff]  ;;  %v2603_v2 = vmul.bf16 %v9853_v46, %v7535_v60 }
 0x3a5   : > { %v2567_v1 = vmul.bf16 %v7931_v36, %v9910_v39  ;;  %v2202_v11 = vadd.bf16 %v2186_v25, %v2166_v4  ;;  %v7935_v29 = vld [vmem:[#allocation2 + $0xc8] sm:$0x3c]  ;;  %v2547_v16 = vadd.bf16 %v2531_v45, %v2508_v49  ;;  %v2639_v5 = vmul.bf16 %v9854_v13, %v7661_v43  ;;  %v9911_v4 = vld [vmem:[#allocation82_spill] sm:$0xff] }
 0x3a6   : > { %v1583_v47 = vrot.slane %v1505_v57, 1  ;;  %v1584_v28 = vrot.slane %v1506_v12, 1  ;;  %v1857_v6 = vadd.bf16 %v1841_v24, %v1821_v34  ;;  %v2675_v8 = vmul.bf16 %v9799_v40, %v7794_v56  ;;  %v7950_v57 = vld [vmem:[#allocation2 + $0xa8] sm:$0x7c] }
 0x3a7   : > { %v2238_v21 = vadd.bf16 %v2222_v9, %v2202_v11  ;;  %v2583_v63 = vadd.bf16 %v2567_v1, %v2547_v16  ;;  %v2925_v25 = vmul.bf16 %v7801_v59, %v9855_v7  ;;  %v2948_v45 = vmul.bf16 %v7808_v55, %v9801_v58  ;;  %v9912_v24 = vld [vmem:[#allocation67_spill] sm:$0xff]  ;;  %v9913_v11 = vld [vmem:[#allocation78_spill] sm:$0xff] }
 0x3a8   : > { %v1585_v49 = vsel %vm1543_vm6, %v1583_v47, %v1584_v28  ;;  %v1893_v60 = vadd.bf16 %v1877_v51, %v1857_v6  ;;  %v2711_v13 = vmul.bf16 %v9911_v4, %v7935_v29  ;;  %v2984_v34 = vmul.bf16 %v7950_v57, %v9912_v24 }
 0x3a9   : > { %v2274_v12 = vadd.bf16 %v2258_v50, %v2238_v21  ;;  %v2619_v9 = vadd.bf16 %v2603_v2, %v2583_v63  ;;  %v2964_v1 = vadd.bf16 %v2948_v45, %v2925_v25  ;;  %v3020_v59 = vmul.bf16 %v9913_v11, %v7550_v26  ;;  %v9914_v2 = vld [vmem:[#allocation100_spill] sm:$0xff] }
 0x3aa   : > { %v1621_v16 = vadd.f32 %v1585_v49, %v1204_v0  ;;  %v1922_v7 = vunpack.c.l.bf16 %v1893_v60  ;;  %v1923_v58 = vunpack.c.h.bf16 %v1893_v60  ;;  %v3056_v6 = vmul.bf16 %v9742_v19, %v7674_v37  ;;  %v7964_v25 = vld [vmem:[#allocation2 + $0xc8] sm:$0x7c]  ;;  %v9916_v60 = vld [vmem:[#allocation69_spill] sm:$0xff] }
 0x3ab   : > { %v2310_v47 = vadd.bf16 %v2294_v15, %v2274_v12  ;;  %v2655_v51 = vadd.bf16 %v2639_v5, %v2619_v9  ;;  %v3000_v28 = vadd.bf16 %v2984_v34, %v2964_v1  ;;  %v3092_v4 = vmul.bf16 %v9743_v18, %v7816_v17  ;;  %v7967_v49 = vld [vmem:[#allocation2 + $0xa8] sm:$0x78]  ;;  %v9918_v34 = vld [vmem:[#allocation81_spill] sm:$0xff] }
 0x3ac   : > { %v2000_v55 = vrot.slane %v1922_v7, 2  ;;  %v2001_v24 = vrot.slane %v1923_v58, 2  ;;  %v3342_v50 = vmul.bf16 %v7821_v44, %v9804_v53  ;;  %v3365_v26 = vmul.bf16 %v9914_v2, %v9805_v32  ;;  %9915 = vst [vmem:[#allocation84_spill] sm:$0xff] %v7967_v49  ;;  %v9917_v7 = vld [vmem:[#allocation20_spill] sm:$0xff] }
 0x3ad   : > { %v2339_v0 = vunpack.c.l.bf16 %v2310_v47  ;;  %v2340_v21 = vunpack.c.h.bf16 %v2310_v47  ;;  %v2691_v63 = vadd.bf16 %v2675_v8, %v2655_v51  ;;  %v3036_v45 = vadd.bf16 %v3020_v59, %v3000_v28  ;;  %v9919_v8 = vld [vmem:[#allocation85_spill] sm:$0xff]  ;;  %v9920_v28 = vld [vmem:[#allocation91_spill] sm:$0xff] }
 0x3ae   : > { %v2002_v5 = vsel %vm884_vm2, %v2000_v55, %v2001_v24  ;;  %v3381_v15 = vadd.bf16 %v3365_v26, %v3342_v50  ;;  %v3401_v58 = vmul.bf16 %v7967_v49, %v9916_v60  ;;  %v3437_v44 = vmul.bf16 %v9918_v34, %v9917_v7  ;;  %v9921_v55 = vld [vmem:[#allocation86_spill] sm:$0xff]  ;;  %v7978_v60 = vld [vmem:[#allocation2 + $0xc8] sm:$0x78]  ;;  %v7986_v34 = vld [vmem:[#allocation2 + $0xb0] sm:$0xf] }
 0x3af   : > { %v2038_v12 = vadd.f32 %v2002_v5, %v1621_v16  ;;  %v2417_v9 = vrot.slane %v2339_v0, 3  ;;  %v2418_v1 = vrot.slane %v2340_v21, 3  ;;  %v2727_v32 = vadd.bf16 %v2711_v13, %v2691_v63  ;;  %v9922_v49 = vld [vmem:[#allocation80_spill] sm:$0xff]  ;;  %v9923_v7 = vld [vmem:[#allocation87_spill] sm:$0xff]  ;;  %v9925_v63 = vld [vmem:[#allocation21_spill] sm:$0xff] }
 0x3b0   : > { %v3072_v47 = vadd.bf16 %v3056_v6, %v3036_v45  ;;  %v3128_v51 = vmul.bf16 %v9919_v8, %v7964_v25  ;;  %v3417_v59 = vadd.bf16 %v3401_v58, %v3381_v15  ;;  %v3473_v24 = vmul.bf16 %v9921_v55, %v9920_v28  ;;  %v9924_v6 = vld [vmem:[#allocation30_spill] sm:$0xff]  ;;  %v9926_v58 = vld [vmem:[#allocation31_spill] sm:$0xff] }
 0x3b1   : > { %v2419_v50 = vsel %vm2377_vm7, %v2417_v9, %v2418_v1  ;;  %v2756_v26 = vunpack.c.l.bf16 %v2727_v32  ;;  %v2757_v2 = vunpack.c.h.bf16 %v2727_v32  ;;  %v3509_v16 = vmul.bf16 %v9923_v7, %v9922_v49  ;;  %v9927_v9 = vld [vmem:[#allocation35_spill] sm:$0xff]  ;;  %v9928_v7 = vld [vmem:[#allocation90_spill] sm:$0xff] }
 0x3b2   : > { %v2455_v0 = vadd.f32 %v2419_v50, %v2038_v12  ;;  %v3108_v21 = vadd.bf16 %v3092_v4, %v3072_v47  ;;  %v3453_v13 = vadd.bf16 %v3437_v44, %v3417_v59  ;;  %v970_v45 = vmul.bf16 %v9925_v63, %v9924_v6  ;;  %v7995_v47 = vld [vmem:[#allocation2 + $0xd0] sm:$0xf]  ;;  %v9929_v63 = vld [vmem:[#allocation63_spill] sm:$0xff] }
 0x3b3   : > { %v2834_v5 = vrot.slane %v2756_v26, 4  ;;  %v2835_v15 = vrot.slane %v2757_v2, 4  ;;  %v993_v55 = vmul.bf16 %v7847_v31, %v9926_v58  ;;  %v1029_v32 = vmul.bf16 %v7986_v34, %v9927_v9 }
 0x3b4   : > { %v3144_v1 = vadd.bf16 %v3128_v51, %v3108_v21  ;;  %v3489_v28 = vadd.bf16 %v3473_v24, %v3453_v13  ;;  %v3545_v12 = vmul.bf16 %v9928_v7, %v7978_v60  ;;  %v1065_v4 = vmul.bf16 %v9868_v3, %v9869_v23  ;;  %v9930_v23 = vld [vmem:[#allocation33_spill] sm:$0xff] }
 0x3b5   : > { %v2836_v44 = vsel %vm2794_vm8, %v2834_v5, %v2835_v15  ;;  %v1009_v2 = vadd.bf16 %v993_v55, %v970_v45  ;;  %v1101_v59 = vmul.bf16 %v9870_v27, %v7714_v30  ;;  %v1137_v50 = vmul.bf16 %v9871_v20, %v7860_v14  ;;  %v8005_v15 = vld [vmem:[#allocation2 + $0xb0] sm:$0x1f]  ;;  %v9931_v55 = vld [vmem:[#allocation38_spill] sm:$0xff] }
 0x3b6   : > { %v2872_v26 = vadd.f32 %v2836_v44, %v2455_v0  ;;  %v3173_v51 = vunpack.c.l.bf16 %v3144_v1  ;;  %v3174_v24 = vunpack.c.h.bf16 %v3144_v1  ;;  %v3525_v21 = vadd.bf16 %v3509_v16, %v3489_v28  ;;  %v9932_v0 = vld [vmem:[#allocation70_spill] sm:$0xff]  ;;  %v9933_v16 = vld [vmem:[#allocation43_spill] sm:$0xff]  ;;  %v8016_v20 = vld [vmem:[#allocation2 + $0xd0] sm:$0x1f] }
 0x3b7   : > { %v1045_v13 = vadd.bf16 %v1029_v32, %v1009_v2  ;;  %v1258_v7 = vmul.bf16 %v9929_v63, %v9872_v62  ;;  %v1281_v5 = vmul.bf16 %v7866_v61, %v9930_v23  ;;  %v1317_v45 = vmul.bf16 %v8005_v15, %v9931_v55  ;;  %v9934_v2 = vld [vmem:[#allocation54_spill] sm:$0xff]  ;;  %9935 = vst [vmem:[#allocation29_spill] sm:$0xff] %v8016_v20 }
 0x3b8   : > { %v3251_v27 = vrot.slane %v3173_v51, 5  ;;  %v3252_v3 = vrot.slane %v3174_v24, 5  ;;  %v3561_v30 = vadd.bf16 %v3545_v12, %v3525_v21  ;;  %v1173_v44 = vmul.bf16 %v9932_v0, %v7995_v47  ;;  %v9936_v51 = vld [vmem:[#allocation39_spill] sm:$0xff]  ;;  %v9937_v24 = vld [vmem:[#allocation62_spill] sm:$0xff] }
 0x3b9   : > { %v1081_v1 = vadd.bf16 %v1065_v4, %v1045_v13  ;;  %v1297_v28 = vadd.bf16 %v1281_v5, %v1258_v7  ;;  %v1353_v32 = vmul.bf16 %v9933_v16, %v7595_v10  ;;  %v1389_v63 = vmul.bf16 %v9934_v2, %v9880_v42  ;;  %v9938_v13 = vld [vmem:[#allocation36_spill] sm:$0xff]  ;;  %v9939_v5 = vld [vmem:[#allocation25_spill] sm:$0xff] }
 0x3ba   : > { %v3253_v23 = vsel %vm3211_vm9, %v3251_v27, %v3252_v3  ;;  %v3590_v61 = vunpack.c.l.bf16 %v3561_v30  ;;  %v3591_v62 = vunpack.c.h.bf16 %v3561_v30  ;;  %v1425_v12 = vmul.bf16 %v9937_v24, %v9936_v51  ;;  %v8024_v16 = vld [vmem:[#allocation2 + $0xb0] sm:$0x1e]  ;;  %v9942_v24 = vld [vmem:[#allocation74_spill] sm:$0xff] }
 0x3bb   : > { %v3289_v21 = vadd.f32 %v3253_v23, %v2872_v26  ;;  %v1117_v55 = vadd.bf16 %v1101_v59, %v1081_v1  ;;  %v1333_v0 = vadd.bf16 %v1317_v45, %v1297_v28  ;;  %v1675_v7 = vmul.bf16 %v7745_v41, %v9883_v48  ;;  %9940 = vst [vmem:[#allocation97_spill] sm:$0xff] %v8024_v16  ;;  %v9941_v27 = vld [vmem:[#allocation40_spill] sm:$0xff]  ;;  %v9944_v23 = vld [vmem:[#allocation50_spill] sm:$0xff]  ;;  %v9946_v28 = vld [vmem:[#allocation59_spill] sm:$0xff] }
 0x3bc   : > { %v3668_v4 = vrot.slane %v3590_v61, 6  ;;  %v3669_v10 = vrot.slane %v3591_v62, 6  ;;  %v1698_v2 = vmul.bf16 %v9939_v5, %v9938_v13  ;;  %v1734_v30 = vmul.bf16 %v8024_v16, %v9941_v27  ;;  %v8030_v59 = vld [vmem:[#allocation2 + $0xd0] sm:$0x1e]  ;;  %v9950_v48 = vld [vmem:[#allocation75_spill] sm:$0xff] }
 0x3bd   : > { %v1153_v3 = vadd.bf16 %v1137_v50, %v1117_v55  ;;  %v1369_v42 = vadd.bf16 %v1353_v32, %v1333_v0  ;;  %v1461_v26 = vmul.bf16 %v9942_v24, %v8016_v20  ;;  %9943 = vst [vmem:[#allocation49_spill] sm:$0xff] %v8030_v59  ;;  %v1770_v41 = vmul.bf16 %v9944_v23, %v7618_v35  ;;  %v9945_v45 = vld [vmem:[#allocation64_spill] sm:$0xff]  ;;  %v9947_v13 = vld [vmem:[#allocation65_spill] sm:$0xff] }
 0x3be   : > { %v3670_v62 = vsel %vm865_vm0, %v3668_v4, %v3669_v10  ;;  %v1714_v61 = vadd.bf16 %v1698_v2, %v1675_v7  ;;  %v1806_v1 = vmul.bf16 %v9945_v45, %v7751_v38  ;;  %v1842_v5 = vmul.bf16 %v9947_v13, %v9946_v28  ;;  %v9948_v0 = vld [vmem:[#allocation41_spill] sm:$0xff]  ;;  %v9952_v23 = vld [vmem:[#allocation44_spill] sm:$0xff]  ;;  %v9954_v45 = vld [vmem:[#allocation94_spill] sm:$0xff] }
 0x3bf   : > { %v3706_v27 = vadd.f32 %v3670_v62, %v3289_v21  ;;  %v1189_v50 = vadd.bf16 %v1173_v44, %v1153_v3  ;;  %v1405_v55 = vadd.bf16 %v1389_v63, %v1369_v42  ;;  %v9949_v32 = vld [vmem:[#allocation101_spill] sm:$0xff]  ;;  %v1878_v20 = vmul.bf16 %v9950_v48, %v8030_v59  ;;  %v9957_v21 = vld [vmem:[#allocation68_spill] sm:$0xff] }
 0x3c0   : > { %v2092_v24 = vmul.bf16 %v9949_v32, %v9948_v0  ;;  %v1750_v16 = vadd.bf16 %v1734_v30, %v1714_v61  ;;  %v9951_v35 = vld [vmem:[#allocation45_spill] sm:$0xff]  ;;  %v9958_v30 = vld [vmem:[#allocation66_spill] sm:$0xff]  ;;  %v9959_v32 = vld [vmem:[#allocation71_spill] sm:$0xff]  ;;  %v2259_v59 = vmul.bf16 %v9903_v22, %v7904_v52 }
 0x3c1   : > { %v2115_v4 = vmul.bf16 %v9952_v23, %v9951_v35  ;;  %v8045_v2 = vld [vmem:[#allocation2 + $0xb0] sm:$0x3e]  ;;  %v8050_v13 = vadd.f32 %v9954_v45, %v3706_v27  ;;  %v1205_v44 = vunpack.c.l.bf16 %v1189_v50  ;;  %v1441_v42 = vadd.bf16 %v1425_v12, %v1405_v55  ;;  %v9960_v27 = vld [vmem:[#allocation99_spill] sm:$0xff] }
 0x3c2   : > { %v9953_v7 = vld [vmem:[#allocation53_spill] sm:$0xff]  ;;  %v2187_v3 = vmul.bf16 %v9958_v30, %v9957_v21  ;;  %v1786_v62 = vadd.bf16 %v1770_v41, %v1750_v16  ;;  %v2223_v48 = vmul.bf16 %v9959_v32, %v9902_v54  ;;  %v2509_v50 = vmul.bf16 %v9960_v27, %v9905_v33  ;;  %v9961_v12 = vld [vmem:[#allocation48_spill] sm:$0xff] }
 0x3c3   : > { %v2151_v10 = vmul.bf16 %v8045_v2, %v9953_v7  ;;  %9955 = vst [vmem:[#allocation22_spill] sm:$0xff] %v8050_v13  ;;  %v8052_v63 = vld [vmem:[#allocation2 + $0xd0] sm:$0x3e]  ;;  %v2131_v61 = vadd.bf16 %v2115_v4, %v2092_v24  ;;  %3758 = vadd.xlane.f32.xlu1 %v8050_v13  ;;  %v1477_v7 = vadd.bf16 %v1461_v26, %v1441_v42 }
 0x3c4   : > { %9956 = vst [vmem:[#allocation23_spill] sm:$0xff] %v8052_v63  ;;  %v2532_v55 = vmul.bf16 %v7931_v36, %v9961_v12  ;;  %v8065_v45 = vld [vmem:[#allocation2 + $0xb0] sm:$0x3c]  ;;  %v1822_v24 = vadd.bf16 %v1806_v1, %v1786_v62  ;;  %v2604_v13 = vmul.bf16 %v9853_v46, %v7661_v43  ;;  %v9964_v12 = vld [vmem:[#allocation79_spill] sm:$0xff]  ;;  %v2676_v1 = vmul.bf16 %v9799_v40, %v7935_v29  ;;  %v9966_v62 = vld [vmem:[#allocation98_spill] sm:$0xff] }
 0x3c5   : > { %9962 = vst [vmem:[#allocation102_spill] sm:$0xff] %v8065_v45  ;;  %v2568_v16 = vmul.bf16 %v8065_v45, %v9910_v39  ;;  %v2167_v41 = vadd.bf16 %v2151_v10, %v2131_v61  ;;  %v9963_v4 = vld [vmem:[#allocation76_spill] sm:$0xff]  ;;  %v1507_v26 = vunpack.c.l.bf16 %v1477_v7  ;;  %v1508_v42 = vunpack.c.h.bf16 %v1477_v7  ;;  %v9965_v10 = vld [vmem:[#allocation57_spill] sm:$0xff]  ;;  %v9967_v43 = vld [vmem:[#allocation58_spill] sm:$0xff] }
 0x3c6   : > { %v2295_v21 = vmul.bf16 %v9963_v4, %v8052_v63  ;;  %v8073_v22 = vld [vmem:[#allocation2 + $0xd0] sm:$0x3c]  ;;  %v2548_v27 = vadd.bf16 %v2532_v55, %v2509_v50  ;;  %v2640_v36 = vmul.bf16 %v9964_v12, %v7794_v56  ;;  %v1858_v33 = vadd.bf16 %v1842_v5, %v1822_v24  ;;  %v9968_v50 = vld [vmem:[#allocation82_spill] sm:$0xff]  ;;  %v9969_v5 = vld [vmem:[#allocation67_spill] sm:$0xff] }
 0x3c7   : > { %v2203_v32 = vadd.bf16 %v2187_v3, %v2167_v41  ;;  %v2926_v61 = vmul.bf16 %v9966_v62, %v9965_v10  ;;  %v1586_v39 = vrot.slane %v1507_v26, 1  ;;  %v1587_v45 = vrot.slane %v1508_v42, 1  ;;  %v8085_v12 = vld [vmem:[#allocation2 + $0xb0] sm:$0x7c] }
 0x3c8   : > { %v2584_v4 = vadd.bf16 %v2568_v16, %v2548_v27  ;;  %v2949_v7 = vmul.bf16 %v7950_v57, %v9967_v43  ;;  %v1894_v46 = vadd.bf16 %v1878_v20, %v1858_v33  ;;  %v2712_v55 = vmul.bf16 %v9968_v50, %v8073_v22 }
 0x3c9   : > { %v2239_v63 = vadd.bf16 %v2223_v48, %v2203_v32  ;;  %v2985_v3 = vmul.bf16 %v8085_v12, %v9969_v5  ;;  %v1588_v24 = vsel %vm1543_vm6, %v1586_v39, %v1587_v45  ;;  %v3021_v16 = vmul.bf16 %v9913_v11, %v7674_v37  ;;  %v8094_v32 = vld [vmem:[#allocation2 + $0xd0] sm:$0x7c] }
 0x3ca   : > { %v2620_v41 = vadd.bf16 %v2604_v13, %v2584_v4  ;;  %v2965_v62 = vadd.bf16 %v2949_v7, %v2926_v61  ;;  %v1924_v26 = vunpack.c.l.bf16 %v1894_v46  ;;  %v1925_v42 = vunpack.c.h.bf16 %v1894_v46  ;;  %v9970_v4 = vld [vmem:[#allocation100_spill] sm:$0xff] }
 0x3cb   : > { %v2275_v27 = vadd.bf16 %v2259_v59, %v2239_v63  ;;  %v3057_v20 = vmul.bf16 %v9742_v19, %v7816_v17  ;;  %v1622_v48 = vadd.f32 %v1588_v24, %v1205_v44  ;;  %v3093_v5 = vmul.bf16 %v9743_v18, %v7964_v25  ;;  %v9971_v59 = vld [vmem:[#allocation61_spill] sm:$0xff]  ;;  %v9972_v63 = vld [vmem:[#allocation84_spill] sm:$0xff] }
 0x3cc   : > { %v2656_v33 = vadd.bf16 %v2640_v36, %v2620_v41  ;;  %v3001_v50 = vadd.bf16 %v2985_v3, %v2965_v62  ;;  %v2003_v39 = vrot.slane %v1924_v26, 2  ;;  %v2004_v13 = vrot.slane %v1925_v42, 2  ;;  %v8102_v19 = vld [vmem:[#allocation2 + $0xb0] sm:$0x78] }
 0x3cd   : > { %v2311_v45 = vadd.bf16 %v2295_v21, %v2275_v27  ;;  %v3343_v37 = vmul.bf16 %v9970_v4, %v9804_v53  ;;  %v3366_v7 = vmul.bf16 %v9972_v63, %v9971_v59  ;;  %9973 = vst [vmem:[#allocation18_spill] sm:$0xff] %v8102_v19  ;;  %v9974_v36 = vld [vmem:[#allocation69_spill] sm:$0xff]  ;;  %v3129_v21 = vmul.bf16 %v9919_v8, %v8094_v32  ;;  %v9975_v27 = vld [vmem:[#allocation91_spill] sm:$0xff]  ;;  %v9977_v59 = vld [vmem:[#allocation86_spill] sm:$0xff] }
 0x3ce   : > { %v2692_v61 = vadd.bf16 %v2676_v1, %v2656_v33  ;;  %v3037_v46 = vadd.bf16 %v3021_v16, %v3001_v50  ;;  %v3402_v44 = vmul.bf16 %v8102_v19, %v9974_v36  ;;  %v2005_v3 = vsel %vm884_vm2, %v2003_v39, %v2004_v13  ;;  %v9976_v33 = vld [vmem:[#allocation81_spill] sm:$0xff] }
 0x3cf   : > { %v2341_v24 = vunpack.c.l.bf16 %v2311_v45  ;;  %v2342_v41 = vunpack.c.h.bf16 %v2311_v45  ;;  %v2039_v62 = vadd.f32 %v2005_v3, %v1622_v48  ;;  %v3382_v1 = vadd.bf16 %v3366_v7, %v3343_v37  ;;  %v8114_v53 = vld [vmem:[#allocation2 + $0xd0] sm:$0x78] }
 0x3d0   : > { %v2728_v26 = vadd.bf16 %v2712_v55, %v2692_v61  ;;  %v3073_v42 = vadd.bf16 %v3057_v20, %v3037_v46  ;;  %v3438_v4 = vmul.bf16 %v9976_v33, %v9975_v27  ;;  %v3474_v63 = vmul.bf16 %v9977_v59, %v9922_v49  ;;  %v9978_v55 = vld [vmem:[#allocation87_spill] sm:$0xff]  ;;  %v9981_v27 = vld [vmem:[#allocation90_spill] sm:$0xff] }
 0x3d1   : > { %v2420_v50 = vrot.slane %v2341_v24, 3  ;;  %v2421_v16 = vrot.slane %v2342_v41, 3  ;;  %v3418_v13 = vadd.bf16 %v3402_v44, %v3382_v1  ;;  %v3510_v20 = vmul.bf16 %v9978_v55, %v7978_v60  ;;  %v5035_v44 = vld [vmem:[#allocation2 + $0xb8] sm:$0xf] }
 0x3d2   : > { %v2758_v36 = vunpack.c.l.bf16 %v2728_v26  ;;  %v2759_v19 = vunpack.c.h.bf16 %v2728_v26  ;;  %v3109_v39 = vadd.bf16 %v3093_v5, %v3073_v42  ;;  %v971_v48 = vmul.bf16 %v7847_v31, %v9924_v6  ;;  %v9979_v26 = vld [vmem:[#allocation95_spill] sm:$0xff]  ;;  %v9980_v42 = vld [vmem:[#allocation42_spill] sm:$0xff] }
 0x3d3   : > { %v2422_v45 = vsel %vm2377_vm7, %v2420_v50, %v2421_v16  ;;  %v994_v37 = vmul.bf16 %v7986_v34, %v9926_v58  ;;  %v3454_v24 = vadd.bf16 %v3438_v4, %v3418_v13  ;;  %v1030_v41 = vmul.bf16 %v5035_v44, %v9927_v9  ;;  %v948_v58 = vld [vmem:[#allocation2 + $0xd8] sm:$0xf]  ;;  %v9983_v9 = vld [vmem:[#allocation52_spill] sm:$0xff] }
 0x3d4   : > { %v2456_v61 = vadd.f32 %v2422_v45, %v2039_v62  ;;  %v2837_v46 = vrot.slane %v2758_v36, 4  ;;  %v2838_v7 = vrot.slane %v2759_v19, 4  ;;  %v3145_v3 = vadd.bf16 %v3129_v21, %v3109_v39  ;;  %v9982_v19 = vld [vmem:[#allocation51_spill] sm:$0xff] }
 0x3d5   : > { %v1010_v5 = vadd.bf16 %v994_v37, %v971_v48  ;;  %v1066_v1 = vmul.bf16 %v9980_v42, %v9979_v26  ;;  %v3546_v31 = vmul.bf16 %v9981_v27, %v8114_v53  ;;  %v3490_v34 = vadd.bf16 %v3474_v63, %v3454_v24  ;;  %v9984_v37 = vld [vmem:[#allocation32_spill] sm:$0xff]  ;;  %v9986_v26 = vld [vmem:[#allocation33_spill] sm:$0xff]  ;;  %v9990_v42 = vld [vmem:[#allocation43_spill] sm:$0xff] }
 0x3d6   : > { %v3175_v50 = vunpack.c.l.bf16 %v3145_v3  ;;  %v3176_v16 = vunpack.c.h.bf16 %v3145_v3  ;;  %v2839_v6 = vsel %vm2794_vm8, %v2837_v46, %v2838_v7  ;;  %v1102_v21 = vmul.bf16 %v9982_v19, %v7860_v14  ;;  %v9985_v3 = vld [vmem:[#allocation103_spill] sm:$0xff]  ;;  %v9987_v7 = vld [vmem:[#allocation70_spill] sm:$0xff]  ;;  %v9992_v19 = vld [vmem:[#allocation29_spill] sm:$0xff] }
 0x3d7   : > { %v1046_v36 = vadd.bf16 %v1030_v41, %v1010_v5  ;;  %v2873_v62 = vadd.f32 %v2839_v6, %v2456_v61  ;;  %v1138_v13 = vmul.bf16 %v9983_v9, %v7995_v47  ;;  %v3526_v45 = vadd.bf16 %v3510_v20, %v3490_v34  ;;  %v5036_v5 = vld [vmem:[#allocation2 + $0xb8] sm:$0x1f] }
 0x3d8   : > { %v3254_v4 = vrot.slane %v3175_v50, 5  ;;  %v3255_v39 = vrot.slane %v3176_v16, 5  ;;  %v1259_v44 = vmul.bf16 %v9985_v3, %v9984_v37  ;;  %v1282_v46 = vmul.bf16 %v8005_v15, %v9986_v26  ;;  %v9988_v14 = vld [vmem:[#allocation38_spill] sm:$0xff]  ;;  %v9989_v41 = vld [vmem:[#allocation37_spill] sm:$0xff]  ;;  %v9996_v37 = vld [vmem:[#allocation36_spill] sm:$0xff] }
 0x3d9   : > { %v1082_v48 = vadd.bf16 %v1066_v1, %v1046_v36  ;;  %v1174_v24 = vmul.bf16 %v9987_v7, %v948_v58  ;;  %v1318_v61 = vmul.bf16 %v5036_v5, %v9988_v14  ;;  %v1354_v50 = vmul.bf16 %v9990_v42, %v9989_v41  ;;  %v1236_v20 = vld [vmem:[#allocation2 + $0xd8] sm:$0x1f] }
 0x3da   : > { %v3256_v63 = vsel %vm3211_vm9, %v3254_v4, %v3255_v39  ;;  %v3562_v16 = vadd.bf16 %v3546_v31, %v3526_v45  ;;  %v1298_v1 = vadd.bf16 %v1282_v46, %v1259_v44  ;;  %v9991_v6 = vld [vmem:[#allocation54_spill] sm:$0xff]  ;;  %v9995_v39 = vld [vmem:[#allocation25_spill] sm:$0xff]  ;;  %v9999_v46 = vld [vmem:[#allocation40_spill] sm:$0xff] }
 0x3db   : > { %v1118_v47 = vadd.bf16 %v1102_v21, %v1082_v48  ;;  %v1390_v34 = vmul.bf16 %v9991_v6, %v9936_v51  ;;  %v3290_v36 = vadd.f32 %v3256_v63, %v2873_v62  ;;  %v9993_v15 = vld [vmem:[#allocation62_spill] sm:$0xff]  ;;  %v9997_v3 = vld [vmem:[#allocation97_spill] sm:$0xff] }
 0x3dc   : > { %v1426_v9 = vmul.bf16 %v9993_v15, %v9992_v19  ;;  %v9994_v4 = vld [vmem:[#allocation34_spill] sm:$0xff]  ;;  %v1699_v26 = vmul.bf16 %v9997_v3, %v9996_v37  ;;  %v3592_v7 = vunpack.c.l.bf16 %v3562_v16  ;;  %v3593_v5 = vunpack.c.h.bf16 %v3562_v16  ;;  %v8155_v15 = vpop.xlane.xlu0 %3732  ;;  %v10004_v37 = vld [vmem:[#allocation53_spill] sm:$0xff] }
 0x3dd   : > { %v1676_v58 = vmul.bf16 %v9995_v39, %v9994_v4  ;;  %v1154_v14 = vadd.bf16 %v1138_v13, %v1118_v47  ;;  %v1334_v31 = vadd.bf16 %v1318_v61, %v1298_v1  ;;  %v9998_v21 = vld [vmem:[#allocation74_spill] sm:$0xff]  ;;  %v10001_v13 = vld [vmem:[#allocation64_spill] sm:$0xff]  ;;  %v2093_v47 = vmul.bf16 %v9952_v23, %v9948_v0  ;;  %v10002_v39 = vld [vmem:[#allocation49_spill] sm:$0xff] }
 0x3de   : > { %v1462_v45 = vmul.bf16 %v9998_v21, %v1236_v20  ;;  %v5037_v44 = vld [vmem:[#allocation2 + $0xb8] sm:$0x1e]  ;;  %v3671_v41 = vrot.slane %v3592_v7, 6  ;;  %v3672_v42 = vrot.slane %v3593_v5, 6  ;;  %v1807_v61 = vmul.bf16 %v10001_v13, %v9946_v28 }
 0x3df   : > { %v1715_v48 = vadd.bf16 %v1699_v26, %v1676_v58  ;;  %v1735_v51 = vmul.bf16 %v5037_v44, %v9999_v46  ;;  %v10000_v62 = vld [vmem:[#allocation50_spill] sm:$0xff]  ;;  %v8153_v6 = vadd.bf16 %v1174_v24, %v1154_v14  ;;  %v1370_v19 = vadd.bf16 %v1354_v50, %v1334_v31  ;;  %v10003_v24 = vld [vmem:[#allocation65_spill] sm:$0xff] }
 0x3e0   : > { %v1771_v63 = vmul.bf16 %v10000_v62, %v7751_v38  ;;  %v1653_v4 = vld [vmem:[#allocation2 + $0xd8] sm:$0x1e]  ;;  %v2116_v20 = vmul.bf16 %v8045_v2, %v9951_v35  ;;  %v3673_v38 = vsel %vm865_vm0, %v3671_v41, %v3672_v42  ;;  %v1843_v58 = vmul.bf16 %v10003_v24, %v10002_v39  ;;  %v10005_v35 = vld [vmem:[#allocation75_spill] sm:$0xff]  ;;  %v10010_v41 = vld [vmem:[#allocation76_spill] sm:$0xff] }
 0x3e1   : > { %v1751_v16 = vadd.bf16 %v1735_v51, %v1715_v48  ;;  %v1406_v1 = vadd.bf16 %v1390_v34, %v1370_v19  ;;  %v5038_v50 = vld [vmem:[#allocation2 + $0xb8] sm:$0x3e]  ;;  %v3707_v26 = vadd.f32 %v3673_v38, %v3290_v36  ;;  %v2188_v28 = vmul.bf16 %v9958_v30, %v9902_v54  ;;  %v10006_v34 = vld [vmem:[#allocation71_spill] sm:$0xff]  ;;  %v10009_v51 = vld [vmem:[#allocation72_spill] sm:$0xff] }
 0x3e2   : > { %v2152_v3 = vmul.bf16 %v5038_v50, %v10004_v37  ;;  %v2070_v5 = vld [vmem:[#allocation2 + $0xd8] sm:$0x3e]  ;;  %v2132_v14 = vadd.bf16 %v2116_v20, %v2093_v47  ;;  %v1206_v23 = vunpack.c.l.bf16 %v8153_v6  ;;  %v1879_v2 = vmul.bf16 %v10005_v35, %v1653_v4  ;;  %v10008_v36 = vld [vmem:[#allocation23_spill] sm:$0xff]  ;;  %v10015_v47 = vld [vmem:[#allocation56_spill] sm:$0xff] }
 0x3e3   : > { %v1787_v7 = vadd.bf16 %v1771_v63, %v1751_v16  ;;  %v1442_v0 = vadd.bf16 %v1426_v9, %v1406_v1  ;;  %v2224_v31 = vmul.bf16 %v10006_v34, %v7904_v52  ;;  %v10007_v21 = vld [vmem:[#allocation94_spill] sm:$0xff]  ;;  %v2260_v62 = vmul.bf16 %v10009_v51, %v10008_v36  ;;  %v10011_v54 = vld [vmem:[#allocation47_spill] sm:$0xff]  ;;  %v10012_v30 = vld [vmem:[#allocation73_spill] sm:$0xff]  ;;  %v8183_v16 = vpop.xlane.xlu0 %3736 }
 0x3e4   : > { %v8174_v48 = vadd.f32 %v10007_v21, %v3707_v26  ;;  %v2168_v46 = vadd.bf16 %v2152_v3, %v2132_v14  ;;  %v2296_v42 = vmul.bf16 %v10010_v41, %v2070_v5  ;;  %v2510_v6 = vmul.bf16 %v10012_v30, %v10011_v54  ;;  %v10013_v9 = vld [vmem:[#allocation48_spill] sm:$0xff]  ;;  %v10014_v19 = vld [vmem:[#allocation102_spill] sm:$0xff]  ;;  %v10016_v38 = vld [vmem:[#allocation77_spill] sm:$0xff] }
 0x3e5   : > { %v1823_v44 = vadd.bf16 %v1807_v61, %v1787_v7  ;;  %v1478_v63 = vadd.bf16 %v1462_v45, %v1442_v0  ;;  %v2533_v4 = vmul.bf16 %v10014_v19, %v10013_v9  ;;  %v5039_v61 = vld [vmem:[#allocation2 + $0xb8] sm:$0x3c]  ;;  %v2605_v45 = vmul.bf16 %v10016_v38, %v7794_v56  ;;  %v10017_v50 = vld [vmem:[#allocation79_spill] sm:$0xff] }
 0x3e6   : > { %3760 = vadd.xlane.f32.xlu0 %v8174_v48  ;;  %v2204_v13 = vadd.bf16 %v2188_v28, %v2168_v46  ;;  %v2569_v20 = vmul.bf16 %v5039_v61, %v10015_v47  ;;  %v2641_v37 = vmul.bf16 %v10017_v50, %v7935_v29  ;;  %v2927_v7 = vmul.bf16 %v7950_v57, %v9965_v10  ;;  %v2487_v28 = vld [vmem:[#allocation2 + $0xd8] sm:$0x3c]  ;;  %v10018_v36 = vld [vmem:[#allocation67_spill] sm:$0xff] }
 0x3e7   : > { %v1859_v52 = vadd.bf16 %v1843_v58, %v1823_v44  ;;  %v1509_v1 = vunpack.c.l.bf16 %v1478_v63  ;;  %v1510_v39 = vunpack.c.h.bf16 %v1478_v63  ;;  %v2549_v24 = vadd.bf16 %v2533_v4, %v2510_v6  ;;  %v3741_v10 = vpop.xlane.xlu0 %3740  ;;  %v10019_v51 = vld [vmem:[#allocation82_spill] sm:$0xff]  ;;  %v10020_v41 = vld [vmem:[#allocation83_spill] sm:$0xff]  ;;  %v10023_v47 = vld [vmem:[#allocation61_spill] sm:$0xff] }
 0x3e8   : > { %v2240_v26 = vadd.bf16 %v2224_v31, %v2204_v13  ;;  %v2950_v58 = vmul.bf16 %v8085_v12, %v9967_v43  ;;  %v2677_v56 = vmul.bf16 %v9799_v40, %v8073_v22  ;;  %v5040_v31 = vld [vmem:[#allocation2 + $0xb8] sm:$0x7c]  ;;  %v3022_v12 = vmul.bf16 %v9913_v11, %v7816_v17  ;;  %v10021_v11 = vld [vmem:[#allocation60_spill] sm:$0xff] }
 0x3e9   : > { %v1895_v3 = vadd.bf16 %v1879_v2, %v1859_v52  ;;  %v1589_v5 = vrot.slane %v1509_v1, 1  ;;  %v1590_v14 = vrot.slane %v1510_v39, 1  ;;  %v2585_v0 = vadd.bf16 %v2569_v20, %v2549_v24  ;;  %v2904_v30 = vld [vmem:[#allocation2 + $0xd8] sm:$0x7c] }
 0x3ea   : > { %v2276_v44 = vadd.bf16 %v2260_v62, %v2240_v26  ;;  %v2966_v46 = vadd.bf16 %v2950_v58, %v2927_v7  ;;  %v2986_v57 = vmul.bf16 %v5040_v31, %v10018_v36  ;;  %v2713_v63 = vmul.bf16 %v10019_v51, %v2487_v28  ;;  %v10024_v20 = vld [vmem:[#allocation18_spill] sm:$0xff]  ;;  %v10027_v36 = vld [vmem:[#allocation55_spill] sm:$0xff] }
 0x3eb   : > { %v1926_v35 = vunpack.c.l.bf16 %v1895_v3  ;;  %v1927_v34 = vunpack.c.h.bf16 %v1895_v3  ;;  %v1591_v29 = vsel %vm1543_vm6, %v1589_v5, %v1590_v14  ;;  %v2621_v2 = vadd.bf16 %v2605_v45, %v2585_v0  ;;  %v3745_v50 = vpop.xlane.xlu0 %3744  ;;  %v5041_v3 = vld [vmem:[#allocation2 + $0xb8] sm:$0x78] }
 0x3ec   : > { %v2312_v43 = vadd.bf16 %v2296_v42, %v2276_v44  ;;  %v3058_v40 = vmul.bf16 %v10020_v41, %v7964_v25  ;;  %v1623_v22 = vadd.f32 %v1591_v29, %v1206_v23  ;;  %v3002_v6 = vadd.bf16 %v2986_v57, %v2966_v46  ;;  %v10022_v42 = vld [vmem:[#allocation84_spill] sm:$0xff] }
 0x3ed   : > { %v2006_v54 = vrot.slane %v1926_v35, 2  ;;  %v2657_v62 = vadd.bf16 %v2641_v37, %v2621_v2  ;;  %v2007_v9 = vrot.slane %v1927_v34, 2  ;;  %v3094_v52 = vmul.bf16 %v9743_v18, %v8094_v32  ;;  %v10025_v18 = vld [vmem:[#allocation69_spill] sm:$0xff]  ;;  %v3735_v34 = vpop.xlane.xlu1 %3734 }
 0x3ee   : > { %v2343_v19 = vunpack.c.l.bf16 %v2312_v43  ;;  %v2344_v4 = vunpack.c.h.bf16 %v2312_v43  ;;  %v3038_v17 = vadd.bf16 %v3022_v12, %v3002_v6  ;;  %v3344_v61 = vmul.bf16 %v10022_v42, %v10021_v11 }
 0x3ef   : > { %v2693_v13 = vadd.bf16 %v2677_v56, %v2657_v62  ;;  %v3367_v38 = vmul.bf16 %v10024_v20, %v10023_v47  ;;  %v3130_v23 = vmul.bf16 %v9919_v8, %v2904_v30  ;;  %v2008_v37 = vsel %vm884_vm2, %v2006_v54, %v2007_v9  ;;  %v10026_v56 = vld [vmem:[#allocation96_spill] sm:$0xff] }
 0x3f0   : > { %v2423_v25 = vrot.slane %v2343_v19, 3  ;;  %v2424_v45 = vrot.slane %v2344_v4, 3  ;;  %v3074_v39 = vadd.bf16 %v3058_v40, %v3038_v17  ;;  %v3403_v32 = vmul.bf16 %v5041_v3, %v10025_v18  ;;  %v10028_v30 = vld [vmem:[#allocation88_spill] sm:$0xff]  ;;  %v10031_v3 = vld [vmem:[#allocation93_spill] sm:$0xff] }
 0x3f1   : > { %v2729_v1 = vadd.bf16 %v2713_v63, %v2693_v13  ;;  %v3383_v24 = vadd.bf16 %v3367_v38, %v3344_v61  ;;  %v3439_v26 = vmul.bf16 %v9976_v33, %v9922_v49  ;;  %v3764_v7 = vmul.f32 0.0078125, %v8155_v15  ;;  %v3321_v15 = vld [vmem:[#allocation2 + $0xd8] sm:$0x78]  ;;  %v3739_v62 = vpop.xlane.xlu1 %3738  ;;  %v10030_v38 = vld [vmem:[#allocation104_spill] sm:$0xff] }
 0x3f2   : > { %v2040_v58 = vadd.f32 %v2008_v37, %v1623_v22  ;;  %v3110_v28 = vadd.bf16 %v3094_v52, %v3074_v39  ;;  %v3475_v0 = vmul.bf16 %v9977_v59, %v7978_v60  ;;  %v3766_v44 = vmul.f32 0.0078125, %v8183_v16  ;;  %v3749_v16 = vpop.xlane.xlu0 %3748 }
 0x3f3   : > { %v2760_v5 = vunpack.c.l.bf16 %v2729_v1  ;;  %v2761_v14 = vunpack.c.h.bf16 %v2729_v1  ;;  %v3419_v8 = vadd.bf16 %v3403_v32, %v3383_v24  ;;  %v8219_v35 = vsub.f32 %v10026_v56, %v3764_v7 }
 0x3f4   : > { %v2425_v46 = vsel %vm2377_vm7, %v2423_v25, %v2424_v45  ;;  %v3146_v33 = vadd.bf16 %v3130_v23, %v3110_v28  ;;  %v3511_v31 = vmul.bf16 %v9978_v55, %v8114_v53  ;;  %v8226_v57 = vsub.f32 %v10027_v36, %v3766_v44  ;;  %v10033_v28 = vld [vmem:[#allocation24_spill] sm:$0xff]  ;;  %v10034_v44 = vld [vmem:[#allocation46_spill] sm:$0xff] }
 0x3f5   : > { %v2840_v29 = vrot.slane %v2760_v5, 4  ;;  %v2841_v49 = vrot.slane %v2761_v14, 4  ;;  %v3455_v2 = vadd.bf16 %v3439_v26, %v3419_v8  ;;  %v3796_v60 = vmul.f32 %v8219_v35, %v8219_v35  ;;  %v3743_v1 = vpop.xlane.xlu1 %3742  ;;  %v10032_v26 = vld [vmem:[#allocation19_spill] sm:$0xff] }
 0x3f6   : > { %v2457_v59 = vadd.f32 %v2425_v46, %v2040_v58  ;;  %v3177_v12 = vunpack.c.l.bf16 %v3146_v33  ;;  %v3178_v43 = vunpack.c.h.bf16 %v3146_v33  ;;  %v3547_v63 = vmul.bf16 %v9981_v27, %v3321_v15  ;;  %v10029_v27 = vld [vmem:[#allocation92_spill] sm:$0xff]  ;;  %v3753_v17 = vpop.xlane.xlu0 %3752 }
 0x3f7   : > { %v3491_v51 = vadd.bf16 %v3475_v0, %v3455_v2  ;;  %3812 = vadd.xlane.f32.xlu0 %v3796_v60  ;;  %v3768_v41 = vmul.f32 0.0078125, %v3741_v10  ;;  %v2842_v40 = vsel %vm2794_vm8, %v2840_v29, %v2841_v49  ;;  %v3798_v53 = vmul.f32 %v8226_v57, %v8226_v57  ;;  %v10035_v33 = vld [vmem:[#allocation28_spill] sm:$0xff]  ;;  %v10036_v60 = vld [vmem:[#allocation26_spill] sm:$0xff] }
 0x3f8   : > { %v3257_v22 = vrot.slane %v3177_v12, 5  ;;  %v3258_v55 = vrot.slane %v3178_v43, 5  ;;  %v3770_v9 = vmul.f32 0.0078125, %v3745_v50  ;;  %v2874_v19 = vadd.f32 %v2842_v40, %v2457_v59  ;;  %v4812_v40 = vld [vmem:[#allocation8] sm:$0xff]  }
 0x3f9   : > { %v3527_v54 = vadd.bf16 %v3511_v31, %v3491_v51  ;;  %v8235_v6 = vsub.f32 %v10028_v30, %v3768_v41  ;;  %v3772_v4 = vmul.f32 0.0078125, %v3749_v16  ;;  %v3765_v20 = vmul.f32 0.0078125, %v3735_v34  ;;  %v3747_v14 = vpop.xlane.xlu1 %3746  ;;  %v10037_v16 = vld [vmem:[#allocation27_spill] sm:$0xff]  ;;  %4664 = vmatprep.subr.bf16.mxu0 %v4812_v40  ;;  %v4818_v30 = vld [vmem:[#allocation8 + $0x30] sm:$0xff]  }
 0x3fa   : > { %v8238_v13 = vsub.f32 %v10029_v27, %v3770_v9  ;;  %v3259_v11 = vsel %vm3211_vm9, %v3257_v22, %v3258_v55  ;;  %v3774_v24 = vmul.f32 0.0078125, %v3753_v17  ;;  %v3767_v32 = vmul.f32 0.0078125, %v3739_v62  ;;  %v4813_v22 = vld [vmem:[#allocation8 + $0x8] sm:$0xff]   ;;  %4665 = vmatpush3.bf16.msra.mxu0 %v4812_v40  ;;  %v4815_v55 = vld [vmem:[#allocation8 + $0x18] sm:$0xff]  }
 0x3fb   : > { %v3563_v52 = vadd.bf16 %v3547_v63, %v3527_v54  ;;  %3816 = vadd.xlane.f32.xlu0 %v3798_v53  ;;  %v3800_v10 = vmul.f32 %v8235_v6, %v8235_v6  ;;  %v3291_v47 = vadd.f32 %v3259_v11, %v2874_v19  ;;  %v8244_v25 = vsub.f32 %v10030_v38, %v3772_v4  ;;  %v4814_v53 = vld [vmem:[#allocation8 + $0x10] sm:$0xff]   ;;  %v4816_v54 = vld [vmem:[#allocation8 + $0x20] sm:$0xff]   ;;  %v4817_v62 = vld [vmem:[#allocation8 + $0x28] sm:$0xff]  }
 0x3fc   : > { %v3802_v39 = vmul.f32 %v8238_v13, %v8238_v13  ;;  %v8250_v18 = vsub.f32 %v10031_v3, %v3765_v20  ;;  %v8253_v7 = vsub.f32 %v10032_v26, %v3774_v24  ;;  %v8262_v8 = vsub.f32 %v10033_v28, %v3767_v32  ;;  %4666 = vmatprep.subr.bf16.mxu0 %v4813_v22  ;;  %v10038_v4 = vld [vmem:[#allocation89_spill] sm:$0xff] }
 0x3fd   : > { %v3594_v42 = vunpack.c.l.bf16 %v3563_v52  ;;  %v3595_v61 = vunpack.c.h.bf16 %v3563_v52  ;;  %v3804_v58 = vmul.f32 %v8244_v25, %v8244_v25  ;;  %v3769_v56 = vmul.f32 0.0078125, %v3743_v1  ;;  %v3751_v49 = vpop.xlane.xlu1 %3750 }
 0x3fe   : > { %v3797_v0 = vmul.f32 %v8250_v18, %v8250_v18  ;;  %v3806_v34 = vmul.f32 %v8253_v7, %v8253_v7  ;;  %v3771_v29 = vmul.f32 0.0078125, %v3747_v14  ;;  %v3773_v31 = vmul.f32 0.0078125, %v3751_v49  ;;  %4667 = vmatpush3.bf16.msra.mxu0 %v4813_v22 }
 0x3ff   : > { %v3674_v23 = vrot.slane %v3594_v42, 6  ;;  %v3675_v45 = vrot.slane %v3595_v61, 6  ;;  %3820 = vadd.xlane.f32.xlu0 %v3800_v10  ;;  %v8269_v46 = vsub.f32 %v10034_v44, %v3769_v56  ;;  %4668 = vmatprep.subr.bf16.mxu0 %v4814_v53  ;;  %v4819_v10 = vld [vmem:[#allocation8 + $0x38] sm:$0xff]   ;;  %v10039_v42 = vld [vmem:[#allocation22_spill] sm:$0xff] }
 0x400   : > { %v8274_v15 = vsub.f32 %v10035_v33, %v3771_v29  ;;  %v8279_v59 = vsub.f32 %v10036_v60, %v3773_v31 }
 0x401   : > { %v3676_v50 = vsel %vm865_vm0, %v3674_v23, %v3675_v45  ;;  %v3801_v2 = vmul.f32 %v8269_v46, %v8269_v46 }
 0x402   : > { %v3708_v37 = vadd.f32 %v3676_v50, %v3291_v47  ;;  %v3803_v12 = vmul.f32 %v8274_v15, %v8274_v15  ;;  %v3805_v63 = vmul.f32 %v8279_v59, %v8279_v59  ;;  %4669 = vmatpush3.bf16.msra.mxu0 %v4814_v53 }
 0x403   : > { %3824 = vadd.xlane.f32.xlu0 %v3802_v39  ;;  %4670 = vmatprep.subr.bf16.mxu0 %v4815_v55 }
 0x404   : > { %v8258_v5 = vadd.f32 %v10007_v21, %v3708_v37  ;;  %v3799_v21 = vmul.f32 %v8262_v8, %v8262_v8 }
 0x406   : > { %3762 = vadd.xlane.f32.xlu1 %v8258_v5  ;;  %4671 = vmatpush3.bf16.msra.mxu0 %v4815_v55 }
 0x407   : > { %3828 = vadd.xlane.f32.xlu0 %v3804_v58  ;;  %4672 = vmatprep.subr.bf16.mxu0 %v4816_v54 }
 0x40a   : > { %3814 = vadd.xlane.f32.xlu1 %v3797_v0  ;;  %4673 = vmatpush3.bf16.msra.mxu0 %v4816_v54  ;;  %v8314_v54 = vld [vmem:[%s8550_s5] ss:$0 sm:$0xff] }
 0x40b   : > { %3832 = vadd.xlane.f32.xlu0 %v3806_v34  ;;  %4674 = vmatprep.subr.bf16.mxu0 %v4817_v62 }
 0x40e   : > { %3818 = vadd.xlane.f32.xlu1 %v3799_v21  ;;  %4675 = vmatpush3.bf16.msra.mxu0 %v4817_v62 }
 0x40f   : > { %4676 = vmatprep.subr.bf16.mxu0 %v4818_v30 }
 0x410   : > { %v3755_v36 = vpop.xlane.xlu1 %3754 }
 0x411   : > { %v3775_v43 = vmul.f32 0.0078125, %v3755_v36 }
 0x412   : > { %3822 = vadd.xlane.f32.xlu1 %v3801_v2  ;;  %4677 = vmatpush3.bf16.msra.mxu0 %v4818_v30 }
 0x413   : > { %v8284_v51 = vsub.f32 %v10037_v16, %v3775_v43  ;;  %4678 = vmatprep.subr.bf16.mxu0 %v4819_v10 }
 0x415   : > { %v3807_v41 = vmul.f32 %v8284_v51, %v8284_v51 }
 0x416   : > { %3826 = vadd.xlane.f32.xlu1 %v3803_v12  ;;  %4679 = vmatpush3.bf16.msra.mxu0 %v4819_v10 }
 0x41a   : > { %3830 = vadd.xlane.f32.xlu1 %v3805_v63 }
 0x41e   : > { %3834 = vadd.xlane.f32.xlu1 %v3807_v41 }
 0x431   : > { %v3757_v9 = vpop.xlane.xlu0 %3756 }
 0x432   : > { %v3776_v19 = vmul.f32 0.0078125, %v3757_v9 }
 0x434   : > { %v8291_v52 = vsub.f32 %v10038_v4, %v3776_v19 }
 0x436   : > { %v3808_v27 = vmul.f32 %v8291_v52, %v8291_v52 }
 0x438   : > { %3836 = vadd.xlane.f32.xlu0 %v3808_v27 }
 0x450   : > { %v3759_v17 = vpop.xlane.xlu1 %3758 }
 0x451   : > { %v3777_v11 = vmul.f32 0.0078125, %v3759_v17 }
 0x453   : > { %v8296_v61 = vsub.f32 %v10039_v42, %v3777_v11 }
 0x455   : > { %v3809_v47 = vmul.f32 %v8296_v61, %v8296_v61 }
 0x457   : > { %3838 = vadd.xlane.f32.xlu1 %v3809_v47 }
 0x473   : > { %v3761_v20 = vpop.xlane.xlu0 %3760 }
 0x474   : > { %v3778_v38 = vmul.f32 0.0078125, %v3761_v20 }
 0x476   : > { %v8301_v23 = vsub.f32 %v8174_v48, %v3778_v38 }
 0x478   : > { %v3810_v45 = vmul.f32 %v8301_v23, %v8301_v23 }
 0x47a   : > { %3840 = vadd.xlane.f32.xlu0 %v3810_v45 }
 0x484   : > { %v3813_v1 = vpop.xlane.xlu0 %3812 }
 0x485   : > { %v3844_v50 = vmul.f32 0.0078125, %v3813_v1 }
 0x487   : > { %v3860_v37 = vadd.f32 1e-05, %v3844_v50 }
 0x488   : > { %v3817_v39 = vpop.xlane.xlu0 %3816 }
 0x489   : > { %v3846_v26 = vmul.f32 0.0078125, %v3817_v39  ;;  %4860 = vrsqrt.f32 %v3860_v37 }
 0x48b   : > { %v3862_v48 = vadd.f32 1e-05, %v3846_v26 }
 0x48c   : > { %v3821_v24 = vpop.xlane.xlu0 %3820 }
 0x48d   : > { %v3848_v0 = vmul.f32 0.0078125, %v3821_v24  ;;  %4862 = vrsqrt.f32 %v3862_v48 }
 0x48f   : > { %v3864_v33 = vadd.f32 1e-05, %v3848_v0 }
 0x490   : > { %v3825_v3 = vpop.xlane.xlu0 %3824 }
 0x491   : > { %v3850_v21 = vmul.f32 0.0078125, %v3825_v3 }
 0x493   : > { %v3763_v32 = vpop.xlane.xlu1 %3762  ;;  %v3866_v31 = vadd.f32 1e-05, %v3850_v21  ;;  %v4861_v43 = vpop.eup %4860 }
 0x494   : > { %v3779_v58 = vmul.f32 0.0078125, %v3763_v32  ;;  %v3829_v44 = vpop.xlane.xlu0 %3828  ;;  %v3892_v53 = vmul.f32 %v4861_v43, %v8219_v35  ;;  %v8321_v35 = vld [vmem:[%s8551_s6] ss:$0 sm:$0xff] }
 0x496   : > { %v8306_v14 = vsub.f32 %v8258_v5, %v3779_v58  ;;  %v3852_v5 = vmul.f32 0.0078125, %v3829_v44  ;;  %v3915_v10 = vmul.f32 %v8314_v54, %v3892_v53 }
 0x497   : > { %v3815_v28 = vpop.xlane.xlu1 %3814  ;;  %v4863_v62 = vpop.eup %4862 }
 0x498   : > { %v3811_v56 = vmul.f32 %v8306_v14, %v8306_v14  ;;  %v3845_v34 = vmul.f32 0.0078125, %v3815_v28  ;;  %v3833_v60 = vpop.xlane.xlu0 %3832  ;;  %v3868_v63 = vadd.f32 1e-05, %v3852_v5  ;;  %v3894_v47 = vmul.f32 %v4863_v62, %v8226_v57 }
 0x499   : > { %v3854_v41 = vmul.f32 0.0078125, %v3833_v60 }
 0x49a   : > { %3842 = vadd.xlane.f32.xlu1 %v3811_v56  ;;  %v3861_v29 = vadd.f32 1e-05, %v3845_v34  ;;  %v3917_v50 = vmul.f32 %v8314_v54, %v3894_v47 }
 0x49b   : > { %v3819_v49 = vpop.xlane.xlu1 %3818  ;;  %v3870_v30 = vadd.f32 1e-05, %v3854_v41 }
 0x49c   : > { %4864 = vrsqrt.f32 %v3861_v29  ;;  %v3847_v2 = vmul.f32 0.0078125, %v3819_v49  ;;  %v3940_v0 = vadd.f32 %v8321_v35, %v3917_v50 }
 0x49d   : > { %4866 = vrsqrt.f32 %v3864_v33 }
 0x49e   : > { %v3863_v36 = vadd.f32 1e-05, %v3847_v2 }
 0x49f   : > { %v3823_v12 = vpop.xlane.xlu1 %3822 }
 0x4a0   : > { %4868 = vrsqrt.f32 %v3863_v36  ;;  %v3849_v16 = vmul.f32 0.0078125, %v3823_v12 }
 0x4a1   : > { %4870 = vrsqrt.f32 %v3866_v31 }
 0x4a2   : > { %v3865_v40 = vadd.f32 1e-05, %v3849_v16 }
 0x4a3   : > { %v3827_v22 = vpop.xlane.xlu1 %3826 }
 0x4a4   : > { %4872 = vrsqrt.f32 %v3865_v40  ;;  %v3851_v55 = vmul.f32 0.0078125, %v3827_v22 }
 0x4a5   : > { %4874 = vrsqrt.f32 %v3868_v63 }
 0x4a6   : > { %v4865_v9 = vpop.eup %4864  ;;  %v3867_v19 = vadd.f32 1e-05, %v3851_v55 }
 0x4a7   : > { %v3831_v4 = vpop.xlane.xlu1 %3830  ;;  %v3893_v27 = vmul.f32 %v4865_v9, %v8250_v18  ;;  %v4867_v11 = vpop.eup %4866  ;;  %v3938_v18 = vadd.f32 %v8321_v35, %v3915_v10 }
 0x4a8   : > { %4876 = vrsqrt.f32 %v3867_v19  ;;  %v3853_v17 = vmul.f32 0.0078125, %v3831_v4  ;;  %v3896_v3 = vmul.f32 %v4867_v11, %v8235_v6 }
 0x4a9   : > { %4878 = vrsqrt.f32 %v3870_v30  ;;  %v3916_v42 = vmul.f32 %v8314_v54, %v3893_v27 }
 0x4aa   : > { %v4869_v20 = vpop.eup %4868  ;;  %v3869_v38 = vadd.f32 1e-05, %v3853_v17  ;;  %v3919_v34 = vmul.f32 %v8314_v54, %v3896_v3  ;;  %v4820_v3 = vld [vmem:[#allocation9] sm:$0xff]  }
 0x4ab   : > { %v4871_v45 = vpop.eup %4870  ;;  %v3835_v1 = vpop.xlane.xlu1 %3834  ;;  %v3939_v39 = vadd.f32 %v8321_v35, %v3916_v42  ;;  %v3895_v24 = vmul.f32 %v4869_v20, %v8262_v8  ;;  %4696 = vmatprep.subr.bf16.mxu1 %v4820_v3 }
 0x4ac   : > { %4880 = vrsqrt.f32 %v3869_v38  ;;  %v3855_v37 = vmul.f32 0.0078125, %v3835_v1  ;;  %v3898_v28 = vmul.f32 %v4871_v45, %v8238_v13  ;;  %v3942_v13 = vadd.f32 %v8321_v35, %v3919_v34  ;;  %4697 = vmatpush3.bf16.msra.mxu1 %v4820_v3  ;;  %v4824_v34 = vld [vmem:[#allocation9 + $0x20] sm:$0xff]  }
 0x4ad   : > { %v3954_v32 = vpack.c.bf16 %v3939_v39, %v3938_v18  ;;  %v3918_v26 = vmul.f32 %v8314_v54, %v3895_v24 }
 0x4ae   : > { %v4873_v57 = vpop.eup %4872  ;;  %v3871_v58 = vadd.f32 1e-05, %v3855_v37  ;;  %v3921_v31 = vmul.f32 %v8314_v54, %v3898_v28 }
 0x4af   : > { %v4875_v48 = vpop.eup %4874  ;;  %4680 = vmatprep.mubr.bf16.mxu0 %v3954_v32  ;;  %v3941_v56 = vadd.f32 %v8321_v35, %v3918_v26  ;;  %v3897_v8 = vmul.f32 %v4873_v57, %v8269_v46  ;;  %v4821_v26 = vld [vmem:[#allocation9 + $0x8] sm:$0xff]   ;;  %v4822_v57 = vld [vmem:[#allocation9 + $0x10] sm:$0xff]  }
 0x4b0   : > { %4882 = vrsqrt.f32 %v3871_v58  ;;  %v3900_v29 = vmul.f32 %v4875_v48, %v8244_v25  ;;  %v3944_v12 = vadd.f32 %v8321_v35, %v3921_v31  ;;  %4698 = vmatprep.subr.bf16.mxu1 %v4821_v26  ;;  %v4823_v48 = vld [vmem:[#allocation9 + $0x18] sm:$0xff]  }
 0x4b1   : > { %v3955_v44 = vpack.c.bf16 %v3941_v56, %v3940_v0  ;;  %v3920_v6 = vmul.f32 %v8314_v54, %v3897_v8  ;;  %4699 = vmatpush3.bf16.msra.mxu1 %v4821_v26 }
 0x4b2   : > { %v4877_v21 = vpop.eup %4876  ;;  %v3923_v16 = vmul.f32 %v8314_v54, %v3900_v29  ;;  %4700 = vmatprep.subr.bf16.mxu1 %v4822_v57 }
 0x4b3   : > { %v4879_v49 = vpop.eup %4878  ;;  %4681 = vmatmul.mubr.bf16.vlgmr.msra.gmra.mrb[0].mxu0 %v3955_v44  ;;  %v3943_v33 = vadd.f32 %v8321_v35, %v3920_v6  ;;  %v3899_v2 = vmul.f32 %v4877_v21, %v8274_v15 }
 0x4b4   : > { %v3902_v60 = vmul.f32 %v4879_v49, %v8253_v7  ;;  %v3946_v40 = vadd.f32 %v8321_v35, %v3923_v16 }
 0x4b5   : > { %v3956_v46 = vpack.c.bf16 %v3943_v33, %v3942_v13  ;;  %v3922_v5 = vmul.f32 %v8314_v54, %v3899_v2  ;;  %4701 = vmatpush3.bf16.msra.mxu1 %v4822_v57 }
 0x4b6   : > { %v4881_v36 = vpop.eup %4880  ;;  %v3925_v53 = vmul.f32 %v8314_v54, %v3902_v60  ;;  %4702 = vmatprep.subr.bf16.mxu1 %v4823_v48 }
 0x4b7   : > { %4684 = vmatprep.mubr.bf16.mxu0 %v3956_v46  ;;  %v3945_v25 = vadd.f32 %v8321_v35, %v3922_v5  ;;  %v3901_v43 = vmul.f32 %v4881_v36, %v8279_v59 }
 0x4b8   : > { %v3948_v59 = vadd.f32 %v8321_v35, %v3925_v53 }
 0x4b9   : > { %v3957_v63 = vpack.c.bf16 %v3945_v25, %v3944_v12  ;;  %v3924_v15 = vmul.f32 %v8314_v54, %v3901_v43  ;;  %4703 = vmatpush3.bf16.msra.mxu1 %v4823_v48 }
 0x4ba   : > { %v4883_v41 = vpop.eup %4882  ;;  %4704 = vmatprep.subr.bf16.mxu1 %v4824_v34 }
 0x4bb   : > { %4685 = vmatmul.mubr.bf16.gmra.mrb[4].mxu0 %v3957_v63  ;;  %v3947_v22 = vadd.f32 %v8321_v35, %v3924_v15  ;;  %v3903_v7 = vmul.f32 %v4883_v41, %v8284_v51 }
 0x4bd   : > { %v3958_v55 = vpack.c.bf16 %v3947_v22, %v3946_v40  ;;  %v3926_v62 = vmul.f32 %v8314_v54, %v3903_v7  ;;  %4705 = vmatpush3.bf16.msra.mxu1 %v4824_v34 }
 0x4bf   : > { %4688 = vmatprep.mubr.bf16.mxu0 %v3958_v55  ;;  %v3949_v30 = vadd.f32 %v8321_v35, %v3926_v62 }
 0x4c1   : > { %v3959_v9 = vpack.c.bf16 %v3949_v30, %v3948_v59 }
 0x4c3   : > { %4689 = vmatmul.mubr.bf16.gmra.mrb[8].mxu0 %v3959_v9 }
 0x4c5   : > { %v3837_v19 = vpop.xlane.xlu0 %3836 }
 0x4c6   : > { %v3856_v4 = vmul.f32 0.0078125, %v3837_v19 }
 0x4c8   : > { %v3872_v27 = vadd.f32 1e-05, %v3856_v4 }
 0x4ca   : > { %4884 = vrsqrt.f32 %v3872_v27 }
 0x4d4   : > { %v4885_v51 = vpop.eup %4884 }
 0x4d5   : > { %v3904_v42 = vmul.f32 %v4885_v51, %v8291_v52 }
 0x4d7   : > { %v3927_v38 = vmul.f32 %v8314_v54, %v3904_v42 }
 0x4d9   : > { %v3950_v1 = vadd.f32 %v8321_v35, %v3927_v38 }
 0x4e4   : > { %v3839_v10 = vpop.xlane.xlu1 %3838 }
 0x4e5   : > { %v3857_v17 = vmul.f32 0.0078125, %v3839_v10 }
 0x4e7   : > { %v3873_v11 = vadd.f32 1e-05, %v3857_v17 }
 0x4e9   : > { %4886 = vrsqrt.f32 %v3873_v11 }
 0x4f3   : > { %v4887_v47 = vpop.eup %4886 }
 0x4f4   : > { %v3905_v20 = vmul.f32 %v4887_v47, %v8296_v61 }
 0x4f6   : > { %v3928_v45 = vmul.f32 %v8314_v54, %v3905_v20 }
 0x4f8   : > { %v3951_v18 = vadd.f32 %v8321_v35, %v3928_v45 }
 0x4fa   : > { %v3960_v39 = vpack.c.bf16 %v3951_v18, %v3950_v1 }
 0x4fc   : > { %4692 = vmatprep.mubr.bf16.mxu0 %v3960_v39 }
 0x507   : > { %v3841_v24 = vpop.xlane.xlu0 %3840 }
 0x508   : > { %v3858_v50 = vmul.f32 0.0078125, %v3841_v24 }
 0x50a   : > { %v3874_v37 = vadd.f32 1e-05, %v3858_v50 }
 0x50c   : > { %4888 = vrsqrt.f32 %v3874_v37  ;;  %v4825_v37 = vld [vmem:[#allocation9 + $0x28] sm:$0xff]  }
 0x50d   : > { %4706 = vmatprep.subr.bf16.mxu1 %v4825_v37 }
 0x50e   : > { %4707 = vmatpush3.bf16.msra.mxu1 %v4825_v37 }
 0x516   : > { %v4889_v58 = vpop.eup %4888 }
 0x517   : > { %v3906_v28 = vmul.f32 %v4889_v58, %v8301_v23  ;;  %v8371_v23 = vld [vmem:[%s10040_s16] ss:$0 sm:$0xff]  ;;  %s5176_s16 = sshll.u32 %s5257_s30, 4  ;;  %s5177_s16 = int_to_ptr.vmem [resolvable:$false] %s5176_s16 }
 0x518   : > { %s5178_s12 = scalar_lea.vmem %s5177_s16, 4096  ;;  %p5179_p12 = scmp.lt.s32.totalorder %s8497_s15, %s5177_s16 }
 0x519   : > { %v3929_v8 = vmul.f32 %v8314_v54, %v3906_v28  ;;  %v4826_v28 = vld [vmem:[#allocation9 + $0x30] sm:$0xff]   ;;  %p5180_p1 = scmp.lt.s32.totalorder %s5178_s12, %s5172_s27 }
 0x51a   : > { %4708 = vmatprep.subr.bf16.mxu1 %v4826_v28 }
 0x51b   : > { %v3952_v6 = vadd.f32 %v8321_v35, %v3929_v8  ;;  %4709 = vmatpush3.bf16.msra.mxu1 %v4826_v28  ;;  %p5181_p2 = por %p5180_p1, %p5179_p12 }
 0x51d   : > { %p5182_p4 = pnand %p5181_p2, %p5175_p7 }
 0x527   : > { %v3843_v32 = vpop.xlane.xlu1 %3842 }
 0x528   : > { %v3859_v52 = vmul.f32 0.0078125, %v3843_v32 }
 0x52a   : > { %v3875_v61 = vadd.f32 1e-05, %v3859_v52 }
 0x52c   : > { %4890 = vrsqrt.f32 %v3875_v61 }
 0x536   : > { %v4891_v0 = vpop.eup %4890 }
 0x537   : > { %v3907_v56 = vmul.f32 %v4891_v0, %v8306_v14 }
 0x539   : > { %v3930_v44 = vmul.f32 %v8314_v54, %v3907_v56 }
 0x53b   : > { %v3953_v21 = vadd.f32 %v8321_v35, %v3930_v44 }
 0x53d   : > { %v3961_v29 = vpack.c.bf16 %v3953_v21, %v3952_v6  ;;  %v4827_v6 = vld [vmem:[#allocation9 + $0x38] sm:$0xff]  }
 0x53e   : > { %4710 = vmatprep.subr.bf16.mxu1 %v4827_v6 }
 0x53f   : > { %4693 = vmatmul.mubr.bf16.gmra.mrb[12].mxu0 %v3961_v29  ;;  %4711 = vmatpush3.bf16.msra.mxu1 %v4827_v6 }
 0x586   : > { %v4682_v14 = vpop.f32.mrb[0].mxu0 }
 0x587   : > { %v8374_v49 = vadd.f32 %v4682_v14, %v8371_v23  ;;  %v4067_v13 = vpop.f32.mrb[1].mxu0 }
 0x588   : > { %v8377_v54 = vadd.f32 %v8371_v23, %v4067_v13  ;;  %v4683_v33 = vpop.f32.mrb[2].mxu0 }
 0x589   : > { %v4599_v2 = vmul.f32 -1.442695, %v8374_v49  ;;  %v8381_v35 = vadd.f32 %v4683_v33, %v8371_v23  ;;  %v4070_v31 = vpop.f32.mrb[3].mxu0 }
 0x58a   : > { %v4597_v46 = vmul.f32 -1.442695, %v8377_v54  ;;  %v8385_v5 = vadd.f32 %v8371_v23, %v4070_v31 }
 0x58b   : > { %4892 = vpow2.f32 %v4599_v2  ;;  %v4600_v36 = vmul.f32 -1.442695, %v8381_v35 }
 0x58c   : > { %4894 = vpow2.f32 %v4597_v46  ;;  %v4598_v60 = vmul.f32 -1.442695, %v8385_v5 }
 0x58d   : > { %4896 = vpow2.f32 %v4600_v36 }
 0x58e   : > { %4898 = vpow2.f32 %v4598_v60  ;;  %v4686_v12 = vpop.f32.mrb[4].mxu0 }
 0x58f   : > { %v8390_v25 = vadd.f32 %v4686_v12, %v8371_v23  ;;  %v4083_v43 = vpop.f32.mrb[5].mxu0 }
 0x590   : > { %v8393_v16 = vadd.f32 %v8371_v23, %v4083_v43  ;;  %v4687_v63 = vpop.f32.mrb[6].mxu0 }
 0x591   : > { %v4603_v15 = vmul.f32 -1.442695, %v8390_v25  ;;  %v8397_v41 = vadd.f32 %v4687_v63, %v8371_v23  ;;  %v4086_v40 = vpop.f32.mrb[7].mxu0 }
 0x592   : > { %v4601_v22 = vmul.f32 -1.442695, %v8393_v16  ;;  %v8401_v7 = vadd.f32 %v8371_v23, %v4086_v40 }
 0x593   : > { %4900 = vpow2.f32 %v4603_v15  ;;  %v4604_v53 = vmul.f32 -1.442695, %v8397_v41 }
 0x594   : > { %4902 = vpow2.f32 %v4601_v22  ;;  %v4602_v55 = vmul.f32 -1.442695, %v8401_v7 }
 0x595   : > { %v4893_v62 = vpop.eup %4892  ;;  %4904 = vpow2.f32 %v4604_v53 }
 0x596   : > { %v4895_v59 = vpop.eup %4894  ;;  %v4180_v30 = vadd.f32 1.0, %v4893_v62  ;;  %4906 = vpow2.f32 %v4602_v55  ;;  %v4690_v9 = vpop.f32.mrb[8].mxu0 }
 0x597   : > { %v4897_v19 = vpop.eup %4896  ;;  %v4178_v4 = vadd.f32 1.0, %v4895_v59  ;;  %v8406_v27 = vadd.f32 %v4690_v9, %v8371_v23  ;;  %v4099_v10 = vpop.f32.mrb[9].mxu0 }
 0x598   : > { %v4899_v17 = vpop.eup %4898  ;;  %4908 = vrcp.f32 %v4180_v30  ;;  %v4181_v11 = vadd.f32 1.0, %v4897_v19  ;;  %v8409_v51 = vadd.f32 %v8371_v23, %v4099_v10  ;;  %v4691_v42 = vpop.f32.mrb[10].mxu0 }
 0x599   : > { %4910 = vrcp.f32 %v4178_v4  ;;  %v4179_v47 = vadd.f32 1.0, %v4899_v17  ;;  %v4607_v20 = vmul.f32 -1.442695, %v8406_v27  ;;  %v8413_v38 = vadd.f32 %v4691_v42, %v8371_v23  ;;  %v4102_v45 = vpop.f32.mrb[11].mxu0 }
 0x59a   : > { %4912 = vrcp.f32 %v4181_v11  ;;  %v4605_v1 = vmul.f32 -1.442695, %v8409_v51  ;;  %v8417_v18 = vadd.f32 %v8371_v23, %v4102_v45 }
 0x59b   : > { %4914 = vrcp.f32 %v4179_v47  ;;  %v4608_v39 = vmul.f32 -1.442695, %v8413_v38 }
 0x59c   : > { %4916 = vpow2.f32 %v4607_v20  ;;  %v4606_v24 = vmul.f32 -1.442695, %v8417_v18 }
 0x59d   : > { %v4901_v50 = vpop.eup %4900  ;;  %4918 = vpow2.f32 %v4605_v1 }
 0x59e   : > { %v4903_v3 = vpop.eup %4902  ;;  %v4184_v32 = vadd.f32 1.0, %v4901_v50  ;;  %4920 = vpow2.f32 %v4608_v39 }
 0x59f   : > { %v4905_v52 = vpop.eup %4904  ;;  %v4182_v61 = vadd.f32 1.0, %v4903_v3  ;;  %4922 = vpow2.f32 %v4606_v24 }
 0x5a0   : > { %v4907_v26 = vpop.eup %4906  ;;  %4924 = vrcp.f32 %v4184_v32  ;;  %v4185_v57 = vadd.f32 1.0, %v4905_v52 }
 0x5a1   : > { %4926 = vrcp.f32 %v4182_v61  ;;  %v4183_v58 = vadd.f32 1.0, %v4907_v26 }
 0x5a2   : > { %v4909_v48 = vpop.eup %4908  ;;  %4928 = vrcp.f32 %v4185_v57 }
 0x5a3   : > { %v4911_v0 = vpop.eup %4910  ;;  %4930 = vrcp.f32 %v4183_v58  ;;  %v4228_v34 = vmul.f32 %v4909_v48, %v8374_v49 }
 0x5a4   : > { %v4913_v56 = vpop.eup %4912  ;;  %v4226_v29 = vmul.f32 %v4911_v0, %v8377_v54 }
 0x5a5   : > { %v4915_v8 = vpop.eup %4914  ;;  %v4229_v44 = vmul.f32 %v4913_v56, %v8381_v35 }
 0x5a6   : > { %v4917_v21 = vpop.eup %4916  ;;  %v4227_v14 = vmul.f32 %v4915_v8, %v8385_v5 }
 0x5a7   : > { %v4919_v13 = vpop.eup %4918  ;;  %v4188_v33 = vadd.f32 1.0, %v4917_v21  ;;  %v4243_v2 = vpack.c.bf16 %v4229_v44, %v4228_v34  ;;  %v8440_v44 = vld [vmem:[%s10041_s8] ss:$0 sm:$0xff] }
 0x5a8   : > { %v4921_v31 = vpop.eup %4920  ;;  %v4186_v46 = vadd.f32 1.0, %v4919_v13  ;;  %v4242_v36 = vpack.c.bf16 %v4227_v14, %v4226_v29 }
 0x5a9   : > { %v4923_v60 = vpop.eup %4922  ;;  %4932 = vrcp.f32 %v4188_v33  ;;  %v4189_v12 = vadd.f32 1.0, %v4921_v31  ;;  %v5042_v33 = vld [vmem:[%s5528_s22 + $0x10] sm:$0xff] }
 0x5aa   : > { %v4925_v49 = vpop.eup %4924  ;;  %4934 = vrcp.f32 %v4186_v46  ;;  %v4187_v35 = vadd.f32 1.0, %v4923_v60  ;;  %4712 = vmatprep.mubr.bf16.mxu1 %v4242_v36  ;;  %v5043_v36 = vld [vmem:[%s5528_s22] sm:$0xff] }
 0x5ab   : > { %v4927_v43 = vpop.eup %4926  ;;  %4936 = vrcp.f32 %v4189_v12  ;;  %4713 = vmatmul.mubr.bf16.vlgmr.msra.gmra.mrb[0].mxu1 %v4243_v2  ;;  %v4232_v63 = vmul.f32 %v4925_v49, %v8390_v25  ;;  %v5044_v49 = vld [vmem:[%s5528_s22 + $0x18] sm:$0xff] }
 0x5ac   : > { %v4929_v54 = vpop.eup %4928  ;;  %4938 = vrcp.f32 %v4187_v35  ;;  %v4230_v40 = vmul.f32 %v4927_v43, %v8393_v16  ;;  %v5045_v43 = vld [vmem:[%s5528_s22 + $0x8] sm:$0xff] }
 0x5ad   : > { %v4931_v5 = vpop.eup %4930  ;;  %v4233_v15 = vmul.f32 %v4929_v54, %v8397_v41 }
 0x5ae   : > { %v4231_v22 = vmul.f32 %v4931_v5, %v8401_v7 }
 0x5af   : > { %v4245_v53 = vpack.c.bf16 %v4233_v15, %v4232_v63 }
 0x5b0   : > { %v4244_v55 = vpack.c.bf16 %v4231_v22, %v4230_v40 }
 0x5b2   : > { %4716 = vmatprep.mubr.bf16.mxu1 %v4244_v55 }
 0x5b3   : > { %v4933_v62 = vpop.eup %4932  ;;  %4717 = vmatmul.mubr.bf16.gmra.mrb[4].mxu1 %v4245_v53  ;;  %v5046_v53 = vld [vmem:[%s5528_s22 + $0x30] sm:$0xff] }
 0x5b4   : > { %v4935_v59 = vpop.eup %4934  ;;  %v4236_v19 = vmul.f32 %v4933_v62, %v8406_v27 }
 0x5b5   : > { %v4937_v30 = vpop.eup %4936  ;;  %v4234_v25 = vmul.f32 %v4935_v59, %v8409_v51 }
 0x5b6   : > { %v4939_v9 = vpop.eup %4938  ;;  %v4237_v4 = vmul.f32 %v4937_v30, %v8413_v38  ;;  %v5047_v30 = vld [vmem:[%s5528_s22 + $0x20] sm:$0xff] }
 0x5b7   : > { %v4235_v41 = vmul.f32 %v4939_v9, %v8417_v18 }
 0x5b8   : > { %v4247_v10 = vpack.c.bf16 %v4237_v4, %v4236_v19  ;;  %v5048_v4 = vld [vmem:[%s5528_s22 + $0x38] sm:$0xff] }
 0x5b9   : > { %v4246_v16 = vpack.c.bf16 %v4235_v41, %v4234_v25  ;;  %v5049_v41 = vld [vmem:[%s5528_s22 + $0x28] sm:$0xff] }
 0x5bb   : > { %4720 = vmatprep.mubr.bf16.mxu1 %v4246_v16 }
 0x5bc   : > { %4721 = vmatmul.mubr.bf16.gmra.mrb[8].mxu1 %v4247_v10 }
 0x612   : > { %v4694_v7 = vpop.f32.mrb[12].mxu0 }
 0x613   : > { %v4124_v17 = vadd.f32 %v4694_v7, %v8371_v23  ;;  %v4115_v11 = vpop.f32.mrb[13].mxu0 }
 0x614   : > { %v4116_v42 = vadd.f32 %v8371_v23, %v4115_v11  ;;  %v4695_v47 = vpop.f32.mrb[14].mxu0 }
 0x615   : > { %v4611_v20 = vmul.f32 -1.442695, %v4124_v17  ;;  %v4127_v27 = vadd.f32 %v4695_v47, %v8371_v23  ;;  %v4118_v45 = vpop.f32.mrb[15].mxu0  ;;  %v5050_v47 = vld [vmem:[%s5528_s22 + $0x50] sm:$0xff] }
 0x616   : > { %v4609_v38 = vmul.f32 -1.442695, %v4116_v42  ;;  %v4119_v51 = vadd.f32 %v8371_v23, %v4118_v45 }
 0x617   : > { %4940 = vpow2.f32 %v4611_v20  ;;  %v4612_v1 = vmul.f32 -1.442695, %v4127_v27 }
 0x618   : > { %4942 = vpow2.f32 %v4609_v38  ;;  %v4610_v18 = vmul.f32 -1.442695, %v4119_v51  ;;  %v5051_v38 = vld [vmem:[%s5528_s22 + $0x40] sm:$0xff] }
 0x619   : > { %4944 = vpow2.f32 %v4612_v1 }
 0x61a   : > { %4946 = vpow2.f32 %v4610_v18  ;;  %v5052_v18 = vld [vmem:[%s5528_s22 + $0x58] sm:$0xff] }
 0x621   : > { %v4941_v39 = vpop.eup %4940 }
 0x622   : > { %v4943_v24 = vpop.eup %4942  ;;  %v4192_v50 = vadd.f32 1.0, %v4941_v39 }
 0x623   : > { %v4945_v37 = vpop.eup %4944  ;;  %v4190_v3 = vadd.f32 1.0, %v4943_v24  ;;  %v5053_v24 = vld [vmem:[%s5528_s22 + $0x48] sm:$0xff] }
 0x624   : > { %v4947_v32 = vpop.eup %4946  ;;  %4948 = vrcp.f32 %v4192_v50  ;;  %v4193_v52 = vadd.f32 1.0, %v4945_v37 }
 0x625   : > { %4950 = vrcp.f32 %v4190_v3  ;;  %v4191_v61 = vadd.f32 1.0, %v4947_v32 }
 0x626   : > { %4952 = vrcp.f32 %v4193_v52 }
 0x627   : > { %4954 = vrcp.f32 %v4191_v61 }
 0x62e   : > { %v4949_v26 = vpop.eup %4948 }
 0x62f   : > { %v4951_v23 = vpop.eup %4950  ;;  %v4240_v28 = vmul.f32 %v4949_v26, %v4124_v17  ;;  %v5054_v26 = vld [vmem:[%s5528_s22 + $0x70] sm:$0xff] }
 0x630   : > { %v4953_v57 = vpop.eup %4952  ;;  %v4238_v0 = vmul.f32 %v4951_v23, %v4116_v42 }
 0x631   : > { %v4955_v58 = vpop.eup %4954  ;;  %v4241_v48 = vmul.f32 %v4953_v57, %v4127_v27 }
 0x632   : > { %v4239_v56 = vmul.f32 %v4955_v58, %v4119_v51 }
 0x633   : > { %v4249_v8 = vpack.c.bf16 %v4241_v48, %v4240_v28  ;;  %v5055_v28 = vld [vmem:[%s5528_s22 + $0x60] sm:$0xff] }
 0x634   : > { %v4248_v34 = vpack.c.bf16 %v4239_v56, %v4238_v0  ;;  %v5056_v56 = vld [vmem:[%s5528_s22 + $0x78] sm:$0xff] }
 0x636   : > { %4724 = vmatprep.mubr.bf16.mxu1 %v4248_v34  ;;  %v5057_v34 = vld [vmem:[%s5528_s22 + $0x68] sm:$0xff] }
 0x637   : > { %4725 = vmatmul.mubr.bf16.gmra.mrb[12].mxu1 %v4249_v8 }
 0x67e   : > { %v4714_v6 = vpop.f32.mrb[0].mxu1 }
 0x67f   : > { %v4364_v21 = vadd.f32 %v4714_v6, %v8440_v44  ;;  %v4355_v29 = vpop.f32.mrb[1].mxu1 }
 0x680   : > { %v4356_v14 = vadd.f32 %v8440_v44, %v4355_v29  ;;  %v4715_v13 = vpop.f32.mrb[2].mxu1 }
 0x681   : > { %v4420_v2 = vadd.f32 %v5042_v33, %v4364_v21  ;;  %v4367_v31 = vadd.f32 %v4715_v13, %v8440_v44  ;;  %v4358_v46 = vpop.f32.mrb[3].mxu1 }
 0x682   : > { %v4418_v60 = vadd.f32 %v5043_v36, %v4356_v14  ;;  %v4359_v12 = vadd.f32 %v8440_v44, %v4358_v46 }
 0x683   : > { %4436 = vst [vmem:[%s8450_s10 + $0x10] sm:$0xff] %v4420_v2  ;;  %v4421_v35 = vadd.f32 %v5044_v49, %v4367_v31 }
 0x684   : > { %4434 = vst [vmem:[%s8450_s10] sm:$0xff] %v4418_v60  ;;  %v4419_v54 = vadd.f32 %v5045_v43, %v4359_v12 }
 0x685   : > { %4437 = vst [vmem:[%s8450_s10 + $0x18] sm:$0xff] %v4421_v35 }
 0x686   : > { %4435 = vst [vmem:[%s8450_s10 + $0x8] sm:$0xff] %v4419_v54  ;;  %v4718_v5 = vpop.f32.mrb[4].mxu1 }
 0x687   : > { %v4380_v63 = vadd.f32 %v4718_v5, %v8440_v44  ;;  %v4371_v15 = vpop.f32.mrb[5].mxu1 }
 0x688   : > { %v4372_v40 = vadd.f32 %v8440_v44, %v4371_v15  ;;  %v4719_v22 = vpop.f32.mrb[6].mxu1 }
 0x689   : > { %v4424_v55 = vadd.f32 %v5046_v53, %v4380_v63  ;;  %v4383_v62 = vadd.f32 %v4719_v22, %v8440_v44  ;;  %v4374_v59 = vpop.f32.mrb[7].mxu1 }
 0x68a   : > { %v4422_v9 = vadd.f32 %v5047_v30, %v4372_v40  ;;  %v4375_v19 = vadd.f32 %v8440_v44, %v4374_v59 }
 0x68b   : > { %4440 = vst [vmem:[%s8450_s10 + $0x30] sm:$0xff] %v4424_v55  ;;  %v4425_v25 = vadd.f32 %v5048_v4, %v4383_v62 }
 0x68c   : > { %4438 = vst [vmem:[%s8450_s10 + $0x20] sm:$0xff] %v4422_v9  ;;  %v4423_v10 = vadd.f32 %v5049_v41, %v4375_v19 }
 0x68d   : > { %4441 = vst [vmem:[%s8450_s10 + $0x38] sm:$0xff] %v4425_v25 }
 0x68e   : > { %4439 = vst [vmem:[%s8450_s10 + $0x28] sm:$0xff] %v4423_v10 }
 0x68f   : > { %v4722_v16 = vpop.f32.mrb[8].mxu1 }
 0x690   : > { %v4396_v7 = vadd.f32 %v4722_v16, %v8440_v44  ;;  %v4387_v17 = vpop.f32.mrb[9].mxu1 }
 0x691   : > { %v4388_v11 = vadd.f32 %v8440_v44, %v4387_v17  ;;  %v4723_v42 = vpop.f32.mrb[10].mxu1 }
 0x692   : > { %v4428_v20 = vadd.f32 %v5050_v47, %v4396_v7  ;;  %v4399_v27 = vadd.f32 %v4723_v42, %v8440_v44  ;;  %v4390_v45 = vpop.f32.mrb[11].mxu1 }
 0x693   : > { %v4426_v51 = vadd.f32 %v5051_v38, %v4388_v11  ;;  %v4391_v1 = vadd.f32 %v8440_v44, %v4390_v45 }
 0x694   : > { %4444 = vst [vmem:[%s8450_s10 + $0x50] sm:$0xff] %v4428_v20  ;;  %v4429_v39 = vadd.f32 %v5052_v18, %v4399_v27 }
 0x695   : > { %4442 = vst [vmem:[%s8450_s10 + $0x40] sm:$0xff] %v4426_v51  ;;  %v4427_v50 = vadd.f32 %v5053_v24, %v4391_v1 }
 0x696   : > { %4445 = vst [vmem:[%s8450_s10 + $0x58] sm:$0xff] %v4429_v39 }
 0x697   : > { %4443 = vst [vmem:[%s8450_s10 + $0x48] sm:$0xff] %v4427_v50 }
 0x70a   : > { %v4726_v37 = vpop.f32.mrb[12].mxu1 }
 0x70b   : > { %v4412_v3 = vadd.f32 %v4726_v37, %v8440_v44  ;;  %v4403_v32 = vpop.f32.mrb[13].mxu1 }
 0x70c   : > { %v4404_v52 = vadd.f32 %v8440_v44, %v4403_v32  ;;  %v4727_v61 = vpop.f32.mrb[14].mxu1 }
 0x70d   : > { %v4432_v23 = vadd.f32 %v5054_v26, %v4412_v3  ;;  %v4415_v57 = vadd.f32 %v4727_v61, %v8440_v44  ;;  %v4406_v58 = vpop.f32.mrb[15].mxu1 }
 0x70e   : > { %v4430_v48 = vadd.f32 %v5055_v28, %v4404_v52  ;;  %v4407_v0 = vadd.f32 %v8440_v44, %v4406_v58 }
 0x70f   : > { %4448 = vst [vmem:[%s8450_s10 + $0x70] sm:$0xff] %v4432_v23  ;;  %v4433_v8 = vadd.f32 %v5056_v56, %v4415_v57 }
 0x710   : > { %4446 = vst [vmem:[%s8450_s10 + $0x60] sm:$0xff] %v4430_v48  ;;  %v4431_v6 = vadd.f32 %v5057_v34, %v4407_v0 }
 0x711   : > { %4449 = vst [vmem:[%s8450_s10 + $0x78] sm:$0xff] %v4433_v8 }
 0x712   : > { %4447 = vst [vmem:[%s8450_s10 + $0x68] sm:$0xff] %v4431_v6 }
 0x713   : > { %5185 = shalt.err (!%p5182_p4)
}
 0x714   : > { %s5186_s22 = scalar_lea.hbm %s8495_s29, 2048  ;;  %s5190_s10 = scalar_lea.hbm %s10042_s21, 4096 }
 0x715   : > { %p5187_p9 = scmp.ne.s32.totalorder %s8495_s29, %s5186_s22  ;;  %p5191_p8 = scmp.lt.u32.totalorder %s8495_s29, %s10042_s21 }
 0x716   : > { %p5192_p13 = scmp.lt.u32.totalorder %s5190_s10, %s5186_s22  ;;  %p5194_p10 = scmp.lt.u32.totalorder %s5186_s22, %s8495_s29 }
 0x717   : > { %p5188_p0 = pnand %p5187_p9, %p5474_p5 }
 0x718   : > { %p5193_p6 = por %p5192_p13, %p5191_p8 }
 0x719   : > { %p5189_p11 = pneg %p5188_p0 }
 0x71a   : > { %p5195_p3 = por %p5194_p10, %p5193_p6 }
 0x71c   : > { %p5196_p7 = pnand %p5195_p3, %p5189_p11 }
 0x71e   : > { %5199 = shalt.err (!%p5196_p7)
}
 0x71f   : > { %s5258_s25 = smov 128   ;;  %s5259_s27 = smov 8  }
 0x720   : > { %4742 = dma.vmem_to_hbm [thread:$0]  (%p5474_p5), %s8497_s15, 2048, %s8495_s29, %s4451_s14, %s5258_s25, %s5258_s25, %s5259_s27  }
 0x721 PF: > { %s10043_s30 = sld [smem:[#allocation16_spill]]  ;;  %s10044_s16 = sld [smem:[#allocation17_spill]] }
 0x722   : > { %p10046_p1 = scmp.ge.s32.totalorder %s5246_s20, 2 }
 0x727   : > { %s4480_s12 = sand.u32 1, %s10043_s30   ;;  %p10045_p12 = scmp.ne.s32.totalorder %s10044_s16, 0 }
 0x728   : > { %s4481_s22 = scalar_lea.sflag [#allocation5], %s4480_s12 }
 0x729   : > { %p4759_p2 = pnand %p10046_p1, %p10045_p12 }
 0x72b   : > { %5229 = dma.done.wait (!%p4759_p2), %s4481_s22, 2048  }
 0x72c   : > { %5231 = vsyncadd (!%p4759_p2), %s4481_s22, 4294965248  ;;  %p26_p4 = scmp.ge.s32.totalorder %s5460_s24, 4   ;;  %s10047_s17 = smov %s5238_s18 }
 0x72d   : > { %s10048_s18 = smov %s5242_s19  ;;  %s10049_s19 = smov %s5470_s11 }
 0x72e   : > { %s10050_s20 = smov %s5460_s24  ;;  %28 = sbr.rel (!%p26_p4) target bundleno = 11 (0xb), region = 129 }
 0x735   :  { %4486 = vsyncpa [#allocation4], 1 }
 0x736   :  { %4488 = vsyncpa [#allocation4 + $0x1], 1 }
 0x737   :  { %4489 = vsyncpa [#allocation7], 1 }
 0x738   :  { %4490 = vsyncpa [#allocation10], 1 }
 0x739   :  { %4491 = vsyncpa [#allocation5], 1 }
 0x73a   :  { %4493 = vsyncpa [#allocation5 + $0x1], 1 }

</bundles_post_ra>
